<compile_context>
chip_gen: v6e
topology: v6e:2x2x1
jax: 0.10.0
libtpu: 0.0.40
codegen_flags: <defaults>
</compile_context>

<pallas_src>
import math
import functools

import jax
import jax.numpy as jnp
from jax.experimental import pallas as pl
from jax.experimental.pallas import tpu as pltpu

# ----------------------------- config (small synthetic) -----------------------------
D_MODEL = 32          # DETR uses 256
N_HEADS = 4           # DETR uses 8
HEAD_DIM = D_MODEL // N_HEADS
FFN_DIM = 64          # DETR uses 2048
NUM_ENC = 2
NUM_DEC = 2
NUM_CLASSES = 4       # class_embed replaced with Linear(in_features, num_classes=4)
NUM_QUERIES = 20

_STACK_SEMANTICS = pltpu.CompilerParams(dimension_semantics=("parallel", "arbitrary"))


# ----------------------------- in-kernel helpers -----------------------------
def _ln(x, g, b, eps=1e-5):
    """Single-pass LayerNorm over last dim (PyTorch eps=1e-5). g, b broadcast as (1, D)."""
    mu = jnp.mean(x, axis=-1, keepdims=True)
    ms = jnp.mean(x * x, axis=-1, keepdims=True)
    var = jnp.maximum(ms - mu * mu, 0.0)
    return (x - mu) * jax.lax.rsqrt(var + eps) * g + b


def _mha_accum(q, k, v, wo_bf16, n_heads, head_dim, scale):
    """Multi-head softmax attention with the head merge folded into the out-projection:
    out = sum_h softmax(q_h k_h^T * scale) v_h @ Wo[h*hd:(h+1)*hd, :]
    so there is no lane-axis concat; Wo row slices are 8-sublane aligned.  All
    intermediates stay in vregs/VMEM.  Matmul operands are bf16, accumulation f32."""
    out = None
    for h in range(n_heads):
        sl = slice(h * head_dim, (h + 1) * head_dim)
        qh = q[:, sl].astype(jnp.bfloat16)
        kh = k[:, sl].astype(jnp.bfloat16)
        vh = v[:, sl].astype(jnp.bfloat16)
        s = jnp.einsum('qd,kd->qk', qh, kh, preferred_element_type=jnp.float32) * scale
        s = s - jnp.max(s, axis=-1, keepdims=True)
        p = jnp.exp(s)
        p = p * pl.reciprocal(jnp.sum(p, axis=-1, keepdims=True), approx=True)
        oh = jnp.dot(p.astype(jnp.bfloat16), vh, preferred_element_type=jnp.float32)
        part = jnp.dot(oh.astype(jnp.bfloat16), wo_bf16[sl, :],
                       preferred_element_type=jnp.float32)
        out = part if out is None else out + part
    return out


# ----------------------------- backbone / projection kernels -----------------------------
def _matmul_bias_kernel(x_ref, w_ref, b_ref, o_ref, *, relu):
    acc = jnp.dot(x_ref[...].astype(jnp.bfloat16), w_ref[...],
                  preferred_element_type=jnp.float32) + b_ref[...]
    if relu:
        acc = jnp.maximum(acc, 0.0)
    o_ref[...] = acc.astype(o_ref.dtype)


def pallas_linear(x, w_bf16, b, relu=False):
    """x: (M, K) f32, w: (K, N) bf16, b: (N,) f32 -> (M, N) f32. Single grid step: at
    these shapes everything fits VMEM and extra grid steps only add ~0.35 us each."""
    M, K = x.shape
    N = w_bf16.shape[1]
    return pl.pallas_call(
        functools.partial(_matmul_bias_kernel, relu=relu),
        out_shape=jax.ShapeDtypeStruct((M, N), jnp.float32),
        grid=(1,),
        in_specs=[pl.BlockSpec((M, K), lambda i: (0, 0)),
                  pl.BlockSpec((K, N), lambda i: (0, 0)),
                  pl.BlockSpec((1, N), lambda i: (0, 0))],
        out_specs=pl.BlockSpec((M, N), lambda i: (0, 0)),
    )(x, w_bf16, b.reshape(1, N))


def _conv_proj_kernel(col_ref, w2_ref, b2_ref, wp_ref, bp_ref, o_ref):
    """Fused: second backbone conv (as im2col matmul + ReLU) and input_proj 1x1 conv."""
    h = jnp.dot(col_ref[...].astype(jnp.bfloat16), w2_ref[...],
                preferred_element_type=jnp.float32) + b2_ref[...]
    h = jnp.maximum(h, 0.0)
    o_ref[...] = (jnp.dot(h.astype(jnp.bfloat16), wp_ref[...],
                          preferred_element_type=jnp.float32) + bp_ref[...]).astype(o_ref.dtype)


def conv2_proj(col, w2_bf16, b2, wp_bf16, bp):
    M, K = col.shape
    N1 = w2_bf16.shape[1]
    N2 = wp_bf16.shape[1]
    return pl.pallas_call(
        _conv_proj_kernel,
        out_shape=jax.ShapeDtypeStruct((M, N2), jnp.float32),
        grid=(1,),
        in_specs=[pl.BlockSpec((M, K), lambda i: (0, 0)),
                  pl.BlockSpec((K, N1), lambda i: (0, 0)),
                  pl.BlockSpec((1, N1), lambda i: (0, 0)),
                  pl.BlockSpec((N1, N2), lambda i: (0, 0)),
                  pl.BlockSpec((1, N2), lambda i: (0, 0))],
        out_specs=pl.BlockSpec((M, N2), lambda i: (0, 0)),
    )(col, w2_bf16, b2.reshape(1, N1), wp_bf16, bp.reshape(1, N2))


# ----------------------------- fused encoder stack -----------------------------
def _encoder_stack_kernel(src_ref, pos_ref, wslab_ref, w2_ref, vec_ref, out_ref,
                          *, n_heads, head_dim, scale, d_model, ffn_dim):
    """All encoder layers for one batch element. Grid = (B, NUM_ENC); the output block
    (same index across the layer axis) carries the activation between layer steps."""
    l = pl.program_id(1)
    d = d_model

    @pl.when(l == 0)
    def _():
        out_ref[0] = src_ref[0]            # load the projected features once per batch elem

    x = out_ref[0]                         # (L, D) f32 current activation
    pos = pos_ref[...]                     # (L, D) f32
    wsl = wslab_ref[0]                     # (D, 6D)  bf16  [wq | wk | wv | wo | ffn_w1]
    w2 = w2_ref[0]                         # (FFN, D) bf16
    vec = vec_ref[0]                       # (10, FFN) f32 packed biases / LN params

    bq = vec[0:1, :d]; bk = vec[1:2, :d]; bv = vec[2:3, :d]; bo = vec[3:4, :d]
    b1 = vec[4:5, :ffn_dim]; b2 = vec[5:6, :d]
    ln1g = vec[6:7, :d]; ln1b = vec[7:8, :d]
    ln2g = vec[8:9, :d]; ln2b = vec[9:10, :d]

    # --- self-attention: q = k = src + pos ; v = src ---
    qk_in = (x + pos).astype(jnp.bfloat16)
    xb = x.astype(jnp.bfloat16)
    q = jnp.dot(qk_in, wsl[:, 0:d], preferred_element_type=jnp.float32) + bq
    k = jnp.dot(qk_in, wsl[:, d:2 * d], preferred_element_type=jnp.float32) + bk
    v = jnp.dot(xb, wsl[:, 2 * d:3 * d], preferred_element_type=jnp.float32) + bv
    attn = _mha_accum(q, k, v, wsl[:, 3 * d:4 * d], n_heads, head_dim, scale) + bo
    x = _ln(x + attn, ln1g, ln1b)

    # --- FFN ---
    h = jnp.maximum(jnp.dot(x.astype(jnp.bfloat16), wsl[:, 4 * d:4 * d + ffn_dim],
                            preferred_element_type=jnp.float32) + b1, 0.0)
    h = jnp.dot(h.astype(jnp.bfloat16), w2, preferred_element_type=jnp.float32) + b2
    out_ref[0] = _ln(x + h, ln2g, ln2b)


def encoder_stack(packed, src, pos):
    B, L, D = src.shape
    wslab = packed['enc_wslab']            # (NUM_ENC, D, 6D)   bf16
    w2 = packed['enc_w2']                  # (NUM_ENC, FFN, D)  bf16
    vec = packed['enc_vec']                # (NUM_ENC, 10, FFN) f32
    n_layers = wslab.shape[0]
    return pl.pallas_call(
        functools.partial(_encoder_stack_kernel, n_heads=N_HEADS, head_dim=HEAD_DIM,
                          scale=1.0 / math.sqrt(HEAD_DIM), d_model=D, ffn_dim=FFN_DIM),
        out_shape=jax.ShapeDtypeStruct((B, L, D), jnp.float32),
        grid=(B, n_layers),
        in_specs=[pl.BlockSpec((1, L, D), lambda b, l: (b, 0, 0)),
                  pl.BlockSpec((L, D), lambda b, l: (0, 0)),
                  pl.BlockSpec((1,) + wslab.shape[1:], lambda b, l: (l, 0, 0)),
                  pl.BlockSpec((1,) + w2.shape[1:], lambda b, l: (l, 0, 0)),
                  pl.BlockSpec((1,) + vec.shape[1:], lambda b, l: (l, 0, 0))],
        out_specs=pl.BlockSpec((1, L, D), lambda b, l: (b, 0, 0)),
        compiler_params=_STACK_SEMANTICS,
    )(src, pos, wslab, w2, vec)


# ----------------------------- fused decoder stack + prediction heads -----------------------------
def _decoder_stack_kernel(mem_ref, pos_ref, qpos_ref, wslab_ref, w2_ref, vec_ref,
                          hwa_ref, hwb_ref, hvec_ref,
                          logits_ref, boxes_ref, hid_ref,
                          *, n_heads, head_dim, scale, d_model, ffn_dim, num_classes):
    """All decoder layers + prediction heads for one batch element. Grid = (B, NUM_DEC);
    the decoder hidden state is carried in a VMEM scratch across layer steps; the heads
    run (and the outputs are written) only at the last layer step."""
    l = pl.program_id(1)
    d = d_model

    @pl.when(l == 0)
    def _():
        hid_ref[...] = jnp.zeros_like(hid_ref)    # DETR decoder tgt starts as zeros

    tgt = hid_ref[...]                    # (Q, D) f32
    mem = mem_ref[0]                      # (L, D) f32
    pos = pos_ref[...]                    # (L, D) f32
    qpos = qpos_ref[...]                  # (Q, D) f32
    wsl = wslab_ref[0]                    # (D, 10D) bf16
    w2 = w2_ref[0]                        # (FFN, D) bf16
    vec = vec_ref[0]                      # (16, FFN) f32

    sa_bq = vec[0:1, :d]; sa_bk = vec[1:2, :d]; sa_bv = vec[2:3, :d]; sa_bo = vec[3:4, :d]
    ca_bq = vec[4:5, :d]; ca_bk = vec[5:6, :d]; ca_bv = vec[6:7, :d]; ca_bo = vec[7:8, :d]
    b1 = vec[8:9, :ffn_dim]; b2 = vec[9:10, :d]
    ln1g = vec[10:11, :d]; ln1b = vec[11:12, :d]
    ln2g = vec[12:13, :d]; ln2b = vec[13:14, :d]
    ln3g = vec[14:15, :d]; ln3b = vec[15:16, :d]

    # weight slab columns: [sa_wq|sa_wk|sa_wv|sa_wo|ca_wq|ca_wk|ca_wv|ca_wo|ffn_w1]
    sa_wq = wsl[:, 0:d];         sa_wk = wsl[:, d:2 * d]
    sa_wv = wsl[:, 2 * d:3 * d]; sa_wo = wsl[:, 3 * d:4 * d]
    ca_wq = wsl[:, 4 * d:5 * d]; ca_wk = wsl[:, 5 * d:6 * d]
    ca_wv = wsl[:, 6 * d:7 * d]; ca_wo = wsl[:, 7 * d:8 * d]
    w1 = wsl[:, 8 * d:8 * d + ffn_dim]

    # --- self-attention: q = k = tgt + query_pos ; v = tgt ---
    qk_in = (tgt + qpos).astype(jnp.bfloat16)
    tb = tgt.astype(jnp.bfloat16)
    q = jnp.dot(qk_in, sa_wq, preferred_element_type=jnp.float32) + sa_bq
    k = jnp.dot(qk_in, sa_wk, preferred_element_type=jnp.float32) + sa_bk
    v = jnp.dot(tb, sa_wv, preferred_element_type=jnp.float32) + sa_bv
    sa = _mha_accum(q, k, v, sa_wo, n_heads, head_dim, scale) + sa_bo
    x = _ln(tgt + sa, ln1g, ln1b)

    # --- cross-attention: q = x + query_pos ; k = memory + pos ; v = memory ---
    qx = (x + qpos).astype(jnp.bfloat16)
    km = (mem + pos).astype(jnp.bfloat16)
    mb = mem.astype(jnp.bfloat16)
    q = jnp.dot(qx, ca_wq, preferred_element_type=jnp.float32) + ca_bq
    k = jnp.dot(km, ca_wk, preferred_element_type=jnp.float32) + ca_bk
    v = jnp.dot(mb, ca_wv, preferred_element_type=jnp.float32) + ca_bv
    ca = _mha_accum(q, k, v, ca_wo, n_heads, head_dim, scale) + ca_bo
    y = _ln(x + ca, ln2g, ln2b)

    # --- FFN ---
    h = jnp.maximum(jnp.dot(y.astype(jnp.bfloat16), w1, preferred_element_type=jnp.float32) + b1, 0.0)
    h = jnp.dot(h.astype(jnp.bfloat16), w2, preferred_element_type=jnp.float32) + b2
    out = _ln(y + h, ln3g, ln3b)
    hid_ref[...] = out

    # --- prediction heads, fused into the last layer step ---
    @pl.when(l == pl.num_programs(1) - 1)
    def _():
        hwa = hwa_ref[...]                # (D, D+C) bf16  [bbox_w1 | cls_w]
        hwb = hwb_ref[...]                # (D, D+4) bf16  [bbox_w2 | bbox_w3]
        hvec = hvec_ref[...]              # (5, D+C) f32
        b_a = hvec[0:1, :]                # [bbox_b1 | cls_b]
        b_w2 = hvec[1:2, :d]
        b_w3 = hvec[2:3, :4]
        dng = hvec[3:4, :d]; dnb = hvec[4:5, :d]

        hs = _ln(out, dng, dnb)           # final decoder LayerNorm
        cat = jnp.dot(hs.astype(jnp.bfloat16), hwa,
                      preferred_element_type=jnp.float32) + b_a
        logits_ref[0] = cat[:, d:d + num_classes]               # class_embed (no ReLU)
        hh = jnp.maximum(cat[:, :d], 0.0)                        # bbox MLP layer 1
        hh = jnp.maximum(jnp.dot(hh.astype(jnp.bfloat16), hwb[:, :d],
                                 preferred_element_type=jnp.float32) + b_w2, 0.0)
        boxes_ref[0] = jax.nn.sigmoid(
            jnp.dot(hh.astype(jnp.bfloat16), hwb[:, d:d + 4],
                    preferred_element_type=jnp.float32) + b_w3)


def decoder_stack_and_heads(packed, memory, pos, qpos):
    B, L, D = memory.shape
    Q = qpos.shape[0]
    wslab = packed['dec_wslab']
    w2 = packed['dec_w2']
    vec = packed['dec_vec']
    hwa, hwb, hvec = packed['head_wa'], packed['head_wb'], packed['head_vec']
    n_layers = wslab.shape[0]
    return pl.pallas_call(
        functools.partial(_decoder_stack_kernel, n_heads=N_HEADS, head_dim=HEAD_DIM,
                          scale=1.0 / math.sqrt(HEAD_DIM), d_model=D, ffn_dim=FFN_DIM,
                          num_classes=NUM_CLASSES),
        out_shape=(jax.ShapeDtypeStruct((B, Q, NUM_CLASSES), jnp.float32),
                   jax.ShapeDtypeStruct((B, Q, 4), jnp.float32)),
        grid=(B, n_layers),
        in_specs=[pl.BlockSpec((1, L, D), lambda b, l: (b, 0, 0)),
                  pl.BlockSpec((L, D), lambda b, l: (0, 0)),
                  pl.BlockSpec((Q, D), lambda b, l: (0, 0)),
                  pl.BlockSpec((1,) + wslab.shape[1:], lambda b, l: (l, 0, 0)),
                  pl.BlockSpec((1,) + w2.shape[1:], lambda b, l: (l, 0, 0)),
                  pl.BlockSpec((1,) + vec.shape[1:], lambda b, l: (l, 0, 0)),
                  pl.BlockSpec(hwa.shape, lambda b, l: (0, 0)),
                  pl.BlockSpec(hwb.shape, lambda b, l: (0, 0)),
                  pl.BlockSpec(hvec.shape, lambda b, l: (0, 0))],
        out_specs=(pl.BlockSpec((1, Q, NUM_CLASSES), lambda b, l: (b, 0, 0)),
                   pl.BlockSpec((1, Q, 4), lambda b, l: (b, 0, 0))),
        scratch_shapes=[pltpu.VMEM((Q, D), jnp.float32)],
        compiler_params=_STACK_SEMANTICS,
    )(memory, pos, qpos, wslab, w2, vec, hwa, hwb, hvec)


# ----------------------------- glue (plain JAX) -----------------------------
def _im2col(x_nhwc, kh, kw, stride, padding):
    """NHWC im2col in token order (n, ho, wo) with patch layout (i, j, c)."""
    N, H, W, C = x_nhwc.shape
    xp = jnp.pad(x_nhwc, ((0, 0), (padding, padding), (padding, padding), (0, 0)))
    Ho = (H + 2 * padding - kh) // stride + 1
    Wo = (W + 2 * padding - kw) // stride + 1
    patches = []
    for i in range(kh):
        for j in range(kw):
            patches.append(xp[:, i:i + stride * Ho:stride, j:j + stride * Wo:stride, :])
    col = jnp.concatenate(patches, axis=-1).reshape(N * Ho * Wo, kh * kw * C)
    return col, Ho, Wo


def sine_pos_embed(H, W, d_model):
    """DETR PositionEmbeddingSine (normalize=True, no padding mask) -> (H*W, d_model).
    Fully constant-folded by jit."""
    num_pos_feats = d_model // 2
    temperature = 10000.0
    eps = 1e-6
    scale = 2 * math.pi
    y_embed = jnp.arange(1, H + 1, dtype=jnp.float32)[:, None] * jnp.ones((1, W), jnp.float32)
    x_embed = jnp.arange(1, W + 1, dtype=jnp.float32)[None, :] * jnp.ones((H, 1), jnp.float32)
    y_embed = y_embed / (y_embed[-1:, :] + eps) * scale
    x_embed = x_embed / (x_embed[:, -1:] + eps) * scale
    dim_t = jnp.arange(num_pos_feats, dtype=jnp.float32)
    dim_t = temperature ** (2.0 * (dim_t // 2) / num_pos_feats)
    pos_x = x_embed[:, :, None] / dim_t
    pos_y = y_embed[:, :, None] / dim_t
    pos_x = jnp.stack([jnp.sin(pos_x[:, :, 0::2]), jnp.cos(pos_x[:, :, 1::2])], axis=3).reshape(H, W, -1)
    pos_y = jnp.stack([jnp.sin(pos_y[:, :, 0::2]), jnp.cos(pos_y[:, :, 1::2])], axis=3).reshape(H, W, -1)
    pos = jnp.concatenate([pos_y, pos_x], axis=-1)
    return pos.reshape(H * W, d_model)


def detr_forward(packed, images):
    """images: NCHW (B, 3, H, W) -> {'pred_logits': (B, Q, C), 'pred_boxes': (B, Q, 4)}."""
    B = images.shape[0]
    x = jnp.transpose(images, (0, 2, 3, 1))                        # NCHW -> NHWC once
    # Backbone (simplified stand-in for pretrained ResNet-50; synthetic weights).
    col1, H1, W1 = _im2col(x, 3, 3, stride=2, padding=1)
    f1 = pallas_linear(col1, packed['bb1_w'], packed['bb1_b'], relu=True)
    f1 = f1.reshape(B, H1, W1, -1)
    # Second conv + input_proj (1x1 conv) fused in one kernel.
    col2, H2, W2 = _im2col(f1, 3, 3, stride=2, padding=1)
    src = conv2_proj(col2, packed['bb2_w'], packed['bb2_b'],
                     packed['proj_w'], packed['proj_b'])
    L = H2 * W2
    src = src.reshape(B, L, D_MODEL)
    pos = sine_pos_embed(H2, W2, D_MODEL)                          # (L, D), constant

    memory = encoder_stack(packed, src, pos)                       # 1 pallas_call, all layers
    logits, boxes = decoder_stack_and_heads(packed, memory, pos,
                                            packed['query_embed'])  # 1 pallas_call
    return {'pred_logits': logits, 'pred_boxes': boxes}


# ----------------------------- parameter init + packing -----------------------------
def _init_linear(key, din, dout):
    k1, k2 = jax.random.split(key)
    return (jax.random.normal(k1, (din, dout), jnp.float32) * 0.02,
            jax.random.normal(k2, (dout,), jnp.float32) * 0.02)


def _ones(d):
    return jnp.ones((d,), jnp.float32)


def _zeros(d):
    return jnp.zeros((d,), jnp.float32)


def _init_enc_layer(key):
    ks = jax.random.split(key, 6)
    wq, bq = _init_linear(ks[0], D_MODEL, D_MODEL)
    wk, bk = _init_linear(ks[1], D_MODEL, D_MODEL)
    wv, bv = _init_linear(ks[2], D_MODEL, D_MODEL)
    wo, bo = _init_linear(ks[3], D_MODEL, D_MODEL)
    w1, b1 = _init_linear(ks[4], D_MODEL, FFN_DIM)
    w2, b2 = _init_linear(ks[5], FFN_DIM, D_MODEL)
    return dict(wq=wq, bq=bq, wk=wk, bk=bk, wv=wv, bv=bv, wo=wo, bo=bo,
                ffn_w1=w1, ffn_b1=b1, ffn_w2=w2, ffn_b2=b2,
                ln1_g=_ones(D_MODEL), ln1_b=_zeros(D_MODEL),
                ln2_g=_ones(D_MODEL), ln2_b=_zeros(D_MODEL))


def _init_dec_layer(key):
    ks = jax.random.split(key, 10)
    sa_wq, sa_bq = _init_linear(ks[0], D_MODEL, D_MODEL)
    sa_wk, sa_bk = _init_linear(ks[1], D_MODEL, D_MODEL)
    sa_wv, sa_bv = _init_linear(ks[2], D_MODEL, D_MODEL)
    sa_wo, sa_bo = _init_linear(ks[3], D_MODEL, D_MODEL)
    ca_wq, ca_bq = _init_linear(ks[4], D_MODEL, D_MODEL)
    ca_wk, ca_bk = _init_linear(ks[5], D_MODEL, D_MODEL)
    ca_wv, ca_bv = _init_linear(ks[6], D_MODEL, D_MODEL)
    ca_wo, ca_bo = _init_linear(ks[7], D_MODEL, D_MODEL)
    w1, b1 = _init_linear(ks[8], D_MODEL, FFN_DIM)
    w2, b2 = _init_linear(ks[9], FFN_DIM, D_MODEL)
    return dict(sa_wq=sa_wq, sa_bq=sa_bq, sa_wk=sa_wk, sa_bk=sa_bk,
                sa_wv=sa_wv, sa_bv=sa_bv, sa_wo=sa_wo, sa_bo=sa_bo,
                ca_wq=ca_wq, ca_bq=ca_bq, ca_wk=ca_wk, ca_bk=ca_bk,
                ca_wv=ca_wv, ca_bv=ca_bv, ca_wo=ca_wo, ca_bo=ca_bo,
                ffn_w1=w1, ffn_b1=b1, ffn_w2=w2, ffn_b2=b2,
                ln1_g=_ones(D_MODEL), ln1_b=_zeros(D_MODEL),
                ln2_g=_ones(D_MODEL), ln2_b=_zeros(D_MODEL),
                ln3_g=_ones(D_MODEL), ln3_b=_zeros(D_MODEL))


def init_params(key):
    ks = jax.random.split(key, 10)
    p = {}
    p['bb1_w'] = jax.random.normal(ks[0], (16, 3, 3, 3), jnp.float32) * 0.05   # (Cout,Cin,kh,kw)
    p['bb1_b'] = _zeros(16)
    p['bb2_w'] = jax.random.normal(ks[1], (64, 16, 3, 3), jnp.float32) * 0.05
    p['bb2_b'] = _zeros(64)
    p['proj_w'], p['proj_b'] = _init_linear(ks[2], 64, D_MODEL)
    p['enc_layers'] = [_init_enc_layer(k) for k in jax.random.split(ks[3], NUM_ENC)]
    p['dec_layers'] = [_init_dec_layer(k) for k in jax.random.split(ks[4], NUM_DEC)]
    p['dec_norm_g'] = _ones(D_MODEL)
    p['dec_norm_b'] = _zeros(D_MODEL)
    p['query_embed'] = jax.random.normal(ks[5], (NUM_QUERIES, D_MODEL), jnp.float32)
    p['cls_w'], p['cls_b'] = _init_linear(ks[6], D_MODEL, NUM_CLASSES)
    p['bbox_w1'], p['bbox_b1'] = _init_linear(ks[7], D_MODEL, D_MODEL)
    p['bbox_w2'], p['bbox_b2'] = _init_linear(ks[8], D_MODEL, D_MODEL)
    p['bbox_w3'], p['bbox_b3'] = _init_linear(ks[9], D_MODEL, 4)
    return p


def _pack_rows(vectors, width):
    """Pack 1D parameter vectors as rows of a (n, width) f32 slab (zero-padded)."""
    rows = []
    for v in vectors:
        v = v.reshape(1, -1).astype(jnp.float32)
        pad = width - v.shape[1]
        if pad:
            v = jnp.pad(v, ((0, 0), (0, pad)))
        rows.append(v)
    return jnp.concatenate(rows, axis=0)


def pack_params(p):
    """One-time packing of PyTorch-layout params into the stacked / concatenated slabs the
    fused kernels consume (weights bf16, bias/LN slabs f32). Done once outside jit."""
    packed = {}
    # backbone conv weights in im2col layout (kh, kw, Cin, Cout) flattened to (K, Cout)
    packed['bb1_w'] = p['bb1_w'].transpose(2, 3, 1, 0).reshape(-1, p['bb1_w'].shape[0]).astype(jnp.bfloat16)
    packed['bb1_b'] = p['bb1_b']
    packed['bb2_w'] = p['bb2_w'].transpose(2, 3, 1, 0).reshape(-1, p['bb2_w'].shape[0]).astype(jnp.bfloat16)
    packed['bb2_b'] = p['bb2_b']
    packed['proj_w'] = p['proj_w'].astype(jnp.bfloat16)
    packed['proj_b'] = p['proj_b']

    enc_wslab, enc_w2, enc_vec = [], [], []
    for lp in p['enc_layers']:
        enc_wslab.append(jnp.concatenate(
            [lp['wq'], lp['wk'], lp['wv'], lp['wo'], lp['ffn_w1']], axis=1))
        enc_w2.append(lp['ffn_w2'])
        enc_vec.append(_pack_rows([lp['bq'], lp['bk'], lp['bv'], lp['bo'],
                                   lp['ffn_b1'], lp['ffn_b2'],
                                   lp['ln1_g'], lp['ln1_b'],
                                   lp['ln2_g'], lp['ln2_b']], FFN_DIM))
    packed['enc_wslab'] = jnp.stack(enc_wslab).astype(jnp.bfloat16)   # (NE, D, 6D)
    packed['enc_w2'] = jnp.stack(enc_w2).astype(jnp.bfloat16)         # (NE, FFN, D)
    packed['enc_vec'] = jnp.stack(enc_vec)                            # (NE, 10, FFN)

    dec_wslab, dec_w2, dec_vec = [], [], []
    for lp in p['dec_layers']:
        dec_wslab.append(jnp.concatenate(
            [lp['sa_wq'], lp['sa_wk'], lp['sa_wv'], lp['sa_wo'],
             lp['ca_wq'], lp['ca_wk'], lp['ca_wv'], lp['ca_wo'], lp['ffn_w1']], axis=1))
        dec_w2.append(lp['ffn_w2'])
        dec_vec.append(_pack_rows([lp['sa_bq'], lp['sa_bk'], lp['sa_bv'], lp['sa_bo'],
                                   lp['ca_bq'], lp['ca_bk'], lp['ca_bv'], lp['ca_bo'],
                                   lp['ffn_b1'], lp['ffn_b2'],
                                   lp['ln1_g'], lp['ln1_b'],
                                   lp['ln2_g'], lp['ln2_b'],
                                   lp['ln3_g'], lp['ln3_b']], FFN_DIM))
    packed['dec_wslab'] = jnp.stack(dec_wslab).astype(jnp.bfloat16)   # (ND, D, 10D)
    packed['dec_w2'] = jnp.stack(dec_w2).astype(jnp.bfloat16)         # (ND, FFN, D)
    packed['dec_vec'] = jnp.stack(dec_vec)                            # (ND, 16, FFN)

    # Prediction heads: [bbox_w1 | cls_w] so the relu'd bbox path starts at lane 0.
    packed['head_wa'] = jnp.concatenate([p['bbox_w1'], p['cls_w']], axis=1).astype(jnp.bfloat16)
    packed['head_wb'] = jnp.concatenate([p['bbox_w2'], p['bbox_w3']], axis=1).astype(jnp.bfloat16)
    packed['head_vec'] = _pack_rows([jnp.concatenate([p['bbox_b1'], p['cls_b']]),
                                     p['bbox_b2'], p['bbox_b3'],
                                     p['dec_norm_g'], p['dec_norm_b']],
                                    D_MODEL + NUM_CLASSES)
    packed['query_embed'] = p['query_embed']
    return packed


if __name__ == "__main__":
    key = jax.random.PRNGKey(0)
    pkey, xkey = jax.random.split(key)
    params = init_params(pkey)
    packed = pack_params(params)
    images = jax.random.normal(xkey, (2, 3, 32, 32), jnp.float32)   # NCHW like PyTorch
    out = jax.jit(detr_forward)(packed, images)
    out = jax.block_until_ready(out)
    assert out['pred_logits'].shape == (2, NUM_QUERIES, NUM_CLASSES)
    assert out['pred_boxes'].shape == (2, NUM_QUERIES, 4)
    assert bool(jnp.all(jnp.isfinite(out['pred_logits'])))
    assert bool(jnp.all(jnp.isfinite(out['pred_boxes'])))
    assert bool(jnp.all((out['pred_boxes'] >= 0) & (out['pred_boxes'] <= 1)))
    print("KERNEL_OK")
</pallas_src>

<mosaic_0001>
module attributes {stable_mosaic.version = 11 : i64} {
  func.func @_matmul_bias_kernel(%arg0: i32, %arg1: memref<512x27xf32, #tpu.memory_space<vmem>>, %arg2: memref<27x16xbf16, #tpu.memory_space<vmem>>, %arg3: memref<1x16xf32, #tpu.memory_space<vmem>>, %arg4: memref<512x16xf32, #tpu.memory_space<vmem>>) attributes {dimension_semantics = [#tpu.dimension_semantics<arbitrary>], iteration_bounds = array<i64: 1>, scalar_prefetch = 0 : i64, scratch_operands = 0 : i64, tpu.core_type = #tpu.core_type<tc>, window_params = [{pipeline_mode = #tpu.pipeline_mode<synchronous>, transform_indices = @transform_0, window_bounds = array<i64: 512, 27>}, {pipeline_mode = #tpu.pipeline_mode<synchronous>, transform_indices = @transform_1, window_bounds = array<i64: 27, 16>}, {pipeline_mode = #tpu.pipeline_mode<synchronous>, transform_indices = @transform_2, window_bounds = array<i64: 1, 16>}, {pipeline_mode = #tpu.pipeline_mode<synchronous>, transform_indices = @transform_3, window_bounds = array<i64: 512, 16>}]} {
    %c0 = arith.constant 0 : index
    %c0_0 = arith.constant 0 : index
    %0 = vector.load %arg1[%c0, %c0_0] : memref<512x27xf32, #tpu.memory_space<vmem>>, vector<512x27xf32>
    %1 = arith.truncf %0 : vector<512x27xf32> to vector<512x27xbf16>
    %c0_1 = arith.constant 0 : index
    %c0_2 = arith.constant 0 : index
    %2 = vector.load %arg2[%c0_1, %c0_2] : memref<27x16xbf16, #tpu.memory_space<vmem>>, vector<27x16xbf16>
    %cst = arith.constant dense<0.000000e+00> : vector<512x16xf32>
    %3 = tpu.matmul %1, %2, %cst {dimension_numbers = #tpu.dot_dimension_numbers<[1], [0], [0], [1], [0, 0, 1, 1], [], []>} : vector<512x27xbf16>, vector<27x16xbf16>, vector<512x16xf32> -> vector<512x16xf32>
    %c0_3 = arith.constant 0 : index
    %c0_4 = arith.constant 0 : index
    %4 = vector.load %arg3[%c0_3, %c0_4] : memref<1x16xf32, #tpu.memory_space<vmem>>, vector<1x16xf32>
    %5 = vector.broadcast %4 : vector<1x16xf32> to vector<512x16xf32>
    %6 = arith.addf %3, %5 : vector<512x16xf32>
    %cst_5 = arith.constant 0.000000e+00 : f32
    %7 = vector.broadcast %cst_5 : f32 to vector<512x16xf32>
    %8 = arith.maximumf %6, %7 : vector<512x16xf32>
    %c0_6 = arith.constant 0 : index
    %c0_7 = arith.constant 0 : index
    %9 = vector.load %arg4[%c0_6, %c0_7] : memref<512x16xf32, #tpu.memory_space<vmem>>, vector<512x16xf32>
    tpu.vector_store %arg4[%c0_6, %c0_7], %8 {strides = array<i32>} : memref<512x16xf32, #tpu.memory_space<vmem>>, vector<512x16xf32>,
    return
  }
  func.func @transform_0(%arg0: i32) -> (i32, i32) {
    %c0_i32 = arith.constant 0 : i32
    %c0_i32_0 = arith.constant 0 : i32
    %c0_i32_1 = arith.constant 0 : i32
    return %c0_i32, %c0_i32_0 : i32, i32
  }
  func.func @transform_1(%arg0: i32) -> (i32, i32) {
    %c0_i32 = arith.constant 0 : i32
    %c0_i32_0 = arith.constant 0 : i32
    %c0_i32_1 = arith.constant 0 : i32
    return %c0_i32, %c0_i32_0 : i32, i32
  }
  func.func @transform_2(%arg0: i32) -> (i32, i32) {
    %c0_i32 = arith.constant 0 : i32
    %c0_i32_0 = arith.constant 0 : i32
    %c0_i32_1 = arith.constant 0 : i32
    return %c0_i32, %c0_i32_0 : i32, i32
  }
  func.func @transform_3(%arg0: i32) -> (i32, i32) {
    %c0_i32 = arith.constant 0 : i32
    %c0_i32_0 = arith.constant 0 : i32
    %c0_i32_1 = arith.constant 0 : i32
    return %c0_i32, %c0_i32_0 : i32, i32
  }
}

module attributes {stable_mosaic.version = 11 : i64} {
  func.func @_conv_proj_kernel(%arg0: i32, %arg1: memref<128x144xf32, #tpu.memory_space<vmem>>, %arg2: memref<144x64xbf16, #tpu.memory_space<vmem>>, %arg3: memref<1x64xf32, #tpu.memory_space<vmem>>, %arg4: memref<64x32xbf16, #tpu.memory_space<vmem>>, %arg5: memref<1x32xf32, #tpu.memory_space<vmem>>, %arg6: memref<128x32xf32, #tpu.memory_space<vmem>>) attributes {dimension_semantics = [#tpu.dimension_semantics<arbitrary>], iteration_bounds = array<i64: 1>, scalar_prefetch = 0 : i64, scratch_operands = 0 : i64, tpu.core_type = #tpu.core_type<tc>, window_params = [{pipeline_mode = #tpu.pipeline_mode<synchronous>, transform_indices = @transform_0, window_bounds = array<i64: 128, 144>}, {pipeline_mode = #tpu.pipeline_mode<synchronous>, transform_indices = @transform_1, window_bounds = array<i64: 144, 64>}, {pipeline_mode = #tpu.pipeline_mode<synchronous>, transform_indices = @transform_2, window_bounds = array<i64: 1, 64>}, {pipeline_mode = #tpu.pipeline_mode<synchronous>, transform_indices = @transform_3, window_bounds = array<i64: 64, 32>}, {pipeline_mode = #tpu.pipeline_mode<synchronous>, transform_indices = @transform_4, window_bounds = array<i64: 1, 32>}, {pipeline_mode = #tpu.pipeline_mode<synchronous>, transform_indices = @transform_5, window_bounds = array<i64: 128, 32>}]} {
    %c0 = arith.constant 0 : index
    %c0_0 = arith.constant 0 : index
    %0 = vector.load %arg1[%c0, %c0_0] : memref<128x144xf32, #tpu.memory_space<vmem>>, vector<128x144xf32>
    %1 = arith.truncf %0 : vector<128x144xf32> to vector<128x144xbf16>
    %c0_1 = arith.constant 0 : index
    %c0_2 = arith.constant 0 : index
    %2 = vector.load %arg2[%c0_1, %c0_2] : memref<144x64xbf16, #tpu.memory_space<vmem>>, vector<144x64xbf16>
    %cst = arith.constant dense<0.000000e+00> : vector<128x64xf32>
    %3 = tpu.matmul %1, %2, %cst {dimension_numbers = #tpu.dot_dimension_numbers<[1], [0], [0], [1], [0, 0, 1, 1], [], []>} : vector<128x144xbf16>, vector<144x64xbf16>, vector<128x64xf32> -> vector<128x64xf32>
    %c0_3 = arith.constant 0 : index
    %c0_4 = arith.constant 0 : index
    %4 = vector.load %arg3[%c0_3, %c0_4] : memref<1x64xf32, #tpu.memory_space<vmem>>, vector<1x64xf32>
    %5 = vector.broadcast %4 : vector<1x64xf32> to vector<128x64xf32>
    %6 = arith.addf %3, %5 : vector<128x64xf32>
    %cst_5 = arith.constant 0.000000e+00 : f32
    %7 = vector.broadcast %cst_5 : f32 to vector<128x64xf32>
    %8 = arith.maximumf %6, %7 : vector<128x64xf32>
    %9 = arith.truncf %8 : vector<128x64xf32> to vector<128x64xbf16>
    %c0_6 = arith.constant 0 : index
    %c0_7 = arith.constant 0 : index
    %10 = vector.load %arg4[%c0_6, %c0_7] : memref<64x32xbf16, #tpu.memory_space<vmem>>, vector<64x32xbf16>
    %cst_8 = arith.constant dense<0.000000e+00> : vector<128x32xf32>
    %11 = tpu.matmul %9, %10, %cst_8 {dimension_numbers = #tpu.dot_dimension_numbers<[1], [0], [0], [1], [0, 0, 1, 1], [], []>} : vector<128x64xbf16>, vector<64x32xbf16>, vector<128x32xf32> -> vector<128x32xf32>
    %c0_9 = arith.constant 0 : index
    %c0_10 = arith.constant 0 : index
    %12 = vector.load %arg5[%c0_9, %c0_10] : memref<1x32xf32, #tpu.memory_space<vmem>>, vector<1x32xf32>
    %13 = vector.broadcast %12 : vector<1x32xf32> to vector<128x32xf32>
    %14 = arith.addf %11, %13 : vector<128x32xf32>
    %c0_11 = arith.constant 0 : index
    %c0_12 = arith.constant 0 : index
    %15 = vector.load %arg6[%c0_11, %c0_12] : memref<128x32xf32, #tpu.memory_space<vmem>>, vector<128x32xf32>
    tpu.vector_store %arg6[%c0_11, %c0_12], %14 {strides = array<i32>} : memref<128x32xf32, #tpu.memory_space<vmem>>, vector<128x32xf32>,
    return
  }
  func.func @transform_0(%arg0: i32) -> (i32, i32) {
    %c0_i32 = arith.constant 0 : i32
    %c0_i32_0 = arith.constant 0 : i32
    %c0_i32_1 = arith.constant 0 : i32
    return %c0_i32, %c0_i32_0 : i32, i32
  }
  func.func @transform_1(%arg0: i32) -> (i32, i32) {
    %c0_i32 = arith.constant 0 : i32
    %c0_i32_0 = arith.constant 0 : i32
    %c0_i32_1 = arith.constant 0 : i32
    return %c0_i32, %c0_i32_0 : i32, i32
  }
  func.func @transform_2(%arg0: i32) -> (i32, i32) {
    %c0_i32 = arith.constant 0 : i32
    %c0_i32_0 = arith.constant 0 : i32
    %c0_i32_1 = arith.constant 0 : i32
    return %c0_i32, %c0_i32_0 : i32, i32
  }
  func.func @transform_3(%arg0: i32) -> (i32, i32) {
    %c0_i32 = arith.constant 0 : i32
    %c0_i32_0 = arith.constant 0 : i32
    %c0_i32_1 = arith.constant 0 : i32
    return %c0_i32, %c0_i32_0 : i32, i32
  }
  func.func @transform_4(%arg0: i32) -> (i32, i32) {
    %c0_i32 = arith.constant 0 : i32
    %c0_i32_0 = arith.constant 0 : i32
    %c0_i32_1 = arith.constant 0 : i32
    return %c0_i32, %c0_i32_0 : i32, i32
  }
  func.func @transform_5(%arg0: i32) -> (i32, i32) {
    %c0_i32 = arith.constant 0 : i32
    %c0_i32_0 = arith.constant 0 : i32
    %c0_i32_1 = arith.constant 0 : i32
    return %c0_i32, %c0_i32_0 : i32, i32
  }
}

module attributes {stable_mosaic.version = 11 : i64} {
  func.func @_encoder_stack_kernel(%arg0: i32, %arg1: i32, %arg2: memref<1x64x32xf32, #tpu.memory_space<vmem>>, %arg3: memref<64x32xf32, #tpu.memory_space<vmem>>, %arg4: memref<1x32x192xbf16, #tpu.memory_space<vmem>>, %arg5: memref<1x64x32xbf16, #tpu.memory_space<vmem>>, %arg6: memref<1x10x64xf32, #tpu.memory_space<vmem>>, %arg7: memref<1x64x32xf32, #tpu.memory_space<vmem>>) attributes {dimension_semantics = [#tpu.dimension_semantics<parallel>, #tpu.dimension_semantics<arbitrary>], iteration_bounds = array<i64: 2, 2>, scalar_prefetch = 0 : i64, scratch_operands = 0 : i64, tpu.core_type = #tpu.core_type<tc>, window_params = [{transform_indices = @transform_0, window_bounds = array<i64: 1, 64, 32>}, {pipeline_mode = #tpu.pipeline_mode<synchronous>, transform_indices = @transform_1, window_bounds = array<i64: 64, 32>}, {transform_indices = @transform_2, window_bounds = array<i64: 1, 32, 192>}, {transform_indices = @transform_3, window_bounds = array<i64: 1, 64, 32>}, {transform_indices = @transform_4, window_bounds = array<i64: 1, 10, 64>}, {transform_indices = @transform_5, window_bounds = array<i64: 1, 64, 32>}]} {
    %c0_i32 = arith.constant 0 : i32
    %0 = arith.cmpi eq, %arg1, %c0_i32 : i32
    %1 = arith.extui %0 : i1 to i32
    %c0_i32_0 = arith.constant 0 : i32
    %2 = arith.cmpi ne, %1, %c0_i32_0 : i32
    scf.if %2 {
      %c0_58 = arith.constant 0 : index
      %c0_59 = arith.constant 0 : index
      %c0_60 = arith.constant 0 : index
      %203 = vector.load %arg2[%c0_58, %c0_59, %c0_60] : memref<1x64x32xf32, #tpu.memory_space<vmem>>, vector<1x64x32xf32>
      %204 = vector.shape_cast %203 : vector<1x64x32xf32> to vector<64x32xf32>
      %c0_61 = arith.constant 0 : index
      %c0_62 = arith.constant 0 : index
      %c0_63 = arith.constant 0 : index
      %205 = vector.load %arg7[%c0_61, %c0_62, %c0_63] : memref<1x64x32xf32, #tpu.memory_space<vmem>>, vector<1x64x32xf32>
      %206 = vector.shape_cast %205 : vector<1x64x32xf32> to vector<64x32xf32>
      %207 = vector.shape_cast %204 : vector<64x32xf32> to vector<1x64x32xf32>
      tpu.vector_store %arg7[%c0_61, %c0_62, %c0_63], %207 {strides = array<i32>} : memref<1x64x32xf32, #tpu.memory_space<vmem>>, vector<1x64x32xf32>,
    } else {
    }
    %c0 = arith.constant 0 : index
    %c0_1 = arith.constant 0 : index
    %c0_2 = arith.constant 0 : index
    %3 = vector.load %arg7[%c0, %c0_1, %c0_2] : memref<1x64x32xf32, #tpu.memory_space<vmem>>, vector<1x64x32xf32>
    %4 = vector.shape_cast %3 : vector<1x64x32xf32> to vector<64x32xf32>
    %c0_3 = arith.constant 0 : index
    %c0_4 = arith.constant 0 : index
    %5 = vector.load %arg3[%c0_3, %c0_4] : memref<64x32xf32, #tpu.memory_space<vmem>>, vector<64x32xf32>
    %c0_5 = arith.constant 0 : index
    %c0_6 = arith.constant 0 : index
    %c0_7 = arith.constant 0 : index
    %6 = vector.load %arg4[%c0_5, %c0_6, %c0_7] : memref<1x32x192xbf16, #tpu.memory_space<vmem>>, vector<1x32x192xbf16>
    %7 = vector.shape_cast %6 : vector<1x32x192xbf16> to vector<32x192xbf16>
    %c0_8 = arith.constant 0 : index
    %c0_9 = arith.constant 0 : index
    %c0_10 = arith.constant 0 : index
    %8 = vector.load %arg5[%c0_8, %c0_9, %c0_10] : memref<1x64x32xbf16, #tpu.memory_space<vmem>>, vector<1x64x32xbf16>
    %9 = vector.shape_cast %8 : vector<1x64x32xbf16> to vector<64x32xbf16>
    %c0_11 = arith.constant 0 : index
    %c0_12 = arith.constant 0 : index
    %c0_13 = arith.constant 0 : index
    %10 = vector.load %arg6[%c0_11, %c0_12, %c0_13] : memref<1x10x64xf32, #tpu.memory_space<vmem>>, vector<1x10x64xf32>
    %11 = vector.shape_cast %10 : vector<1x10x64xf32> to vector<10x64xf32>
    %12 = vector.extract_strided_slice %11 {offsets = [0, 0], sizes = [1, 32], strides = [1, 1]} : vector<10x64xf32> to vector<1x32xf32>
    %13 = vector.extract_strided_slice %11 {offsets = [1, 0], sizes = [1, 32], strides = [1, 1]} : vector<10x64xf32> to vector<1x32xf32>
    %14 = vector.extract_strided_slice %11 {offsets = [2, 0], sizes = [1, 32], strides = [1, 1]} : vector<10x64xf32> to vector<1x32xf32>
    %15 = vector.extract_strided_slice %11 {offsets = [3, 0], sizes = [1, 32], strides = [1, 1]} : vector<10x64xf32> to vector<1x32xf32>
    %16 = vector.extract_strided_slice %11 {offsets = [4, 0], sizes = [1, 64], strides = [1, 1]} : vector<10x64xf32> to vector<1x64xf32>
    %17 = vector.extract_strided_slice %11 {offsets = [5, 0], sizes = [1, 32], strides = [1, 1]} : vector<10x64xf32> to vector<1x32xf32>
    %18 = vector.extract_strided_slice %11 {offsets = [6, 0], sizes = [1, 32], strides = [1, 1]} : vector<10x64xf32> to vector<1x32xf32>
    %19 = vector.extract_strided_slice %11 {offsets = [7, 0], sizes = [1, 32], strides = [1, 1]} : vector<10x64xf32> to vector<1x32xf32>
    %20 = vector.extract_strided_slice %11 {offsets = [8, 0], sizes = [1, 32], strides = [1, 1]} : vector<10x64xf32> to vector<1x32xf32>
    %21 = vector.extract_strided_slice %11 {offsets = [9, 0], sizes = [1, 32], strides = [1, 1]} : vector<10x64xf32> to vector<1x32xf32>
    %22 = arith.addf %4, %5 : vector<64x32xf32>
    %23 = arith.truncf %22 : vector<64x32xf32> to vector<64x32xbf16>
    %24 = arith.truncf %4 : vector<64x32xf32> to vector<64x32xbf16>
    %25 = vector.extract_strided_slice %7 {offsets = [0, 0], sizes = [32, 32], strides = [1, 1]} : vector<32x192xbf16> to vector<32x32xbf16>
    %cst = arith.constant dense<0.000000e+00> : vector<64x32xf32>
    %26 = tpu.matmul %23, %25, %cst {dimension_numbers = #tpu.dot_dimension_numbers<[1], [0], [0], [1], [0, 0, 1, 1], [], []>} : vector<64x32xbf16>, vector<32x32xbf16>, vector<64x32xf32> -> vector<64x32xf32>
    %27 = vector.broadcast %12 : vector<1x32xf32> to vector<64x32xf32>
    %28 = arith.addf %26, %27 : vector<64x32xf32>
    %29 = vector.extract_strided_slice %7 {offsets = [0, 32], sizes = [32, 32], strides = [1, 1]} : vector<32x192xbf16> to vector<32x32xbf16>
    %cst_14 = arith.constant dense<0.000000e+00> : vector<64x32xf32>
    %30 = tpu.matmul %23, %29, %cst_14 {dimension_numbers = #tpu.dot_dimension_numbers<[1], [0], [0], [1], [0, 0, 1, 1], [], []>} : vector<64x32xbf16>, vector<32x32xbf16>, vector<64x32xf32> -> vector<64x32xf32>
    %31 = vector.broadcast %13 : vector<1x32xf32> to vector<64x32xf32>
    %32 = arith.addf %30, %31 : vector<64x32xf32>
    %33 = vector.extract_strided_slice %7 {offsets = [0, 64], sizes = [32, 32], strides = [1, 1]} : vector<32x192xbf16> to vector<32x32xbf16>
    %cst_15 = arith.constant dense<0.000000e+00> : vector<64x32xf32>
    %34 = tpu.matmul %24, %33, %cst_15 {dimension_numbers = #tpu.dot_dimension_numbers<[1], [0], [0], [1], [0, 0, 1, 1], [], []>} : vector<64x32xbf16>, vector<32x32xbf16>, vector<64x32xf32> -> vector<64x32xf32>
    %35 = vector.broadcast %14 : vector<1x32xf32> to vector<64x32xf32>
    %36 = arith.addf %34, %35 : vector<64x32xf32>
    %37 = vector.extract_strided_slice %7 {offsets = [0, 96], sizes = [32, 32], strides = [1, 1]} : vector<32x192xbf16> to vector<32x32xbf16>
    %38 = vector.extract_strided_slice %28 {offsets = [0, 0], sizes = [64, 8], strides = [1, 1]} : vector<64x32xf32> to vector<64x8xf32>
    %39 = arith.truncf %38 : vector<64x8xf32> to vector<64x8xbf16>
    %40 = vector.extract_strided_slice %32 {offsets = [0, 0], sizes = [64, 8], strides = [1, 1]} : vector<64x32xf32> to vector<64x8xf32>
    %41 = arith.truncf %40 : vector<64x8xf32> to vector<64x8xbf16>
    %42 = vector.extract_strided_slice %36 {offsets = [0, 0], sizes = [64, 8], strides = [1, 1]} : vector<64x32xf32> to vector<64x8xf32>
    %43 = arith.truncf %42 : vector<64x8xf32> to vector<64x8xbf16>
    "tpu.trace_start"() <{level = 10 : i32, message = "qd,kd->qk"}> : () -> ()
    %cst_16 = arith.constant dense<0.000000e+00> : vector<64x64xf32>
    %44 = tpu.matmul %39, %41, %cst_16 {dimension_numbers = #tpu.dot_dimension_numbers<[1], [1], [0], [0], [0, 0, 1, 0], [], []>} : vector<64x8xbf16>, vector<64x8xbf16>, vector<64x64xf32> -> vector<64x64xf32>
    "tpu.trace_stop"() : () -> ()
    %cst_17 = arith.constant 0.353553385 : f32
    %45 = vector.broadcast %cst_17 : f32 to vector<64x64xf32>
    %46 = arith.mulf %44, %45 : vector<64x64xf32>
    %cst_18 = arith.constant dense<0xFF800000> : vector<64xf32>
    %47 = vector.multi_reduction <maximumf>, %46, %cst_18 [1] : vector<64x64xf32> to vector<64xf32>
    %48 = vector.shape_cast %47 : vector<64xf32> to vector<64x1xf32>
    %49 = vector.broadcast %48 : vector<64x1xf32> to vector<64x64xf32>
    %50 = arith.subf %46, %49 : vector<64x64xf32>
    %51 = math.exp %50 : vector<64x64xf32>
    %cst_19 = arith.constant dense<0.000000e+00> : vector<64xf32>
    %52 = vector.multi_reduction <add>, %51, %cst_19 [1] : vector<64x64xf32> to vector<64xf32>
    %53 = vector.shape_cast %52 : vector<64xf32> to vector<64x1xf32>
    %54 = tpu.reciprocal %53 {approx = true} : vector<64x1xf32> -> vector<64x1xf32>
    %55 = vector.broadcast %54 : vector<64x1xf32> to vector<64x64xf32>
    %56 = arith.mulf %51, %55 : vector<64x64xf32>
    %57 = arith.truncf %56 : vector<64x64xf32> to vector<64x64xbf16>
    %cst_20 = arith.constant dense<0.000000e+00> : vector<64x8xf32>
    %58 = tpu.matmul %57, %43, %cst_20 {dimension_numbers = #tpu.dot_dimension_numbers<[1], [0], [0], [1], [0, 0, 1, 1], [], []>} : vector<64x64xbf16>, vector<64x8xbf16>, vector<64x8xf32> -> vector<64x8xf32>
    %59 = arith.truncf %58 : vector<64x8xf32> to vector<64x8xbf16>
    %60 = vector.extract_strided_slice %37 {offsets = [0, 0], sizes = [8, 32], strides = [1, 1]} : vector<32x32xbf16> to vector<8x32xbf16>
    %cst_21 = arith.constant dense<0.000000e+00> : vector<64x32xf32>
    %61 = tpu.matmul %59, %60, %cst_21 {dimension_numbers = #tpu.dot_dimension_numbers<[1], [0], [0], [1], [0, 0, 1, 1], [], []>} : vector<64x8xbf16>, vector<8x32xbf16>, vector<64x32xf32> -> vector<64x32xf32>
    %62 = vector.extract_strided_slice %28 {offsets = [0, 8], sizes = [64, 8], strides = [1, 1]} : vector<64x32xf32> to vector<64x8xf32>
    %63 = arith.truncf %62 : vector<64x8xf32> to vector<64x8xbf16>
    %64 = vector.extract_strided_slice %32 {offsets = [0, 8], sizes = [64, 8], strides = [1, 1]} : vector<64x32xf32> to vector<64x8xf32>
    %65 = arith.truncf %64 : vector<64x8xf32> to vector<64x8xbf16>
    %66 = vector.extract_strided_slice %36 {offsets = [0, 8], sizes = [64, 8], strides = [1, 1]} : vector<64x32xf32> to vector<64x8xf32>
    %67 = arith.truncf %66 : vector<64x8xf32> to vector<64x8xbf16>
    "tpu.trace_start"() <{level = 10 : i32, message = "qd,kd->qk"}> : () -> ()
    %cst_22 = arith.constant dense<0.000000e+00> : vector<64x64xf32>
    %68 = tpu.matmul %63, %65, %cst_22 {dimension_numbers = #tpu.dot_dimension_numbers<[1], [1], [0], [0], [0, 0, 1, 0], [], []>} : vector<64x8xbf16>, vector<64x8xbf16>, vector<64x64xf32> -> vector<64x64xf32>
    "tpu.trace_stop"() : () -> ()
    %cst_23 = arith.constant 0.353553385 : f32
    %69 = vector.broadcast %cst_23 : f32 to vector<64x64xf32>
    %70 = arith.mulf %68, %69 : vector<64x64xf32>
    %cst_24 = arith.constant dense<0xFF800000> : vector<64xf32>
    %71 = vector.multi_reduction <maximumf>, %70, %cst_24 [1] : vector<64x64xf32> to vector<64xf32>
    %72 = vector.shape_cast %71 : vector<64xf32> to vector<64x1xf32>
    %73 = vector.broadcast %72 : vector<64x1xf32> to vector<64x64xf32>
    %74 = arith.subf %70, %73 : vector<64x64xf32>
    %75 = math.exp %74 : vector<64x64xf32>
    %cst_25 = arith.constant dense<0.000000e+00> : vector<64xf32>
    %76 = vector.multi_reduction <add>, %75, %cst_25 [1] : vector<64x64xf32> to vector<64xf32>
    %77 = vector.shape_cast %76 : vector<64xf32> to vector<64x1xf32>
    %78 = tpu.reciprocal %77 {approx = true} : vector<64x1xf32> -> vector<64x1xf32>
    %79 = vector.broadcast %78 : vector<64x1xf32> to vector<64x64xf32>
    %80 = arith.mulf %75, %79 : vector<64x64xf32>
    %81 = arith.truncf %80 : vector<64x64xf32> to vector<64x64xbf16>
    %cst_26 = arith.constant dense<0.000000e+00> : vector<64x8xf32>
    %82 = tpu.matmul %81, %67, %cst_26 {dimension_numbers = #tpu.dot_dimension_numbers<[1], [0], [0], [1], [0, 0, 1, 1], [], []>} : vector<64x64xbf16>, vector<64x8xbf16>, vector<64x8xf32> -> vector<64x8xf32>
    %83 = arith.truncf %82 : vector<64x8xf32> to vector<64x8xbf16>
    %84 = vector.extract_strided_slice %37 {offsets = [8, 0], sizes = [8, 32], strides = [1, 1]} : vector<32x32xbf16> to vector<8x32xbf16>
    %cst_27 = arith.constant dense<0.000000e+00> : vector<64x32xf32>
    %85 = tpu.matmul %83, %84, %cst_27 {dimension_numbers = #tpu.dot_dimension_numbers<[1], [0], [0], [1], [0, 0, 1, 1], [], []>} : vector<64x8xbf16>, vector<8x32xbf16>, vector<64x32xf32> -> vector<64x32xf32>
    %86 = arith.addf %61, %85 : vector<64x32xf32>
    %87 = vector.extract_strided_slice %28 {offsets = [0, 16], sizes = [64, 8], strides = [1, 1]} : vector<64x32xf32> to vector<64x8xf32>
    %88 = arith.truncf %87 : vector<64x8xf32> to vector<64x8xbf16>
    %89 = vector.extract_strided_slice %32 {offsets = [0, 16], sizes = [64, 8], strides = [1, 1]} : vector<64x32xf32> to vector<64x8xf32>
    %90 = arith.truncf %89 : vector<64x8xf32> to vector<64x8xbf16>
    %91 = vector.extract_strided_slice %36 {offsets = [0, 16], sizes = [64, 8], strides = [1, 1]} : vector<64x32xf32> to vector<64x8xf32>
    %92 = arith.truncf %91 : vector<64x8xf32> to vector<64x8xbf16>
    "tpu.trace_start"() <{level = 10 : i32, message = "qd,kd->qk"}> : () -> ()
    %cst_28 = arith.constant dense<0.000000e+00> : vector<64x64xf32>
    %93 = tpu.matmul %88, %90, %cst_28 {dimension_numbers = #tpu.dot_dimension_numbers<[1], [1], [0], [0], [0, 0, 1, 0], [], []>} : vector<64x8xbf16>, vector<64x8xbf16>, vector<64x64xf32> -> vector<64x64xf32>
    "tpu.trace_stop"() : () -> ()
    %cst_29 = arith.constant 0.353553385 : f32
    %94 = vector.broadcast %cst_29 : f32 to vector<64x64xf32>
    %95 = arith.mulf %93, %94 : vector<64x64xf32>
    %cst_30 = arith.constant dense<0xFF800000> : vector<64xf32>
    %96 = vector.multi_reduction <maximumf>, %95, %cst_30 [1] : vector<64x64xf32> to vector<64xf32>
    %97 = vector.shape_cast %96 : vector<64xf32> to vector<64x1xf32>
    %98 = vector.broadcast %97 : vector<64x1xf32> to vector<64x64xf32>
    %99 = arith.subf %95, %98 : vector<64x64xf32>
    %100 = math.exp %99 : vector<64x64xf32>
    %cst_31 = arith.constant dense<0.000000e+00> : vector<64xf32>
    %101 = vector.multi_reduction <add>, %100, %cst_31 [1] : vector<64x64xf32> to vector<64xf32>
    %102 = vector.shape_cast %101 : vector<64xf32> to vector<64x1xf32>
    %103 = tpu.reciprocal %102 {approx = true} : vector<64x1xf32> -> vector<64x1xf32>
    %104 = vector.broadcast %103 : vector<64x1xf32> to vector<64x64xf32>
    %105 = arith.mulf %100, %104 : vector<64x64xf32>
    %106 = arith.truncf %105 : vector<64x64xf32> to vector<64x64xbf16>
    %cst_32 = arith.constant dense<0.000000e+00> : vector<64x8xf32>
    %107 = tpu.matmul %106, %92, %cst_32 {dimension_numbers = #tpu.dot_dimension_numbers<[1], [0], [0], [1], [0, 0, 1, 1], [], []>} : vector<64x64xbf16>, vector<64x8xbf16>, vector<64x8xf32> -> vector<64x8xf32>
    %108 = arith.truncf %107 : vector<64x8xf32> to vector<64x8xbf16>
    %109 = vector.extract_strided_slice %37 {offsets = [16, 0], sizes = [8, 32], strides = [1, 1]} : vector<32x32xbf16> to vector<8x32xbf16>
    %cst_33 = arith.constant dense<0.000000e+00> : vector<64x32xf32>
    %110 = tpu.matmul %108, %109, %cst_33 {dimension_numbers = #tpu.dot_dimension_numbers<[1], [0], [0], [1], [0, 0, 1, 1], [], []>} : vector<64x8xbf16>, vector<8x32xbf16>, vector<64x32xf32> -> vector<64x32xf32>
    %111 = arith.addf %86, %110 : vector<64x32xf32>
    %112 = vector.extract_strided_slice %28 {offsets = [0, 24], sizes = [64, 8], strides = [1, 1]} : vector<64x32xf32> to vector<64x8xf32>
    %113 = arith.truncf %112 : vector<64x8xf32> to vector<64x8xbf16>
    %114 = vector.extract_strided_slice %32 {offsets = [0, 24], sizes = [64, 8], strides = [1, 1]} : vector<64x32xf32> to vector<64x8xf32>
    %115 = arith.truncf %114 : vector<64x8xf32> to vector<64x8xbf16>
    %116 = vector.extract_strided_slice %36 {offsets = [0, 24], sizes = [64, 8], strides = [1, 1]} : vector<64x32xf32> to vector<64x8xf32>
    %117 = arith.truncf %116 : vector<64x8xf32> to vector<64x8xbf16>
    "tpu.trace_start"() <{level = 10 : i32, message = "qd,kd->qk"}> : () -> ()
    %cst_34 = arith.constant dense<0.000000e+00> : vector<64x64xf32>
    %118 = tpu.matmul %113, %115, %cst_34 {dimension_numbers = #tpu.dot_dimension_numbers<[1], [1], [0], [0], [0, 0, 1, 0], [], []>} : vector<64x8xbf16>, vector<64x8xbf16>, vector<64x64xf32> -> vector<64x64xf32>
    "tpu.trace_stop"() : () -> ()
    %cst_35 = arith.constant 0.353553385 : f32
    %119 = vector.broadcast %cst_35 : f32 to vector<64x64xf32>
    %120 = arith.mulf %118, %119 : vector<64x64xf32>
    %cst_36 = arith.constant dense<0xFF800000> : vector<64xf32>
    %121 = vector.multi_reduction <maximumf>, %120, %cst_36 [1] : vector<64x64xf32> to vector<64xf32>
    %122 = vector.shape_cast %121 : vector<64xf32> to vector<64x1xf32>
    %123 = vector.broadcast %122 : vector<64x1xf32> to vector<64x64xf32>
    %124 = arith.subf %120, %123 : vector<64x64xf32>
    %125 = math.exp %124 : vector<64x64xf32>
    %cst_37 = arith.constant dense<0.000000e+00> : vector<64xf32>
    %126 = vector.multi_reduction <add>, %125, %cst_37 [1] : vector<64x64xf32> to vector<64xf32>
    %127 = vector.shape_cast %126 : vector<64xf32> to vector<64x1xf32>
    %128 = tpu.reciprocal %127 {approx = true} : vector<64x1xf32> -> vector<64x1xf32>
    %129 = vector.broadcast %128 : vector<64x1xf32> to vector<64x64xf32>
    %130 = arith.mulf %125, %129 : vector<64x64xf32>
    %131 = arith.truncf %130 : vector<64x64xf32> to vector<64x64xbf16>
    %cst_38 = arith.constant dense<0.000000e+00> : vector<64x8xf32>
    %132 = tpu.matmul %131, %117, %cst_38 {dimension_numbers = #tpu.dot_dimension_numbers<[1], [0], [0], [1], [0, 0, 1, 1], [], []>} : vector<64x64xbf16>, vector<64x8xbf16>, vector<64x8xf32> -> vector<64x8xf32>
    %133 = arith.truncf %132 : vector<64x8xf32> to vector<64x8xbf16>
    %134 = vector.extract_strided_slice %37 {offsets = [24, 0], sizes = [8, 32], strides = [1, 1]} : vector<32x32xbf16> to vector<8x32xbf16>
    %cst_39 = arith.constant dense<0.000000e+00> : vector<64x32xf32>
    %135 = tpu.matmul %133, %134, %cst_39 {dimension_numbers = #tpu.dot_dimension_numbers<[1], [0], [0], [1], [0, 0, 1, 1], [], []>} : vector<64x8xbf16>, vector<8x32xbf16>, vector<64x32xf32> -> vector<64x32xf32>
    %136 = arith.addf %111, %135 : vector<64x32xf32>
    %137 = vector.broadcast %15 : vector<1x32xf32> to vector<64x32xf32>
    %138 = arith.addf %136, %137 : vector<64x32xf32>
    %139 = arith.addf %4, %138 : vector<64x32xf32>
    %cst_40 = arith.constant dense<0.000000e+00> : vector<64xf32>
    %140 = vector.multi_reduction <add>, %139, %cst_40 [1] : vector<64x32xf32> to vector<64xf32>
    %141 = vector.shape_cast %140 : vector<64xf32> to vector<64x1xf32>
    %cst_41 = arith.constant 3.200000e+01 : f32
    %142 = vector.broadcast %cst_41 : f32 to vector<64x1xf32>
    %143 = arith.divf %141, %142 : vector<64x1xf32>
    %144 = arith.mulf %139, %139 : vector<64x32xf32>
    %cst_42 = arith.constant dense<0.000000e+00> : vector<64xf32>
    %145 = vector.multi_reduction <add>, %144, %cst_42 [1] : vector<64x32xf32> to vector<64xf32>
    %146 = vector.shape_cast %145 : vector<64xf32> to vector<64x1xf32>
    %cst_43 = arith.constant 3.200000e+01 : f32
    %147 = vector.broadcast %cst_43 : f32 to vector<64x1xf32>
    %148 = arith.divf %146, %147 : vector<64x1xf32>
    %149 = arith.mulf %143, %143 : vector<64x1xf32>
    %150 = arith.subf %148, %149 : vector<64x1xf32>
    %cst_44 = arith.constant 0.000000e+00 : f32
    %151 = vector.broadcast %cst_44 : f32 to vector<64x1xf32>
    %152 = arith.maximumf %150, %151 : vector<64x1xf32>
    %153 = vector.broadcast %143 : vector<64x1xf32> to vector<64x32xf32>
    %154 = arith.subf %139, %153 : vector<64x32xf32>
    %cst_45 = arith.constant 9.99999974E-6 : f32
    %155 = vector.broadcast %cst_45 : f32 to vector<64x1xf32>
    %156 = arith.addf %152, %155 : vector<64x1xf32>
    %157 = math.rsqrt %156 : vector<64x1xf32>
    %158 = vector.broadcast %157 : vector<64x1xf32> to vector<64x32xf32>
    %159 = arith.mulf %154, %158 : vector<64x32xf32>
    %160 = vector.broadcast %18 : vector<1x32xf32> to vector<64x32xf32>
    %161 = arith.mulf %159, %160 : vector<64x32xf32>
    %162 = vector.broadcast %19 : vector<1x32xf32> to vector<64x32xf32>
    %163 = arith.addf %161, %162 : vector<64x32xf32>
    %164 = arith.truncf %163 : vector<64x32xf32> to vector<64x32xbf16>
    %165 = vector.extract_strided_slice %7 {offsets = [0, 128], sizes = [32, 64], strides = [1, 1]} : vector<32x192xbf16> to vector<32x64xbf16>
    %cst_46 = arith.constant dense<0.000000e+00> : vector<64x64xf32>
    %166 = tpu.matmul %164, %165, %cst_46 {dimension_numbers = #tpu.dot_dimension_numbers<[1], [0], [0], [1], [0, 0, 1, 1], [], []>} : vector<64x32xbf16>, vector<32x64xbf16>, vector<64x64xf32> -> vector<64x64xf32>
    %167 = vector.broadcast %16 : vector<1x64xf32> to vector<64x64xf32>
    %168 = arith.addf %166, %167 : vector<64x64xf32>
    %cst_47 = arith.constant 0.000000e+00 : f32
    %169 = vector.broadcast %cst_47 : f32 to vector<64x64xf32>
    %170 = arith.maximumf %168, %169 : vector<64x64xf32>
    %171 = arith.truncf %170 : vector<64x64xf32> to vector<64x64xbf16>
    %cst_48 = arith.constant dense<0.000000e+00> : vector<64x32xf32>
    %172 = tpu.matmul %171, %9, %cst_48 {dimension_numbers = #tpu.dot_dimension_numbers<[1], [0], [0], [1], [0, 0, 1, 1], [], []>} : vector<64x64xbf16>, vector<64x32xbf16>, vector<64x32xf32> -> vector<64x32xf32>
    %173 = vector.broadcast %17 : vector<1x32xf32> to vector<64x32xf32>
    %174 = arith.addf %172, %173 : vector<64x32xf32>
    %175 = arith.addf %163, %174 : vector<64x32xf32>
    %cst_49 = arith.constant dense<0.000000e+00> : vector<64xf32>
    %176 = vector.multi_reduction <add>, %175, %cst_49 [1] : vector<64x32xf32> to vector<64xf32>
    %177 = vector.shape_cast %176 : vector<64xf32> to vector<64x1xf32>
    %cst_50 = arith.constant 3.200000e+01 : f32
    %178 = vector.broadcast %cst_50 : f32 to vector<64x1xf32>
    %179 = arith.divf %177, %178 : vector<64x1xf32>
    %180 = arith.mulf %175, %175 : vector<64x32xf32>
    %cst_51 = arith.constant dense<0.000000e+00> : vector<64xf32>
    %181 = vector.multi_reduction <add>, %180, %cst_51 [1] : vector<64x32xf32> to vector<64xf32>
    %182 = vector.shape_cast %181 : vector<64xf32> to vector<64x1xf32>
    %cst_52 = arith.constant 3.200000e+01 : f32
    %183 = vector.broadcast %cst_52 : f32 to vector<64x1xf32>
    %184 = arith.divf %182, %183 : vector<64x1xf32>
    %185 = arith.mulf %179, %179 : vector<64x1xf32>
    %186 = arith.subf %184, %185 : vector<64x1xf32>
    %cst_53 = arith.constant 0.000000e+00 : f32
    %187 = vector.broadcast %cst_53 : f32 to vector<64x1xf32>
    %188 = arith.maximumf %186, %187 : vector<64x1xf32>
    %189 = vector.broadcast %179 : vector<64x1xf32> to vector<64x32xf32>
    %190 = arith.subf %175, %189 : vector<64x32xf32>
    %cst_54 = arith.constant 9.99999974E-6 : f32
    %191 = vector.broadcast %cst_54 : f32 to vector<64x1xf32>
    %192 = arith.addf %188, %191 : vector<64x1xf32>
    %193 = math.rsqrt %192 : vector<64x1xf32>
    %194 = vector.broadcast %193 : vector<64x1xf32> to vector<64x32xf32>
    %195 = arith.mulf %190, %194 : vector<64x32xf32>
    %196 = vector.broadcast %20 : vector<1x32xf32> to vector<64x32xf32>
    %197 = arith.mulf %195, %196 : vector<64x32xf32>
    %198 = vector.broadcast %21 : vector<1x32xf32> to vector<64x32xf32>
    %199 = arith.addf %197, %198 : vector<64x32xf32>
    %c0_55 = arith.constant 0 : index
    %c0_56 = arith.constant 0 : index
    %c0_57 = arith.constant 0 : index
    %200 = vector.load %arg7[%c0_55, %c0_56, %c0_57] : memref<1x64x32xf32, #tpu.memory_space<vmem>>, vector<1x64x32xf32>
    %201 = vector.shape_cast %200 : vector<1x64x32xf32> to vector<64x32xf32>
    %202 = vector.shape_cast %199 : vector<64x32xf32> to vector<1x64x32xf32>
    tpu.vector_store %arg7[%c0_55, %c0_56, %c0_57], %202 {strides = array<i32>} : memref<1x64x32xf32, #tpu.memory_space<vmem>>, vector<1x64x32xf32>,
    return
  }
  func.func @transform_0(%arg0: i32, %arg1: i32) -> (i32, i32, i32) {
    %c0_i32 = arith.constant 0 : i32
    %c0_i32_0 = arith.constant 0 : i32
    %c0_i32_1 = arith.constant 0 : i32
    return %arg0, %c0_i32, %c0_i32_0 : i32, i32, i32
  }
  func.func @transform_1(%arg0: i32, %arg1: i32) -> (i32, i32) {
    %c0_i32 = arith.constant 0 : i32
    %c0_i32_0 = arith.constant 0 : i32
    %c0_i32_1 = arith.constant 0 : i32
    return %c0_i32, %c0_i32_0 : i32, i32
  }
  func.func @transform_2(%arg0: i32, %arg1: i32) -> (i32, i32, i32) {
    %c0_i32 = arith.constant 0 : i32
    %c0_i32_0 = arith.constant 0 : i32
    %c0_i32_1 = arith.constant 0 : i32
    return %arg1, %c0_i32, %c0_i32_0 : i32, i32, i32
  }
  func.func @transform_3(%arg0: i32, %arg1: i32) -> (i32, i32, i32) {
    %c0_i32 = arith.constant 0 : i32
    %c0_i32_0 = arith.constant 0 : i32
    %c0_i32_1 = arith.constant 0 : i32
    return %arg1, %c0_i32, %c0_i32_0 : i32, i32, i32
  }
  func.func @transform_4(%arg0: i32, %arg1: i32) -> (i32, i32, i32) {
    %c0_i32 = arith.constant 0 : i32
    %c0_i32_0 = arith.constant 0 : i32
    %c0_i32_1 = arith.constant 0 : i32
    return %arg1, %c0_i32, %c0_i32_0 : i32, i32, i32
  }
  func.func @transform_5(%arg0: i32, %arg1: i32) -> (i32, i32, i32) {
    %c0_i32 = arith.constant 0 : i32
    %c0_i32_0 = arith.constant 0 : i32
    %c0_i32_1 = arith.constant 0 : i32
    return %arg0, %c0_i32, %c0_i32_0 : i32, i32, i32
  }
}

module attributes {stable_mosaic.version = 11 : i64} {
  func.func @_decoder_stack_kernel(%arg0: i32, %arg1: i32, %arg2: memref<1x64x32xf32, #tpu.memory_space<vmem>>, %arg3: memref<64x32xf32, #tpu.memory_space<vmem>>, %arg4: memref<20x32xf32, #tpu.memory_space<vmem>>, %arg5: memref<1x32x320xbf16, #tpu.memory_space<vmem>>, %arg6: memref<1x64x32xbf16, #tpu.memory_space<vmem>>, %arg7: memref<1x16x64xf32, #tpu.memory_space<vmem>>, %arg8: memref<32x36xbf16, #tpu.memory_space<vmem>>, %arg9: memref<32x36xbf16, #tpu.memory_space<vmem>>, %arg10: memref<5x36xf32, #tpu.memory_space<vmem>>, %arg11: memref<1x20x4xf32, #tpu.memory_space<vmem>>, %arg12: memref<1x20x4xf32, #tpu.memory_space<vmem>>, %arg13: memref<20x32xf32, #tpu.memory_space<vmem>>) attributes {dimension_semantics = [#tpu.dimension_semantics<parallel>, #tpu.dimension_semantics<arbitrary>], iteration_bounds = array<i64: 2, 2>, scalar_prefetch = 0 : i64, scratch_operands = 1 : i64, tpu.core_type = #tpu.core_type<tc>, window_params = [{transform_indices = @transform_0, window_bounds = array<i64: 1, 64, 32>}, {pipeline_mode = #tpu.pipeline_mode<synchronous>, transform_indices = @transform_1, window_bounds = array<i64: 64, 32>}, {pipeline_mode = #tpu.pipeline_mode<synchronous>, transform_indices = @transform_2, window_bounds = array<i64: 20, 32>}, {transform_indices = @transform_3, window_bounds = array<i64: 1, 32, 320>}, {transform_indices = @transform_4, window_bounds = array<i64: 1, 64, 32>}, {transform_indices = @transform_5, window_bounds = array<i64: 1, 16, 64>}, {pipeline_mode = #tpu.pipeline_mode<synchronous>, transform_indices = @transform_6, window_bounds = array<i64: 32, 36>}, {pipeline_mode = #tpu.pipeline_mode<synchronous>, transform_indices = @transform_7, window_bounds = array<i64: 32, 36>}, {pipeline_mode = #tpu.pipeline_mode<synchronous>, transform_indices = @transform_8, window_bounds = array<i64: 5, 36>}, {transform_indices = @transform_9, window_bounds = array<i64: 1, 20, 4>}, {transform_indices = @transform_10, window_bounds = array<i64: 1, 20, 4>}]} {
    %c0_i32 = arith.constant 0 : i32
    %0 = arith.cmpi eq, %arg1, %c0_i32 : i32
    %1 = arith.extui %0 : i1 to i32
    %c0_i32_0 = arith.constant 0 : i32
    %2 = arith.cmpi ne, %1, %c0_i32_0 : i32
    scf.if %2 {
      %cst_95 = arith.constant 0.000000e+00 : f32
      %356 = vector.broadcast %cst_95 : f32 to vector<20x32xf32>
      %c0_96 = arith.constant 0 : index
      %c0_97 = arith.constant 0 : index
      %357 = vector.load %arg13[%c0_96, %c0_97] : memref<20x32xf32, #tpu.memory_space<vmem>>, vector<20x32xf32>
      tpu.vector_store %arg13[%c0_96, %c0_97], %356 {strides = array<i32>} : memref<20x32xf32, #tpu.memory_space<vmem>>, vector<20x32xf32>,
    } else {
    }
    %c0 = arith.constant 0 : index
    %c0_1 = arith.constant 0 : index
    %3 = vector.load %arg13[%c0, %c0_1] : memref<20x32xf32, #tpu.memory_space<vmem>>, vector<20x32xf32>
    %c0_2 = arith.constant 0 : index
    %c0_3 = arith.constant 0 : index
    %c0_4 = arith.constant 0 : index
    %4 = vector.load %arg2[%c0_2, %c0_3, %c0_4] : memref<1x64x32xf32, #tpu.memory_space<vmem>>, vector<1x64x32xf32>
    %5 = vector.shape_cast %4 : vector<1x64x32xf32> to vector<64x32xf32>
    %c0_5 = arith.constant 0 : index
    %c0_6 = arith.constant 0 : index
    %6 = vector.load %arg3[%c0_5, %c0_6] : memref<64x32xf32, #tpu.memory_space<vmem>>, vector<64x32xf32>
    %c0_7 = arith.constant 0 : index
    %c0_8 = arith.constant 0 : index
    %7 = vector.load %arg4[%c0_7, %c0_8] : memref<20x32xf32, #tpu.memory_space<vmem>>, vector<20x32xf32>
    %c0_9 = arith.constant 0 : index
    %c0_10 = arith.constant 0 : index
    %c0_11 = arith.constant 0 : index
    %8 = vector.load %arg5[%c0_9, %c0_10, %c0_11] : memref<1x32x320xbf16, #tpu.memory_space<vmem>>, vector<1x32x320xbf16>
    %9 = vector.shape_cast %8 : vector<1x32x320xbf16> to vector<32x320xbf16>
    %c0_12 = arith.constant 0 : index
    %c0_13 = arith.constant 0 : index
    %c0_14 = arith.constant 0 : index
    %10 = vector.load %arg6[%c0_12, %c0_13, %c0_14] : memref<1x64x32xbf16, #tpu.memory_space<vmem>>, vector<1x64x32xbf16>
    %11 = vector.shape_cast %10 : vector<1x64x32xbf16> to vector<64x32xbf16>
    %c0_15 = arith.constant 0 : index
    %c0_16 = arith.constant 0 : index
    %c0_17 = arith.constant 0 : index
    %12 = vector.load %arg7[%c0_15, %c0_16, %c0_17] : memref<1x16x64xf32, #tpu.memory_space<vmem>>, vector<1x16x64xf32>
    %13 = vector.shape_cast %12 : vector<1x16x64xf32> to vector<16x64xf32>
    %14 = vector.extract_strided_slice %13 {offsets = [0, 0], sizes = [1, 32], strides = [1, 1]} : vector<16x64xf32> to vector<1x32xf32>
    %15 = vector.extract_strided_slice %13 {offsets = [1, 0], sizes = [1, 32], strides = [1, 1]} : vector<16x64xf32> to vector<1x32xf32>
    %16 = vector.extract_strided_slice %13 {offsets = [2, 0], sizes = [1, 32], strides = [1, 1]} : vector<16x64xf32> to vector<1x32xf32>
    %17 = vector.extract_strided_slice %13 {offsets = [3, 0], sizes = [1, 32], strides = [1, 1]} : vector<16x64xf32> to vector<1x32xf32>
    %18 = vector.extract_strided_slice %13 {offsets = [4, 0], sizes = [1, 32], strides = [1, 1]} : vector<16x64xf32> to vector<1x32xf32>
    %19 = vector.extract_strided_slice %13 {offsets = [5, 0], sizes = [1, 32], strides = [1, 1]} : vector<16x64xf32> to vector<1x32xf32>
    %20 = vector.extract_strided_slice %13 {offsets = [6, 0], sizes = [1, 32], strides = [1, 1]} : vector<16x64xf32> to vector<1x32xf32>
    %21 = vector.extract_strided_slice %13 {offsets = [7, 0], sizes = [1, 32], strides = [1, 1]} : vector<16x64xf32> to vector<1x32xf32>
    %22 = vector.extract_strided_slice %13 {offsets = [8, 0], sizes = [1, 64], strides = [1, 1]} : vector<16x64xf32> to vector<1x64xf32>
    %23 = vector.extract_strided_slice %13 {offsets = [9, 0], sizes = [1, 32], strides = [1, 1]} : vector<16x64xf32> to vector<1x32xf32>
    %24 = vector.extract_strided_slice %13 {offsets = [10, 0], sizes = [1, 32], strides = [1, 1]} : vector<16x64xf32> to vector<1x32xf32>
    %25 = vector.extract_strided_slice %13 {offsets = [11, 0], sizes = [1, 32], strides = [1, 1]} : vector<16x64xf32> to vector<1x32xf32>
    %26 = vector.extract_strided_slice %13 {offsets = [12, 0], sizes = [1, 32], strides = [1, 1]} : vector<16x64xf32> to vector<1x32xf32>
    %27 = vector.extract_strided_slice %13 {offsets = [13, 0], sizes = [1, 32], strides = [1, 1]} : vector<16x64xf32> to vector<1x32xf32>
    %28 = vector.extract_strided_slice %13 {offsets = [14, 0], sizes = [1, 32], strides = [1, 1]} : vector<16x64xf32> to vector<1x32xf32>
    %29 = vector.extract_strided_slice %13 {offsets = [15, 0], sizes = [1, 32], strides = [1, 1]} : vector<16x64xf32> to vector<1x32xf32>
    %30 = vector.extract_strided_slice %9 {offsets = [0, 0], sizes = [32, 32], strides = [1, 1]} : vector<32x320xbf16> to vector<32x32xbf16>
    %31 = vector.extract_strided_slice %9 {offsets = [0, 32], sizes = [32, 32], strides = [1, 1]} : vector<32x320xbf16> to vector<32x32xbf16>
    %32 = vector.extract_strided_slice %9 {offsets = [0, 64], sizes = [32, 32], strides = [1, 1]} : vector<32x320xbf16> to vector<32x32xbf16>
    %33 = vector.extract_strided_slice %9 {offsets = [0, 96], sizes = [32, 32], strides = [1, 1]} : vector<32x320xbf16> to vector<32x32xbf16>
    %34 = vector.extract_strided_slice %9 {offsets = [0, 128], sizes = [32, 32], strides = [1, 1]} : vector<32x320xbf16> to vector<32x32xbf16>
    %35 = vector.extract_strided_slice %9 {offsets = [0, 160], sizes = [32, 32], strides = [1, 1]} : vector<32x320xbf16> to vector<32x32xbf16>
    %36 = vector.extract_strided_slice %9 {offsets = [0, 192], sizes = [32, 32], strides = [1, 1]} : vector<32x320xbf16> to vector<32x32xbf16>
    %37 = vector.extract_strided_slice %9 {offsets = [0, 224], sizes = [32, 32], strides = [1, 1]} : vector<32x320xbf16> to vector<32x32xbf16>
    %38 = vector.extract_strided_slice %9 {offsets = [0, 256], sizes = [32, 64], strides = [1, 1]} : vector<32x320xbf16> to vector<32x64xbf16>
    %39 = arith.addf %3, %7 : vector<20x32xf32>
    %40 = arith.truncf %39 : vector<20x32xf32> to vector<20x32xbf16>
    %41 = arith.truncf %3 : vector<20x32xf32> to vector<20x32xbf16>
    %cst = arith.constant dense<0.000000e+00> : vector<20x32xf32>
    %42 = tpu.matmul %40, %30, %cst {dimension_numbers = #tpu.dot_dimension_numbers<[1], [0], [0], [1], [0, 0, 1, 1], [], []>} : vector<20x32xbf16>, vector<32x32xbf16>, vector<20x32xf32> -> vector<20x32xf32>
    %43 = vector.broadcast %14 : vector<1x32xf32> to vector<20x32xf32>
    %44 = arith.addf %42, %43 : vector<20x32xf32>
    %cst_18 = arith.constant dense<0.000000e+00> : vector<20x32xf32>
    %45 = tpu.matmul %40, %31, %cst_18 {dimension_numbers = #tpu.dot_dimension_numbers<[1], [0], [0], [1], [0, 0, 1, 1], [], []>} : vector<20x32xbf16>, vector<32x32xbf16>, vector<20x32xf32> -> vector<20x32xf32>
    %46 = vector.broadcast %15 : vector<1x32xf32> to vector<20x32xf32>
    %47 = arith.addf %45, %46 : vector<20x32xf32>
    %cst_19 = arith.constant dense<0.000000e+00> : vector<20x32xf32>
    %48 = tpu.matmul %41, %32, %cst_19 {dimension_numbers = #tpu.dot_dimension_numbers<[1], [0], [0], [1], [0, 0, 1, 1], [], []>} : vector<20x32xbf16>, vector<32x32xbf16>, vector<20x32xf32> -> vector<20x32xf32>
    %49 = vector.broadcast %16 : vector<1x32xf32> to vector<20x32xf32>
    %50 = arith.addf %48, %49 : vector<20x32xf32>
    %51 = vector.extract_strided_slice %44 {offsets = [0, 0], sizes = [20, 8], strides = [1, 1]} : vector<20x32xf32> to vector<20x8xf32>
    %52 = arith.truncf %51 : vector<20x8xf32> to vector<20x8xbf16>
    %53 = vector.extract_strided_slice %47 {offsets = [0, 0], sizes = [20, 8], strides = [1, 1]} : vector<20x32xf32> to vector<20x8xf32>
    %54 = arith.truncf %53 : vector<20x8xf32> to vector<20x8xbf16>
    %55 = vector.extract_strided_slice %50 {offsets = [0, 0], sizes = [20, 8], strides = [1, 1]} : vector<20x32xf32> to vector<20x8xf32>
    %56 = arith.truncf %55 : vector<20x8xf32> to vector<20x8xbf16>
    "tpu.trace_start"() <{level = 10 : i32, message = "qd,kd->qk"}> : () -> ()
    %cst_20 = arith.constant dense<0.000000e+00> : vector<20x20xf32>
    %57 = tpu.matmul %52, %54, %cst_20 {dimension_numbers = #tpu.dot_dimension_numbers<[1], [1], [0], [0], [0, 0, 1, 0], [], []>} : vector<20x8xbf16>, vector<20x8xbf16>, vector<20x20xf32> -> vector<20x20xf32>
    "tpu.trace_stop"() : () -> ()
    %cst_21 = arith.constant 0.353553385 : f32
    %58 = vector.broadcast %cst_21 : f32 to vector<20x20xf32>
    %59 = arith.mulf %57, %58 : vector<20x20xf32>
    %cst_22 = arith.constant dense<0xFF800000> : vector<20xf32>
    %60 = vector.multi_reduction <maximumf>, %59, %cst_22 [1] : vector<20x20xf32> to vector<20xf32>
    %61 = vector.shape_cast %60 : vector<20xf32> to vector<20x1xf32>
    %62 = vector.broadcast %61 : vector<20x1xf32> to vector<20x20xf32>
    %63 = arith.subf %59, %62 : vector<20x20xf32>
    %64 = math.exp %63 : vector<20x20xf32>
    %cst_23 = arith.constant dense<0.000000e+00> : vector<20xf32>
    %65 = vector.multi_reduction <add>, %64, %cst_23 [1] : vector<20x20xf32> to vector<20xf32>
    %66 = vector.shape_cast %65 : vector<20xf32> to vector<20x1xf32>
    %67 = tpu.reciprocal %66 {approx = true} : vector<20x1xf32> -> vector<20x1xf32>
    %68 = vector.broadcast %67 : vector<20x1xf32> to vector<20x20xf32>
    %69 = arith.mulf %64, %68 : vector<20x20xf32>
    %70 = arith.truncf %69 : vector<20x20xf32> to vector<20x20xbf16>
    %cst_24 = arith.constant dense<0.000000e+00> : vector<20x8xf32>
    %71 = tpu.matmul %70, %56, %cst_24 {dimension_numbers = #tpu.dot_dimension_numbers<[1], [0], [0], [1], [0, 0, 1, 1], [], []>} : vector<20x20xbf16>, vector<20x8xbf16>, vector<20x8xf32> -> vector<20x8xf32>
    %72 = arith.truncf %71 : vector<20x8xf32> to vector<20x8xbf16>
    %73 = vector.extract_strided_slice %33 {offsets = [0, 0], sizes = [8, 32], strides = [1, 1]} : vector<32x32xbf16> to vector<8x32xbf16>
    %cst_25 = arith.constant dense<0.000000e+00> : vector<20x32xf32>
    %74 = tpu.matmul %72, %73, %cst_25 {dimension_numbers = #tpu.dot_dimension_numbers<[1], [0], [0], [1], [0, 0, 1, 1], [], []>} : vector<20x8xbf16>, vector<8x32xbf16>, vector<20x32xf32> -> vector<20x32xf32>
    %75 = vector.extract_strided_slice %44 {offsets = [0, 8], sizes = [20, 8], strides = [1, 1]} : vector<20x32xf32> to vector<20x8xf32>
    %76 = arith.truncf %75 : vector<20x8xf32> to vector<20x8xbf16>
    %77 = vector.extract_strided_slice %47 {offsets = [0, 8], sizes = [20, 8], strides = [1, 1]} : vector<20x32xf32> to vector<20x8xf32>
    %78 = arith.truncf %77 : vector<20x8xf32> to vector<20x8xbf16>
    %79 = vector.extract_strided_slice %50 {offsets = [0, 8], sizes = [20, 8], strides = [1, 1]} : vector<20x32xf32> to vector<20x8xf32>
    %80 = arith.truncf %79 : vector<20x8xf32> to vector<20x8xbf16>
    "tpu.trace_start"() <{level = 10 : i32, message = "qd,kd->qk"}> : () -> ()
    %cst_26 = arith.constant dense<0.000000e+00> : vector<20x20xf32>
    %81 = tpu.matmul %76, %78, %cst_26 {dimension_numbers = #tpu.dot_dimension_numbers<[1], [1], [0], [0], [0, 0, 1, 0], [], []>} : vector<20x8xbf16>, vector<20x8xbf16>, vector<20x20xf32> -> vector<20x20xf32>
    "tpu.trace_stop"() : () -> ()
    %cst_27 = arith.constant 0.353553385 : f32
    %82 = vector.broadcast %cst_27 : f32 to vector<20x20xf32>
    %83 = arith.mulf %81, %82 : vector<20x20xf32>
    %cst_28 = arith.constant dense<0xFF800000> : vector<20xf32>
    %84 = vector.multi_reduction <maximumf>, %83, %cst_28 [1] : vector<20x20xf32> to vector<20xf32>
    %85 = vector.shape_cast %84 : vector<20xf32> to vector<20x1xf32>
    %86 = vector.broadcast %85 : vector<20x1xf32> to vector<20x20xf32>
    %87 = arith.subf %83, %86 : vector<20x20xf32>
    %88 = math.exp %87 : vector<20x20xf32>
    %cst_29 = arith.constant dense<0.000000e+00> : vector<20xf32>
    %89 = vector.multi_reduction <add>, %88, %cst_29 [1] : vector<20x20xf32> to vector<20xf32>
    %90 = vector.shape_cast %89 : vector<20xf32> to vector<20x1xf32>
    %91 = tpu.reciprocal %90 {approx = true} : vector<20x1xf32> -> vector<20x1xf32>
    %92 = vector.broadcast %91 : vector<20x1xf32> to vector<20x20xf32>
    %93 = arith.mulf %88, %92 : vector<20x20xf32>
    %94 = arith.truncf %93 : vector<20x20xf32> to vector<20x20xbf16>
    %cst_30 = arith.constant dense<0.000000e+00> : vector<20x8xf32>
    %95 = tpu.matmul %94, %80, %cst_30 {dimension_numbers = #tpu.dot_dimension_numbers<[1], [0], [0], [1], [0, 0, 1, 1], [], []>} : vector<20x20xbf16>, vector<20x8xbf16>, vector<20x8xf32> -> vector<20x8xf32>
    %96 = arith.truncf %95 : vector<20x8xf32> to vector<20x8xbf16>
    %97 = vector.extract_strided_slice %33 {offsets = [8, 0], sizes = [8, 32], strides = [1, 1]} : vector<32x32xbf16> to vector<8x32xbf16>
    %cst_31 = arith.constant dense<0.000000e+00> : vector<20x32xf32>
    %98 = tpu.matmul %96, %97, %cst_31 {dimension_numbers = #tpu.dot_dimension_numbers<[1], [0], [0], [1], [0, 0, 1, 1], [], []>} : vector<20x8xbf16>, vector<8x32xbf16>, vector<20x32xf32> -> vector<20x32xf32>
    %99 = arith.addf %74, %98 : vector<20x32xf32>
    %100 = vector.extract_strided_slice %44 {offsets = [0, 16], sizes = [20, 8], strides = [1, 1]} : vector<20x32xf32> to vector<20x8xf32>
    %101 = arith.truncf %100 : vector<20x8xf32> to vector<20x8xbf16>
    %102 = vector.extract_strided_slice %47 {offsets = [0, 16], sizes = [20, 8], strides = [1, 1]} : vector<20x32xf32> to vector<20x8xf32>
    %103 = arith.truncf %102 : vector<20x8xf32> to vector<20x8xbf16>
    %104 = vector.extract_strided_slice %50 {offsets = [0, 16], sizes = [20, 8], strides = [1, 1]} : vector<20x32xf32> to vector<20x8xf32>
    %105 = arith.truncf %104 : vector<20x8xf32> to vector<20x8xbf16>
    "tpu.trace_start"() <{level = 10 : i32, message = "qd,kd->qk"}> : () -> ()
    %cst_32 = arith.constant dense<0.000000e+00> : vector<20x20xf32>
    %106 = tpu.matmul %101, %103, %cst_32 {dimension_numbers = #tpu.dot_dimension_numbers<[1], [1], [0], [0], [0, 0, 1, 0], [], []>} : vector<20x8xbf16>, vector<20x8xbf16>, vector<20x20xf32> -> vector<20x20xf32>
    "tpu.trace_stop"() : () -> ()
    %cst_33 = arith.constant 0.353553385 : f32
    %107 = vector.broadcast %cst_33 : f32 to vector<20x20xf32>
    %108 = arith.mulf %106, %107 : vector<20x20xf32>
    %cst_34 = arith.constant dense<0xFF800000> : vector<20xf32>
    %109 = vector.multi_reduction <maximumf>, %108, %cst_34 [1] : vector<20x20xf32> to vector<20xf32>
    %110 = vector.shape_cast %109 : vector<20xf32> to vector<20x1xf32>
    %111 = vector.broadcast %110 : vector<20x1xf32> to vector<20x20xf32>
    %112 = arith.subf %108, %111 : vector<20x20xf32>
    %113 = math.exp %112 : vector<20x20xf32>
    %cst_35 = arith.constant dense<0.000000e+00> : vector<20xf32>
    %114 = vector.multi_reduction <add>, %113, %cst_35 [1] : vector<20x20xf32> to vector<20xf32>
    %115 = vector.shape_cast %114 : vector<20xf32> to vector<20x1xf32>
    %116 = tpu.reciprocal %115 {approx = true} : vector<20x1xf32> -> vector<20x1xf32>
    %117 = vector.broadcast %116 : vector<20x1xf32> to vector<20x20xf32>
    %118 = arith.mulf %113, %117 : vector<20x20xf32>
    %119 = arith.truncf %118 : vector<20x20xf32> to vector<20x20xbf16>
    %cst_36 = arith.constant dense<0.000000e+00> : vector<20x8xf32>
    %120 = tpu.matmul %119, %105, %cst_36 {dimension_numbers = #tpu.dot_dimension_numbers<[1], [0], [0], [1], [0, 0, 1, 1], [], []>} : vector<20x20xbf16>, vector<20x8xbf16>, vector<20x8xf32> -> vector<20x8xf32>
    %121 = arith.truncf %120 : vector<20x8xf32> to vector<20x8xbf16>
    %122 = vector.extract_strided_slice %33 {offsets = [16, 0], sizes = [8, 32], strides = [1, 1]} : vector<32x32xbf16> to vector<8x32xbf16>
    %cst_37 = arith.constant dense<0.000000e+00> : vector<20x32xf32>
    %123 = tpu.matmul %121, %122, %cst_37 {dimension_numbers = #tpu.dot_dimension_numbers<[1], [0], [0], [1], [0, 0, 1, 1], [], []>} : vector<20x8xbf16>, vector<8x32xbf16>, vector<20x32xf32> -> vector<20x32xf32>
    %124 = arith.addf %99, %123 : vector<20x32xf32>
    %125 = vector.extract_strided_slice %44 {offsets = [0, 24], sizes = [20, 8], strides = [1, 1]} : vector<20x32xf32> to vector<20x8xf32>
    %126 = arith.truncf %125 : vector<20x8xf32> to vector<20x8xbf16>
    %127 = vector.extract_strided_slice %47 {offsets = [0, 24], sizes = [20, 8], strides = [1, 1]} : vector<20x32xf32> to vector<20x8xf32>
    %128 = arith.truncf %127 : vector<20x8xf32> to vector<20x8xbf16>
    %129 = vector.extract_strided_slice %50 {offsets = [0, 24], sizes = [20, 8], strides = [1, 1]} : vector<20x32xf32> to vector<20x8xf32>
    %130 = arith.truncf %129 : vector<20x8xf32> to vector<20x8xbf16>
    "tpu.trace_start"() <{level = 10 : i32, message = "qd,kd->qk"}> : () -> ()
    %cst_38 = arith.constant dense<0.000000e+00> : vector<20x20xf32>
    %131 = tpu.matmul %126, %128, %cst_38 {dimension_numbers = #tpu.dot_dimension_numbers<[1], [1], [0], [0], [0, 0, 1, 0], [], []>} : vector<20x8xbf16>, vector<20x8xbf16>, vector<20x20xf32> -> vector<20x20xf32>
    "tpu.trace_stop"() : () -> ()
    %cst_39 = arith.constant 0.353553385 : f32
    %132 = vector.broadcast %cst_39 : f32 to vector<20x20xf32>
    %133 = arith.mulf %131, %132 : vector<20x20xf32>
    %cst_40 = arith.constant dense<0xFF800000> : vector<20xf32>
    %134 = vector.multi_reduction <maximumf>, %133, %cst_40 [1] : vector<20x20xf32> to vector<20xf32>
    %135 = vector.shape_cast %134 : vector<20xf32> to vector<20x1xf32>
    %136 = vector.broadcast %135 : vector<20x1xf32> to vector<20x20xf32>
    %137 = arith.subf %133, %136 : vector<20x20xf32>
    %138 = math.exp %137 : vector<20x20xf32>
    %cst_41 = arith.constant dense<0.000000e+00> : vector<20xf32>
    %139 = vector.multi_reduction <add>, %138, %cst_41 [1] : vector<20x20xf32> to vector<20xf32>
    %140 = vector.shape_cast %139 : vector<20xf32> to vector<20x1xf32>
    %141 = tpu.reciprocal %140 {approx = true} : vector<20x1xf32> -> vector<20x1xf32>
    %142 = vector.broadcast %141 : vector<20x1xf32> to vector<20x20xf32>
    %143 = arith.mulf %138, %142 : vector<20x20xf32>
    %144 = arith.truncf %143 : vector<20x20xf32> to vector<20x20xbf16>
    %cst_42 = arith.constant dense<0.000000e+00> : vector<20x8xf32>
    %145 = tpu.matmul %144, %130, %cst_42 {dimension_numbers = #tpu.dot_dimension_numbers<[1], [0], [0], [1], [0, 0, 1, 1], [], []>} : vector<20x20xbf16>, vector<20x8xbf16>, vector<20x8xf32> -> vector<20x8xf32>
    %146 = arith.truncf %145 : vector<20x8xf32> to vector<20x8xbf16>
    %147 = vector.extract_strided_slice %33 {offsets = [24, 0], sizes = [8, 32], strides = [1, 1]} : vector<32x32xbf16> to vector<8x32xbf16>
    %cst_43 = arith.constant dense<0.000000e+00> : vector<20x32xf32>
    %148 = tpu.matmul %146, %147, %cst_43 {dimension_numbers = #tpu.dot_dimension_numbers<[1], [0], [0], [1], [0, 0, 1, 1], [], []>} : vector<20x8xbf16>, vector<8x32xbf16>, vector<20x32xf32> -> vector<20x32xf32>
    %149 = arith.addf %124, %148 : vector<20x32xf32>
    %150 = vector.broadcast %17 : vector<1x32xf32> to vector<20x32xf32>
    %151 = arith.addf %149, %150 : vector<20x32xf32>
    %152 = arith.addf %3, %151 : vector<20x32xf32>
    %cst_44 = arith.constant dense<0.000000e+00> : vector<20xf32>
    %153 = vector.multi_reduction <add>, %152, %cst_44 [1] : vector<20x32xf32> to vector<20xf32>
    %154 = vector.shape_cast %153 : vector<20xf32> to vector<20x1xf32>
    %cst_45 = arith.constant 3.200000e+01 : f32
    %155 = vector.broadcast %cst_45 : f32 to vector<20x1xf32>
    %156 = arith.divf %154, %155 : vector<20x1xf32>
    %157 = arith.mulf %152, %152 : vector<20x32xf32>
    %cst_46 = arith.constant dense<0.000000e+00> : vector<20xf32>
    %158 = vector.multi_reduction <add>, %157, %cst_46 [1] : vector<20x32xf32> to vector<20xf32>
    %159 = vector.shape_cast %158 : vector<20xf32> to vector<20x1xf32>
    %cst_47 = arith.constant 3.200000e+01 : f32
    %160 = vector.broadcast %cst_47 : f32 to vector<20x1xf32>
    %161 = arith.divf %159, %160 : vector<20x1xf32>
    %162 = arith.mulf %156, %156 : vector<20x1xf32>
    %163 = arith.subf %161, %162 : vector<20x1xf32>
    %cst_48 = arith.constant 0.000000e+00 : f32
    %164 = vector.broadcast %cst_48 : f32 to vector<20x1xf32>
    %165 = arith.maximumf %163, %164 : vector<20x1xf32>
    %166 = vector.broadcast %156 : vector<20x1xf32> to vector<20x32xf32>
    %167 = arith.subf %152, %166 : vector<20x32xf32>
    %cst_49 = arith.constant 9.99999974E-6 : f32
    %168 = vector.broadcast %cst_49 : f32 to vector<20x1xf32>
    %169 = arith.addf %165, %168 : vector<20x1xf32>
    %170 = math.rsqrt %169 : vector<20x1xf32>
    %171 = vector.broadcast %170 : vector<20x1xf32> to vector<20x32xf32>
    %172 = arith.mulf %167, %171 : vector<20x32xf32>
    %173 = vector.broadcast %24 : vector<1x32xf32> to vector<20x32xf32>
    %174 = arith.mulf %172, %173 : vector<20x32xf32>
    %175 = vector.broadcast %25 : vector<1x32xf32> to vector<20x32xf32>
    %176 = arith.addf %174, %175 : vector<20x32xf32>
    %177 = arith.addf %176, %7 : vector<20x32xf32>
    %178 = arith.truncf %177 : vector<20x32xf32> to vector<20x32xbf16>
    %179 = arith.addf %5, %6 : vector<64x32xf32>
    %180 = arith.truncf %179 : vector<64x32xf32> to vector<64x32xbf16>
    %181 = arith.truncf %5 : vector<64x32xf32> to vector<64x32xbf16>
    %cst_50 = arith.constant dense<0.000000e+00> : vector<20x32xf32>
    %182 = tpu.matmul %178, %34, %cst_50 {dimension_numbers = #tpu.dot_dimension_numbers<[1], [0], [0], [1], [0, 0, 1, 1], [], []>} : vector<20x32xbf16>, vector<32x32xbf16>, vector<20x32xf32> -> vector<20x32xf32>
    %183 = vector.broadcast %18 : vector<1x32xf32> to vector<20x32xf32>
    %184 = arith.addf %182, %183 : vector<20x32xf32>
    %cst_51 = arith.constant dense<0.000000e+00> : vector<64x32xf32>
    %185 = tpu.matmul %180, %35, %cst_51 {dimension_numbers = #tpu.dot_dimension_numbers<[1], [0], [0], [1], [0, 0, 1, 1], [], []>} : vector<64x32xbf16>, vector<32x32xbf16>, vector<64x32xf32> -> vector<64x32xf32>
    %186 = vector.broadcast %19 : vector<1x32xf32> to vector<64x32xf32>
    %187 = arith.addf %185, %186 : vector<64x32xf32>
    %cst_52 = arith.constant dense<0.000000e+00> : vector<64x32xf32>
    %188 = tpu.matmul %181, %36, %cst_52 {dimension_numbers = #tpu.dot_dimension_numbers<[1], [0], [0], [1], [0, 0, 1, 1], [], []>} : vector<64x32xbf16>, vector<32x32xbf16>, vector<64x32xf32> -> vector<64x32xf32>
    %189 = vector.broadcast %20 : vector<1x32xf32> to vector<64x32xf32>
    %190 = arith.addf %188, %189 : vector<64x32xf32>
    %191 = vector.extract_strided_slice %184 {offsets = [0, 0], sizes = [20, 8], strides = [1, 1]} : vector<20x32xf32> to vector<20x8xf32>
    %192 = arith.truncf %191 : vector<20x8xf32> to vector<20x8xbf16>
    %193 = vector.extract_strided_slice %187 {offsets = [0, 0], sizes = [64, 8], strides = [1, 1]} : vector<64x32xf32> to vector<64x8xf32>
    %194 = arith.truncf %193 : vector<64x8xf32> to vector<64x8xbf16>
    %195 = vector.extract_strided_slice %190 {offsets = [0, 0], sizes = [64, 8], strides = [1, 1]} : vector<64x32xf32> to vector<64x8xf32>
    %196 = arith.truncf %195 : vector<64x8xf32> to vector<64x8xbf16>
    "tpu.trace_start"() <{level = 10 : i32, message = "qd,kd->qk"}> : () -> ()
    %cst_53 = arith.constant dense<0.000000e+00> : vector<20x64xf32>
    %197 = tpu.matmul %192, %194, %cst_53 {dimension_numbers = #tpu.dot_dimension_numbers<[1], [1], [0], [0], [0, 0, 1, 0], [], []>} : vector<20x8xbf16>, vector<64x8xbf16>, vector<20x64xf32> -> vector<20x64xf32>
    "tpu.trace_stop"() : () -> ()
    %cst_54 = arith.constant 0.353553385 : f32
    %198 = vector.broadcast %cst_54 : f32 to vector<20x64xf32>
    %199 = arith.mulf %197, %198 : vector<20x64xf32>
    %cst_55 = arith.constant dense<0xFF800000> : vector<20xf32>
    %200 = vector.multi_reduction <maximumf>, %199, %cst_55 [1] : vector<20x64xf32> to vector<20xf32>
    %201 = vector.shape_cast %200 : vector<20xf32> to vector<20x1xf32>
    %202 = vector.broadcast %201 : vector<20x1xf32> to vector<20x64xf32>
    %203 = arith.subf %199, %202 : vector<20x64xf32>
    %204 = math.exp %203 : vector<20x64xf32>
    %cst_56 = arith.constant dense<0.000000e+00> : vector<20xf32>
    %205 = vector.multi_reduction <add>, %204, %cst_56 [1] : vector<20x64xf32> to vector<20xf32>
    %206 = vector.shape_cast %205 : vector<20xf32> to vector<20x1xf32>
    %207 = tpu.reciprocal %206 {approx = true} : vector<20x1xf32> -> vector<20x1xf32>
    %208 = vector.broadcast %207 : vector<20x1xf32> to vector<20x64xf32>
    %209 = arith.mulf %204, %208 : vector<20x64xf32>
    %210 = arith.truncf %209 : vector<20x64xf32> to vector<20x64xbf16>
    %cst_57 = arith.constant dense<0.000000e+00> : vector<20x8xf32>
    %211 = tpu.matmul %210, %196, %cst_57 {dimension_numbers = #tpu.dot_dimension_numbers<[1], [0], [0], [1], [0, 0, 1, 1], [], []>} : vector<20x64xbf16>, vector<64x8xbf16>, vector<20x8xf32> -> vector<20x8xf32>
    %212 = arith.truncf %211 : vector<20x8xf32> to vector<20x8xbf16>
    %213 = vector.extract_strided_slice %37 {offsets = [0, 0], sizes = [8, 32], strides = [1, 1]} : vector<32x32xbf16> to vector<8x32xbf16>
    %cst_58 = arith.constant dense<0.000000e+00> : vector<20x32xf32>
    %214 = tpu.matmul %212, %213, %cst_58 {dimension_numbers = #tpu.dot_dimension_numbers<[1], [0], [0], [1], [0, 0, 1, 1], [], []>} : vector<20x8xbf16>, vector<8x32xbf16>, vector<20x32xf32> -> vector<20x32xf32>
    %215 = vector.extract_strided_slice %184 {offsets = [0, 8], sizes = [20, 8], strides = [1, 1]} : vector<20x32xf32> to vector<20x8xf32>
    %216 = arith.truncf %215 : vector<20x8xf32> to vector<20x8xbf16>
    %217 = vector.extract_strided_slice %187 {offsets = [0, 8], sizes = [64, 8], strides = [1, 1]} : vector<64x32xf32> to vector<64x8xf32>
    %218 = arith.truncf %217 : vector<64x8xf32> to vector<64x8xbf16>
    %219 = vector.extract_strided_slice %190 {offsets = [0, 8], sizes = [64, 8], strides = [1, 1]} : vector<64x32xf32> to vector<64x8xf32>
    %220 = arith.truncf %219 : vector<64x8xf32> to vector<64x8xbf16>
    "tpu.trace_start"() <{level = 10 : i32, message = "qd,kd->qk"}> : () -> ()
    %cst_59 = arith.constant dense<0.000000e+00> : vector<20x64xf32>
    %221 = tpu.matmul %216, %218, %cst_59 {dimension_numbers = #tpu.dot_dimension_numbers<[1], [1], [0], [0], [0, 0, 1, 0], [], []>} : vector<20x8xbf16>, vector<64x8xbf16>, vector<20x64xf32> -> vector<20x64xf32>
    "tpu.trace_stop"() : () -> ()
    %cst_60 = arith.constant 0.353553385 : f32
    %222 = vector.broadcast %cst_60 : f32 to vector<20x64xf32>
    %223 = arith.mulf %221, %222 : vector<20x64xf32>
    %cst_61 = arith.constant dense<0xFF800000> : vector<20xf32>
    %224 = vector.multi_reduction <maximumf>, %223, %cst_61 [1] : vector<20x64xf32> to vector<20xf32>
    %225 = vector.shape_cast %224 : vector<20xf32> to vector<20x1xf32>
    %226 = vector.broadcast %225 : vector<20x1xf32> to vector<20x64xf32>
    %227 = arith.subf %223, %226 : vector<20x64xf32>
    %228 = math.exp %227 : vector<20x64xf32>
    %cst_62 = arith.constant dense<0.000000e+00> : vector<20xf32>
    %229 = vector.multi_reduction <add>, %228, %cst_62 [1] : vector<20x64xf32> to vector<20xf32>
    %230 = vector.shape_cast %229 : vector<20xf32> to vector<20x1xf32>
    %231 = tpu.reciprocal %230 {approx = true} : vector<20x1xf32> -> vector<20x1xf32>
    %232 = vector.broadcast %231 : vector<20x1xf32> to vector<20x64xf32>
    %233 = arith.mulf %228, %232 : vector<20x64xf32>
    %234 = arith.truncf %233 : vector<20x64xf32> to vector<20x64xbf16>
    %cst_63 = arith.constant dense<0.000000e+00> : vector<20x8xf32>
    %235 = tpu.matmul %234, %220, %cst_63 {dimension_numbers = #tpu.dot_dimension_numbers<[1], [0], [0], [1], [0, 0, 1, 1], [], []>} : vector<20x64xbf16>, vector<64x8xbf16>, vector<20x8xf32> -> vector<20x8xf32>
    %236 = arith.truncf %235 : vector<20x8xf32> to vector<20x8xbf16>
    %237 = vector.extract_strided_slice %37 {offsets = [8, 0], sizes = [8, 32], strides = [1, 1]} : vector<32x32xbf16> to vector<8x32xbf16>
    %cst_64 = arith.constant dense<0.000000e+00> : vector<20x32xf32>
    %238 = tpu.matmul %236, %237, %cst_64 {dimension_numbers = #tpu.dot_dimension_numbers<[1], [0], [0], [1], [0, 0, 1, 1], [], []>} : vector<20x8xbf16>, vector<8x32xbf16>, vector<20x32xf32> -> vector<20x32xf32>
    %239 = arith.addf %214, %238 : vector<20x32xf32>
    %240 = vector.extract_strided_slice %184 {offsets = [0, 16], sizes = [20, 8], strides = [1, 1]} : vector<20x32xf32> to vector<20x8xf32>
    %241 = arith.truncf %240 : vector<20x8xf32> to vector<20x8xbf16>
    %242 = vector.extract_strided_slice %187 {offsets = [0, 16], sizes = [64, 8], strides = [1, 1]} : vector<64x32xf32> to vector<64x8xf32>
    %243 = arith.truncf %242 : vector<64x8xf32> to vector<64x8xbf16>
    %244 = vector.extract_strided_slice %190 {offsets = [0, 16], sizes = [64, 8], strides = [1, 1]} : vector<64x32xf32> to vector<64x8xf32>
    %245 = arith.truncf %244 : vector<64x8xf32> to vector<64x8xbf16>
    "tpu.trace_start"() <{level = 10 : i32, message = "qd,kd->qk"}> : () -> ()
    %cst_65 = arith.constant dense<0.000000e+00> : vector<20x64xf32>
    %246 = tpu.matmul %241, %243, %cst_65 {dimension_numbers = #tpu.dot_dimension_numbers<[1], [1], [0], [0], [0, 0, 1, 0], [], []>} : vector<20x8xbf16>, vector<64x8xbf16>, vector<20x64xf32> -> vector<20x64xf32>
    "tpu.trace_stop"() : () -> ()
    %cst_66 = arith.constant 0.353553385 : f32
    %247 = vector.broadcast %cst_66 : f32 to vector<20x64xf32>
    %248 = arith.mulf %246, %247 : vector<20x64xf32>
    %cst_67 = arith.constant dense<0xFF800000> : vector<20xf32>
    %249 = vector.multi_reduction <maximumf>, %248, %cst_67 [1] : vector<20x64xf32> to vector<20xf32>
    %250 = vector.shape_cast %249 : vector<20xf32> to vector<20x1xf32>
    %251 = vector.broadcast %250 : vector<20x1xf32> to vector<20x64xf32>
    %252 = arith.subf %248, %251 : vector<20x64xf32>
    %253 = math.exp %252 : vector<20x64xf32>
    %cst_68 = arith.constant dense<0.000000e+00> : vector<20xf32>
    %254 = vector.multi_reduction <add>, %253, %cst_68 [1] : vector<20x64xf32> to vector<20xf32>
    %255 = vector.shape_cast %254 : vector<20xf32> to vector<20x1xf32>
    %256 = tpu.reciprocal %255 {approx = true} : vector<20x1xf32> -> vector<20x1xf32>
    %257 = vector.broadcast %256 : vector<20x1xf32> to vector<20x64xf32>
    %258 = arith.mulf %253, %257 : vector<20x64xf32>
    %259 = arith.truncf %258 : vector<20x64xf32> to vector<20x64xbf16>
    %cst_69 = arith.constant dense<0.000000e+00> : vector<20x8xf32>
    %260 = tpu.matmul %259, %245, %cst_69 {dimension_numbers = #tpu.dot_dimension_numbers<[1], [0], [0], [1], [0, 0, 1, 1], [], []>} : vector<20x64xbf16>, vector<64x8xbf16>, vector<20x8xf32> -> vector<20x8xf32>
    %261 = arith.truncf %260 : vector<20x8xf32> to vector<20x8xbf16>
    %262 = vector.extract_strided_slice %37 {offsets = [16, 0], sizes = [8, 32], strides = [1, 1]} : vector<32x32xbf16> to vector<8x32xbf16>
    %cst_70 = arith.constant dense<0.000000e+00> : vector<20x32xf32>
    %263 = tpu.matmul %261, %262, %cst_70 {dimension_numbers = #tpu.dot_dimension_numbers<[1], [0], [0], [1], [0, 0, 1, 1], [], []>} : vector<20x8xbf16>, vector<8x32xbf16>, vector<20x32xf32> -> vector<20x32xf32>
    %264 = arith.addf %239, %263 : vector<20x32xf32>
    %265 = vector.extract_strided_slice %184 {offsets = [0, 24], sizes = [20, 8], strides = [1, 1]} : vector<20x32xf32> to vector<20x8xf32>
    %266 = arith.truncf %265 : vector<20x8xf32> to vector<20x8xbf16>
    %267 = vector.extract_strided_slice %187 {offsets = [0, 24], sizes = [64, 8], strides = [1, 1]} : vector<64x32xf32> to vector<64x8xf32>
    %268 = arith.truncf %267 : vector<64x8xf32> to vector<64x8xbf16>
    %269 = vector.extract_strided_slice %190 {offsets = [0, 24], sizes = [64, 8], strides = [1, 1]} : vector<64x32xf32> to vector<64x8xf32>
    %270 = arith.truncf %269 : vector<64x8xf32> to vector<64x8xbf16>
    "tpu.trace_start"() <{level = 10 : i32, message = "qd,kd->qk"}> : () -> ()
    %cst_71 = arith.constant dense<0.000000e+00> : vector<20x64xf32>
    %271 = tpu.matmul %266, %268, %cst_71 {dimension_numbers = #tpu.dot_dimension_numbers<[1], [1], [0], [0], [0, 0, 1, 0], [], []>} : vector<20x8xbf16>, vector<64x8xbf16>, vector<20x64xf32> -> vector<20x64xf32>
    "tpu.trace_stop"() : () -> ()
    %cst_72 = arith.constant 0.353553385 : f32
    %272 = vector.broadcast %cst_72 : f32 to vector<20x64xf32>
    %273 = arith.mulf %271, %272 : vector<20x64xf32>
    %cst_73 = arith.constant dense<0xFF800000> : vector<20xf32>
    %274 = vector.multi_reduction <maximumf>, %273, %cst_73 [1] : vector<20x64xf32> to vector<20xf32>
    %275 = vector.shape_cast %274 : vector<20xf32> to vector<20x1xf32>
    %276 = vector.broadcast %275 : vector<20x1xf32> to vector<20x64xf32>
    %277 = arith.subf %273, %276 : vector<20x64xf32>
    %278 = math.exp %277 : vector<20x64xf32>
    %cst_74 = arith.constant dense<0.000000e+00> : vector<20xf32>
    %279 = vector.multi_reduction <add>, %278, %cst_74 [1] : vector<20x64xf32> to vector<20xf32>
    %280 = vector.shape_cast %279 : vector<20xf32> to vector<20x1xf32>
    %281 = tpu.reciprocal %280 {approx = true} : vector<20x1xf32> -> vector<20x1xf32>
    %282 = vector.broadcast %281 : vector<20x1xf32> to vector<20x64xf32>
    %283 = arith.mulf %278, %282 : vector<20x64xf32>
    %284 = arith.truncf %283 : vector<20x64xf32> to vector<20x64xbf16>
    %cst_75 = arith.constant dense<0.000000e+00> : vector<20x8xf32>
    %285 = tpu.matmul %284, %270, %cst_75 {dimension_numbers = #tpu.dot_dimension_numbers<[1], [0], [0], [1], [0, 0, 1, 1], [], []>} : vector<20x64xbf16>, vector<64x8xbf16>, vector<20x8xf32> -> vector<20x8xf32>
    %286 = arith.truncf %285 : vector<20x8xf32> to vector<20x8xbf16>
    %287 = vector.extract_strided_slice %37 {offsets = [24, 0], sizes = [8, 32], strides = [1, 1]} : vector<32x32xbf16> to vector<8x32xbf16>
    %cst_76 = arith.constant dense<0.000000e+00> : vector<20x32xf32>
    %288 = tpu.matmul %286, %287, %cst_76 {dimension_numbers = #tpu.dot_dimension_numbers<[1], [0], [0], [1], [0, 0, 1, 1], [], []>} : vector<20x8xbf16>, vector<8x32xbf16>, vector<20x32xf32> -> vector<20x32xf32>
    %289 = arith.addf %264, %288 : vector<20x32xf32>
    %290 = vector.broadcast %21 : vector<1x32xf32> to vector<20x32xf32>
    %291 = arith.addf %289, %290 : vector<20x32xf32>
    %292 = arith.addf %176, %291 : vector<20x32xf32>
    %cst_77 = arith.constant dense<0.000000e+00> : vector<20xf32>
    %293 = vector.multi_reduction <add>, %292, %cst_77 [1] : vector<20x32xf32> to vector<20xf32>
    %294 = vector.shape_cast %293 : vector<20xf32> to vector<20x1xf32>
    %cst_78 = arith.constant 3.200000e+01 : f32
    %295 = vector.broadcast %cst_78 : f32 to vector<20x1xf32>
    %296 = arith.divf %294, %295 : vector<20x1xf32>
    %297 = arith.mulf %292, %292 : vector<20x32xf32>
    %cst_79 = arith.constant dense<0.000000e+00> : vector<20xf32>
    %298 = vector.multi_reduction <add>, %297, %cst_79 [1] : vector<20x32xf32> to vector<20xf32>
    %299 = vector.shape_cast %298 : vector<20xf32> to vector<20x1xf32>
    %cst_80 = arith.constant 3.200000e+01 : f32
    %300 = vector.broadcast %cst_80 : f32 to vector<20x1xf32>
    %301 = arith.divf %299, %300 : vector<20x1xf32>
    %302 = arith.mulf %296, %296 : vector<20x1xf32>
    %303 = arith.subf %301, %302 : vector<20x1xf32>
    %cst_81 = arith.constant 0.000000e+00 : f32
    %304 = vector.broadcast %cst_81 : f32 to vector<20x1xf32>
    %305 = arith.maximumf %303, %304 : vector<20x1xf32>
    %306 = vector.broadcast %296 : vector<20x1xf32> to vector<20x32xf32>
    %307 = arith.subf %292, %306 : vector<20x32xf32>
    %cst_82 = arith.constant 9.99999974E-6 : f32
    %308 = vector.broadcast %cst_82 : f32 to vector<20x1xf32>
    %309 = arith.addf %305, %308 : vector<20x1xf32>
    %310 = math.rsqrt %309 : vector<20x1xf32>
    %311 = vector.broadcast %310 : vector<20x1xf32> to vector<20x32xf32>
    %312 = arith.mulf %307, %311 : vector<20x32xf32>
    %313 = vector.broadcast %26 : vector<1x32xf32> to vector<20x32xf32>
    %314 = arith.mulf %312, %313 : vector<20x32xf32>
    %315 = vector.broadcast %27 : vector<1x32xf32> to vector<20x32xf32>
    %316 = arith.addf %314, %315 : vector<20x32xf32>
    %317 = arith.truncf %316 : vector<20x32xf32> to vector<20x32xbf16>
    %cst_83 = arith.constant dense<0.000000e+00> : vector<20x64xf32>
    %318 = tpu.matmul %317, %38, %cst_83 {dimension_numbers = #tpu.dot_dimension_numbers<[1], [0], [0], [1], [0, 0, 1, 1], [], []>} : vector<20x32xbf16>, vector<32x64xbf16>, vector<20x64xf32> -> vector<20x64xf32>
    %319 = vector.broadcast %22 : vector<1x64xf32> to vector<20x64xf32>
    %320 = arith.addf %318, %319 : vector<20x64xf32>
    %cst_84 = arith.constant 0.000000e+00 : f32
    %321 = vector.broadcast %cst_84 : f32 to vector<20x64xf32>
    %322 = arith.maximumf %320, %321 : vector<20x64xf32>
    %323 = arith.truncf %322 : vector<20x64xf32> to vector<20x64xbf16>
    %cst_85 = arith.constant dense<0.000000e+00> : vector<20x32xf32>
    %324 = tpu.matmul %323, %11, %cst_85 {dimension_numbers = #tpu.dot_dimension_numbers<[1], [0], [0], [1], [0, 0, 1, 1], [], []>} : vector<20x64xbf16>, vector<64x32xbf16>, vector<20x32xf32> -> vector<20x32xf32>
    %325 = vector.broadcast %23 : vector<1x32xf32> to vector<20x32xf32>
    %326 = arith.addf %324, %325 : vector<20x32xf32>
    %327 = arith.addf %316, %326 : vector<20x32xf32>
    %cst_86 = arith.constant dense<0.000000e+00> : vector<20xf32>
    %328 = vector.multi_reduction <add>, %327, %cst_86 [1] : vector<20x32xf32> to vector<20xf32>
    %329 = vector.shape_cast %328 : vector<20xf32> to vector<20x1xf32>
    %cst_87 = arith.constant 3.200000e+01 : f32
    %330 = vector.broadcast %cst_87 : f32 to vector<20x1xf32>
    %331 = arith.divf %329, %330 : vector<20x1xf32>
    %332 = arith.mulf %327, %327 : vector<20x32xf32>
    %cst_88 = arith.constant dense<0.000000e+00> : vector<20xf32>
    %333 = vector.multi_reduction <add>, %332, %cst_88 [1] : vector<20x32xf32> to vector<20xf32>
    %334 = vector.shape_cast %333 : vector<20xf32> to vector<20x1xf32>
    %cst_89 = arith.constant 3.200000e+01 : f32
    %335 = vector.broadcast %cst_89 : f32 to vector<20x1xf32>
    %336 = arith.divf %334, %335 : vector<20x1xf32>
    %337 = arith.mulf %331, %331 : vector<20x1xf32>
    %338 = arith.subf %336, %337 : vector<20x1xf32>
    %cst_90 = arith.constant 0.000000e+00 : f32
    %339 = vector.broadcast %cst_90 : f32 to vector<20x1xf32>
    %340 = arith.maximumf %338, %339 : vector<20x1xf32>
    %341 = vector.broadcast %331 : vector<20x1xf32> to vector<20x32xf32>
    %342 = arith.subf %327, %341 : vector<20x32xf32>
    %cst_91 = arith.constant 9.99999974E-6 : f32
    %343 = vector.broadcast %cst_91 : f32 to vector<20x1xf32>
    %344 = arith.addf %340, %343 : vector<20x1xf32>
    %345 = math.rsqrt %344 : vector<20x1xf32>
    %346 = vector.broadcast %345 : vector<20x1xf32> to vector<20x32xf32>
    %347 = arith.mulf %342, %346 : vector<20x32xf32>
    %348 = vector.broadcast %28 : vector<1x32xf32> to vector<20x32xf32>
    %349 = arith.mulf %347, %348 : vector<20x32xf32>
    %350 = vector.broadcast %29 : vector<1x32xf32> to vector<20x32xf32>
    %351 = arith.addf %349, %350 : vector<20x32xf32>
    %c0_92 = arith.constant 0 : index
    %c0_93 = arith.constant 0 : index
    %352 = vector.load %arg13[%c0_92, %c0_93] : memref<20x32xf32, #tpu.memory_space<vmem>>, vector<20x32xf32>
    tpu.vector_store %arg13[%c0_92, %c0_93], %351 {strides = array<i32>} : memref<20x32xf32, #tpu.memory_space<vmem>>, vector<20x32xf32>,
    %c1_i32 = arith.constant 1 : i32
    %353 = arith.cmpi eq, %arg1, %c1_i32 : i32
    %354 = arith.extui %353 : i1 to i32
    %c0_i32_94 = arith.constant 0 : i32
    %355 = arith.cmpi ne, %354, %c0_i32_94 : i32
    scf.if %355 {
      %c0_95 = arith.constant 0 : index
      %c0_96 = arith.constant 0 : index
      %356 = vector.load %arg8[%c0_95, %c0_96] : memref<32x36xbf16, #tpu.memory_space<vmem>>, vector<32x36xbf16>
      %c0_97 = arith.constant 0 : index
      %c0_98 = arith.constant 0 : index
      %357 = vector.load %arg9[%c0_97, %c0_98] : memref<32x36xbf16, #tpu.memory_space<vmem>>, vector<32x36xbf16>
      %c0_99 = arith.constant 0 : index
      %c0_100 = arith.constant 0 : index
      %358 = vector.load %arg10[%c0_99, %c0_100] : memref<5x36xf32, #tpu.memory_space<vmem>>, vector<5x36xf32>
      %359 = vector.extract_strided_slice %358 {offsets = [0, 0], sizes = [1, 36], strides = [1, 1]} : vector<5x36xf32> to vector<1x36xf32>
      %360 = vector.extract_strided_slice %358 {offsets = [1, 0], sizes = [1, 32], strides = [1, 1]} : vector<5x36xf32> to vector<1x32xf32>
      %361 = vector.extract_strided_slice %358 {offsets = [2, 0], sizes = [1, 4], strides = [1, 1]} : vector<5x36xf32> to vector<1x4xf32>
      %362 = vector.extract_strided_slice %358 {offsets = [3, 0], sizes = [1, 32], strides = [1, 1]} : vector<5x36xf32> to vector<1x32xf32>
      %363 = vector.extract_strided_slice %358 {offsets = [4, 0], sizes = [1, 32], strides = [1, 1]} : vector<5x36xf32> to vector<1x32xf32>
      %cst_101 = arith.constant dense<0.000000e+00> : vector<20xf32>
      %364 = vector.multi_reduction <add>, %351, %cst_101 [1] : vector<20x32xf32> to vector<20xf32>
      %365 = vector.shape_cast %364 : vector<20xf32> to vector<20x1xf32>
      %cst_102 = arith.constant 3.200000e+01 : f32
      %366 = vector.broadcast %cst_102 : f32 to vector<20x1xf32>
      %367 = arith.divf %365, %366 : vector<20x1xf32>
      %368 = arith.mulf %351, %351 : vector<20x32xf32>
      %cst_103 = arith.constant dense<0.000000e+00> : vector<20xf32>
      %369 = vector.multi_reduction <add>, %368, %cst_103 [1] : vector<20x32xf32> to vector<20xf32>
      %370 = vector.shape_cast %369 : vector<20xf32> to vector<20x1xf32>
      %cst_104 = arith.constant 3.200000e+01 : f32
      %371 = vector.broadcast %cst_104 : f32 to vector<20x1xf32>
      %372 = arith.divf %370, %371 : vector<20x1xf32>
      %373 = arith.mulf %367, %367 : vector<20x1xf32>
      %374 = arith.subf %372, %373 : vector<20x1xf32>
      %cst_105 = arith.constant 0.000000e+00 : f32
      %375 = vector.broadcast %cst_105 : f32 to vector<20x1xf32>
      %376 = arith.maximumf %374, %375 : vector<20x1xf32>
      %377 = vector.broadcast %367 : vector<20x1xf32> to vector<20x32xf32>
      %378 = arith.subf %351, %377 : vector<20x32xf32>
      %cst_106 = arith.constant 9.99999974E-6 : f32
      %379 = vector.broadcast %cst_106 : f32 to vector<20x1xf32>
      %380 = arith.addf %376, %379 : vector<20x1xf32>
      %381 = math.rsqrt %380 : vector<20x1xf32>
      %382 = vector.broadcast %381 : vector<20x1xf32> to vector<20x32xf32>
      %383 = arith.mulf %378, %382 : vector<20x32xf32>
      %384 = vector.broadcast %362 : vector<1x32xf32> to vector<20x32xf32>
      %385 = arith.mulf %383, %384 : vector<20x32xf32>
      %386 = vector.broadcast %363 : vector<1x32xf32> to vector<20x32xf32>
      %387 = arith.addf %385, %386 : vector<20x32xf32>
      %388 = arith.truncf %387 : vector<20x32xf32> to vector<20x32xbf16>
      %cst_107 = arith.constant dense<0.000000e+00> : vector<20x36xf32>
      %389 = tpu.matmul %388, %356, %cst_107 {dimension_numbers = #tpu.dot_dimension_numbers<[1], [0], [0], [1], [0, 0, 1, 1], [], []>} : vector<20x32xbf16>, vector<32x36xbf16>, vector<20x36xf32> -> vector<20x36xf32>
      %390 = vector.broadcast %359 : vector<1x36xf32> to vector<20x36xf32>
      %391 = arith.addf %389, %390 : vector<20x36xf32>
      %392 = vector.extract_strided_slice %391 {offsets = [0, 32], sizes = [20, 4], strides = [1, 1]} : vector<20x36xf32> to vector<20x4xf32>
      %c0_108 = arith.constant 0 : index
      %c0_109 = arith.constant 0 : index
      %c0_110 = arith.constant 0 : index
      %393 = vector.load %arg11[%c0_108, %c0_109, %c0_110] : memref<1x20x4xf32, #tpu.memory_space<vmem>>, vector<1x20x4xf32>
      %394 = vector.shape_cast %393 : vector<1x20x4xf32> to vector<20x4xf32>
      %395 = vector.shape_cast %392 : vector<20x4xf32> to vector<1x20x4xf32>
      tpu.vector_store %arg11[%c0_108, %c0_109, %c0_110], %395 {strides = array<i32>} : memref<1x20x4xf32, #tpu.memory_space<vmem>>, vector<1x20x4xf32>,
      %396 = vector.extract_strided_slice %391 {offsets = [0, 0], sizes = [20, 32], strides = [1, 1]} : vector<20x36xf32> to vector<20x32xf32>
      %cst_111 = arith.constant 0.000000e+00 : f32
      %397 = vector.broadcast %cst_111 : f32 to vector<20x32xf32>
      %398 = arith.maximumf %396, %397 : vector<20x32xf32>
      %399 = arith.truncf %398 : vector<20x32xf32> to vector<20x32xbf16>
      %400 = vector.extract_strided_slice %357 {offsets = [0, 0], sizes = [32, 32], strides = [1, 1]} : vector<32x36xbf16> to vector<32x32xbf16>
      %cst_112 = arith.constant dense<0.000000e+00> : vector<20x32xf32>
      %401 = tpu.matmul %399, %400, %cst_112 {dimension_numbers = #tpu.dot_dimension_numbers<[1], [0], [0], [1], [0, 0, 1, 1], [], []>} : vector<20x32xbf16>, vector<32x32xbf16>, vector<20x32xf32> -> vector<20x32xf32>
      %402 = vector.broadcast %360 : vector<1x32xf32> to vector<20x32xf32>
      %403 = arith.addf %401, %402 : vector<20x32xf32>
      %cst_113 = arith.constant 0.000000e+00 : f32
      %404 = vector.broadcast %cst_113 : f32 to vector<20x32xf32>
      %405 = arith.maximumf %403, %404 : vector<20x32xf32>
      %406 = arith.truncf %405 : vector<20x32xf32> to vector<20x32xbf16>
      %407 = vector.extract_strided_slice %357 {offsets = [0, 32], sizes = [32, 4], strides = [1, 1]} : vector<32x36xbf16> to vector<32x4xbf16>
      %cst_114 = arith.constant dense<0.000000e+00> : vector<20x4xf32>
      %408 = tpu.matmul %406, %407, %cst_114 {dimension_numbers = #tpu.dot_dimension_numbers<[1], [0], [0], [1], [0, 0, 1, 1], [], []>} : vector<20x32xbf16>, vector<32x4xbf16>, vector<20x4xf32> -> vector<20x4xf32>
      %409 = vector.broadcast %361 : vector<1x4xf32> to vector<20x4xf32>
      %410 = arith.addf %408, %409 : vector<20x4xf32>
      %411 = arith.negf %410 : vector<20x4xf32>
      %412 = math.exp %411 : vector<20x4xf32>
      %cst_115 = arith.constant 1.000000e+00 : f32
      %413 = vector.broadcast %cst_115 : f32 to vector<20x4xf32>
      %414 = arith.addf %413, %412 : vector<20x4xf32>
      %415 = arith.divf %413, %414 : vector<20x4xf32>
      %c0_116 = arith.constant 0 : index
      %c0_117 = arith.constant 0 : index
      %c0_118 = arith.constant 0 : index
      %416 = vector.load %arg12[%c0_116, %c0_117, %c0_118] : memref<1x20x4xf32, #tpu.memory_space<vmem>>, vector<1x20x4xf32>
      %417 = vector.shape_cast %416 : vector<1x20x4xf32> to vector<20x4xf32>
      %418 = vector.shape_cast %415 : vector<20x4xf32> to vector<1x20x4xf32>
      tpu.vector_store %arg12[%c0_116, %c0_117, %c0_118], %418 {strides = array<i32>} : memref<1x20x4xf32, #tpu.memory_space<vmem>>, vector<1x20x4xf32>,
    } else {
    }
    return
  }
  func.func @transform_0(%arg0: i32, %arg1: i32) -> (i32, i32, i32) {
    %c0_i32 = arith.constant 0 : i32
    %c0_i32_0 = arith.constant 0 : i32
    %c0_i32_1 = arith.constant 0 : i32
    return %arg0, %c0_i32, %c0_i32_0 : i32, i32, i32
  }
  func.func @transform_1(%arg0: i32, %arg1: i32) -> (i32, i32) {
    %c0_i32 = arith.constant 0 : i32
    %c0_i32_0 = arith.constant 0 : i32
    %c0_i32_1 = arith.constant 0 : i32
    return %c0_i32, %c0_i32_0 : i32, i32
  }
  func.func @transform_2(%arg0: i32, %arg1: i32) -> (i32, i32) {
    %c0_i32 = arith.constant 0 : i32
    %c0_i32_0 = arith.constant 0 : i32
    %c0_i32_1 = arith.constant 0 : i32
    return %c0_i32, %c0_i32_0 : i32, i32
  }
  func.func @transform_3(%arg0: i32, %arg1: i32) -> (i32, i32, i32) {
    %c0_i32 = arith.constant 0 : i32
    %c0_i32_0 = arith.constant 0 : i32
    %c0_i32_1 = arith.constant 0 : i32
    return %arg1, %c0_i32, %c0_i32_0 : i32, i32, i32
  }
  func.func @transform_4(%arg0: i32, %arg1: i32) -> (i32, i32, i32) {
    %c0_i32 = arith.constant 0 : i32
    %c0_i32_0 = arith.constant 0 : i32
    %c0_i32_1 = arith.constant 0 : i32
    return %arg1, %c0_i32, %c0_i32_0 : i32, i32, i32
  }
  func.func @transform_5(%arg0: i32, %arg1: i32) -> (i32, i32, i32) {
    %c0_i32 = arith.constant 0 : i32
    %c0_i32_0 = arith.constant 0 : i32
    %c0_i32_1 = arith.constant 0 : i32
    return %arg1, %c0_i32, %c0_i32_0 : i32, i32, i32
  }
  func.func @transform_6(%arg0: i32, %arg1: i32) -> (i32, i32) {
    %c0_i32 = arith.constant 0 : i32
    %c0_i32_0 = arith.constant 0 : i32
    %c0_i32_1 = arith.constant 0 : i32
    return %c0_i32, %c0_i32_0 : i32, i32
  }
  func.func @transform_7(%arg0: i32, %arg1: i32) -> (i32, i32) {
    %c0_i32 = arith.constant 0 : i32
    %c0_i32_0 = arith.constant 0 : i32
    %c0_i32_1 = arith.constant 0 : i32
    return %c0_i32, %c0_i32_0 : i32, i32
  }
  func.func @transform_8(%arg0: i32, %arg1: i32) -> (i32, i32) {
    %c0_i32 = arith.constant 0 : i32
    %c0_i32_0 = arith.constant 0 : i32
    %c0_i32_1 = arith.constant 0 : i32
    return %c0_i32, %c0_i32_0 : i32, i32
  }
  func.func @transform_9(%arg0: i32, %arg1: i32) -> (i32, i32, i32) {
    %c0_i32 = arith.constant 0 : i32
    %c0_i32_0 = arith.constant 0 : i32
    %c0_i32_1 = arith.constant 0 : i32
    return %arg0, %c0_i32, %c0_i32_0 : i32, i32, i32
  }
  func.func @transform_10(%arg0: i32, %arg1: i32) -> (i32, i32, i32) {
    %c0_i32 = arith.constant 0 : i32
    %c0_i32_0 = arith.constant 0 : i32
    %c0_i32_1 = arith.constant 0 : i32
    return %arg0, %c0_i32, %c0_i32_0 : i32, i32, i32
  }
}

</mosaic_0001>

<bundles_post_ra>
// kernel: detr_forward.4
= control target key start
LH: loop header
LB: loop body
LE: loop exit
PB: predicated region body
PF: predicated region fallthrough
CT: control target
= control target key end

     0   :  { %vm230_vm0 = vcmask 1044480   ;;  %vm231_vm1 = vcmask 1045504   ;;  %v803_v1 = vmov 65535   ;;  %vm133_vm2 = vcmask 220160   ;;  %s1379_s1 = inlined_call_operand.vmem [shape: bf16[27,16], index: 1, kind: input, shape index: {}]   ;;  %s1380_s0 = inlined_call_operand.vmem [shape: f32[512,27], index: 0, kind: input, shape index: {}]   ;;  %s1381_s2 = inlined_call_operand.vmem [shape: f32[1,16], index: 2, kind: input, shape index: {}]   ;;  %s1382_s3 = inlined_call_operand.vmem [shape: f32[512,16], index: 3, kind: output, shape index: {}]  }
   0x1   :  { %v801_v0 = vld [vmem:[%s1379_s1 + $0x8] sm:$0x3f]   ;;  %v232_v2 = vsel %vm230_vm0, 4294967295, %v803_v1  ;;  %v15_v4 = vld [vmem:[%s1380_s0] sm:$0xff]  ;;  %v17_v12 = vld [vmem:[%s1380_s0 + $0x10] sm:$0xff]  ;;  %vm590_vm3 = vcmask 130048  }
   0x2   :  { %v233_v3 = vsel %vm231_vm1, %v232_v2, 0  ;;  %v16_v5 = vld [vmem:[%s1380_s0 + $0x8] sm:$0xff]  ;;  %v47_v6 = vld [vmem:[%s1380_s0 + $0x100] sm:$0xff]  ;;  %v18_v13 = vld [vmem:[%s1380_s0 + $0x18] sm:$0xff] }
   0x3   :  { %v235_v7 = vand.u32 %v801_v0, %v233_v3  ;;  %v802_v8 = vld [vmem:[%s1379_s1] sm:$0xff]   ;;  %v48_v9 = vld [vmem:[%s1380_s0 + $0x108] sm:$0xff]  ;;  %v79_v10 = vpack.c.bf16 %v16_v5, %v15_v4  ;;  %v49_v14 = vld [vmem:[%s1380_s0 + $0x110] sm:$0xff]  ;;  %v80_v20 = vpack.c.bf16 %v18_v13, %v17_v12 }
   0x4   :  { %v95_v11 = vpack.c.bf16 %v48_v9, %v47_v6  ;;  %v50_v15 = vld [vmem:[%s1380_s0 + $0x118] sm:$0xff]  ;;  %v19_v16 = vld [vmem:[%s1380_s0 + $0x20] sm:$0xff]  ;;  %v20_v17 = vld [vmem:[%s1380_s0 + $0x28] sm:$0xff] }
   0x5   :  { %728 = vmatprep.subr.bf16.mxu0 %v235_v7  ;;  %796 = vmatprep.subr.bf16.mxu1 %v235_v7  ;;  %v51_v18 = vld [vmem:[%s1380_s0 + $0x120] sm:$0xff]  ;;  %v52_v19 = vld [vmem:[%s1380_s0 + $0x128] sm:$0xff]  ;;  %v96_v21 = vpack.c.bf16 %v50_v15, %v49_v14  ;;  %v81_v22 = vpack.c.bf16 %v20_v17, %v19_v16  ;;  %v21_v24 = vld [vmem:[%s1380_s0 + $0x30] sm:$0xff] }
   0x6   :  { %729 = vmatpush3.bf16.msra.mxu0 %v235_v7  ;;  %798 = vmatpush3.bf16.msra.mxu1 %v235_v7  ;;  %v97_v23 = vpack.c.bf16 %v52_v19, %v51_v18  ;;  %v22_v25 = vld [vmem:[%s1380_s0 + $0x38] sm:$0xff]  ;;  %v53_v26 = vld [vmem:[%s1380_s0 + $0x130] sm:$0xff]  ;;  %v23_v28 = vld [vmem:[%s1380_s0 + $0x40] sm:$0xff] }
   0x7   :  { %730 = vmatprep.subr.bf16.mxu0 %v802_v8  ;;  %797 = vmatprep.subr.bf16.mxu1 %v802_v8  ;;  %v54_v27 = vld [vmem:[%s1380_s0 + $0x138] sm:$0xff]  ;;  %v24_v29 = vld [vmem:[%s1380_s0 + $0x48] sm:$0xff]  ;;  %v55_v30 = vld [vmem:[%s1380_s0 + $0x140] sm:$0xff]  ;;  %v82_v32 = vpack.c.bf16 %v22_v25, %v21_v24 }
   0x8   :  { %732 = vmatprep.mubr.msk.bf16.mxu0 %vm133_vm2, %v79_v10  ;;  %764 = vmatprep.mubr.msk.bf16.mxu1 %vm133_vm2, %v95_v11  ;;  %v56_v31 = vld [vmem:[%s1380_s0 + $0x148] sm:$0xff]  ;;  %v98_v33 = vpack.c.bf16 %v54_v27, %v53_v26  ;;  %v83_v34 = vpack.c.bf16 %v24_v29, %v23_v28  ;;  %v25_v36 = vld [vmem:[%s1380_s0 + $0x50] sm:$0xff]  ;;  %v26_v37 = vld [vmem:[%s1380_s0 + $0x58] sm:$0xff] }
   0x9   :  { %v99_v35 = vpack.c.bf16 %v56_v31, %v55_v30  ;;  %v57_v38 = vld [vmem:[%s1380_s0 + $0x150] sm:$0xff]  ;;  %v58_v39 = vld [vmem:[%s1380_s0 + $0x158] sm:$0xff]  ;;  %v27_v40 = vld [vmem:[%s1380_s0 + $0x60] sm:$0xff]  ;;  %v84_v44 = vpack.c.bf16 %v26_v37, %v25_v36 }
   0xa   :  { %731 = vmatpush3.bf16.msra.mxu0 %v802_v8  ;;  %799 = vmatpush3.bf16.msra.mxu1 %v802_v8  ;;  %v28_v41 = vld [vmem:[%s1380_s0 + $0x68] sm:$0xff]  ;;  %v59_v42 = vld [vmem:[%s1380_s0 + $0x160] sm:$0xff]  ;;  %v100_v45 = vpack.c.bf16 %v58_v39, %v57_v38  ;;  %v29_v48 = vld [vmem:[%s1380_s0 + $0x70] sm:$0xff] }
   0xb   :  { %v60_v43 = vld [vmem:[%s1380_s0 + $0x168] sm:$0xff]  ;;  %v85_v46 = vpack.c.bf16 %v28_v41, %v27_v40  ;;  %v30_v49 = vld [vmem:[%s1380_s0 + $0x78] sm:$0xff]  ;;  %v61_v50 = vld [vmem:[%s1380_s0 + $0x170] sm:$0xff] }
   0xc   :  { %v101_v47 = vpack.c.bf16 %v60_v43, %v59_v42  ;;  %v62_v51 = vld [vmem:[%s1380_s0 + $0x178] sm:$0xff]  ;;  %v31_v52 = vld [vmem:[%s1380_s0 + $0x80] sm:$0xff]  ;;  %v32_v53 = vld [vmem:[%s1380_s0 + $0x88] sm:$0xff]  ;;  %v86_v56 = vpack.c.bf16 %v30_v49, %v29_v48 }
   0xd   :  { %733 = vmatmul.mubr.msk.bf16.vlgmr.msra.gmra.mxu0 %vm133_vm2, %v80_v20  ;;  %765 = vmatmul.mubr.msk.bf16.vlgmr.msra.gmra.mxu1 %vm133_vm2, %v96_v21  ;;  %v63_v54 = vld [vmem:[%s1380_s0 + $0x180] sm:$0xff]  ;;  %v64_v55 = vld [vmem:[%s1380_s0 + $0x188] sm:$0xff]  ;;  %v102_v57 = vpack.c.bf16 %v62_v51, %v61_v50  ;;  %v87_v58 = vpack.c.bf16 %v32_v53, %v31_v52  ;;  %v33_v60 = vld [vmem:[%s1380_s0 + $0x90] sm:$0xff] }
   0xe   :  { %736 = vmatprep.mubr.msk.bf16.mxu0 %vm133_vm2, %v81_v22  ;;  %768 = vmatprep.mubr.msk.bf16.mxu1 %vm133_vm2, %v97_v23  ;;  %v103_v59 = vpack.c.bf16 %v64_v55, %v63_v54  ;;  %v34_v61 = vld [vmem:[%s1380_s0 + $0x98] sm:$0xff]  ;;  %v65_v62 = vld [vmem:[%s1380_s0 + $0x190] sm:$0xff]  ;;  %v35_v0 = vld [vmem:[%s1380_s0 + $0xa0] sm:$0xff] }
   0xf   :  { %v66_v63 = vld [vmem:[%s1380_s0 + $0x198] sm:$0xff]  ;;  %v36_v1 = vld [vmem:[%s1380_s0 + $0xa8] sm:$0xff]  ;;  %v67_v2 = vld [vmem:[%s1380_s0 + $0x1a0] sm:$0xff]  ;;  %v88_v4 = vpack.c.bf16 %v34_v61, %v33_v60 }
  0x10   :  { %v68_v3 = vld [vmem:[%s1380_s0 + $0x1a8] sm:$0xff]  ;;  %v104_v5 = vpack.c.bf16 %v66_v63, %v65_v62  ;;  %v89_v6 = vpack.c.bf16 %v36_v1, %v35_v0  ;;  %v37_v8 = vld [vmem:[%s1380_s0 + $0xb0] sm:$0xff]  ;;  %v38_v9 = vld [vmem:[%s1380_s0 + $0xb8] sm:$0xff] }
  0x11   :  { %v105_v7 = vpack.c.bf16 %v68_v3, %v67_v2  ;;  %v69_v10 = vld [vmem:[%s1380_s0 + $0x1b0] sm:$0xff]  ;;  %v70_v11 = vld [vmem:[%s1380_s0 + $0x1b8] sm:$0xff]  ;;  %v39_v12 = vld [vmem:[%s1380_s0 + $0xc0] sm:$0xff]  ;;  %v90_v16 = vpack.c.bf16 %v38_v9, %v37_v8 }
  0x12   :  { %v40_v13 = vld [vmem:[%s1380_s0 + $0xc8] sm:$0xff]  ;;  %v71_v14 = vld [vmem:[%s1380_s0 + $0x1c0] sm:$0xff]  ;;  %v106_v17 = vpack.c.bf16 %v70_v11, %v69_v10  ;;  %v41_v20 = vld [vmem:[%s1380_s0 + $0xd0] sm:$0xff] }
  0x13   :  { %v72_v15 = vld [vmem:[%s1380_s0 + $0x1c8] sm:$0xff]  ;;  %v91_v18 = vpack.c.bf16 %v40_v13, %v39_v12  ;;  %v42_v21 = vld [vmem:[%s1380_s0 + $0xd8] sm:$0xff]  ;;  %v73_v22 = vld [vmem:[%s1380_s0 + $0x1d0] sm:$0xff] }
  0x14   :  { %v107_v19 = vpack.c.bf16 %v72_v15, %v71_v14  ;;  %v74_v23 = vld [vmem:[%s1380_s0 + $0x1d8] sm:$0xff]  ;;  %v43_v24 = vld [vmem:[%s1380_s0 + $0xe0] sm:$0xff]  ;;  %v44_v25 = vld [vmem:[%s1380_s0 + $0xe8] sm:$0xff]  ;;  %v92_v28 = vpack.c.bf16 %v42_v21, %v41_v20 }
  0x15   :  { %737 = vmatmul.mubr.msk.bf16.gmra.mxu0 %vm133_vm2, %v82_v32  ;;  %769 = vmatmul.mubr.msk.bf16.gmra.mxu1 %vm133_vm2, %v98_v33  ;;  %v75_v26 = vld [vmem:[%s1380_s0 + $0x1e0] sm:$0xff]  ;;  %v76_v27 = vld [vmem:[%s1380_s0 + $0x1e8] sm:$0xff]  ;;  %v108_v29 = vpack.c.bf16 %v74_v23, %v73_v22  ;;  %v93_v30 = vpack.c.bf16 %v44_v25, %v43_v24  ;;  %v45_v32 = vld [vmem:[%s1380_s0 + $0xf0] sm:$0xff] }
  0x16   :  { %740 = vmatprep.mubr.msk.bf16.mxu0 %vm133_vm2, %v83_v34  ;;  %772 = vmatprep.mubr.msk.bf16.mxu1 %vm133_vm2, %v99_v35  ;;  %v109_v31 = vpack.c.bf16 %v76_v27, %v75_v26  ;;  %v46_v33 = vld [vmem:[%s1380_s0 + $0xf8] sm:$0xff]  ;;  %v77_v34 = vld [vmem:[%s1380_s0 + $0x1f0] sm:$0xff]  ;;  %v1057_v38 = vld [vmem:[%s1381_s2] ss:$0 sm:$0xff] }
  0x17   :  { %v78_v35 = vld [vmem:[%s1380_s0 + $0x1f8] sm:$0xff]  ;;  %v94_v36 = vpack.c.bf16 %v46_v33, %v45_v32 }
  0x18   :  { %v110_v37 = vpack.c.bf16 %v78_v35, %v77_v34 }
  0x1d   :  { %741 = vmatmul.mubr.msk.bf16.gmra.mxu0 %vm133_vm2, %v84_v44  ;;  %773 = vmatmul.mubr.msk.bf16.gmra.mxu1 %vm133_vm2, %v100_v45 }
  0x1e   :  { %744 = vmatprep.mubr.msk.bf16.mxu0 %vm133_vm2, %v85_v46  ;;  %776 = vmatprep.mubr.msk.bf16.mxu1 %vm133_vm2, %v101_v47 }
  0x25   :  { %745 = vmatmul.mubr.msk.bf16.gmra.mxu0 %vm133_vm2, %v86_v56  ;;  %777 = vmatmul.mubr.msk.bf16.gmra.mxu1 %vm133_vm2, %v102_v57 }
  0x26   :  { %748 = vmatprep.mubr.msk.bf16.mxu0 %vm133_vm2, %v87_v58  ;;  %780 = vmatprep.mubr.msk.bf16.mxu1 %vm133_vm2, %v103_v59 }
  0x2d   :  { %749 = vmatmul.mubr.msk.bf16.gmra.mxu0 %vm133_vm2, %v88_v4  ;;  %781 = vmatmul.mubr.msk.bf16.gmra.mxu1 %vm133_vm2, %v104_v5 }
  0x2e   :  { %752 = vmatprep.mubr.msk.bf16.mxu0 %vm133_vm2, %v89_v6  ;;  %784 = vmatprep.mubr.msk.bf16.mxu1 %vm133_vm2, %v105_v7 }
  0x35   :  { %753 = vmatmul.mubr.msk.bf16.gmra.mxu0 %vm133_vm2, %v90_v16  ;;  %785 = vmatmul.mubr.msk.bf16.gmra.mxu1 %vm133_vm2, %v106_v17 }
  0x36   :  { %756 = vmatprep.mubr.msk.bf16.mxu0 %vm133_vm2, %v91_v18  ;;  %788 = vmatprep.mubr.msk.bf16.mxu1 %vm133_vm2, %v107_v19 }
  0x3d   :  { %757 = vmatmul.mubr.msk.bf16.gmra.mxu0 %vm133_vm2, %v92_v28  ;;  %789 = vmatmul.mubr.msk.bf16.gmra.mxu1 %vm133_vm2, %v108_v29 }
  0x3e   :  { %760 = vmatprep.mubr.msk.bf16.mxu0 %vm133_vm2, %v93_v30  ;;  %792 = vmatprep.mubr.msk.bf16.mxu1 %vm133_vm2, %v109_v31 }
  0x45   :  { %761 = vmatmul.mubr.msk.bf16.gmra.mxu0 %vm133_vm2, %v94_v36  ;;  %793 = vmatmul.mubr.msk.bf16.gmra.mxu1 %vm133_vm2, %v110_v37 }
  0xcd   :  { %v734_v39 = vpop.f32.mrf.mxu0  ;;  %v766_v40 = vpop.f32.mrf.mxu1 }
  0xce   :  { %v280_v41 = vadd.f32 %v734_v39, %v1057_v38  ;;  %v408_v42 = vadd.f32 %v766_v40, %v1057_v38 }
  0xcf   :  { %v271_v43 = vpop.f32.mrf.mxu0  ;;  %v399_v44 = vpop.f32.mrf.mxu1 }
  0xd0   :  { %v528_v45 = vmax.f32 %v280_v41, 0.0  ;;  %v560_v46 = vmax.f32 %v408_v42, 0.0  ;;  %v272_v47 = vadd.f32 %v1057_v38, %v271_v43  ;;  %v400_v48 = vadd.f32 %v1057_v38, %v399_v44 }
  0xd1   :  { %v735_v49 = vpop.f32.mrf.mxu0  ;;  %v767_v50 = vpop.f32.mrf.mxu1 }
  0xd2   :  { %593 = vst.msk [vmem:[%s1382_s3 + $0x10] sm:$0xff] %vm590_vm3, %v528_v45  ;;  %625 = vst.msk [vmem:[%s1382_s3 + $0x110] sm:$0xff] %vm590_vm3, %v560_v46  ;;  %v526_v51 = vmax.f32 %v272_v47, 0.0  ;;  %v558_v52 = vmax.f32 %v400_v48, 0.0  ;;  %v283_v53 = vadd.f32 %v735_v49, %v1057_v38  ;;  %v411_v54 = vadd.f32 %v767_v50, %v1057_v38 }
  0xd3   :  { %v274_v55 = vpop.f32.mrf.mxu0  ;;  %v402_v56 = vpop.f32.mrf.mxu1 }
  0xd4   :  { %591 = vst.msk [vmem:[%s1382_s3] sm:$0xff] %vm590_vm3, %v526_v51  ;;  %623 = vst.msk [vmem:[%s1382_s3 + $0x100] sm:$0xff] %vm590_vm3, %v558_v52  ;;  %v529_v57 = vmax.f32 %v283_v53, 0.0  ;;  %v561_v58 = vmax.f32 %v411_v54, 0.0  ;;  %v275_v59 = vadd.f32 %v1057_v38, %v274_v55  ;;  %v403_v60 = vadd.f32 %v1057_v38, %v402_v56 }
  0xd5   :  { %v738_v61 = vpop.f32.mrf.mxu0  ;;  %v770_v62 = vpop.f32.mrf.mxu1 }
  0xd6   :  { %594 = vst.msk [vmem:[%s1382_s3 + $0x18] sm:$0xff] %vm590_vm3, %v529_v57  ;;  %626 = vst.msk [vmem:[%s1382_s3 + $0x118] sm:$0xff] %vm590_vm3, %v561_v58  ;;  %v527_v63 = vmax.f32 %v275_v59, 0.0  ;;  %v559_v0 = vmax.f32 %v403_v60, 0.0  ;;  %v296_v1 = vadd.f32 %v738_v61, %v1057_v38  ;;  %v424_v2 = vadd.f32 %v770_v62, %v1057_v38 }
  0xd7   :  { %v287_v3 = vpop.f32.mrf.mxu0  ;;  %v415_v4 = vpop.f32.mrf.mxu1 }
  0xd8   :  { %592 = vst.msk [vmem:[%s1382_s3 + $0x8] sm:$0xff] %vm590_vm3, %v527_v63  ;;  %624 = vst.msk [vmem:[%s1382_s3 + $0x108] sm:$0xff] %vm590_vm3, %v559_v0  ;;  %v532_v5 = vmax.f32 %v296_v1, 0.0  ;;  %v564_v6 = vmax.f32 %v424_v2, 0.0  ;;  %v288_v7 = vadd.f32 %v1057_v38, %v287_v3  ;;  %v416_v8 = vadd.f32 %v1057_v38, %v415_v4 }
  0xd9   :  { %v739_v9 = vpop.f32.mrf.mxu0  ;;  %v771_v10 = vpop.f32.mrf.mxu1 }
  0xda   :  { %597 = vst.msk [vmem:[%s1382_s3 + $0x30] sm:$0xff] %vm590_vm3, %v532_v5  ;;  %629 = vst.msk [vmem:[%s1382_s3 + $0x130] sm:$0xff] %vm590_vm3, %v564_v6  ;;  %v530_v11 = vmax.f32 %v288_v7, 0.0  ;;  %v562_v12 = vmax.f32 %v416_v8, 0.0  ;;  %v299_v13 = vadd.f32 %v739_v9, %v1057_v38  ;;  %v427_v14 = vadd.f32 %v771_v10, %v1057_v38 }
  0xdb   :  { %v290_v15 = vpop.f32.mrf.mxu0  ;;  %v418_v16 = vpop.f32.mrf.mxu1 }
  0xdc   :  { %595 = vst.msk [vmem:[%s1382_s3 + $0x20] sm:$0xff] %vm590_vm3, %v530_v11  ;;  %627 = vst.msk [vmem:[%s1382_s3 + $0x120] sm:$0xff] %vm590_vm3, %v562_v12  ;;  %v533_v17 = vmax.f32 %v299_v13, 0.0  ;;  %v565_v18 = vmax.f32 %v427_v14, 0.0  ;;  %v291_v19 = vadd.f32 %v1057_v38, %v290_v15  ;;  %v419_v20 = vadd.f32 %v1057_v38, %v418_v16 }
  0xdd   :  { %v742_v21 = vpop.f32.mrf.mxu0  ;;  %v774_v22 = vpop.f32.mrf.mxu1 }
  0xde   :  { %598 = vst.msk [vmem:[%s1382_s3 + $0x38] sm:$0xff] %vm590_vm3, %v533_v17  ;;  %630 = vst.msk [vmem:[%s1382_s3 + $0x138] sm:$0xff] %vm590_vm3, %v565_v18  ;;  %v531_v23 = vmax.f32 %v291_v19, 0.0  ;;  %v563_v24 = vmax.f32 %v419_v20, 0.0  ;;  %v312_v25 = vadd.f32 %v742_v21, %v1057_v38  ;;  %v440_v26 = vadd.f32 %v774_v22, %v1057_v38 }
  0xdf   :  { %v303_v27 = vpop.f32.mrf.mxu0  ;;  %v431_v28 = vpop.f32.mrf.mxu1 }
  0xe0   :  { %596 = vst.msk [vmem:[%s1382_s3 + $0x28] sm:$0xff] %vm590_vm3, %v531_v23  ;;  %628 = vst.msk [vmem:[%s1382_s3 + $0x128] sm:$0xff] %vm590_vm3, %v563_v24  ;;  %v536_v29 = vmax.f32 %v312_v25, 0.0  ;;  %v568_v30 = vmax.f32 %v440_v26, 0.0  ;;  %v304_v31 = vadd.f32 %v1057_v38, %v303_v27  ;;  %v432_v32 = vadd.f32 %v1057_v38, %v431_v28 }
  0xe1   :  { %v743_v33 = vpop.f32.mrf.mxu0  ;;  %v775_v34 = vpop.f32.mrf.mxu1 }
  0xe2   :  { %601 = vst.msk [vmem:[%s1382_s3 + $0x50] sm:$0xff] %vm590_vm3, %v536_v29  ;;  %633 = vst.msk [vmem:[%s1382_s3 + $0x150] sm:$0xff] %vm590_vm3, %v568_v30  ;;  %v534_v35 = vmax.f32 %v304_v31, 0.0  ;;  %v566_v36 = vmax.f32 %v432_v32, 0.0  ;;  %v315_v37 = vadd.f32 %v743_v33, %v1057_v38  ;;  %v443_v39 = vadd.f32 %v775_v34, %v1057_v38 }
  0xe3   :  { %v306_v40 = vpop.f32.mrf.mxu0  ;;  %v434_v41 = vpop.f32.mrf.mxu1 }
  0xe4   :  { %599 = vst.msk [vmem:[%s1382_s3 + $0x40] sm:$0xff] %vm590_vm3, %v534_v35  ;;  %631 = vst.msk [vmem:[%s1382_s3 + $0x140] sm:$0xff] %vm590_vm3, %v566_v36  ;;  %v537_v42 = vmax.f32 %v315_v37, 0.0  ;;  %v569_v43 = vmax.f32 %v443_v39, 0.0  ;;  %v307_v44 = vadd.f32 %v1057_v38, %v306_v40  ;;  %v435_v45 = vadd.f32 %v1057_v38, %v434_v41 }
  0xe5   :  { %v746_v46 = vpop.f32.mrf.mxu0  ;;  %v778_v47 = vpop.f32.mrf.mxu1 }
  0xe6   :  { %602 = vst.msk [vmem:[%s1382_s3 + $0x58] sm:$0xff] %vm590_vm3, %v537_v42  ;;  %634 = vst.msk [vmem:[%s1382_s3 + $0x158] sm:$0xff] %vm590_vm3, %v569_v43  ;;  %v535_v48 = vmax.f32 %v307_v44, 0.0  ;;  %v567_v49 = vmax.f32 %v435_v45, 0.0  ;;  %v328_v50 = vadd.f32 %v746_v46, %v1057_v38  ;;  %v456_v51 = vadd.f32 %v778_v47, %v1057_v38 }
  0xe7   :  { %v319_v52 = vpop.f32.mrf.mxu0  ;;  %v447_v53 = vpop.f32.mrf.mxu1 }
  0xe8   :  { %600 = vst.msk [vmem:[%s1382_s3 + $0x48] sm:$0xff] %vm590_vm3, %v535_v48  ;;  %632 = vst.msk [vmem:[%s1382_s3 + $0x148] sm:$0xff] %vm590_vm3, %v567_v49  ;;  %v540_v54 = vmax.f32 %v328_v50, 0.0  ;;  %v572_v55 = vmax.f32 %v456_v51, 0.0  ;;  %v320_v56 = vadd.f32 %v1057_v38, %v319_v52  ;;  %v448_v57 = vadd.f32 %v1057_v38, %v447_v53 }
  0xe9   :  { %v747_v58 = vpop.f32.mrf.mxu0  ;;  %v779_v59 = vpop.f32.mrf.mxu1 }
  0xea   :  { %605 = vst.msk [vmem:[%s1382_s3 + $0x70] sm:$0xff] %vm590_vm3, %v540_v54  ;;  %637 = vst.msk [vmem:[%s1382_s3 + $0x170] sm:$0xff] %vm590_vm3, %v572_v55  ;;  %v538_v60 = vmax.f32 %v320_v56, 0.0  ;;  %v570_v61 = vmax.f32 %v448_v57, 0.0  ;;  %v331_v62 = vadd.f32 %v747_v58, %v1057_v38  ;;  %v459_v63 = vadd.f32 %v779_v59, %v1057_v38 }
  0xeb   :  { %v322_v0 = vpop.f32.mrf.mxu0  ;;  %v450_v1 = vpop.f32.mrf.mxu1 }
  0xec   :  { %603 = vst.msk [vmem:[%s1382_s3 + $0x60] sm:$0xff] %vm590_vm3, %v538_v60  ;;  %635 = vst.msk [vmem:[%s1382_s3 + $0x160] sm:$0xff] %vm590_vm3, %v570_v61  ;;  %v541_v2 = vmax.f32 %v331_v62, 0.0  ;;  %v573_v3 = vmax.f32 %v459_v63, 0.0  ;;  %v323_v4 = vadd.f32 %v1057_v38, %v322_v0  ;;  %v451_v5 = vadd.f32 %v1057_v38, %v450_v1 }
  0xed   :  { %v750_v6 = vpop.f32.mrf.mxu0  ;;  %v782_v7 = vpop.f32.mrf.mxu1 }
  0xee   :  { %606 = vst.msk [vmem:[%s1382_s3 + $0x78] sm:$0xff] %vm590_vm3, %v541_v2  ;;  %638 = vst.msk [vmem:[%s1382_s3 + $0x178] sm:$0xff] %vm590_vm3, %v573_v3  ;;  %v539_v8 = vmax.f32 %v323_v4, 0.0  ;;  %v571_v9 = vmax.f32 %v451_v5, 0.0  ;;  %v344_v10 = vadd.f32 %v750_v6, %v1057_v38  ;;  %v472_v11 = vadd.f32 %v782_v7, %v1057_v38 }
  0xef   :  { %v335_v12 = vpop.f32.mrf.mxu0  ;;  %v463_v13 = vpop.f32.mrf.mxu1 }
  0xf0   :  { %604 = vst.msk [vmem:[%s1382_s3 + $0x68] sm:$0xff] %vm590_vm3, %v539_v8  ;;  %636 = vst.msk [vmem:[%s1382_s3 + $0x168] sm:$0xff] %vm590_vm3, %v571_v9  ;;  %v544_v14 = vmax.f32 %v344_v10, 0.0  ;;  %v576_v15 = vmax.f32 %v472_v11, 0.0  ;;  %v336_v16 = vadd.f32 %v1057_v38, %v335_v12  ;;  %v464_v17 = vadd.f32 %v1057_v38, %v463_v13 }
  0xf1   :  { %v751_v18 = vpop.f32.mrf.mxu0  ;;  %v783_v19 = vpop.f32.mrf.mxu1 }
  0xf2   :  { %609 = vst.msk [vmem:[%s1382_s3 + $0x90] sm:$0xff] %vm590_vm3, %v544_v14  ;;  %641 = vst.msk [vmem:[%s1382_s3 + $0x190] sm:$0xff] %vm590_vm3, %v576_v15  ;;  %v542_v20 = vmax.f32 %v336_v16, 0.0  ;;  %v574_v21 = vmax.f32 %v464_v17, 0.0  ;;  %v347_v22 = vadd.f32 %v751_v18, %v1057_v38  ;;  %v475_v23 = vadd.f32 %v783_v19, %v1057_v38 }
  0xf3   :  { %v338_v24 = vpop.f32.mrf.mxu0  ;;  %v466_v25 = vpop.f32.mrf.mxu1 }
  0xf4   :  { %607 = vst.msk [vmem:[%s1382_s3 + $0x80] sm:$0xff] %vm590_vm3, %v542_v20  ;;  %639 = vst.msk [vmem:[%s1382_s3 + $0x180] sm:$0xff] %vm590_vm3, %v574_v21  ;;  %v545_v26 = vmax.f32 %v347_v22, 0.0  ;;  %v577_v27 = vmax.f32 %v475_v23, 0.0  ;;  %v339_v28 = vadd.f32 %v1057_v38, %v338_v24  ;;  %v467_v29 = vadd.f32 %v1057_v38, %v466_v25 }
  0xf5   :  { %v754_v30 = vpop.f32.mrf.mxu0  ;;  %v786_v31 = vpop.f32.mrf.mxu1 }
  0xf6   :  { %610 = vst.msk [vmem:[%s1382_s3 + $0x98] sm:$0xff] %vm590_vm3, %v545_v26  ;;  %642 = vst.msk [vmem:[%s1382_s3 + $0x198] sm:$0xff] %vm590_vm3, %v577_v27  ;;  %v543_v32 = vmax.f32 %v339_v28, 0.0  ;;  %v575_v33 = vmax.f32 %v467_v29, 0.0  ;;  %v360_v34 = vadd.f32 %v754_v30, %v1057_v38  ;;  %v488_v35 = vadd.f32 %v786_v31, %v1057_v38 }
  0xf7   :  { %v351_v36 = vpop.f32.mrf.mxu0  ;;  %v479_v37 = vpop.f32.mrf.mxu1 }
  0xf8   :  { %608 = vst.msk [vmem:[%s1382_s3 + $0x88] sm:$0xff] %vm590_vm3, %v543_v32  ;;  %640 = vst.msk [vmem:[%s1382_s3 + $0x188] sm:$0xff] %vm590_vm3, %v575_v33  ;;  %v548_v39 = vmax.f32 %v360_v34, 0.0  ;;  %v580_v40 = vmax.f32 %v488_v35, 0.0  ;;  %v352_v41 = vadd.f32 %v1057_v38, %v351_v36  ;;  %v480_v42 = vadd.f32 %v1057_v38, %v479_v37 }
  0xf9   :  { %v755_v43 = vpop.f32.mrf.mxu0  ;;  %v787_v44 = vpop.f32.mrf.mxu1 }
  0xfa   :  { %613 = vst.msk [vmem:[%s1382_s3 + $0xb0] sm:$0xff] %vm590_vm3, %v548_v39  ;;  %645 = vst.msk [vmem:[%s1382_s3 + $0x1b0] sm:$0xff] %vm590_vm3, %v580_v40  ;;  %v546_v45 = vmax.f32 %v352_v41, 0.0  ;;  %v578_v46 = vmax.f32 %v480_v42, 0.0  ;;  %v363_v47 = vadd.f32 %v755_v43, %v1057_v38  ;;  %v491_v48 = vadd.f32 %v787_v44, %v1057_v38 }
  0xfb   :  { %v354_v49 = vpop.f32.mrf.mxu0  ;;  %v482_v50 = vpop.f32.mrf.mxu1 }
  0xfc   :  { %611 = vst.msk [vmem:[%s1382_s3 + $0xa0] sm:$0xff] %vm590_vm3, %v546_v45  ;;  %643 = vst.msk [vmem:[%s1382_s3 + $0x1a0] sm:$0xff] %vm590_vm3, %v578_v46  ;;  %v549_v51 = vmax.f32 %v363_v47, 0.0  ;;  %v581_v52 = vmax.f32 %v491_v48, 0.0  ;;  %v355_v53 = vadd.f32 %v1057_v38, %v354_v49  ;;  %v483_v54 = vadd.f32 %v1057_v38, %v482_v50 }
  0xfd   :  { %v758_v55 = vpop.f32.mrf.mxu0  ;;  %v790_v56 = vpop.f32.mrf.mxu1 }
  0xfe   :  { %614 = vst.msk [vmem:[%s1382_s3 + $0xb8] sm:$0xff] %vm590_vm3, %v549_v51  ;;  %646 = vst.msk [vmem:[%s1382_s3 + $0x1b8] sm:$0xff] %vm590_vm3, %v581_v52  ;;  %v547_v57 = vmax.f32 %v355_v53, 0.0  ;;  %v579_v58 = vmax.f32 %v483_v54, 0.0  ;;  %v376_v59 = vadd.f32 %v758_v55, %v1057_v38  ;;  %v504_v60 = vadd.f32 %v790_v56, %v1057_v38 }
  0xff   :  { %v367_v61 = vpop.f32.mrf.mxu0  ;;  %v495_v62 = vpop.f32.mrf.mxu1 }
 0x100   :  { %612 = vst.msk [vmem:[%s1382_s3 + $0xa8] sm:$0xff] %vm590_vm3, %v547_v57  ;;  %644 = vst.msk [vmem:[%s1382_s3 + $0x1a8] sm:$0xff] %vm590_vm3, %v579_v58  ;;  %v552_v63 = vmax.f32 %v376_v59, 0.0  ;;  %v584_v0 = vmax.f32 %v504_v60, 0.0  ;;  %v368_v1 = vadd.f32 %v1057_v38, %v367_v61  ;;  %v496_v2 = vadd.f32 %v1057_v38, %v495_v62 }
 0x101   :  { %v759_v3 = vpop.f32.mrf.mxu0  ;;  %v791_v4 = vpop.f32.mrf.mxu1 }
 0x102   :  { %617 = vst.msk [vmem:[%s1382_s3 + $0xd0] sm:$0xff] %vm590_vm3, %v552_v63  ;;  %649 = vst.msk [vmem:[%s1382_s3 + $0x1d0] sm:$0xff] %vm590_vm3, %v584_v0  ;;  %v550_v5 = vmax.f32 %v368_v1, 0.0  ;;  %v582_v6 = vmax.f32 %v496_v2, 0.0  ;;  %v379_v7 = vadd.f32 %v759_v3, %v1057_v38  ;;  %v507_v8 = vadd.f32 %v791_v4, %v1057_v38 }
 0x103   :  { %v370_v9 = vpop.f32.mrf.mxu0  ;;  %v498_v10 = vpop.f32.mrf.mxu1 }
 0x104   :  { %615 = vst.msk [vmem:[%s1382_s3 + $0xc0] sm:$0xff] %vm590_vm3, %v550_v5  ;;  %647 = vst.msk [vmem:[%s1382_s3 + $0x1c0] sm:$0xff] %vm590_vm3, %v582_v6  ;;  %v553_v11 = vmax.f32 %v379_v7, 0.0  ;;  %v585_v12 = vmax.f32 %v507_v8, 0.0  ;;  %v371_v13 = vadd.f32 %v1057_v38, %v370_v9  ;;  %v499_v14 = vadd.f32 %v1057_v38, %v498_v10 }
 0x105   :  { %v762_v15 = vpop.f32.mrf.mxu0  ;;  %v794_v16 = vpop.f32.mrf.mxu1 }
 0x106   :  { %618 = vst.msk [vmem:[%s1382_s3 + $0xd8] sm:$0xff] %vm590_vm3, %v553_v11  ;;  %650 = vst.msk [vmem:[%s1382_s3 + $0x1d8] sm:$0xff] %vm590_vm3, %v585_v12  ;;  %v551_v17 = vmax.f32 %v371_v13, 0.0  ;;  %v583_v18 = vmax.f32 %v499_v14, 0.0  ;;  %v392_v19 = vadd.f32 %v762_v15, %v1057_v38  ;;  %v520_v20 = vadd.f32 %v794_v16, %v1057_v38 }
 0x107   :  { %v383_v21 = vpop.f32.mrf.mxu0  ;;  %v511_v22 = vpop.f32.mrf.mxu1 }
 0x108   :  { %616 = vst.msk [vmem:[%s1382_s3 + $0xc8] sm:$0xff] %vm590_vm3, %v551_v17  ;;  %648 = vst.msk [vmem:[%s1382_s3 + $0x1c8] sm:$0xff] %vm590_vm3, %v583_v18  ;;  %v556_v23 = vmax.f32 %v392_v19, 0.0  ;;  %v588_v24 = vmax.f32 %v520_v20, 0.0  ;;  %v384_v25 = vadd.f32 %v1057_v38, %v383_v21  ;;  %v512_v26 = vadd.f32 %v1057_v38, %v511_v22 }
 0x109   :  { %v763_v27 = vpop.f32.mrf.mxu0  ;;  %v795_v28 = vpop.f32.mrf.mxu1 }
 0x10a   :  { %621 = vst.msk [vmem:[%s1382_s3 + $0xf0] sm:$0xff] %vm590_vm3, %v556_v23  ;;  %653 = vst.msk [vmem:[%s1382_s3 + $0x1f0] sm:$0xff] %vm590_vm3, %v588_v24  ;;  %v554_v29 = vmax.f32 %v384_v25, 0.0  ;;  %v586_v30 = vmax.f32 %v512_v26, 0.0  ;;  %v395_v31 = vadd.f32 %v763_v27, %v1057_v38  ;;  %v523_v32 = vadd.f32 %v795_v28, %v1057_v38 }
 0x10b   :  { %v386_v33 = vpop.f32.mrf.mxu0  ;;  %v514_v34 = vpop.f32.mrf.mxu1 }
 0x10c   :  { %619 = vst.msk [vmem:[%s1382_s3 + $0xe0] sm:$0xff] %vm590_vm3, %v554_v29  ;;  %651 = vst.msk [vmem:[%s1382_s3 + $0x1e0] sm:$0xff] %vm590_vm3, %v586_v30  ;;  %v557_v35 = vmax.f32 %v395_v31, 0.0  ;;  %v589_v36 = vmax.f32 %v523_v32, 0.0  ;;  %v387_v37 = vadd.f32 %v1057_v38, %v386_v33  ;;  %v515_v39 = vadd.f32 %v1057_v38, %v514_v34 }
 0x10e   :  { %622 = vst.msk [vmem:[%s1382_s3 + $0xf8] sm:$0xff] %vm590_vm3, %v557_v35  ;;  %654 = vst.msk [vmem:[%s1382_s3 + $0x1f8] sm:$0xff] %vm590_vm3, %v589_v36  ;;  %v555_v40 = vmax.f32 %v387_v37, 0.0  ;;  %v587_v41 = vmax.f32 %v515_v39, 0.0 }
 0x110   :  { %620 = vst.msk [vmem:[%s1382_s3 + $0xe8] sm:$0xff] %vm590_vm3, %v555_v40  ;;  %652 = vst.msk [vmem:[%s1382_s3 + $0x1e8] sm:$0xff] %vm590_vm3, %v587_v41 }

// kernel: detr_forward.5
= control target key start
LH: loop header
LB: loop body
LE: loop exit
PB: predicated region body
PF: predicated region fallthrough
CT: control target
= control target key end

     0   :  { %v575_v0 = vmov 0   ;;  %vm148_vm0 = vcmask 130048   ;;  %vm333_vm1 = vcmask 523264   ;;  %vm455_vm2 = vcmask 261120   ;;  %s845_s1 = inlined_call_operand.vmem [shape: bf16[144,64], index: 1, kind: input, shape index: {}]   ;;  %s846_s0 = inlined_call_operand.vmem [shape: f32[128,144], index: 0, kind: input, shape index: {}]   ;;  %s847_s3 = inlined_call_operand.vmem [shape: bf16[64,32], index: 3, kind: input, shape index: {}]   ;;  %s848_s2 = inlined_call_operand.vmem [shape: f32[1,64], index: 2, kind: input, shape index: {}]   ;;  %s849_s4 = inlined_call_operand.vmem [shape: f32[1,32], index: 4, kind: input, shape index: {}]   ;;  %s850_s5 = inlined_call_operand.vmem [shape: f32[128,32], index: 5, kind: output, shape index: {}]  }
   0x1   :  { %173 = vmatprep.subr.bf16.mxu0 %v575_v0  ;;  %v562_v1 = vld [vmem:[%s845_s1 + $0x38] sm:$0xff]   ;;  %543 = vmatprep.subr.bf16.mxu1 %v575_v0  ;;  %v563_v2 = vld [vmem:[%s845_s1 + $0x30] sm:$0xff]   ;;  %v564_v3 = vld [vmem:[%s845_s1 + $0x28] sm:$0xff]  }
   0x2   :  { %174 = vmatpush1.bf16.msra.mxu0 %v562_v1  ;;  %552 = vmatpush1.bf16.msra.mxu1 %v562_v1  ;;  %v22_v4 = vld [vmem:[%s846_s0 + $0x8] sm:$0xff]  ;;  %v24_v5 = vld [vmem:[%s846_s0 + $0x18] sm:$0xff]  ;;  %v565_v6 = vld [vmem:[%s845_s1 + $0x20] sm:$0xff]  }
   0x3   :  { %175 = vmatprep.subr.bf16.mxu0 %v575_v0  ;;  %544 = vmatprep.subr.bf16.mxu1 %v575_v0  ;;  %v54_v7 = vpack.c.bf16 %v24_v5, %v22_v4  ;;  %v566_v8 = vld [vmem:[%s845_s1 + $0x18] sm:$0xff]   ;;  %v46_v9 = vld [vmem:[%s846_s0 + $0xc8] sm:$0xff]  ;;  %v567_v12 = vld [vmem:[%s845_s1 + $0x10] sm:$0xff]  }
   0x4   :  { %v48_v10 = vld [vmem:[%s846_s0 + $0xd8] sm:$0xff]  ;;  %v568_v13 = vld [vmem:[%s845_s1 + $0x8] sm:$0xff]   ;;  %v569_v14 = vld [vmem:[%s845_s1] sm:$0xff]  }
   0x5   :  { %486 = vmatprep.mubr.msk.bf16.mxu0 %vm148_vm0, %v54_v7  ;;  %v66_v11 = vpack.c.bf16 %v48_v10, %v46_v9  ;;  %v570_v15 = vld [vmem:[%s845_s1 + $0x40] sm:$0xff]   ;;  %v23_v17 = vld [vmem:[%s846_s0 + $0x10] sm:$0xff]  ;;  %v26_v18 = vld [vmem:[%s846_s0 + $0x28] sm:$0xff] }
   0x6   :  { %176 = vmatpush1.bf16.msra.mxu0 %v563_v2  ;;  %553 = vmatpush1.bf16.msra.mxu1 %v563_v2  ;;  %v21_v16 = vld [vmem:[%s846_s0] sm:$0xff]  ;;  %v47_v20 = vld [vmem:[%s846_s0 + $0xd0] sm:$0xff]  ;;  %v28_v21 = vld [vmem:[%s846_s0 + $0x38] sm:$0xff] }
   0x7   :  { %177 = vmatprep.subr.bf16.mxu0 %v575_v0  ;;  %545 = vmatprep.subr.bf16.mxu1 %v575_v0  ;;  %v45_v19 = vld [vmem:[%s846_s0 + $0xc0] sm:$0xff]  ;;  %v50_v22 = vld [vmem:[%s846_s0 + $0xe8] sm:$0xff]  ;;  %v52_v23 = vld [vmem:[%s846_s0 + $0xf8] sm:$0xff]  ;;  %v53_v24 = vpack.c.bf16 %v23_v17, %v21_v16  ;;  %v56_v26 = vpack.c.bf16 %v28_v21, %v26_v18 }
   0x8   :  { %492 = vmatprep.mubr.msk.bf16.mxu1 %vm148_vm0, %v66_v11  ;;  %v65_v25 = vpack.c.bf16 %v47_v20, %v45_v19  ;;  %v68_v27 = vpack.c.bf16 %v52_v23, %v50_v22  ;;  %v25_v28 = vld [vmem:[%s846_s0 + $0x20] sm:$0xff]  ;;  %v27_v29 = vld [vmem:[%s846_s0 + $0x30] sm:$0xff]  ;;  %v30_v32 = vld [vmem:[%s846_s0 + $0x48] sm:$0xff] }
   0x9   :  { %v49_v30 = vld [vmem:[%s846_s0 + $0xe0] sm:$0xff]  ;;  %v51_v31 = vld [vmem:[%s846_s0 + $0xf0] sm:$0xff]  ;;  %v32_v33 = vld [vmem:[%s846_s0 + $0x58] sm:$0xff]  ;;  %v55_v34 = vpack.c.bf16 %v27_v29, %v25_v28 }
   0xa   :  { %178 = vmatpush1.bf16.msra.mxu0 %v564_v3  ;;  %554 = vmatpush1.bf16.msra.mxu1 %v564_v3  ;;  %v67_v35 = vpack.c.bf16 %v51_v31, %v49_v30  ;;  %v58_v36 = vpack.c.bf16 %v32_v33, %v30_v32  ;;  %v29_v37 = vld [vmem:[%s846_s0 + $0x40] sm:$0xff]  ;;  %v31_v38 = vld [vmem:[%s846_s0 + $0x50] sm:$0xff]  ;;  %v34_v39 = vld [vmem:[%s846_s0 + $0x68] sm:$0xff] }
   0xb   :  { %179 = vmatprep.subr.bf16.mxu0 %v575_v0  ;;  %546 = vmatprep.subr.bf16.mxu1 %v575_v0  ;;  %v36_v40 = vld [vmem:[%s846_s0 + $0x78] sm:$0xff]  ;;  %v57_v41 = vpack.c.bf16 %v31_v38, %v29_v37  ;;  %v33_v43 = vld [vmem:[%s846_s0 + $0x60] sm:$0xff]  ;;  %v35_v44 = vld [vmem:[%s846_s0 + $0x70] sm:$0xff] }
   0xc   :  { %v60_v42 = vpack.c.bf16 %v36_v40, %v34_v39  ;;  %v38_v45 = vld [vmem:[%s846_s0 + $0x88] sm:$0xff]  ;;  %v40_v46 = vld [vmem:[%s846_s0 + $0x98] sm:$0xff]  ;;  %v59_v47 = vpack.c.bf16 %v35_v44, %v33_v43  ;;  %v37_v49 = vld [vmem:[%s846_s0 + $0x80] sm:$0xff] }
   0xd   :  { %v62_v48 = vpack.c.bf16 %v40_v46, %v38_v45  ;;  %v39_v50 = vld [vmem:[%s846_s0 + $0x90] sm:$0xff]  ;;  %v42_v51 = vld [vmem:[%s846_s0 + $0xa8] sm:$0xff]  ;;  %v44_v52 = vld [vmem:[%s846_s0 + $0xb8] sm:$0xff] }
   0xe   :  { %180 = vmatpush1.bf16.msra.mxu0 %v565_v6  ;;  %555 = vmatpush1.bf16.msra.mxu1 %v565_v6  ;;  %v61_v53 = vpack.c.bf16 %v39_v50, %v37_v49  ;;  %v64_v54 = vpack.c.bf16 %v44_v52, %v42_v51  ;;  %v41_v55 = vld [vmem:[%s846_s0 + $0xa0] sm:$0xff]  ;;  %v43_v56 = vld [vmem:[%s846_s0 + $0xb0] sm:$0xff]  ;;  %v571_v58 = vld [vmem:[%s847_s3 + $0x18] sm:$0xff]  }
   0xf   :  { %181 = vmatprep.subr.bf16.mxu0 %v575_v0  ;;  %547 = vmatprep.subr.bf16.mxu1 %v575_v0  ;;  %v63_v57 = vpack.c.bf16 %v43_v56, %v41_v55  ;;  %v572_v59 = vld [vmem:[%s847_s3 + $0x10] sm:$0xff]   ;;  %v573_v60 = vld [vmem:[%s847_s3 + $0x8] sm:$0xff]   ;;  %v574_v61 = vld [vmem:[%s847_s3] sm:$0xff]  }
  0x10   :  { %v752_v62 = vld [vmem:[%s848_s2] ss:$0 sm:$0xff] }
  0x12   :  { %182 = vmatpush1.bf16.msra.mxu0 %v566_v8  ;;  %556 = vmatpush1.bf16.msra.mxu1 %v566_v8 }
  0x13   :  { %183 = vmatprep.subr.bf16.mxu0 %v575_v0  ;;  %548 = vmatprep.subr.bf16.mxu1 %v575_v0 }
  0x16   :  { %184 = vmatpush1.bf16.msra.mxu0 %v567_v12  ;;  %557 = vmatpush1.bf16.msra.mxu1 %v567_v12 }
  0x17   :  { %185 = vmatprep.subr.bf16.mxu0 %v575_v0  ;;  %549 = vmatprep.subr.bf16.mxu1 %v575_v0 }
  0x1a   :  { %186 = vmatpush1.bf16.msra.mxu0 %v568_v13  ;;  %558 = vmatpush1.bf16.msra.mxu1 %v568_v13 }
  0x1b   :  { %187 = vmatprep.subr.bf16.mxu0 %v575_v0  ;;  %550 = vmatprep.subr.bf16.mxu1 %v575_v0 }
  0x1e   :  { %188 = vmatpush1.bf16.msra.mxu0 %v569_v14  ;;  %559 = vmatpush1.bf16.msra.mxu1 %v569_v14 }
  0x1f   :  { %203 = vmatprep.subr.bf16.mxu0 %v575_v0  ;;  %551 = vmatprep.subr.bf16.mxu1 %v575_v0 }
  0x22   :  { %204 = vmatpush2.bf16.msra.mxu0 %v570_v15  ;;  %560 = vmatpush2.bf16.msra.mxu1 %v570_v15 }
  0x23   :  { %519 = vmatprep.subr.bf16.mxu1 %v571_v58 }
  0x25   :  { %206 = vmatmul.mubr.bf16.vlgmr.msra.gmra.mxu0 %v53_v24  ;;  %254 = vmatmul.mubr.bf16.vlgmr.msra.gmra.mxu1 %v65_v25 }
  0x26   :  { %487 = vmatprep.mubr.msk.bf16.mxu0 %vm148_vm0, %v56_v26  ;;  %493 = vmatprep.mubr.msk.bf16.mxu1 %vm148_vm0, %v68_v27 }
  0x27   :  { %520 = vmatpush3.bf16.msra.mxu1 %v571_v58 }
  0x28   :  { %521 = vmatprep.subr.bf16.mxu1 %v572_v59 }
  0x2b   :  { %522 = vmatpush3.bf16.msra.mxu1 %v572_v59 }
  0x2c   :  { %523 = vmatprep.subr.bf16.mxu1 %v573_v60 }
  0x2d   :  { %214 = vmatmul.mubr.bf16.gmra.mxu0 %v55_v34  ;;  %262 = vmatmul.mubr.bf16.gmra.mxu1 %v67_v35 }
  0x2e   :  { %488 = vmatprep.mubr.msk.bf16.mxu0 %vm148_vm0, %v58_v36 }
  0x2f   :  { %524 = vmatpush3.bf16.msra.mxu1 %v573_v60 }
  0x30   :  { %525 = vmatprep.subr.bf16.mxu1 %v574_v61 }
  0x33   :  { %526 = vmatpush3.bf16.msra.mxu1 %v574_v61 }
  0x35   :  { %222 = vmatmul.mubr.bf16.gmra.mxu0 %v57_v41 }
  0x36   :  { %489 = vmatprep.mubr.msk.bf16.mxu0 %vm148_vm0, %v60_v42 }
  0x3d   :  { %230 = vmatmul.mubr.bf16.gmra.mxu0 %v59_v47 }
  0x3e   :  { %490 = vmatprep.mubr.msk.bf16.mxu0 %vm148_vm0, %v62_v48 }
  0x45   :  { %238 = vmatmul.mubr.bf16.gmra.mxu0 %v61_v53 }
  0x46   :  { %491 = vmatprep.mubr.msk.bf16.mxu0 %vm148_vm0, %v64_v54 }
  0x4d   :  { %246 = vmatmul.mubr.bf16.gmra.mxu0 %v63_v57 }
  0xe5   :  { %v207_v63 = vpop.f32.mrf.mxu0  ;;  %v255_v0 = vpop.f32.mrf.mxu1 }
  0xe6   :  { %v208_v3 = vadd.f32 %v752_v62, %v207_v63  ;;  %v256_v53 = vadd.f32 %v752_v62, %v255_v0 }
  0xe7   :  { %v209_v1 = vpop.f32.mrf.mxu0  ;;  %v257_v2 = vpop.f32.mrf.mxu1 }
  0xe8   :  { %v270_v9 = vmax.f32 %v208_v3, 0.0  ;;  %v282_v59 = vmax.f32 %v256_v53, 0.0 }
  0xe9   :  { %v210_v4 = vpop.f32.mrf.mxu0  ;;  %v258_v5 = vpop.f32.mrf.mxu1 }
  0xea   :  { %v211_v6 = vadd.f32 %v752_v62, %v210_v4  ;;  %v259_v54 = vadd.f32 %v752_v62, %v258_v5 }
  0xeb   :  { %v212_v7 = vpop.f32.mrf.mxu0  ;;  %v260_v8 = vpop.f32.mrf.mxu1 }
  0xec   :  { %v271_v10 = vmax.f32 %v211_v6, 0.0  ;;  %v283_v60 = vmax.f32 %v259_v54, 0.0  ;;  %v494_v8 = vld [vmem:[%s849_s4] ss:$0 sm:$0xff] }
  0xed   :  { %v215_v11 = vpop.f32.mrf.mxu0  ;;  %v263_v12 = vpop.f32.mrf.mxu1 }
  0xee   :  { %v286_v13 = vpack.c.bf16 %v271_v10, %v270_v9  ;;  %v216_v16 = vadd.f32 %v752_v62, %v215_v11  ;;  %v264_v2 = vadd.f32 %v752_v62, %v263_v12  ;;  %v292_v4 = vpack.c.bf16 %v283_v60, %v282_v59 }
  0xef   :  { %v217_v14 = vpop.f32.mrf.mxu0  ;;  %v265_v15 = vpop.f32.mrf.mxu1 }
  0xf0   :  { %527 = vmatprep.mubr.msk.bf16.mxu1 %vm333_vm1, %v286_v13  ;;  %v272_v22 = vmax.f32 %v216_v16, 0.0  ;;  %v284_v5 = vmax.f32 %v264_v2, 0.0 }
  0xf1   :  { %v218_v17 = vpop.f32.mrf.mxu0  ;;  %v266_v18 = vpop.f32.mrf.mxu1 }
  0xf2   :  { %v219_v19 = vadd.f32 %v752_v62, %v218_v17  ;;  %v267_v0 = vadd.f32 %v752_v62, %v266_v18 }
  0xf3   :  { %v220_v20 = vpop.f32.mrf.mxu0  ;;  %v268_v21 = vpop.f32.mrf.mxu1 }
  0xf4   :  { %v273_v23 = vmax.f32 %v219_v19, 0.0  ;;  %v285_v6 = vmax.f32 %v267_v0, 0.0 }
  0xf5   :  { %v223_v24 = vpop.f32.mrf.mxu0 }
  0xf6   :  { %v287_v25 = vpack.c.bf16 %v273_v23, %v272_v22  ;;  %v224_v27 = vadd.f32 %v752_v62, %v223_v24  ;;  %v293_v7 = vpack.c.bf16 %v285_v6, %v284_v5 }
  0xf7   :  { %v225_v26 = vpop.f32.mrf.mxu0 }
  0xf8   :  { %528 = vmatmul.mubr.msk.bf16.vlgmr.msra.gmra.mxu1 %vm333_vm1, %v287_v25  ;;  %v274_v31 = vmax.f32 %v224_v27, 0.0 }
  0xf9   :  { %v226_v28 = vpop.f32.mrf.mxu0 }
  0xfa   :  { %v227_v29 = vadd.f32 %v752_v62, %v226_v28 }
  0xfb   :  { %v228_v30 = vpop.f32.mrf.mxu0 }
  0xfc   :  { %v275_v32 = vmax.f32 %v227_v29, 0.0 }
  0xfd   :  { %v231_v33 = vpop.f32.mrf.mxu0 }
  0xfe   :  { %v288_v34 = vpack.c.bf16 %v275_v32, %v274_v31  ;;  %v232_v36 = vadd.f32 %v752_v62, %v231_v33 }
  0xff   :  { %v233_v35 = vpop.f32.mrf.mxu0 }
 0x100   :  { %531 = vmatprep.mubr.msk.bf16.mxu1 %vm333_vm1, %v288_v34  ;;  %v276_v40 = vmax.f32 %v232_v36, 0.0 }
 0x101   :  { %v234_v37 = vpop.f32.mrf.mxu0 }
 0x102   :  { %v235_v38 = vadd.f32 %v752_v62, %v234_v37 }
 0x103   :  { %v236_v39 = vpop.f32.mrf.mxu0 }
 0x104   :  { %v277_v41 = vmax.f32 %v235_v38, 0.0 }
 0x105   :  { %v239_v42 = vpop.f32.mrf.mxu0 }
 0x106   :  { %v289_v43 = vpack.c.bf16 %v277_v41, %v276_v40  ;;  %v240_v45 = vadd.f32 %v752_v62, %v239_v42 }
 0x107   :  { %v241_v44 = vpop.f32.mrf.mxu0 }
 0x108   :  { %532 = vmatmul.mubr.msk.bf16.gmra.mxu1 %vm333_vm1, %v289_v43  ;;  %v278_v49 = vmax.f32 %v240_v45, 0.0 }
 0x109   :  { %v242_v46 = vpop.f32.mrf.mxu0 }
 0x10a   :  { %v243_v47 = vadd.f32 %v752_v62, %v242_v46 }
 0x10b   :  { %v244_v48 = vpop.f32.mrf.mxu0 }
 0x10c   :  { %v279_v50 = vmax.f32 %v243_v47, 0.0 }
 0x10d   :  { %v247_v51 = vpop.f32.mrf.mxu0 }
 0x10e   :  { %v290_v52 = vpack.c.bf16 %v279_v50, %v278_v49  ;;  %v248_v56 = vadd.f32 %v752_v62, %v247_v51 }
 0x10f   :  { %v249_v55 = vpop.f32.mrf.mxu0 }
 0x110   :  { %535 = vmatprep.mubr.msk.bf16.mxu1 %vm333_vm1, %v290_v52  ;;  %v280_v63 = vmax.f32 %v248_v56, 0.0 }
 0x111   :  { %v250_v57 = vpop.f32.mrf.mxu0 }
 0x112   :  { %v251_v58 = vadd.f32 %v752_v62, %v250_v57 }
 0x113   :  { %v252_v61 = vpop.f32.mrf.mxu0 }
 0x114   :  { %v281_v1 = vmax.f32 %v251_v58, 0.0 }
 0x116   :  { %v291_v3 = vpack.c.bf16 %v281_v1, %v280_v63 }
 0x118   :  { %536 = vmatmul.mubr.msk.bf16.gmra.mxu1 %vm333_vm1, %v291_v3 }
 0x119   :  { %539 = vmatprep.mubr.msk.bf16.mxu1 %vm333_vm1, %v292_v4 }
 0x120   :  { %540 = vmatmul.mubr.msk.bf16.gmra.mxu1 %vm333_vm1, %v293_v7 }
 0x1b8   :  { %v529_v9 = vpop.f32.mrf.mxu1 }
 0x1b9   :  { %v401_v10 = vadd.f32 %v529_v9, %v494_v8 }
 0x1ba   :  { %v392_v11 = vpop.f32.mrf.mxu1 }
 0x1bb   :  { %458 = vst.msk [vmem:[%s850_s5 + $0x10] sm:$0xff] %vm455_vm2, %v401_v10  ;;  %v393_v62 = vadd.f32 %v494_v8, %v392_v11 }
 0x1bc   :  { %v530_v12 = vpop.f32.mrf.mxu1 }
 0x1bd   :  { %456 = vst.msk [vmem:[%s850_s5] sm:$0xff] %vm455_vm2, %v393_v62  ;;  %v404_v13 = vadd.f32 %v530_v12, %v494_v8 }
 0x1be   :  { %v395_v14 = vpop.f32.mrf.mxu1 }
 0x1bf   :  { %459 = vst.msk [vmem:[%s850_s5 + $0x18] sm:$0xff] %vm455_vm2, %v404_v13  ;;  %v396_v15 = vadd.f32 %v494_v8, %v395_v14 }
 0x1c1   :  { %457 = vst.msk [vmem:[%s850_s5 + $0x8] sm:$0xff] %vm455_vm2, %v396_v15 }
 0x1c8   :  { %v533_v16 = vpop.f32.mrf.mxu1 }
 0x1c9   :  { %v417_v17 = vadd.f32 %v533_v16, %v494_v8 }
 0x1ca   :  { %v408_v18 = vpop.f32.mrf.mxu1 }
 0x1cb   :  { %462 = vst.msk [vmem:[%s850_s5 + $0x30] sm:$0xff] %vm455_vm2, %v417_v17  ;;  %v409_v19 = vadd.f32 %v494_v8, %v408_v18 }
 0x1cc   :  { %v534_v20 = vpop.f32.mrf.mxu1 }
 0x1cd   :  { %460 = vst.msk [vmem:[%s850_s5 + $0x20] sm:$0xff] %vm455_vm2, %v409_v19  ;;  %v420_v21 = vadd.f32 %v534_v20, %v494_v8 }
 0x1ce   :  { %v411_v22 = vpop.f32.mrf.mxu1 }
 0x1cf   :  { %463 = vst.msk [vmem:[%s850_s5 + $0x38] sm:$0xff] %vm455_vm2, %v420_v21  ;;  %v412_v23 = vadd.f32 %v494_v8, %v411_v22 }
 0x1d1   :  { %461 = vst.msk [vmem:[%s850_s5 + $0x28] sm:$0xff] %vm455_vm2, %v412_v23 }
 0x1d8   :  { %v537_v24 = vpop.f32.mrf.mxu1 }
 0x1d9   :  { %v433_v25 = vadd.f32 %v537_v24, %v494_v8 }
 0x1da   :  { %v424_v26 = vpop.f32.mrf.mxu1 }
 0x1db   :  { %466 = vst.msk [vmem:[%s850_s5 + $0x50] sm:$0xff] %vm455_vm2, %v433_v25  ;;  %v425_v27 = vadd.f32 %v494_v8, %v424_v26 }
 0x1dc   :  { %v538_v28 = vpop.f32.mrf.mxu1 }
 0x1dd   :  { %464 = vst.msk [vmem:[%s850_s5 + $0x40] sm:$0xff] %vm455_vm2, %v425_v27  ;;  %v436_v29 = vadd.f32 %v538_v28, %v494_v8 }
 0x1de   :  { %v427_v30 = vpop.f32.mrf.mxu1 }
 0x1df   :  { %467 = vst.msk [vmem:[%s850_s5 + $0x58] sm:$0xff] %vm455_vm2, %v436_v29  ;;  %v428_v31 = vadd.f32 %v494_v8, %v427_v30 }
 0x1e0   :  { %v541_v32 = vpop.f32.mrf.mxu1 }
 0x1e1   :  { %465 = vst.msk [vmem:[%s850_s5 + $0x48] sm:$0xff] %vm455_vm2, %v428_v31  ;;  %v449_v33 = vadd.f32 %v541_v32, %v494_v8 }
 0x1e2   :  { %v440_v34 = vpop.f32.mrf.mxu1 }
 0x1e3   :  { %470 = vst.msk [vmem:[%s850_s5 + $0x70] sm:$0xff] %vm455_vm2, %v449_v33  ;;  %v441_v35 = vadd.f32 %v494_v8, %v440_v34 }
 0x1e4   :  { %v542_v36 = vpop.f32.mrf.mxu1 }
 0x1e5   :  { %468 = vst.msk [vmem:[%s850_s5 + $0x60] sm:$0xff] %vm455_vm2, %v441_v35  ;;  %v452_v37 = vadd.f32 %v542_v36, %v494_v8 }
 0x1e6   :  { %v443_v38 = vpop.f32.mrf.mxu1 }
 0x1e7   :  { %471 = vst.msk [vmem:[%s850_s5 + $0x78] sm:$0xff] %vm455_vm2, %v452_v37  ;;  %v444_v39 = vadd.f32 %v494_v8, %v443_v38 }
 0x1e9   :  { %469 = vst.msk [vmem:[%s850_s5 + $0x68] sm:$0xff] %vm455_vm2, %v444_v39 }

// kernel: detr_forward.6
= control target key start
LH: loop header
LB: loop body
LE: loop exit
PB: predicated region body
PF: predicated region fallthrough
CT: control target
= control target key end

     0   :  { %s3595_s18 = smov 0   ;;  %s3597_s19 = smov 0   ;;  %s4600_s0 = inlined_call_operand.vmem [shape: f32[2,64,32], index: 0, kind: input, shape index: {}]   ;;  %s4601_s1 = inlined_call_operand.vmem [shape: f32[64,32], index: 1, kind: input, shape index: {}]   ;;  %s4602_s2 = inlined_call_operand.vmem [shape: bf16[2,32,192], index: 2, kind: input, shape index: {}]   ;;  %s4603_s3 = inlined_call_operand.vmem [shape: bf16[2,64,32], index: 3, kind: input, shape index: {}]   ;;  %s4604_s4 = inlined_call_operand.vmem [shape: f32[2,10,64], index: 4, kind: input, shape index: {}]   ;;  %s4605_s5 = inlined_call_operand.vmem [shape: f32[2,64,32], index: 5, kind: output, shape index: {}]  }
   0x1   :  { %s3599_s20 = smov 0   ;;  %s3601_s21 = smov 0  }
   0x2   :  { %s3603_s22 = smov 0  }
   0x3 LB: > { %s24_s23 = sadd.s32 1, %s3549_s20  ;;  %s27_s24 = sadd.s32 1, %s3553_s21  ;;  %s3557_s22 = sphi %s3603_s22, %s15_s22   ;;  %s3553_s21 = sphi %s3601_s21, %s4609_s21   ;;  %s3549_s20 = sphi %s3599_s20, %s4608_s20   ;;  %s3545_s19 = sphi %s3597_s19, %s4607_s19   ;;  %s3541_s18 = sphi %s3595_s18, %s4606_s18  }
   0x4   : > { %p25_p0 = scmp.ge.s32.totalorder %s24_s23, 2  ;;  %p2817_p1 = scmp.ge.s32.totalorder %s3557_s22, 1 }
   0x5   : > { %p229_p2 = scmp.lt.s32.totalorder %s3557_s22, 5 }
   0x6   : > { %s4611_s23 = smov (%p25_p0, %s24_s23), 0  ;;  %s4613_s24 = smov (!%p25_p0, %s27_s24), %s3553_s21 }
   0x7   : > { %p230_p3 = pnand %p2817_p1, %p229_p2  ;;  %p29_p4 = scmp.ge.s32.totalorder %s4613_s24, 2 }
   0x8   : > { %p272_p5 = scmp.lt.s32.totalorder (!%p230_p3), %s3545_s19, 1  ;;  %p277_p6 = scmp.lt.s32.totalorder (!%p230_p3), %s3541_s18, 1 }
   0x9   : > { %s4615_s24 = smov (%p29_p4, %s4613_s24), 0  ;;  %233 = sbr.rel (%p230_p3) target bundleno = 3683 (0xe63), region = 40 }
   0xa   : > { %p2828_p7 = scmp.ne.s32.totalorder (!%p230_p3), %s3541_s18, 0 }
   0xe   : > { %s4617_s19 = smov (!%p272_p5, %s3545_s19), 1 }
   0xf   : > { %s278_s25 = scalar_select %p277_p6, %s3541_s18, 1 }
  0x10   : > { %s2911_s26 = sshll.u32 %s4617_s19, 6  ;;  %301 = sbr.rel (%p2828_p7) target bundleno = 26 (0x1a), region = 44 }
  0x11   : > { %s276_s29 = scalar_lea.vmem %s4600_s0, %s2911_s26  ;;  %s2912_s30 = sshll.u32 %s278_s25, 5 }
  0x12   : > { %s3631_s8 = scalar_lea.vmem %s4602_s2, %s2912_s30  ;;  %s3636_s11 = scalar_lea.vmem %s4603_s3, %s2912_s30 }
  0x13   : > { %s2914_s12 = sshll.u32 %s278_s25, 4  ;;  %s3641_s15 = scalar_lea.vmem %s4605_s5, %s2911_s26 }
  0x14   : > { %s3646_s19 = scalar_lea.vmem %s4604_s4, %s2914_s12 }
  0x15   : > { %v302_v0 = vld [vmem:[%s276_s29] sm:$0xff]  ;;  %vm310_vm0 = vcmask 261120   ;;  %v303_v1 = vld [vmem:[%s276_s29 + $0x8] sm:$0xff]  ;;  %v304_v2 = vld [vmem:[%s276_s29 + $0x10] sm:$0xff] }
  0x16   : > { %311 = vst.msk [vmem:[%s3641_s15] sm:$0xff] %vm310_vm0, %v302_v0  ;;  %312 = vst.msk [vmem:[%s3641_s15 + $0x8] sm:$0xff] %vm310_vm0, %v303_v1  ;;  %v305_v3 = vld [vmem:[%s276_s29 + $0x18] sm:$0xff]  ;;  %v306_v4 = vld [vmem:[%s276_s29 + $0x20] sm:$0xff] }
  0x17   : > { %313 = vst.msk [vmem:[%s3641_s15 + $0x10] sm:$0xff] %vm310_vm0, %v304_v2  ;;  %v307_v5 = vld [vmem:[%s276_s29 + $0x28] sm:$0xff]  ;;  %314 = vst.msk [vmem:[%s3641_s15 + $0x18] sm:$0xff] %vm310_vm0, %v305_v3  ;;  %v308_v6 = vld [vmem:[%s276_s29 + $0x30] sm:$0xff] }
  0x18   : > { %315 = vst.msk [vmem:[%s3641_s15 + $0x20] sm:$0xff] %vm310_vm0, %v306_v4  ;;  %316 = vst.msk [vmem:[%s3641_s15 + $0x28] sm:$0xff] %vm310_vm0, %v307_v5  ;;  %v309_v7 = vld [vmem:[%s276_s29 + $0x38] sm:$0xff] }
  0x19   : > { %317 = vst.msk [vmem:[%s3641_s15 + $0x30] sm:$0xff] %vm310_vm0, %v308_v6  ;;  %318 = vst.msk [vmem:[%s3641_s15 + $0x38] sm:$0xff] %vm310_vm0, %v309_v7 }
  0x1a PF: > { %v337_v8 = vld [vmem:[%s3631_s8 + $0x10] sm:$0xff]  ;;  %v338_v9 = vld [vmem:[%s3631_s8 + $0x18] sm:$0xff]  ;;  %v335_v10 = vld [vmem:[%s3631_s8] sm:$0xff]  ;;  %s3559_s28 = smov 96   ;;  %vm381_vm1 = vcmask 261120   ;;  %v365_v44 = vlaneseq  ;;  %vm633_vm2 = vcmask 64512  }
  0x1b   : > { %v3659_v11 = vcombine.low %v337_v8, %v338_v9  ;;  %v3662_v12 = vld [vmem:[%s3631_s8 + $0x8] sm:$0xff]  ;;  %v331_v15 = vld [vmem:[%s4601_s1 + $0x20] sm:$0xff]  ;;  %v333_v22 = vld [vmem:[%s4601_s1 + $0x30] sm:$0xff]  ;;  %s3560_s25 = smov 64   ;;  %vm731_vm3 = vcmask 523264   ;;  %s3561_s26 = smov 120  }
  0x1c   : > { %v332_v16 = vld [vmem:[%s4601_s1 + $0x28] sm:$0xff]  ;;  %v3681_v18 = vcombine.low %v335_v10, %v3662_v12  ;;  %v334_v23 = vld [vmem:[%s4601_s1 + $0x38] sm:$0xff]  ;;  %v327_v28 = vld [vmem:[%s4601_s1] sm:$0xff]  ;;  %v3741_v45 = vshrl.u32 %v365_v44, 7  ;;  %s3562_s27 = smov 32   ;;  %s3564_s29 = smov 104  }
  0x1d   : > { %465 = vrot.lane.b32.xlu0 %v3659_v11, %s3559_s28  ;;  %3264 = vmatprep.subr.bf16.mxu1 %v3659_v11  ;;  %v3699_v26 = vld [vmem:[%s3641_s15] sm:$0xff]  ;;  %v3702_v27 = vld [vmem:[%s3641_s15 + $0x8] sm:$0xff]  ;;  %v329_v35 = vld [vmem:[%s4601_s1 + $0x10] sm:$0xff]  ;;  %vm1230_vm4 = vcmask 1043456  }
  0x1e   : > { %3266 = vmatpush3.bf16.msra.mxu1 %v3659_v11  ;;  %3032 = vmatprep.subr.bf16.mxu0 %v3659_v11  ;;  %v328_v30 = vld [vmem:[%s4601_s1 + $0x8] sm:$0xff]  ;;  %v349_v31 = vadd.f32 %v327_v28, %v3699_v26  ;;  %v3714_v32 = vld [vmem:[%s3641_s15 + $0x10] sm:$0xff]  ;;  %v3717_v33 = vld [vmem:[%s3641_s15 + $0x18] sm:$0xff]  ;;  %v367_v46 = vsub.s32 0, %v3741_v45  ;;  %v461_v3 = vsub.s32 1, %v3741_v45 }
  0x1f   : > { %v3665_v13 = vld [vmem:[%s3641_s15 + $0x20] sm:$0xff]  ;;  %v3668_v14 = vld [vmem:[%s3641_s15 + $0x28] sm:$0xff]  ;;  %3265 = vmatprep.subr.bf16.mxu1 %v3681_v18  ;;  %3033 = vmatpush3.bf16.msra.mxu0 %v3659_v11  ;;  %v350_v34 = vadd.f32 %v328_v30, %v3702_v27  ;;  %v330_v36 = vld [vmem:[%s4601_s1 + $0x18] sm:$0xff]  ;;  %v351_v38 = vadd.f32 %v329_v35, %v3714_v32 }
  0x20   : > { %v3677_v17 = vld [vmem:[%s3641_s15 + $0x30] sm:$0xff]  ;;  %v353_v19 = vadd.f32 %v331_v15, %v3665_v13  ;;  %v354_v20 = vadd.f32 %v332_v16, %v3668_v14  ;;  %v3687_v21 = vld [vmem:[%s3641_s15 + $0x38] sm:$0xff]  ;;  %3034 = vmatprep.subr.bf16.mxu0 %v3681_v18  ;;  %v352_v39 = vadd.f32 %v330_v36, %v3717_v33  ;;  %v3745_v47 = vld [vmem:[%s3646_s19] sm:$0xff]  ;;  %540 = vrot.lane.b32.xlu1 %v3659_v11, %s3560_s25 }
  0x21   : > { %v355_v24 = vadd.f32 %v333_v22, %v3677_v17  ;;  %v356_v25 = vadd.f32 %v334_v23, %v3687_v21  ;;  %463 = vrot.lane.b32.xlu0 %v3681_v18, %s3559_s28  ;;  %v357_v40 = vpack.c.bf16 %v350_v34, %v349_v31  ;;  %v368_v48 = vrot.slane %v3745_v47, %v367_v46  ;;  %s3563_s28 = smov 112  }
  0x22   : > { %v359_v29 = vpack.c.bf16 %v354_v20, %v353_v19  ;;  %3267 = vmatpush3.bf16.msra.mxu1 %v3681_v18  ;;  %v358_v41 = vpack.c.bf16 %v352_v39, %v351_v38  ;;  %v462_v6 = vrot.slane %v3745_v47, %v461_v3  ;;  %v363_v44 = vpack.c.bf16 %v3668_v14, %v3665_v13 }
  0x23   : > { %v360_v37 = vpack.c.bf16 %v356_v25, %v355_v24  ;;  %3035 = vmatpush3.bf16.msra.mxu0 %v3681_v18  ;;  %3036 = vmatprep.mubr.msk.bf16.mxu0 %vm381_vm1, %v357_v40 }
  0x24   : > { %3040 = vmatprep.mubr.msk.bf16.mxu1 %vm381_vm1, %v359_v29  ;;  %538 = vrot.lane.b32.xlu1 %v3681_v18, %s3560_s25 }
  0x25   : > { %3041 = vmatmul.mubr.msk.bf16.vlgmr.msra.gmra.mxu1 %vm381_vm1, %v360_v37 }
  0x26   : > { %3048 = vmatprep.mubr.msk.bf16.mxu1 %vm381_vm1, %v357_v40  ;;  %3037 = vmatmul.mubr.msk.bf16.vlgmr.msra.gmra.mxu0 %vm381_vm1, %v358_v41 }
  0x8f   : > { %v466_v42 = vpop.permute.xlu0 %465 }
  0x90   : > { %3044 = vmatprep.subr.bf16.mxu1 %v466_v42 }
  0x91   : > { %3045 = vmatpush3.bf16.msra.mxu1 %v466_v42 }
  0x92   : > { %v541_v40 = vpop.permute.xlu1 %540 }
  0x93   : > { %v464_v43 = vpop.permute.xlu0 %463  ;;  %3056 = vmatprep.subr.bf16.mxu0 %v541_v40 }
  0x94   : > { %3046 = vmatprep.subr.bf16.mxu1 %v464_v43  ;;  %3057 = vmatpush3.bf16.msra.mxu0 %v541_v40 }
  0x95   : > { %3047 = vmatpush3.bf16.msra.mxu1 %v464_v43  ;;  %v362_v43 = vpack.c.bf16 %v3717_v33, %v3714_v32 }
  0x96   : > { %v539_v42 = vpop.permute.xlu1 %538 }
  0x97   : > { %3058 = vmatprep.subr.bf16.mxu0 %v539_v42 }
  0x98   : > { %3049 = vmatmul.mubr.msk.bf16.vlgmr.msra.gmra.mxu1 %vm381_vm1, %v358_v41  ;;  %v361_v41 = vpack.c.bf16 %v3702_v27, %v3699_v26  ;;  %3059 = vmatpush3.bf16.msra.mxu0 %v539_v42  ;;  %v364_v26 = vpack.c.bf16 %v3687_v21, %v3677_v17 }
  0x99   : > { %3052 = vmatprep.mubr.msk.bf16.mxu1 %vm381_vm1, %v359_v29 }
  0x9a   : > { %3060 = vmatprep.mubr.msk.bf16.mxu0 %vm381_vm1, %v361_v41 }
  0x9b   : > { %3061 = vmatmul.mubr.msk.bf16.vlgmr.msra.gmra.mxu0 %vm381_vm1, %v362_v43 }
  0x9c   : > { %3064 = vmatprep.mubr.msk.bf16.mxu0 %vm381_vm1, %v363_v44 }
  0xa0   : > { %3053 = vmatmul.mubr.msk.bf16.gmra.mxu1 %vm381_vm1, %v360_v37 }
  0xa3   : > { %3065 = vmatmul.mubr.msk.bf16.gmra.mxu0 %vm381_vm1, %v364_v26 }
  0xe5   : > { %v3042_v59 = vpop.f32.mrf.mxu1 }
  0xe6   : > { %v3038_v49 = vpop.f32.mrf.mxu0  ;;  %v453_v37 = vadd.f32 %v3042_v59, %v368_v48 }
  0xe7   : > { %v437_v50 = vadd.f32 %v3038_v49, %v368_v48  ;;  %v444_v60 = vpop.f32.mrf.mxu1 }
  0xe8   : > { %v428_v51 = vpop.f32.mrf.mxu0  ;;  %v445_v34 = vadd.f32 %v444_v60, %v368_v48 }
  0xe9   : > { %v429_v53 = vadd.f32 %v428_v51, %v368_v48  ;;  %v3043_v61 = vpop.f32.mrf.mxu1 }
  0xea   : > { %v3039_v52 = vpop.f32.mrf.mxu0  ;;  %v456_v38 = vadd.f32 %v3043_v61, %v368_v48 }
  0xeb   : > { %v440_v54 = vadd.f32 %v3039_v52, %v368_v48  ;;  %v447_v62 = vpop.f32.mrf.mxu1 }
  0xec   : > { %v431_v55 = vpop.f32.mrf.mxu0  ;;  %v448_v35 = vadd.f32 %v447_v62, %v368_v48  ;;  %v3792_v39 = vpack.c.bf16 %v456_v38, %v453_v37 }
  0xed   : > { %v3750_v56 = vpack.c.bf16 %v440_v54, %v437_v50  ;;  %v432_v57 = vadd.f32 %v431_v55, %v368_v48 }
  0xee   : > { %v3786_v36 = vpack.c.bf16 %v448_v35, %v445_v34 }
  0xef   : > { %v3752_v58 = vpack.c.bf16 %v432_v57, %v429_v53 }
  0xf1   : > { %3076 = vmatprep.mubr.msk.bf16.mxu1 %vm633_vm2, %v3752_v58 }
 0x158   : > { %v3050_v63 = vpop.f32.mrf.mxu1 }
 0x159   : > { %v512_v22 = vadd.f32 %v3050_v63, %v462_v6 }
 0x15a   : > { %v503_v0 = vpop.f32.mrf.mxu1 }
 0x15b   : > { %v504_v28 = vadd.f32 %v503_v0, %v462_v6 }
 0x15c   : > { %v3051_v1 = vpop.f32.mrf.mxu1 }
 0x15d   : > { %v515_v20 = vadd.f32 %v3051_v1, %v462_v6 }
 0x15e   : > { %v506_v2 = vpop.f32.mrf.mxu1 }
 0x15f   : > { %v3772_v23 = vpack.c.bf16 %v515_v20, %v512_v22  ;;  %v507_v25 = vadd.f32 %v506_v2, %v462_v6 }
 0x160   : > { %v3054_v4 = vpop.f32.mrf.mxu1 }
 0x161   : > { %v528_v8 = vadd.f32 %v3054_v4, %v462_v6  ;;  %v3778_v29 = vpack.c.bf16 %v507_v25, %v504_v28  ;;  %v650_v30 = vsel %vm633_vm2, %v3772_v23, 0  ;;  %v3062_v4 = vpop.f32.mrf.mxu0 }
 0x162   : > { %v519_v5 = vpop.f32.mrf.mxu1 }
 0x163   : > { %v520_v11 = vadd.f32 %v519_v5, %v462_v6  ;;  %v647_v31 = vsel %vm633_vm2, %v3778_v29, 0  ;;  %v590_v5 = vpop.f32.mrf.mxu0 }
 0x164   : > { %v3055_v7 = vpop.f32.mrf.mxu1 }
 0x165   : > { %v531_v9 = vadd.f32 %v3055_v7, %v462_v6  ;;  %v3063_v7 = vpop.f32.mrf.mxu0 }
 0x166   : > { %v522_v10 = vpop.f32.mrf.mxu1 }
 0x167   : > { %v3762_v15 = vpack.c.bf16 %v531_v9, %v528_v8  ;;  %v523_v16 = vadd.f32 %v522_v10, %v462_v6  ;;  %v536_v6 = vsub.s32 2, %v3741_v45  ;;  %v593_v8 = vpop.f32.mrf.mxu0 }
 0x169   : > { %v3764_v18 = vpack.c.bf16 %v523_v16, %v520_v11  ;;  %3268 = vmatprep.subr.msk.bf16.mxu1 %vm633_vm2, %v3762_v15  ;;  %v656_v19 = vsel %vm633_vm2, %v3762_v15, 0  ;;  %v537_v9 = vrot.slane %v3745_v47, %v536_v6  ;;  %v3066_v10 = vpop.f32.mrf.mxu0 }
 0x16a   : > { %3069 = vmatpush3.bf16.xpose.msra.mxu1 %v656_v19 }
 0x16b   : > { %3269 = vmatprep.subr.msk.bf16.mxu1 %vm633_vm2, %v3764_v18  ;;  %v653_v24 = vsel %vm633_vm2, %v3764_v18, 0  ;;  %v606_v11 = vpop.f32.mrf.mxu0  ;;  %v615_v16 = vadd.f32 %v3066_v10, %v537_v9  ;;  %v599_v28 = vadd.f32 %v3062_v4, %v537_v9  ;;  %v591_v41 = vadd.f32 %v590_v5, %v537_v9 }
 0x16c   : > { %v607_v20 = vadd.f32 %v606_v11, %v537_v9  ;;  %v594_v43 = vadd.f32 %v593_v8, %v537_v9 }
 0x16d   : > { %v3067_v19 = vpop.f32.mrf.mxu0 }
 0x16e   : > { %v618_v22 = vadd.f32 %v3067_v19, %v537_v9 }
 0x16f   : > { %v609_v25 = vpop.f32.mrf.mxu0 }
 0x170   : > { %v610_v34 = vadd.f32 %v609_v25, %v537_v9 }
 0x172   : > { %3071 = vmatpush3.bf16.xpose.msra.mxu1 %v653_v24  ;;  %v3829_v37 = vpack.c.bf16 %v610_v34, %v607_v20 }
 0x173   : > { %3270 = vmatprep.subr.msk.bf16.mxu1 %vm633_vm2, %v3772_v23 }
 0x17a   : > { %3073 = vmatpush3.bf16.xpose.msra.mxu1 %v650_v30  ;;  %v602_v30 = vadd.f32 %v3063_v7, %v537_v9 }
 0x17b   : > { %3271 = vmatprep.subr.msk.bf16.mxu1 %vm633_vm2, %v3778_v29 }
 0x17c   : > { %v3833_v42 = vpack.c.bf16 %v602_v30, %v599_v28 }
 0x182   : > { %3075 = vmatpush3.bf16.xpose.msra.mxu1 %v647_v31  ;;  %v3827_v31 = vpack.c.bf16 %v618_v22, %v615_v16 }
 0x184   : > { %3084 = vmatprep.subr.bf16.mxu0 %v3827_v31 }
 0x185   : > { %3085 = vmatpush3.bf16.msra.mxu0 %v3827_v31 }
 0x186   : > { %3086 = vmatprep.subr.bf16.mxu0 %v3829_v37 }
 0x189   : > { %3077 = vmatmul.mubr.msk.bf16.vlgmr.msra.gmra.mxu1 %vm633_vm2, %v3750_v56  ;;  %3087 = vmatpush3.bf16.msra.mxu0 %v3829_v37 }
 0x18a   : > { %3080 = vmatprep.mubr.msk.bf16.mxu1 %vm633_vm2, %v3786_v36  ;;  %3088 = vmatprep.subr.bf16.mxu0 %v3833_v42 }
 0x18d   : > { %3089 = vmatpush3.bf16.msra.mxu0 %v3833_v42 }
 0x191   : > { %3081 = vmatmul.mubr.msk.bf16.gmra.mxu1 %vm633_vm2, %v3792_v39 }
 0x249   : > { %v3078_v27 = vpop.f32.mrf.mxu1 }
 0x24a   : > { %v725_v51 = vmul.f32 0.35355338, %v3078_v27 }
 0x24b   : > { %v692_v48 = vpop.f32.mrf.mxu1 }
 0x24c   : > { %v723_v49 = vmul.f32 0.35355338, %v692_v48  ;;  %v738_v53 = vsel %vm731_vm3, %v725_v51, -inf }
 0x24d   : > { %v3079_v50 = vpop.f32.mrf.mxu1 }
 0x24e   : > { %v732_v32 = vsel %vm731_vm3, %v723_v49, -inf  ;;  %v726_v52 = vmul.f32 0.35355338, %v3079_v50  ;;  %v3838_v50 = vpack.c.bf16 %v594_v43, %v591_v41 }
 0x24f   : > { %733 = vmax.xlane.f32.xlu0 %v732_v32  ;;  %v695_v33 = vpop.f32.mrf.mxu1 }
 0x250   : > { %v3809_v13 = vmul.f32 0.35355338, %v695_v33  ;;  %v741_v59 = vsel %vm731_vm3, %v726_v52, -inf  ;;  %3090 = vmatprep.subr.bf16.mxu0 %v3838_v50 }
 0x251   : > { %v3082_v14 = vpop.f32.mrf.mxu1  ;;  %3091 = vmatpush3.bf16.msra.mxu0 %v3838_v50 }
 0x252   : > { %v735_v17 = vsel %vm731_vm3, %v3809_v13, -inf  ;;  %v3816_v57 = vmul.f32 0.35355338, %v3082_v14 }
 0x253   : > { %739 = vmax.xlane.f32.xlu0 %v738_v53  ;;  %736 = vmax.xlane.f32.xlu1 %v735_v17  ;;  %v708_v21 = vpop.f32.mrf.mxu1 }
 0x254   : > { %v3814_v54 = vmul.f32 0.35355338, %v708_v21  ;;  %v750_v0 = vsel %vm731_vm3, %v3816_v57, -inf }
 0x255   : > { %v3083_v55 = vpop.f32.mrf.mxu1 }
 0x256   : > { %v744_v60 = vsel %vm731_vm3, %v3814_v54, -inf  ;;  %v730_v63 = vmul.f32 0.35355338, %v3083_v55 }
 0x257   : > { %742 = vmax.xlane.f32.xlu0 %v741_v59  ;;  %745 = vmax.xlane.f32.xlu1 %v744_v60  ;;  %v711_v61 = vpop.f32.mrf.mxu1 }
 0x258   : > { %v728_v62 = vmul.f32 0.35355338, %v711_v61  ;;  %v753_v2 = vsel %vm731_vm3, %v730_v63, -inf }
 0x25a   : > { %v747_v1 = vsel %vm731_vm3, %v728_v62, -inf }
 0x25b   : > { %751 = vmax.xlane.f32.xlu1 %v750_v0  ;;  %748 = vmax.xlane.f32.xlu0 %v747_v1 }
 0x25f   : > { %754 = vmax.xlane.f32.xlu0 %v753_v2 }
 0x2d8   : > { %v734_v24 = vpop.xlane.xlu0 %733 }
 0x2d9   : > { %v756_v35 = vsub.f32 %v723_v49, %v734_v24 }
 0x2db   : > { %v764_v44 = vmul.f32 1.442695, %v756_v35 }
 0x2dc   : > { %v740_v38 = vpop.xlane.xlu0 %739  ;;  %v737_v47 = vpop.xlane.xlu1 %736 }
 0x2dd   : > { %v758_v40 = vsub.f32 %v725_v51, %v740_v38  ;;  %v757_v27 = vsub.f32 %v3809_v13, %v737_v47 }
 0x2df   : > { %v768_v26 = vmul.f32 1.442695, %v758_v40  ;;  %v766_v51 = vmul.f32 1.442695, %v757_v27 }
 0x2e0   : > { %v743_v48 = vpop.xlane.xlu0 %742  ;;  %v746_v6 = vpop.xlane.xlu1 %745 }
 0x2e1   : > { %3346 = vpow2.f32 %v768_v26  ;;  %v759_v49 = vsub.f32 %v726_v52, %v743_v48  ;;  %v760_v9 = vsub.f32 %v3814_v54, %v746_v6 }
 0x2e2   : > { %3348 = vpow2.f32 %v764_v44 }
 0x2e3   : > { %v770_v32 = vmul.f32 1.442695, %v759_v49  ;;  %v772_v11 = vmul.f32 1.442695, %v760_v9 }
 0x2e4   : > { %v749_v33 = vpop.xlane.xlu0 %748  ;;  %v752_v7 = vpop.xlane.xlu1 %751 }
 0x2e5   : > { %3350 = vpow2.f32 %v770_v32  ;;  %v761_v13 = vsub.f32 %v728_v62, %v749_v33  ;;  %v762_v8 = vsub.f32 %v3816_v57, %v752_v7 }
 0x2e6   : > { %3352 = vpow2.f32 %v766_v51 }
 0x2e7   : > { %v774_v52 = vmul.f32 1.442695, %v761_v13  ;;  %v776_v10 = vmul.f32 1.442695, %v762_v8 }
 0x2e8   : > { %v755_v14 = vpop.xlane.xlu0 %754 }
 0x2e9   : > { %v763_v53 = vsub.f32 %v730_v63, %v755_v14 }
 0x2eb   : > { %v778_v17 = vmul.f32 1.442695, %v763_v53 }
 0x2ed   : > { %3354 = vpow2.f32 %v778_v17 }
 0x2ee   : > { %v3347_v21 = vpop.eup %3346  ;;  %3356 = vpow2.f32 %v774_v52 }
 0x2ef   : > { %v786_v55 = vsel %vm731_vm3, %v3347_v21, 0.0  ;;  %v3349_v59 = vpop.eup %3348  ;;  %3358 = vpow2.f32 %v776_v10 }
 0x2f0   : > { %787 = vadd.xlane.f32.xlu1 %v786_v55  ;;  %v780_v61 = vsel %vm731_vm3, %v3349_v59, 0.0  ;;  %3360 = vpow2.f32 %v772_v11 }
 0x2f2   : > { %v3351_v60 = vpop.eup %3350 }
 0x2f3   : > { %v789_v0 = vsel %vm731_vm3, %v3351_v60, 0.0  ;;  %v3353_v1 = vpop.eup %3352 }
 0x2f4   : > { %781 = vadd.xlane.f32.xlu1 %v780_v61  ;;  %790 = vadd.xlane.f32.xlu0 %v789_v0  ;;  %v783_v62 = vsel %vm731_vm3, %v3353_v1, 0.0 }
 0x2f8   : > { %784 = vadd.xlane.f32.xlu0 %v783_v62 }
 0x2fa   : > { %v3848_v63 = vpop.eup %3354 }
 0x2fb   : > { %v801_v2 = vsel %vm731_vm3, %v3848_v63, 0.0  ;;  %v3852_v4 = vpop.eup %3356 }
 0x2fc   : > { %802 = vadd.xlane.f32.xlu0 %v801_v2  ;;  %v795_v5 = vsel %vm731_vm3, %v3852_v4, 0.0  ;;  %v3359_v16 = vpop.eup %3358 }
 0x2fd   : > { %v798_v19 = vsel %vm731_vm3, %v3359_v16, 0.0  ;;  %v3361_v20 = vpop.eup %3360 }
 0x2fe   : > { %v792_v54 = vsel %vm731_vm3, %v3361_v20, 0.0 }
 0x300   : > { %796 = vadd.xlane.f32.xlu0 %v795_v5 }
 0x305   : > { %927 = vrot.lane.b32.xlu1 %v3762_v15, %s3561_s26 }
 0x316   : > { %925 = vrot.lane.b32.xlu0 %v3764_v18, %s3561_s26 }
 0x31a   : > { %909 = vrot.lane.b32.xlu0 %v3752_v58, %s3561_s26 }
 0x31e   : > { %913 = vrot.lane.b32.xlu0 %v3786_v36, %s3561_s26 }
 0x329   : > { %799 = vadd.xlane.f32.xlu1 %v798_v19 }
 0x32d   : > { %793 = vadd.xlane.f32.xlu1 %v792_v54 }
 0x33e   : > { %923 = vrot.lane.b32.xlu1 %v3772_v23, %s3561_s26 }
 0x342   : > { %921 = vrot.lane.b32.xlu1 %v3778_v29, %s3561_s26 }
 0x346   : > { %911 = vrot.lane.b32.xlu1 %v3750_v56, %s3561_s26 }
 0x34a   : > { %915 = vrot.lane.b32.xlu1 %v3792_v39, %s3561_s26 }
 0x379   : > { %v788_v57 = vpop.xlane.xlu1 %787 }
 0x37d   : > { %v782_v22 = vpop.xlane.xlu1 %781  ;;  %v791_v24 = vpop.xlane.xlu0 %790 }
 0x37e   : > { %3362 = vrcp.f32 %v791_v24 }
 0x37f   : > { %3364 = vrcp.f32 %v782_v22 }
 0x380   : > { %3366 = vrcp.f32 %v788_v57 }
 0x381   : > { %v928_v25 = vpop.permute.xlu1 %927  ;;  %v785_v28 = vpop.xlane.xlu0 %784 }
 0x382   : > { %3368 = vrcp.f32 %v785_v28  ;;  %3272 = vmatprep.subr.msk.bf16.mxu0 %vm633_vm2, %v928_v25  ;;  %v951_v49 = vsel %vm633_vm2, %v928_v25, 0 }
 0x385   : > { %v803_v30 = vpop.xlane.xlu0 %802 }
 0x389   : > { %v797_v41 = vpop.xlane.xlu0 %796 }
 0x38b   : > { %v3363_v34 = vpop.eup %3362 }
 0x38c   : > { %v3365_v35 = vpop.eup %3364  ;;  %v815_v40 = vmul.f32 %v3363_v34, %v3351_v60 }
 0x38d   : > { %v3367_v38 = vpop.eup %3366  ;;  %v812_v43 = vmul.f32 %v3365_v35, %v3349_v59  ;;  %v926_v51 = vpop.permute.xlu0 %925 }
 0x38e   : > { %v814_v26 = vmul.f32 %v3367_v38, %v3347_v21  ;;  %v948_v32 = vsel %vm633_vm2, %v926_v51, 0 }
 0x38f   : > { %v3369_v47 = vpop.eup %3368 }
 0x390   : > { %v813_v44 = vmul.f32 %v3369_v47, %v3353_v1  ;;  %v821_v48 = vpack.c.bf16 %v815_v40, %v814_v26 }
 0x391   : > { %v910_v6 = vpop.permute.xlu0 %909 }
 0x392   : > { %v820_v27 = vpack.c.bf16 %v813_v44, %v812_v43 }
 0x394   : > { %3092 = vmatprep.mubr.msk.bf16.mxu0 %vm731_vm3, %v820_v27 }
 0x395   : > { %3093 = vmatmul.mubr.msk.bf16.vlgmr.msra.gmra.mxu0 %vm731_vm3, %v821_v48  ;;  %v914_v8 = vpop.permute.xlu0 %913 }
 0x396   : > { %3101 = vmatpush3.bf16.xpose.msra.mxu0 %v951_v49 }
 0x397   : > { %3273 = vmatprep.subr.msk.bf16.mxu0 %vm633_vm2, %v926_v51 }
 0x39e   : > { %3103 = vmatpush3.bf16.xpose.msra.mxu0 %v948_v32 }
 0x3b2   : > { %v800_v33 = vpop.xlane.xlu1 %799 }
 0x3b3   : > { %3370 = vrcp.f32 %v800_v33 }
 0x3b4   : > { %3372 = vrcp.f32 %v797_v41 }
 0x3b5   : > { %3374 = vrcp.f32 %v803_v30 }
 0x3b6   : > { %v794_v13 = vpop.xlane.xlu1 %793 }
 0x3b7   : > { %3376 = vrcp.f32 %v794_v13 }
 0x3ba   : > { %v924_v14 = vpop.permute.xlu1 %923 }
 0x3bb   : > { %3274 = vmatprep.subr.msk.bf16.mxu0 %vm633_vm2, %v924_v14  ;;  %v945_v53 = vsel %vm633_vm2, %v924_v14, 0 }
 0x3bc   : > { %3105 = vmatpush3.bf16.xpose.msra.mxu0 %v945_v53 }
 0x3be   : > { %v922_v52 = vpop.permute.xlu1 %921 }
 0x3bf   : > { %3275 = vmatprep.subr.msk.bf16.mxu0 %vm633_vm2, %v922_v52  ;;  %v942_v59 = vsel %vm633_vm2, %v922_v52, 0 }
 0x3c0   : > { %v3371_v17 = vpop.eup %3370 }
 0x3c1   : > { %v3373_v21 = vpop.eup %3372  ;;  %v818_v61 = vmul.f32 %v3371_v17, %v3359_v16 }
 0x3c2   : > { %v3375_v55 = vpop.eup %3374  ;;  %v817_v1 = vmul.f32 %v3373_v21, %v3852_v4  ;;  %v912_v7 = vpop.permute.xlu1 %911 }
 0x3c3   : > { %v819_v62 = vmul.f32 %v3375_v55, %v3848_v63 }
 0x3c4   : > { %v3377_v60 = vpop.eup %3376  ;;  %3107 = vmatpush3.bf16.xpose.msra.mxu0 %v942_v59 }
 0x3c5   : > { %v816_v0 = vmul.f32 %v3377_v60, %v3361_v20  ;;  %v823_v5 = vpack.c.bf16 %v819_v62, %v818_v61 }
 0x3c6   : > { %v916_v9 = vpop.permute.xlu1 %915 }
 0x3c7   : > { %v822_v2 = vpack.c.bf16 %v817_v1, %v816_v0 }
 0x3c9   : > { %3096 = vmatprep.mubr.msk.bf16.mxu0 %vm731_vm3, %v822_v2 }
 0x3ca   : > { %3097 = vmatmul.mubr.msk.bf16.gmra.mxu0 %vm731_vm3, %v823_v5 }
 0x3cb   : > { %3108 = vmatprep.mubr.msk.bf16.mxu0 %vm633_vm2, %v910_v6 }
 0x3d2   : > { %3109 = vmatmul.mubr.msk.bf16.vlgmr.msra.gmra.mxu0 %vm633_vm2, %v912_v7 }
 0x3d3   : > { %3112 = vmatprep.mubr.msk.bf16.mxu0 %vm633_vm2, %v914_v8 }
 0x3da   : > { %3113 = vmatmul.mubr.msk.bf16.gmra.mxu0 %vm633_vm2, %v916_v9 }
 0x455   : > { %v3894_v4 = vpop.f32.mrf.mxu0 }
 0x457   : > { %v870_v63 = vpop.f32.mrf.mxu0 }
 0x459   : > { %v3896_v10 = vpop.f32.mrf.mxu0 }
 0x45a   : > { %v902_v11 = vpack.c.bf16 %v3896_v10, %v3894_v4 }
 0x45b   : > { %v873_v16 = vpop.f32.mrf.mxu0 }
 0x45c   : > { %v901_v19 = vpack.c.bf16 %v873_v16, %v870_v63 }
 0x45e   : > { %3144 = vmatprep.mubr.msk.bf16.mxu0 %vm633_vm2, %v901_v19 }
 0x48a   : > { %v3901_v20 = vpop.f32.mrf.mxu0 }
 0x48c   : > { %v3903_v54 = vpop.f32.mrf.mxu0 }
 0x48e   : > { %v3905_v57 = vpop.f32.mrf.mxu0 }
 0x48f   : > { %v904_v22 = vpack.c.bf16 %v3905_v57, %v3901_v20 }
 0x490   : > { %v3909_v24 = vpop.f32.mrf.mxu0 }
 0x491   : > { %v903_v25 = vpack.c.bf16 %v3909_v24, %v3903_v54 }
 0x492   : > { %v3110_v28 = vpop.f32.mrf.mxu0 }
 0x493   : > { %v1020_v38 = vmul.f32 0.35355338, %v3110_v28 }
 0x494   : > { %v987_v30 = vpop.f32.mrf.mxu0 }
 0x495   : > { %v1018_v34 = vmul.f32 0.35355338, %v987_v30  ;;  %v1032_v27 = vsel %vm731_vm3, %v1020_v38, -inf }
 0x496   : > { %v3111_v35 = vpop.f32.mrf.mxu0 }
 0x497   : > { %v1026_v47 = vsel %vm731_vm3, %v1018_v34, -inf  ;;  %v1021_v44 = vmul.f32 0.35355338, %v3111_v35 }
 0x498   : > { %1027 = vmax.xlane.f32.xlu0 %v1026_v47  ;;  %v990_v40 = vpop.f32.mrf.mxu0 }
 0x499   : > { %v1019_v41 = vmul.f32 0.35355338, %v990_v40  ;;  %v1035_v13 = vsel %vm731_vm3, %v1021_v44, -inf }
 0x49a   : > { %v3114_v43 = vpop.f32.mrf.mxu0 }
 0x49b   : > { %v1024_v26 = vmul.f32 0.35355338, %v3114_v43  ;;  %v1029_v48 = vsel %vm731_vm3, %v1019_v41, -inf }
 0x49c   : > { %1033 = vmax.xlane.f32.xlu0 %v1032_v27  ;;  %1030 = vmax.xlane.f32.xlu1 %v1029_v48  ;;  %v1003_v49 = vpop.f32.mrf.mxu0 }
 0x49d   : > { %v1022_v32 = vmul.f32 0.35355338, %v1003_v49  ;;  %v1044_v14 = vsel %vm731_vm3, %v1024_v26, -inf }
 0x49e   : > { %v3115_v51 = vpop.f32.mrf.mxu0 }
 0x49f   : > { %v1025_v33 = vmul.f32 0.35355338, %v3115_v51  ;;  %v1038_v17 = vsel %vm731_vm3, %v1022_v32, -inf }
 0x4a0   : > { %1036 = vmax.xlane.f32.xlu0 %v1035_v13  ;;  %1045 = vmax.xlane.f32.xlu1 %v1044_v14  ;;  %v1006_v53 = vpop.f32.mrf.mxu0 }
 0x4a1   : > { %v1023_v52 = vmul.f32 0.35355338, %v1006_v53  ;;  %v1047_v21 = vsel %vm731_vm3, %v1025_v33, -inf }
 0x4a3   : > { %v1041_v55 = vsel %vm731_vm3, %v1023_v52, -inf }
 0x4a4   : > { %1039 = vmax.xlane.f32.xlu1 %v1038_v17  ;;  %1048 = vmax.xlane.f32.xlu0 %v1047_v21 }
 0x4a8   : > { %1042 = vmax.xlane.f32.xlu0 %v1041_v55 }
 0x4b5   : > { %1128 = vrot.lane.b32.xlu1 %v3827_v31, %s3561_s26 }
 0x4be   : > { %1126 = vrot.lane.b32.xlu0 %v3829_v37, %s3561_s26 }
 0x521   : > { %v1028_v59 = vpop.xlane.xlu0 %1027 }
 0x522   : > { %v1050_v60 = vsub.f32 %v1018_v34, %v1028_v59 }
 0x524   : > { %v1058_v2 = vmul.f32 1.442695, %v1050_v60 }
 0x525   : > { %v1031_v61 = vpop.xlane.xlu1 %1030  ;;  %v1034_v0 = vpop.xlane.xlu0 %1033 }
 0x526   : > { %v1052_v1 = vsub.f32 %v1020_v38, %v1034_v0  ;;  %v1051_v5 = vsub.f32 %v1019_v41, %v1031_v61  ;;  %v2859_v0 = vcombine.low %v3662_v12, %v3662_v12 }
 0x528   : > { %v1062_v62 = vmul.f32 1.442695, %v1052_v1  ;;  %v1060_v63 = vmul.f32 1.442695, %v1051_v5 }
 0x529   : > { %v1046_v6 = vpop.xlane.xlu1 %1045  ;;  %v1037_v7 = vpop.xlane.xlu0 %1036 }
 0x52a   : > { %v1053_v8 = vsub.f32 %v1021_v44, %v1037_v7  ;;  %3378 = vpow2.f32 %v1062_v62  ;;  %v1056_v16 = vsub.f32 %v1024_v26, %v1046_v6 }
 0x52b   : > { %3380 = vpow2.f32 %v1058_v2 }
 0x52c   : > { %v1064_v9 = vmul.f32 1.442695, %v1053_v8  ;;  %v1070_v34 = vmul.f32 1.442695, %v1056_v16 }
 0x52d   : > { %v1040_v19 = vpop.xlane.xlu1 %1039  ;;  %v1049_v28 = vpop.xlane.xlu0 %1048 }
 0x52e   : > { %v1054_v30 = vsub.f32 %v1022_v32, %v1040_v19  ;;  %3382 = vpow2.f32 %v1064_v9  ;;  %v1057_v47 = vsub.f32 %v1025_v33, %v1049_v28 }
 0x52f   : > { %3384 = vpow2.f32 %v1060_v63 }
 0x530   : > { %v1066_v35 = vmul.f32 1.442695, %v1054_v30  ;;  %v1072_v41 = vmul.f32 1.442695, %v1057_v47 }
 0x531   : > { %v1129_v38 = vpop.permute.xlu1 %1128  ;;  %v1043_v40 = vpop.xlane.xlu0 %1042 }
 0x532   : > { %3386 = vpow2.f32 %v1066_v35  ;;  %3116 = vmatprep.subr.bf16.mxu1 %v1129_v38  ;;  %v1055_v43 = vsub.f32 %v1023_v52, %v1043_v40 }
 0x533   : > { %3117 = vmatpush3.bf16.msra.mxu1 %v1129_v38  ;;  %3388 = vpow2.f32 %v1070_v34 }
 0x534   : > { %3390 = vpow2.f32 %v1072_v41  ;;  %v1068_v27 = vmul.f32 1.442695, %v1055_v43 }
 0x535   : > { %v1127_v44 = vpop.permute.xlu0 %1126 }
 0x536   : > { %3118 = vmatprep.subr.bf16.mxu1 %v1127_v44  ;;  %3392 = vpow2.f32 %v1068_v27 }
 0x537   : > { %3119 = vmatpush3.bf16.msra.mxu1 %v1127_v44  ;;  %v3925_v26 = vpop.eup %3378 }
 0x538   : > { %v1080_v48 = vsel %vm731_vm3, %v3925_v26, 0.0  ;;  %v3929_v49 = vpop.eup %3380 }
 0x539   : > { %1081 = vadd.xlane.f32.xlu1 %v1080_v48  ;;  %v1074_v32 = vsel %vm731_vm3, %v3929_v49, 0.0 }
 0x53b   : > { %v3931_v51 = vpop.eup %3382 }
 0x53c   : > { %v1083_v33 = vsel %vm731_vm3, %v3931_v51, 0.0  ;;  %v3937_v13 = vpop.eup %3384 }
 0x53d   : > { %1075 = vadd.xlane.f32.xlu1 %v1074_v32  ;;  %1084 = vadd.xlane.f32.xlu0 %v1083_v33  ;;  %v1077_v52 = vsel %vm731_vm3, %v3937_v13, 0.0 }
 0x53f   : > { %v3939_v14 = vpop.eup %3386 }
 0x540   : > { %v1086_v53 = vsel %vm731_vm3, %v3939_v14, 0.0  ;;  %v3945_v17 = vpop.eup %3388 }
 0x541   : > { %1087 = vadd.xlane.f32.xlu1 %v1086_v53  ;;  %1078 = vadd.xlane.f32.xlu0 %v1077_v52  ;;  %v1092_v21 = vsel %vm731_vm3, %v3945_v17, 0.0  ;;  %v3949_v55 = vpop.eup %3390 }
 0x542   : > { %v1095_v59 = vsel %vm731_vm3, %v3949_v55, 0.0 }
 0x543   : > { %v3953_v60 = vpop.eup %3392 }
 0x544   : > { %v1089_v61 = vsel %vm731_vm3, %v3953_v60, 0.0 }
 0x545   : > { %1093 = vadd.xlane.f32.xlu0 %v1092_v21 }
 0x549   : > { %1096 = vadd.xlane.f32.xlu0 %v1095_v59 }
 0x54d   : > { %1090 = vadd.xlane.f32.xlu0 %v1089_v61 }
 0x552   : > { %1124 = vrot.lane.b32.xlu1 %v3833_v42, %s3561_s26 }
 0x556   : > { %1216 = vrot.lane.b32.xlu1 %v2859_v0, %s3562_s27 }
 0x55a   : > { %1396 = vrot.lane.b32.xlu1 %v3762_v15, %s3563_s28 }
 0x55e   : > { %1394 = vrot.lane.b32.xlu1 %v3764_v18, %s3563_s28 }
 0x562   : > { %1392 = vrot.lane.b32.xlu1 %v3772_v23, %s3563_s28 }
 0x563   : > { %1122 = vrot.lane.b32.xlu0 %v3838_v50, %s3561_s26 }
 0x566   : > { %1382 = vrot.lane.b32.xlu1 %v3752_v58, %s3563_s28 }
 0x567   : > { %1390 = vrot.lane.b32.xlu0 %v3778_v29, %s3563_s28 }
 0x56a   : > { %1386 = vrot.lane.b32.xlu1 %v3786_v36, %s3563_s28 }
 0x56b   : > { %1384 = vrot.lane.b32.xlu0 %v3750_v56, %s3563_s28 }
 0x56e   : > { %1785 = vrot.lane.b32.xlu1 %v3762_v15, %s3564_s29 }
 0x56f   : > { %1388 = vrot.lane.b32.xlu0 %v3792_v39, %s3563_s28 }
 0x572   : > { %1781 = vrot.lane.b32.xlu1 %v3772_v23, %s3564_s29 }
 0x573   : > { %1783 = vrot.lane.b32.xlu0 %v3764_v18, %s3564_s29 }
 0x576   : > { %1771 = vrot.lane.b32.xlu1 %v3752_v58, %s3564_s29 }
 0x577   : > { %1779 = vrot.lane.b32.xlu0 %v3778_v29, %s3564_s29 }
 0x57a   : > { %1775 = vrot.lane.b32.xlu1 %v3786_v36, %s3564_s29 }
 0x57b   : > { %1773 = vrot.lane.b32.xlu0 %v3750_v56, %s3564_s29 }
 0x57f   : > { %1777 = vrot.lane.b32.xlu0 %v3792_v39, %s3564_s29 }
 0x5c2   : > { %v1082_v12 = vpop.xlane.xlu1 %1081 }
 0x5c6   : > { %v1076_v15 = vpop.xlane.xlu1 %1075  ;;  %v1085_v23 = vpop.xlane.xlu0 %1084 }
 0x5c7   : > { %3394 = vrcp.f32 %v1085_v23 }
 0x5c8   : > { %3396 = vrcp.f32 %v1076_v15 }
 0x5c9   : > { %3398 = vrcp.f32 %v1082_v12 }
 0x5ca   : > { %v1088_v18 = vpop.xlane.xlu1 %1087  ;;  %v1079_v1 = vpop.xlane.xlu0 %1078 }
 0x5cb   : > { %3400 = vrcp.f32 %v1079_v1 }
 0x5ce   : > { %v1125_v58 = vpop.permute.xlu1 %1124  ;;  %v1094_v29 = vpop.xlane.xlu0 %1093 }
 0x5cf   : > { %3120 = vmatprep.subr.bf16.mxu1 %v1125_v58 }
 0x5d0   : > { %3121 = vmatpush3.bf16.msra.mxu1 %v1125_v58 }
 0x5d2   : > { %v1097_v36 = vpop.xlane.xlu0 %1096  ;;  %v1217_v7 = vpop.permute.xlu1 %1216 }
 0x5d3   : > { %3402 = vrcp.f32 %v1097_v36  ;;  %v1232_v28 = vsel %vm1230_vm4, %v1217_v7, 0 }
 0x5d4   : > { %3404 = vrcp.f32 %v1088_v18  ;;  %v3395_v56 = vpop.eup %3394 }
 0x5d5   : > { %3406 = vrcp.f32 %v1094_v29  ;;  %v3397_v39 = vpop.eup %3396  ;;  %v1109_v6 = vmul.f32 %v3395_v56, %v3931_v51 }
 0x5d6   : > { %v1091_v62 = vpop.xlane.xlu0 %1090  ;;  %v3399_v2 = vpop.eup %3398  ;;  %v1106_v9 = vmul.f32 %v3397_v39, %v3929_v49 }
 0x5d7   : > { %3408 = vrcp.f32 %v1091_v62  ;;  %v1108_v16 = vmul.f32 %v3399_v2, %v3925_v26  ;;  %v1397_v35 = vpop.permute.xlu1 %1396 }
 0x5d8   : > { %v3401_v5 = vpop.eup %3400 }
 0x5d9   : > { %v1107_v63 = vmul.f32 %v3401_v5, %v3937_v13  ;;  %v1115_v30 = vpack.c.bf16 %v1109_v6, %v1108_v16 }
 0x5da   : > { %v1123_v8 = vpop.permute.xlu0 %1122 }
 0x5db   : > { %3122 = vmatprep.subr.bf16.mxu1 %v1123_v8  ;;  %v1114_v19 = vpack.c.bf16 %v1107_v63, %v1106_v9  ;;  %v1395_v52 = vpop.permute.xlu1 %1394 }
 0x5dc   : > { %3123 = vmatpush3.bf16.msra.mxu1 %v1123_v8  ;;  %v1417_v61 = vsel %vm633_vm2, %v1395_v52, 0 }
 0x5dd   : > { %3276 = vmatprep.subr.msk.bf16.mxu1 %vm1230_vm4, %v1217_v7  ;;  %3124 = vmatprep.mubr.msk.bf16.mxu1 %vm731_vm3, %v1114_v19 }
 0x5de   : > { %v1391_v23 = vpop.permute.xlu0 %1390 }
 0x5df   : > { %3125 = vmatmul.mubr.msk.bf16.vlgmr.msra.gmra.mxu1 %vm731_vm3, %v1115_v30  ;;  %v1411_v29 = vsel %vm633_vm2, %v1391_v23, 0 }
 0x5e0   : > { %3133 = vmatpush3.bf16.msra.mxu1 %v1232_v28  ;;  %v3403_v34 = vpop.eup %3402 }
 0x5e1   : > { %3278 = vmatprep.subr.msk.bf16.mxu1 %vm633_vm2, %v1397_v35  ;;  %v3405_v47 = vpop.eup %3404  ;;  %v1113_v41 = vmul.f32 %v3403_v34, %v3949_v55  ;;  %v1393_v55 = vpop.permute.xlu1 %1392 }
 0x5e2   : > { %v3407_v38 = vpop.eup %3406  ;;  %v1110_v43 = vmul.f32 %v3405_v47, %v3939_v14  ;;  %v1420_v14 = vsel %vm633_vm2, %v1397_v35, 0  ;;  %v1414_v18 = vsel %vm633_vm2, %v1393_v55, 0  ;;  %v1385_v58 = vpop.permute.xlu0 %1384 }
 0x5e3   : > { %v1112_v26 = vmul.f32 %v3407_v38, %v3945_v17 }
 0x5e4   : > { %v3409_v40 = vpop.eup %3408 }
 0x5e5   : > { %v1111_v44 = vmul.f32 %v3409_v40, %v3953_v60  ;;  %v1117_v48 = vpack.c.bf16 %v1113_v41, %v1112_v26  ;;  %v1383_v15 = vpop.permute.xlu1 %1382 }
 0x5e6   : > { %v1389_v56 = vpop.permute.xlu0 %1388 }
 0x5e7   : > { %v1116_v27 = vpack.c.bf16 %v1111_v44, %v1110_v43 }
 0x5e9   : > { %3128 = vmatprep.mubr.msk.bf16.mxu1 %vm731_vm3, %v1116_v27  ;;  %v1387_v1 = vpop.permute.xlu1 %1386 }
 0x5ea   : > { %3129 = vmatmul.mubr.msk.bf16.gmra.mxu1 %vm731_vm3, %v1117_v48  ;;  %v1784_v39 = vpop.permute.xlu0 %1783 }
 0x5eb   : > { %v1806_v5 = vsel %vm633_vm2, %v1784_v39, 0 }
 0x5ed   : > { %v1786_v36 = vpop.permute.xlu1 %1785 }
 0x5ee   : > { %v1809_v62 = vsel %vm633_vm2, %v1786_v36, 0  ;;  %v1780_v8 = vpop.permute.xlu0 %1779 }
 0x5ef   : > { %v1800_v9 = vsel %vm633_vm2, %v1780_v8, 0 }
 0x5f1   : > { %v1782_v2 = vpop.permute.xlu1 %1781 }
 0x5f2   : > { %v1803_v7 = vsel %vm633_vm2, %v1782_v2, 0  ;;  %v1774_v63 = vpop.permute.xlu0 %1773 }
 0x5f5   : > { %v1772_v6 = vpop.permute.xlu1 %1771 }
 0x5f6   : > { %v1778_v19 = vpop.permute.xlu0 %1777 }
 0x5f9   : > { %v1776_v16 = vpop.permute.xlu1 %1775 }
 0x69f   : > { %v3126_v49 = vpop.f32.mrf.mxu1 }
 0x6a1   : > { %v1180_v51 = vpop.f32.mrf.mxu1 }
 0x6a3   : > { %v3127_v32 = vpop.f32.mrf.mxu1 }
 0x6a4   : > { %v1212_v53 = vpack.c.bf16 %v3127_v32, %v3126_v49 }
 0x6a5   : > { %v1183_v33 = vpop.f32.mrf.mxu1 }
 0x6a6   : > { %v1211_v13 = vpack.c.bf16 %v1183_v33, %v1180_v51 }
 0x6a8   : > { %3134 = vmatprep.mubr.msk.bf16.mxu1 %vm633_vm2, %v1211_v13 }
 0x6a9   : > { %3135 = vmatmul.mubr.msk.bf16.vlgmr.msra.gmra.mxu1 %vm633_vm2, %v1212_v53 }
 0x6aa   : > { %3153 = vmatpush3.bf16.xpose.msra.mxu1 %v1420_v14  ;;  %v3130_v17 = vpop.f32.mrf.mxu1 }
 0x6ab   : > { %3279 = vmatprep.subr.msk.bf16.mxu1 %vm633_vm2, %v1395_v52 }
 0x6ac   : > { %v1196_v21 = vpop.f32.mrf.mxu1 }
 0x6ae   : > { %v3131_v59 = vpop.f32.mrf.mxu1 }
 0x6af   : > { %v1214_v12 = vpack.c.bf16 %v3131_v59, %v3130_v17 }
 0x6b0   : > { %v1199_v60 = vpop.f32.mrf.mxu1 }
 0x6b1   : > { %v1213_v0 = vpack.c.bf16 %v1199_v60, %v1196_v21 }
 0x6b2   : > { %3155 = vmatpush3.bf16.xpose.msra.mxu1 %v1417_v61 }
 0x6b3   : > { %3280 = vmatprep.subr.msk.bf16.mxu1 %vm633_vm2, %v1393_v55  ;;  %3138 = vmatprep.mubr.msk.bf16.mxu1 %vm633_vm2, %v1213_v0 }
 0x6b4   : > { %3139 = vmatmul.mubr.msk.bf16.gmra.mxu1 %vm633_vm2, %v1214_v12 }
 0x6b5   : > { %3160 = vmatprep.mubr.msk.bf16.mxu1 %vm633_vm2, %v1383_v15 }
 0x6ba   : > { %3157 = vmatpush3.bf16.xpose.msra.mxu1 %v1414_v18 }
 0x6bb   : > { %3281 = vmatprep.subr.msk.bf16.mxu1 %vm633_vm2, %v1391_v23 }
 0x6c2   : > { %3159 = vmatpush3.bf16.xpose.msra.mxu1 %v1411_v29 }
 0x6c3   : > { %3283 = vmatprep.subr.msk.bf16.mxu1 %vm633_vm2, %v1786_v36 }
 0x6c9   : > { %3161 = vmatmul.mubr.msk.bf16.vlgmr.msra.gmra.mxu1 %vm633_vm2, %v1385_v58 }
 0x6ca   : > { %3164 = vmatprep.mubr.msk.bf16.mxu1 %vm633_vm2, %v1387_v1  ;;  %3195 = vmatpush3.bf16.xpose.msra.mxu1 %v1809_v62  ;;  %v4065_v1 = vld [vmem:[%s3631_s8] sm:$0xff] }
 0x6cb   : > { %3284 = vmatprep.subr.msk.bf16.mxu1 %vm633_vm2, %v1784_v39  ;;  %v2864_v58 = vcombine.low %v4065_v1, %v4065_v1 }
 0x6d1   : > { %3165 = vmatmul.mubr.msk.bf16.gmra.mxu1 %vm633_vm2, %v1389_v56 }
 0x6d2   : > { %3197 = vmatpush3.bf16.xpose.msra.mxu1 %v1806_v5  ;;  %3202 = vmatprep.mubr.msk.bf16.mxu1 %vm633_vm2, %v1772_v6 }
 0x6d3   : > { %3285 = vmatprep.subr.msk.bf16.mxu1 %vm633_vm2, %v1782_v2 }
 0x6da   : > { %3199 = vmatpush3.bf16.xpose.msra.mxu1 %v1803_v7 }
 0x6db   : > { %3286 = vmatprep.subr.msk.bf16.mxu1 %vm633_vm2, %v1780_v8 }
 0x6e2   : > { %3201 = vmatpush3.bf16.xpose.msra.mxu1 %v1800_v9 }
 0x6e9   : > { %3203 = vmatmul.mubr.msk.bf16.vlgmr.msra.gmra.mxu1 %vm633_vm2, %v1774_v63 }
 0x6ea   : > { %3206 = vmatprep.mubr.msk.bf16.mxu1 %vm633_vm2, %v1776_v16 }
 0x6f1   : > { %3207 = vmatmul.mubr.msk.bf16.gmra.mxu1 %vm633_vm2, %v1778_v19 }
 0x769   : > { %v4038_v28 = vpop.f32.mrf.mxu1 }
 0x76b   : > { %v4040_v30 = vpop.f32.mrf.mxu1 }
 0x76d   : > { %v4042_v35 = vpop.f32.mrf.mxu1 }
 0x76f   : > { %v4044_v34 = vpop.f32.mrf.mxu1 }
 0x774   : > { %v4046_v47 = vpop.f32.mrf.mxu1 }
 0x776   : > { %v4048_v38 = vpop.f32.mrf.mxu1 }
 0x778   : > { %v4050_v40 = vpop.f32.mrf.mxu1 }
 0x77a   : > { %v4052_v41 = vpop.f32.mrf.mxu1 }
 0x789   : > { %v3162_v43 = vpop.f32.mrf.mxu1 }
 0x78a   : > { %v1489_v13 = vmul.f32 0.35355338, %v3162_v43 }
 0x78b   : > { %v1456_v44 = vpop.f32.mrf.mxu1 }
 0x78c   : > { %v1487_v26 = vmul.f32 0.35355338, %v1456_v44  ;;  %v1501_v55 = vsel %vm731_vm3, %v1489_v13, -inf }
 0x78d   : > { %v3163_v27 = vpop.f32.mrf.mxu1 }
 0x78e   : > { %v1490_v48 = vmul.f32 0.35355338, %v3163_v27  ;;  %v1495_v49 = vsel %vm731_vm3, %v1487_v26, -inf }
 0x78f   : > { %1496 = vmax.xlane.f32.xlu1 %v1495_v49  ;;  %v1459_v51 = vpop.f32.mrf.mxu1 }
 0x790   : > { %v1488_v32 = vmul.f32 0.35355338, %v1459_v51  ;;  %v1504_v53 = vsel %vm731_vm3, %v1490_v48, -inf }
 0x791   : > { %v3166_v33 = vpop.f32.mrf.mxu1 }
 0x792   : > { %v1498_v52 = vsel %vm731_vm3, %v1488_v32, -inf  ;;  %v1493_v61 = vmul.f32 0.35355338, %v3166_v33 }
 0x793   : > { %1505 = vmax.xlane.f32.xlu1 %v1504_v53  ;;  %1499 = vmax.xlane.f32.xlu0 %v1498_v52  ;;  %v1472_v14 = vpop.f32.mrf.mxu1 }
 0x794   : > { %v1491_v21 = vmul.f32 0.35355338, %v1472_v14  ;;  %v1513_v23 = vsel %vm731_vm3, %v1493_v61, -inf }
 0x795   : > { %v3167_v17 = vpop.f32.mrf.mxu1 }
 0x796   : > { %v1494_v0 = vmul.f32 0.35355338, %v3167_v17  ;;  %v1507_v12 = vsel %vm731_vm3, %v1491_v21, -inf }
 0x797   : > { %1502 = vmax.xlane.f32.xlu0 %v1501_v55  ;;  %v1475_v59 = vpop.f32.mrf.mxu1 }
 0x798   : > { %v1492_v60 = vmul.f32 0.35355338, %v1475_v59  ;;  %v1516_v18 = vsel %vm731_vm3, %v1494_v0, -inf }
 0x79a   : > { %v1510_v15 = vsel %vm731_vm3, %v1492_v60, -inf }
 0x79b   : > { %1508 = vmax.xlane.f32.xlu0 %v1507_v12  ;;  %1511 = vmax.xlane.f32.xlu1 %v1510_v15 }
 0x79f   : > { %1514 = vmax.xlane.f32.xlu0 %v1513_v23  ;;  %1517 = vmax.xlane.f32.xlu1 %v1516_v18 }
 0x7b0   : > { %1593 = vrot.lane.b32.xlu1 %v3827_v31, %s3563_s28 }
 0x7b4   : > { %1591 = vrot.lane.b32.xlu1 %v3829_v37, %s3563_s28 }
 0x7b5   : > { %1300 = vrot.lane.b32.xlu0 %v2864_v58, %s3562_s27 }
 0x818   : > { %v1497_v29 = vpop.xlane.xlu1 %1496 }
 0x819   : > { %v1519_v2 = vsub.f32 %v1487_v26, %v1497_v29 }
 0x81b   : > { %v1527_v9 = vmul.f32 1.442695, %v1519_v2 }
 0x81c   : > { %v1506_v36 = vpop.xlane.xlu1 %1505  ;;  %v1500_v56 = vpop.xlane.xlu0 %1499 }
 0x81d   : > { %v1522_v62 = vsub.f32 %v1490_v48, %v1506_v36  ;;  %v1520_v39 = vsub.f32 %v1488_v32, %v1500_v56 }
 0x81f   : > { %v1533_v5 = vmul.f32 1.442695, %v1522_v62  ;;  %v1529_v6 = vmul.f32 1.442695, %v1520_v39 }
 0x820   : > { %v1503_v7 = vpop.xlane.xlu0 %1502 }
 0x821   : > { %3410 = vpow2.f32 %v1533_v5  ;;  %v1521_v8 = vsub.f32 %v1489_v13, %v1503_v7 }
 0x822   : > { %3412 = vpow2.f32 %v1529_v6 }
 0x823   : > { %v1531_v63 = vmul.f32 1.442695, %v1521_v8 }
 0x824   : > { %v1512_v16 = vpop.xlane.xlu1 %1511  ;;  %v1509_v19 = vpop.xlane.xlu0 %1508 }
 0x825   : > { %3414 = vpow2.f32 %v1531_v63  ;;  %v1524_v43 = vsub.f32 %v1492_v60, %v1512_v16  ;;  %v1523_v44 = vsub.f32 %v1491_v21, %v1509_v19 }
 0x826   : > { %3416 = vpow2.f32 %v1527_v9 }
 0x827   : > { %v1537_v32 = vmul.f32 1.442695, %v1524_v43  ;;  %v1535_v53 = vmul.f32 1.442695, %v1523_v44 }
 0x828   : > { %v1518_v27 = vpop.xlane.xlu1 %1517  ;;  %v1515_v49 = vpop.xlane.xlu0 %1514 }
 0x829   : > { %v1526_v51 = vsub.f32 %v1494_v0, %v1518_v27  ;;  %v1525_v48 = vsub.f32 %v1493_v61, %v1515_v49 }
 0x82b   : > { %v1541_v26 = vmul.f32 1.442695, %v1526_v51  ;;  %v1539_v33 = vmul.f32 1.442695, %v1525_v48 }
 0x82c   : > { %v1594_v52 = vpop.permute.xlu1 %1593  ;;  %v1301_v14 = vpop.permute.xlu0 %1300 }
 0x82d   : > { %3418 = vpow2.f32 %v1541_v26  ;;  %v1315_v13 = vsel %vm1230_vm4, %v1301_v14, 0  ;;  %3277 = vmatprep.subr.msk.bf16.mxu0 %vm1230_vm4, %v1301_v14 }
 0x82e   : > { %v4074_v17 = vpop.eup %3410  ;;  %3420 = vpow2.f32 %v1539_v33  ;;  %3143 = vmatpush3.bf16.msra.mxu0 %v1315_v13 }
 0x82f   : > { %3422 = vpow2.f32 %v1537_v32  ;;  %3168 = vmatprep.subr.bf16.mxu0 %v1594_v52  ;;  %v1552_v21 = vsel %vm731_vm3, %v4074_v17, 0.0  ;;  %v4078_v55 = vpop.eup %3412  ;;  %v4155_v32 = vld [vmem:[%s3631_s8 + $0x10] sm:$0xff] }
 0x830   : > { %3424 = vpow2.f32 %v1535_v53  ;;  %1553 = vadd.xlane.f32.xlu1 %v1552_v21  ;;  %v1592_v60 = vpop.permute.xlu1 %1591  ;;  %v1546_v61 = vsel %vm731_vm3, %v4078_v55, 0.0  ;;  %v2877_v26 = vcombine.low %v4155_v32, %v4155_v32 }
 0x831   : > { %3145 = vmatmul.mubr.msk.bf16.vlgmr.msra.gmra.mxu0 %vm633_vm2, %v902_v11 }
 0x832   : > { %v4084_v59 = vpop.eup %3414  ;;  %3148 = vmatprep.mubr.msk.bf16.mxu0 %vm633_vm2, %v903_v25  ;;  %3169 = vmatpush3.bf16.msra.mxu0 %v1594_v52 }
 0x833   : > { %3170 = vmatprep.subr.bf16.mxu0 %v1592_v60  ;;  %v1549_v0 = vsel %vm731_vm3, %v4084_v59, 0.0  ;;  %v4094_v12 = vpop.eup %3416 }
 0x834   : > { %1547 = vadd.xlane.f32.xlu1 %v1546_v61  ;;  %1550 = vadd.xlane.f32.xlu0 %v1549_v0  ;;  %v1543_v4 = vsel %vm731_vm3, %v4094_v12, 0.0 }
 0x836   : > { %3171 = vmatpush3.bf16.msra.mxu0 %v1592_v60 }
 0x838   : > { %1544 = vadd.xlane.f32.xlu0 %v1543_v4 }
 0x839   : > { %3149 = vmatmul.mubr.msk.bf16.gmra.mxu0 %vm633_vm2, %v904_v22  ;;  %v3204_v22 = vpop.f32.mrf.mxu1 }
 0x83a   : > { %v4102_v10 = vpop.eup %3418  ;;  %v4130_v5 = vmul.f32 0.35355338, %v3204_v22 }
 0x83b   : > { %v4104_v11 = vpop.eup %3420  ;;  %v1564_v54 = vsel %vm731_vm3, %v4102_v10, 0.0  ;;  %v1845_v23 = vpop.f32.mrf.mxu1 }
 0x83c   : > { %v4108_v24 = vpop.eup %3422  ;;  %1565 = vadd.xlane.f32.xlu1 %v1564_v54  ;;  %v1561_v25 = vsel %vm731_vm3, %v4104_v11, 0.0  ;;  %v4124_v56 = vmul.f32 0.35355338, %v1845_v23  ;;  %v1890_v16 = vsel %vm731_vm3, %v4130_v5, -inf }
 0x83d   : > { %v4112_v15 = vpop.eup %3424  ;;  %1562 = vadd.xlane.f32.xlu0 %v1561_v25  ;;  %v1558_v20 = vsel %vm731_vm3, %v4108_v24, 0.0  ;;  %v3205_v18 = vpop.f32.mrf.mxu1 }
 0x83e   : > { %v1555_v57 = vsel %vm731_vm3, %v4112_v15, 0.0  ;;  %v1884_v6 = vsel %vm731_vm3, %v4124_v56, -inf  ;;  %v4138_v63 = vmul.f32 0.35355338, %v3205_v18 }
 0x83f   : > { %v1848_v58 = vpop.f32.mrf.mxu1 }
 0x840   : > { %1559 = vadd.xlane.f32.xlu1 %v1558_v20  ;;  %v4122_v36 = vmul.f32 0.35355338, %v1848_v58  ;;  %v1893_v27 = vsel %vm731_vm3, %v4138_v63, -inf }
 0x841   : > { %1556 = vadd.xlane.f32.xlu0 %v1555_v57  ;;  %v3208_v29 = vpop.f32.mrf.mxu1 }
 0x842   : > { %v1887_v2 = vsel %vm731_vm3, %v4122_v36, -inf  ;;  %v4134_v8 = vmul.f32 0.35355338, %v3208_v29 }
 0x843   : > { %v1861_v62 = vpop.f32.mrf.mxu1 }
 0x844   : > { %v4126_v39 = vmul.f32 0.35355338, %v1861_v62  ;;  %v1902_v43 = vsel %vm731_vm3, %v4134_v8, -inf }
 0x845   : > { %v3209_v7 = vpop.f32.mrf.mxu1 }
 0x846   : > { %v1896_v9 = vsel %vm731_vm3, %v4126_v39, -inf  ;;  %v4148_v49 = vmul.f32 0.35355338, %v3209_v7 }
 0x847   : > { %v1864_v19 = vpop.f32.mrf.mxu1 }
 0x848   : > { %v4144_v44 = vmul.f32 0.35355338, %v1864_v19  ;;  %v1905_v48 = vsel %vm731_vm3, %v4148_v49, -inf }
 0x84a   : > { %v1899_v51 = vsel %vm731_vm3, %v4144_v44, -inf }
 0x851   : > { %1587 = vrot.lane.b32.xlu1 %v3838_v50, %s3563_s28 }
 0x857   : > { %1589 = vrot.lane.b32.xlu0 %v3833_v42, %s3563_s28 }
 0x875   : > { %1888 = vmax.xlane.f32.xlu1 %v1887_v2 }
 0x876   : > { %1885 = vmax.xlane.f32.xlu0 %v1884_v6 }
 0x879   : > { %1897 = vmax.xlane.f32.xlu1 %v1896_v9 }
 0x87a   : > { %1891 = vmax.xlane.f32.xlu0 %v1890_v16 }
 0x87d   : > { %1903 = vmax.xlane.f32.xlu1 %v1902_v43 }
 0x87e   : > { %1894 = vmax.xlane.f32.xlu0 %v1893_v27 }
 0x882   : > { %1900 = vmax.xlane.f32.xlu0 %v1899_v51 }
 0x886   : > { %1906 = vmax.xlane.f32.xlu0 %v1905_v48 }
 0x88e   : > { %1681 = vrot.lane.b32.xlu1 %v2877_v26, %s3562_s27 }
 0x892   : > { %1980 = vrot.lane.b32.xlu1 %v3829_v37, %s3564_s29 }
 0x89c   : > { %1982 = vrot.lane.b32.xlu0 %v3827_v31, %s3564_s29 }
 0x8b9   : > { %v1554_v33 = vpop.xlane.xlu1 %1553 }
 0x8bd   : > { %v1548_v53 = vpop.xlane.xlu1 %1547  ;;  %v1551_v52 = vpop.xlane.xlu0 %1550 }
 0x8be   : > { %3426 = vrcp.f32 %v1548_v53 }
 0x8bf   : > { %3428 = vrcp.f32 %v1551_v52 }
 0x8c1   : > { %v1545_v14 = vpop.xlane.xlu0 %1544 }
 0x8c2   : > { %3430 = vrcp.f32 %v1545_v14 }
 0x8c3   : > { %3432 = vrcp.f32 %v1554_v33 }
 0x8c5   : > { %v1566_v13 = vpop.xlane.xlu1 %1565 }
 0x8c6   : > { %v1563_v21 = vpop.xlane.xlu0 %1562  ;;  %3434 = vrcp.f32 %v1566_v13 }
 0x8c7   : > { %3436 = vrcp.f32 %v1563_v21 }
 0x8c9   : > { %v1560_v60 = vpop.xlane.xlu1 %1559 }
 0x8ca   : > { %3438 = vrcp.f32 %v1560_v60  ;;  %v1557_v61 = vpop.xlane.xlu0 %1556 }
 0x8cb   : > { %3440 = vrcp.f32 %v1557_v61  ;;  %v3427_v37 = vpop.eup %3426 }
 0x8cc   : > { %v3429_v0 = vpop.eup %3428  ;;  %v1576_v57 = vmul.f32 %v3427_v37, %v4078_v55 }
 0x8cd   : > { %v1588_v25 = vpop.permute.xlu1 %1587  ;;  %v1577_v22 = vmul.f32 %v3429_v0, %v4084_v59 }
 0x8ce   : > { %v1590_v4 = vpop.permute.xlu0 %1589 }
 0x8cf   : > { %v3431_v31 = vpop.eup %3430  ;;  %3172 = vmatprep.subr.bf16.mxu0 %v1590_v4 }
 0x8d0   : > { %v3433_v54 = vpop.eup %3432  ;;  %3173 = vmatpush3.bf16.msra.mxu0 %v1590_v4  ;;  %v1575_v20 = vmul.f32 %v3431_v31, %v4094_v12 }
 0x8d1   : > { %3174 = vmatprep.subr.bf16.mxu0 %v1588_v25  ;;  %v1578_v18 = vmul.f32 %v3433_v54, %v4074_v17 }
 0x8d2   : > { %v1583_v23 = vpack.c.bf16 %v1576_v57, %v1575_v20 }
 0x8d3   : > { %v3435_v58 = vpop.eup %3434  ;;  %v1584_v29 = vpack.c.bf16 %v1578_v18, %v1577_v22 }
 0x8d4   : > { %3175 = vmatpush3.bf16.msra.mxu0 %v1588_v25  ;;  %3176 = vmatprep.mubr.msk.bf16.mxu0 %vm731_vm3, %v1583_v23  ;;  %v3437_v62 = vpop.eup %3436  ;;  %v1582_v7 = vmul.f32 %v3435_v58, %v4102_v10 }
 0x8d5   : > { %v1581_v59 = vmul.f32 %v3437_v62, %v4104_v11 }
 0x8d7   : > { %v3439_v2 = vpop.eup %3438  ;;  %3177 = vmatmul.mubr.msk.bf16.vlgmr.msra.gmra.mxu0 %vm731_vm3, %v1584_v29  ;;  %v1586_v17 = vpack.c.bf16 %v1582_v7, %v1581_v59 }
 0x8d8   : > { %v3441_v6 = vpop.eup %3440  ;;  %v1580_v12 = vmul.f32 %v3439_v2, %v4108_v24 }
 0x8d9   : > { %v1579_v55 = vmul.f32 %v3441_v6, %v4112_v15 }
 0x8db   : > { %v1585_v9 = vpack.c.bf16 %v1580_v12, %v1579_v55  ;;  %v4223_v12 = vld [vmem:[%s3631_s8 + $0x18] sm:$0xff] }
 0x8dc   : > { %v2890_v55 = vcombine.low %v4223_v12, %v4223_v12 }
 0x8dd   : > { %3180 = vmatprep.mubr.msk.bf16.mxu0 %vm731_vm3, %v1585_v9 }
 0x8df   : > { %3181 = vmatmul.mubr.msk.bf16.gmra.mxu0 %vm731_vm3, %v1586_v17 }
 0x8f1   : > { %v4228_v59 = vpop.f32.mrf.mxu0 }
 0x8f3   : > { %v4230_v7 = vpop.f32.mrf.mxu0 }
 0x8f5   : > { %v4232_v9 = vpop.f32.mrf.mxu0 }
 0x8f7   : > { %v4234_v17 = vpop.f32.mrf.mxu0 }
 0x8fe   : > { %v1889_v16 = vpop.xlane.xlu1 %1888 }
 0x8ff   : > { %v1886_v19 = vpop.xlane.xlu0 %1885  ;;  %v1909_v15 = vsub.f32 %v4122_v36, %v1889_v16  ;;  %v4236_v16 = vpop.f32.mrf.mxu0 }
 0x900   : > { %v1908_v43 = vsub.f32 %v4124_v56, %v1886_v19 }
 0x901   : > { %v1918_v52 = vmul.f32 1.442695, %v1909_v15 }
 0x902   : > { %v1898_v27 = vpop.xlane.xlu1 %1897  ;;  %v1916_v48 = vmul.f32 1.442695, %v1908_v43 }
 0x903   : > { %v1892_v51 = vpop.xlane.xlu0 %1891  ;;  %v1912_v14 = vsub.f32 %v4126_v39, %v1898_v27 }
 0x904   : > { %v1910_v24 = vsub.f32 %v4130_v5, %v1892_v51 }
 0x905   : > { %v1924_v36 = vmul.f32 1.442695, %v1912_v14 }
 0x906   : > { %v1920_v11 = vmul.f32 1.442695, %v1910_v24  ;;  %v1904_v26 = vpop.xlane.xlu1 %1903 }
 0x907   : > { %v1914_v10 = vsub.f32 %v4134_v8, %v1904_v26  ;;  %v1895_v33 = vpop.xlane.xlu0 %1894 }
 0x908   : > { %3442 = vpow2.f32 %v1920_v11  ;;  %v1911_v53 = vsub.f32 %v4138_v63, %v1895_v33 }
 0x909   : > { %3444 = vpow2.f32 %v1916_v48  ;;  %v1928_v56 = vmul.f32 1.442695, %v1914_v10 }
 0x90a   : > { %v1922_v13 = vmul.f32 1.442695, %v1911_v53  ;;  %v1682_v21 = vpop.permute.xlu1 %1681 }
 0x90b   : > { %v1696_v5 = vsel %vm1230_vm4, %v1682_v21, 0  ;;  %v1901_v60 = vpop.xlane.xlu0 %1900  ;;  %3282 = vmatprep.subr.msk.bf16.mxu0 %vm1230_vm4, %v1682_v21 }
 0x90c   : > { %3446 = vpow2.f32 %v1922_v13  ;;  %3185 = vmatpush3.bf16.msra.mxu0 %v1696_v5  ;;  %v1913_v8 = vsub.f32 %v4144_v44, %v1901_v60 }
 0x90d   : > { %3448 = vpow2.f32 %v1918_v52 }
 0x90e   : > { %3450 = vpow2.f32 %v1928_v56  ;;  %v1926_v39 = vmul.f32 1.442695, %v1913_v8  ;;  %v1981_v24 = vpop.permute.xlu1 %1980 }
 0x90f   : > { %v1907_v63 = vpop.xlane.xlu0 %1906  ;;  %3452 = vpow2.f32 %v1924_v36 }
 0x910   : > { %v1915_v61 = vsub.f32 %v4148_v49, %v1907_v63 }
 0x912   : > { %v1930_v37 = vmul.f32 1.442695, %v1915_v61 }
 0x913   : > { %v1983_v0 = vpop.permute.xlu0 %1982 }
 0x914   : > { %3454 = vpow2.f32 %v1930_v37  ;;  %3210 = vmatprep.subr.bf16.mxu0 %v1983_v0 }
 0x915   : > { %v4186_v4 = vpop.eup %3442  ;;  %3456 = vpow2.f32 %v1926_v39 }
 0x916   : > { %v1938_v31 = vsel %vm731_vm3, %v4186_v4, 0.0  ;;  %v4190_v54 = vpop.eup %3444 }
 0x917   : > { %1939 = vadd.xlane.f32.xlu1 %v1938_v31  ;;  %v1932_v49 = vsel %vm731_vm3, %v4190_v54, 0.0 }
 0x919   : > { %v4192_v25 = vpop.eup %3446 }
 0x91a   : > { %v4194_v44 = vpop.eup %3448  ;;  %v1941_v20 = vsel %vm731_vm3, %v4192_v25, 0.0 }
 0x91b   : > { %v4200_v57 = vpop.eup %3450  ;;  %1933 = vadd.xlane.f32.xlu1 %v1932_v49  ;;  %1942 = vadd.xlane.f32.xlu0 %v1941_v20  ;;  %v1935_v23 = vsel %vm731_vm3, %v4194_v44, 0.0 }
 0x91c   : > { %v1950_v22 = vsel %vm731_vm3, %v4200_v57, 0.0  ;;  %v4206_v18 = vpop.eup %3452 }
 0x91d   : > { %v1944_v29 = vsel %vm731_vm3, %v4206_v18, 0.0 }
 0x91f   : > { %1951 = vadd.xlane.f32.xlu1 %v1950_v22  ;;  %1936 = vadd.xlane.f32.xlu0 %v1935_v23 }
 0x921   : > { %v4208_v58 = vpop.eup %3454 }
 0x922   : > { %v1953_v62 = vsel %vm731_vm3, %v4208_v58, 0.0  ;;  %v4214_v2 = vpop.eup %3456 }
 0x923   : > { %1945 = vadd.xlane.f32.xlu1 %v1944_v29  ;;  %1954 = vadd.xlane.f32.xlu0 %v1953_v62  ;;  %v1947_v6 = vsel %vm731_vm3, %v4214_v2, 0.0 }
 0x927   : > { %1948 = vadd.xlane.f32.xlu0 %v1947_v6 }
 0x934   : > { %1978 = vrot.lane.b32.xlu1 %v3833_v42, %s3564_s29  ;;  %v4238_v42 = vpop.f32.mrf.mxu0 }
 0x938   : > { %2070 = vrot.lane.b32.xlu1 %v2890_v55, %s3562_s27 }
 0x93d   : > { %1976 = vrot.lane.b32.xlu0 %v3838_v50, %s3564_s29  ;;  %v4240_v50 = vpop.f32.mrf.mxu0 }
 0x93f   : > { %v4242_v19 = vpop.f32.mrf.mxu0 }
 0x997   : > { %v3178_v43 = vpop.f32.mrf.mxu0 }
 0x999   : > { %v1645_v27 = vpop.f32.mrf.mxu0 }
 0x99b   : > { %v3179_v51 = vpop.f32.mrf.mxu0 }
 0x99c   : > { %v1677_v11 = vpack.c.bf16 %v3179_v51, %v3178_v43 }
 0x99d   : > { %v1648_v15 = vpop.f32.mrf.mxu0 }
 0x99e   : > { %v1676_v48 = vpack.c.bf16 %v1648_v15, %v1645_v27 }
 0x99f   : > { %v3182_v26 = vpop.f32.mrf.mxu0 }
 0x9a0   : > { %3186 = vmatprep.mubr.msk.bf16.mxu0 %vm633_vm2, %v1676_v48  ;;  %v1940_v10 = vpop.xlane.xlu1 %1939 }
 0x9a1   : > { %v1661_v33 = vpop.f32.mrf.mxu0  ;;  %3187 = vmatmul.mubr.msk.bf16.vlgmr.msra.gmra.mxu0 %vm633_vm2, %v1677_v11 }
 0x9a2   : > { %3211 = vmatpush3.bf16.msra.mxu0 %v1983_v0 }
 0x9a3   : > { %3212 = vmatprep.subr.bf16.mxu0 %v1981_v24  ;;  %v3183_v53 = vpop.f32.mrf.mxu0 }
 0x9a4   : > { %v1934_v52 = vpop.xlane.xlu1 %1933  ;;  %v1943_v14 = vpop.xlane.xlu0 %1942  ;;  %v1679_v21 = vpack.c.bf16 %v3183_v53, %v3182_v26 }
 0x9a5   : > { %v1664_v56 = vpop.f32.mrf.mxu0  ;;  %3458 = vrcp.f32 %v1943_v14 }
 0x9a6   : > { %v1678_v13 = vpack.c.bf16 %v1664_v56, %v1661_v33  ;;  %3213 = vmatpush3.bf16.msra.mxu0 %v1981_v24  ;;  %3460 = vrcp.f32 %v1934_v52  ;;  %v1355_v52 = vadd.f32 %v4234_v17, %v4044_v34 }
 0x9a7   : > { %3462 = vrcp.f32 %v1940_v10  ;;  %v1363_v10 = vadd.f32 %v4232_v9, %v4042_v35  ;;  %v1379_v35 = vadd.f32 %v4240_v50, %v4050_v40 }
 0x9a8   : > { %3190 = vmatprep.mubr.msk.bf16.mxu0 %vm633_vm2, %v1678_v13  ;;  %v1952_v5 = vpop.xlane.xlu1 %1951  ;;  %v1937_v60 = vpop.xlane.xlu0 %1936  ;;  %v1376_v13 = vadd.f32 %v4236_v16, %v4046_v47 }
 0x9a9   : > { %3191 = vmatmul.mubr.msk.bf16.gmra.mxu0 %vm633_vm2, %v1679_v21  ;;  %3464 = vrcp.f32 %v1937_v60 }
 0x9ac   : > { %v1946_v36 = vpop.xlane.xlu1 %1945  ;;  %v1955_v8 = vpop.xlane.xlu0 %1954 }
 0x9ad   : > { %3466 = vrcp.f32 %v1946_v36 }
 0x9ae   : > { %3468 = vrcp.f32 %v1955_v8 }
 0x9af   : > { %3470 = vrcp.f32 %v1952_v5 }
 0x9b0   : > { %v1979_v63 = vpop.permute.xlu1 %1978  ;;  %v1949_v61 = vpop.xlane.xlu0 %1948 }
 0x9b1   : > { %3472 = vrcp.f32 %v1949_v61  ;;  %3214 = vmatprep.subr.bf16.mxu0 %v1979_v63 }
 0x9b2   : > { %3215 = vmatpush3.bf16.msra.mxu0 %v1979_v63  ;;  %v3459_v39 = vpop.eup %3458 }
 0x9b3   : > { %v3461_v0 = vpop.eup %3460  ;;  %v1967_v20 = vmul.f32 %v3459_v39, %v4192_v25 }
 0x9b4   : > { %v1977_v37 = vpop.permute.xlu0 %1976  ;;  %v3463_v31 = vpop.eup %3462  ;;  %v1964_v22 = vmul.f32 %v3461_v0, %v4190_v54  ;;  %v4282_v0 = vld [vmem:[%s3646_s19] sm:$0xff] }
 0x9b5   : > { %3216 = vmatprep.subr.bf16.mxu0 %v1977_v37  ;;  %v1966_v29 = vmul.f32 %v3463_v31, %v4186_v4  ;;  %v2071_v48 = vpop.permute.xlu1 %2070 }
 0x9b6   : > { %3217 = vmatpush3.bf16.msra.mxu0 %v1977_v37  ;;  %v3465_v49 = vpop.eup %3464  ;;  %v2085_v11 = vsel %vm1230_vm4, %v2071_v48, 0  ;;  %v2162_v37 = vsub.s32 3, %v3741_v45 }
 0x9b7   : > { %v1965_v23 = vmul.f32 %v3465_v49, %v4194_v44  ;;  %v1973_v55 = vpack.c.bf16 %v1967_v20, %v1966_v29  ;;  %3287 = vmatprep.subr.msk.bf16.mxu0 %vm1230_vm4, %v2071_v48 }
 0x9b8   : > { %v2163_v31 = vrot.slane %v4282_v0, %v2162_v37  ;;  %v3517_v37 = vld [vmem:[%s3641_s15 + $0x28] sm:$0xff] }
 0x9b9   : > { %v1972_v62 = vpack.c.bf16 %v1965_v23, %v1964_v22 }
 0x9ba   : > { %v3467_v6 = vpop.eup %3466 }
 0x9bb   : > { %v3469_v43 = vpop.eup %3468  ;;  %3218 = vmatprep.mubr.msk.bf16.mxu0 %vm731_vm3, %v1972_v62  ;;  %v1968_v24 = vmul.f32 %v3467_v6, %v4206_v18  ;;  %v1360_v18 = vadd.f32 %v4228_v59, %v4038_v28  ;;  %v3510_v6 = vld [vmem:[%s3641_s15 + $0x10] sm:$0xff] }
 0x9bc   : > { %v3471_v27 = vpop.eup %3470  ;;  %3219 = vmatmul.mubr.msk.bf16.vlgmr.msra.gmra.mxu0 %vm731_vm3, %v1973_v55  ;;  %v1971_v54 = vmul.f32 %v3469_v43, %v4208_v58  ;;  %v1352_v58 = vadd.f32 %v4230_v7, %v4040_v30  ;;  %v1368_v30 = vadd.f32 %v4238_v42, %v4048_v38 }
 0x9bd   : > { %v1970_v44 = vmul.f32 %v3471_v27, %v4200_v57  ;;  %3227 = vmatpush3.bf16.msra.mxu0 %v2085_v11 }
 0x9be   : > { %v3473_v51 = vpop.eup %3472 }
 0x9bf   : > { %v1969_v25 = vmul.f32 %v3473_v51, %v4214_v2  ;;  %v1975_v4 = vpack.c.bf16 %v1971_v54, %v1970_v44 }
 0x9c1   : > { %v1974_v15 = vpack.c.bf16 %v1969_v25, %v1968_v24  ;;  %v3511_v24 = vld [vmem:[%s3641_s15] sm:$0xff] }
 0x9c3   : > { %3222 = vmatprep.mubr.msk.bf16.mxu0 %vm731_vm3, %v1974_v15 }
 0x9c4   : > { %3223 = vmatmul.mubr.msk.bf16.gmra.mxu0 %vm731_vm3, %v1975_v4 }
 0xa61   : > { %v3188_v2 = vpop.f32.mrf.mxu0 }
 0xa62   : > { %v1765_v26 = vadd.f32 %v3188_v2, %v1360_v18 }
 0xa63   : > { %v1732_v57 = vpop.f32.mrf.mxu0 }
 0xa64   : > { %v1763_v33 = vadd.f32 %v1732_v57, %v1352_v58  ;;  %v3512_v57 = vld [vmem:[%s3641_s15 + $0x18] sm:$0xff] }
 0xa65   : > { %v3189_v53 = vpop.f32.mrf.mxu0 }
 0xa66   : > { %v1766_v14 = vadd.f32 %v3189_v53, %v1363_v10 }
 0xa67   : > { %v1735_v56 = vpop.f32.mrf.mxu0 }
 0xa68   : > { %v1764_v28 = vadd.f32 %v1735_v56, %v1355_v52  ;;  %v3513_v52 = vld [vmem:[%s3641_s15 + $0x8] sm:$0xff] }
 0xa69   : > { %v3192_v59 = vpop.f32.mrf.mxu0 }
 0xa6a   : > { %v1769_v7 = vadd.f32 %v3192_v59, %v1376_v13  ;;  %v1371_v59 = vadd.f32 %v4242_v19, %v4052_v41 }
 0xa6b   : > { %v1748_v21 = vpop.f32.mrf.mxu0 }
 0xa6c   : > { %v1767_v9 = vadd.f32 %v1748_v21, %v1368_v30 }
 0xa6d   : > { %v3193_v5 = vpop.f32.mrf.mxu0 }
 0xa6e   : > { %v1770_v60 = vadd.f32 %v3193_v5, %v1379_v35 }
 0xa6f   : > { %v1751_v36 = vpop.f32.mrf.mxu0 }
 0xa70   : > { %v1768_v5 = vadd.f32 %v1751_v36, %v1371_v59 }
 0xa7c   : > { %v3220_v34 = vpop.f32.mrf.mxu0 }
 0xa7e   : > { %v2034_v17 = vpop.f32.mrf.mxu0 }
 0xa80   : > { %v3221_v8 = vpop.f32.mrf.mxu0 }
 0xa81   : > { %v2066_v16 = vpack.c.bf16 %v3221_v8, %v3220_v34  ;;  %v3514_v34 = vld [vmem:[%s3641_s15 + $0x30] sm:$0xff] }
 0xa82   : > { %v2037_v63 = vpop.f32.mrf.mxu0 }
 0xa83   : > { %v2065_v47 = vpack.c.bf16 %v2037_v63, %v2034_v17 }
 0xa84   : > { %v3224_v61 = vpop.f32.mrf.mxu0 }
 0xa85   : > { %3228 = vmatprep.mubr.msk.bf16.mxu0 %vm633_vm2, %v2065_v47  ;;  %v3515_v47 = vld [vmem:[%s3641_s15 + $0x20] sm:$0xff] }
 0xa86   : > { %v2050_v38 = vpop.f32.mrf.mxu0  ;;  %3229 = vmatmul.mubr.msk.bf16.vlgmr.msra.gmra.mxu0 %vm633_vm2, %v2066_v16 }
 0xa88   : > { %v3225_v42 = vpop.f32.mrf.mxu0 }
 0xa89   : > { %v2068_v39 = vpack.c.bf16 %v3225_v42, %v3224_v61  ;;  %v3516_v61 = vld [vmem:[%s3641_s15 + $0x38] sm:$0xff] }
 0xa8a   : > { %v2053_v40 = vpop.f32.mrf.mxu0 }
 0xa8b   : > { %v2067_v50 = vpack.c.bf16 %v2053_v40, %v2050_v38 }
 0xa8d   : > { %3232 = vmatprep.mubr.msk.bf16.mxu0 %vm633_vm2, %v2067_v50 }
 0xa8e   : > { %3233 = vmatmul.mubr.msk.bf16.gmra.mxu0 %vm633_vm2, %v2068_v39 }
 0xb46   : > { %v3230_v49 = vpop.f32.mrf.mxu0 }
 0xb47   : > { %v2154_v20 = vadd.f32 %v3230_v49, %v1765_v26 }
 0xb48   : > { %v2121_v22 = vpop.f32.mrf.mxu0 }
 0xb49   : > { %v2166_v23 = vadd.f32 %v2163_v31, %v2154_v20  ;;  %v2152_v29 = vadd.f32 %v2121_v22, %v1763_v33 }
 0xb4a   : > { %v3231_v62 = vpop.f32.mrf.mxu0 }
 0xb4b   : > { %v4286_v55 = vadd.f32 %v3510_v6, %v2166_v23  ;;  %v2164_v43 = vadd.f32 %v2163_v31, %v2152_v29  ;;  %v2155_v27 = vadd.f32 %v3231_v62, %v1766_v14 }
 0xb4c   : > { %v2124_v51 = vpop.f32.mrf.mxu0 }
 0xb4d   : > { %v4289_v25 = vadd.f32 %v3511_v24, %v2164_v43  ;;  %v2167_v54 = vadd.f32 %v2163_v31, %v2155_v27  ;;  %v2153_v15 = vadd.f32 %v2124_v51, %v1764_v28  ;;  %v2186_v44 = vsel %vm381_vm1, %v4286_v55, 0.0  ;;  %v3518_v24 = vld [vmem:[%s3631_s8 + $0x8] sm:$0xff] }
 0xb4e   : > { %2187 = vadd.xlane.f32.xlu0 %v2186_v44  ;;  %v3234_v4 = vpop.f32.mrf.mxu0  ;;  %v2215_v48 = vmul.f32 %v4286_v55, %v4286_v55  ;;  %v2896_v51 = vcombine.high %v4155_v32, %v4223_v12 }
 0xb4f   : > { %v2165_v11 = vadd.f32 %v2163_v31, %v2153_v15  ;;  %v2158_v18 = vadd.f32 %v3234_v4, %v1769_v7  ;;  %v2213_v26 = vmul.f32 %v4289_v25, %v4289_v25  ;;  %v4299_v10 = vadd.f32 %v3512_v57, %v2167_v54  ;;  %v3342_v15 = vld [vmem:[%s3636_s11 + $0x18] sm:$0xff]  }
 0xb50   : > { %v2227_v2 = vsel %vm381_vm1, %v2215_v48, 0.0  ;;  %v2137_v58 = vpop.f32.mrf.mxu0  ;;  %v2180_v33 = vsel %vm381_vm1, %v4289_v25, 0.0  ;;  %3236 = vmatprep.subr.bf16.mxu1 %v2896_v51  ;;  %v2895_v54 = vcombine.high %v4065_v1, %v3518_v24  ;;  %3248 = vmatprep.subr.bf16.mxu0 %v3342_v15 }
 0xb51   : > { %2228 = vadd.xlane.f32.xlu1 %v2227_v2  ;;  %v4304_v14 = vadd.f32 %v3513_v52, %v2165_v11  ;;  %v2170_v56 = vadd.f32 %v2163_v31, %v2158_v18  ;;  %v2156_v13 = vadd.f32 %v2137_v58, %v1767_v9  ;;  %v2221_v28 = vsel %vm381_vm1, %v2213_v26, 0.0  ;;  %3237 = vmatpush3.bf16.msra.mxu1 %v2896_v51 }
 0xb52   : > { %2181 = vadd.xlane.f32.xlu0 %v2180_v33  ;;  %v3235_v53 = vpop.f32.mrf.mxu0  ;;  %v2189_v7 = vsel %vm381_vm1, %v4299_v10, 0.0  ;;  %v2216_v21 = vmul.f32 %v4299_v10, %v4299_v10  ;;  %3238 = vmatprep.subr.bf16.mxu1 %v2895_v54 }
 0xb53   : > { %v2159_v30 = vadd.f32 %v3235_v53, %v1770_v60  ;;  %v4314_v9 = vadd.f32 %v3514_v34, %v2170_v56  ;;  %v2168_v17 = vadd.f32 %v2163_v31, %v2156_v13  ;;  %v2183_v41 = vsel %vm381_vm1, %v4304_v14, 0.0  ;;  %3249 = vmatpush3.bf16.msra.mxu0 %v3342_v15 }
 0xb54   : > { %v2140_v35 = vpop.f32.mrf.mxu0  ;;  %v2230_v8 = vsel %vm381_vm1, %v2216_v21, 0.0  ;;  %v2214_v63 = vmul.f32 %v4304_v14, %v4304_v14 }
 0xb55   : > { %2222 = vadd.xlane.f32.xlu1 %v2221_v28  ;;  %v2171_v19 = vadd.f32 %v2163_v31, %v2159_v30  ;;  %v2157_v60 = vadd.f32 %v2140_v35, %v1768_v5  ;;  %v4322_v16 = vadd.f32 %v3515_v47, %v2168_v17  ;;  %v2198_v36 = vsel %vm381_vm1, %v4314_v9, 0.0  ;;  %3239 = vmatpush3.bf16.msra.mxu1 %v2895_v54 }
 0xb56   : > { %2190 = vadd.xlane.f32.xlu0 %v2189_v7  ;;  %v2224_v40 = vsel %vm381_vm1, %v2214_v63, 0.0  ;;  %v2219_v22 = vmul.f32 %v4314_v9, %v4314_v9 }
 0xb57   : > { %v4327_v38 = vadd.f32 %v3516_v61, %v2171_v19  ;;  %v2169_v42 = vadd.f32 %v2163_v31, %v2157_v60  ;;  %v2192_v50 = vsel %vm381_vm1, %v4322_v16, 0.0  ;;  %v2217_v39 = vmul.f32 %v4322_v16, %v4322_v16 }
 0xb58   : > { %v2239_v62 = vsel %vm381_vm1, %v2219_v22, 0.0 }
 0xb59   : > { %2184 = vadd.xlane.f32.xlu1 %v2183_v41  ;;  %v4335_v49 = vadd.f32 %v3517_v37, %v2169_v42  ;;  %v2201_v20 = vsel %vm381_vm1, %v4327_v38, 0.0  ;;  %v2233_v31 = vsel %vm381_vm1, %v2217_v39, 0.0  ;;  %v2220_v43 = vmul.f32 %v4327_v38, %v4327_v38 }
 0xb5a   : > { %2231 = vadd.xlane.f32.xlu0 %v2230_v8 }
 0xb5b   : > { %v2195_v23 = vsel %vm381_vm1, %v4335_v49, 0.0  ;;  %v2218_v29 = vmul.f32 %v4335_v49, %v4335_v49  ;;  %v2242_v27 = vsel %vm381_vm1, %v2220_v43, 0.0 }
 0xb5d   : > { %2199 = vadd.xlane.f32.xlu1 %v2198_v36  ;;  %v2236_v6 = vsel %vm381_vm1, %v2218_v29, 0.0 }
 0xb5e   : > { %2225 = vadd.xlane.f32.xlu0 %v2224_v40 }
 0xb61   : > { %2193 = vadd.xlane.f32.xlu1 %v2192_v50 }
 0xb62   : > { %2202 = vadd.xlane.f32.xlu0 %v2201_v20 }
 0xb65   : > { %2234 = vadd.xlane.f32.xlu1 %v2233_v31 }
 0xb66   : > { %2196 = vadd.xlane.f32.xlu0 %v2195_v23 }
 0xb69   : > { %2240 = vadd.xlane.f32.xlu1 %v2239_v62 }
 0xb6a   : > { %2237 = vadd.xlane.f32.xlu0 %v2236_v6 }
 0xb6e   : > { %2243 = vadd.xlane.f32.xlu0 %v2242_v27 }
 0xbd7   : > { %v2188_v44 = vpop.xlane.xlu0 %2187 }
 0xbd8   : > { %v4356_v4 = vmul.f32 0.03125, %v2188_v44 }
 0xbda   : > { %v2229_v48 = vpop.xlane.xlu1 %2228  ;;  %v2255_v11 = vmul.f32 %v4356_v4, %v4356_v4 }
 0xbdb   : > { %v2247_v18 = vmul.f32 0.03125, %v2229_v48  ;;  %v2182_v2 = vpop.xlane.xlu0 %2181 }
 0xbdc   : > { %v4360_v32 = vmul.f32 0.03125, %v2182_v2 }
 0xbdd   : > { %v2263_v58 = vsub.f32 %v2247_v18, %v2255_v11  ;;  %v2311_v18 = vsub.s32 6, %v3741_v45 }
 0xbde   : > { %v2253_v12 = vmul.f32 %v4360_v32, %v4360_v32  ;;  %v2223_v1 = vpop.xlane.xlu1 %2222  ;;  %v2277_v2 = vsub.f32 %v4289_v25, %v4360_v32 }
 0xbdf   : > { %v2245_v26 = vmul.f32 0.03125, %v2223_v1  ;;  %v2191_v57 = vpop.xlane.xlu0 %2190  ;;  %v2271_v56 = vmax.f32 %v2263_v58, 0.0  ;;  %v2312_v32 = vrot.slane %v4282_v0, %v2311_v18  ;;  %v2339_v18 = vsub.s32 4, %v3741_v45 }
 0xbe0   : > { %v2208_v33 = vmul.f32 0.03125, %v2191_v57 }
 0xbe1   : > { %v2261_v53 = vsub.f32 %v2245_v26, %v2253_v12  ;;  %v2287_v34 = vadd.f32 1e-05, %v2271_v56 }
 0xbe2   : > { %v2185_v52 = vpop.xlane.xlu1 %2184  ;;  %v2256_v59 = vmul.f32 %v2208_v33, %v2208_v33  ;;  %v2280_v26 = vsub.f32 %v4299_v10, %v2208_v33  ;;  %v2323_v10 = vsub.s32 7, %v3741_v45 }
 0xbe3   : > { %v2269_v13 = vmax.f32 %v2261_v53, 0.0  ;;  %v2232_v28 = vpop.xlane.xlu0 %2231  ;;  %v4364_v30 = vmul.f32 0.03125, %v2185_v52 }
 0xbe4   : > { %v2248_v7 = vmul.f32 0.03125, %v2232_v28 }
 0xbe5   : > { %v2285_v21 = vadd.f32 1e-05, %v2269_v13  ;;  %v2254_v41 = vmul.f32 %v4364_v30, %v4364_v30  ;;  %v2279_v13 = vsub.f32 %v4286_v55, %v4356_v4  ;;  %v2278_v33 = vsub.f32 %v4304_v14, %v4364_v30 }
 0xbe6   : > { %v2264_v35 = vsub.f32 %v2248_v7, %v2256_v59  ;;  %v2200_v5 = vpop.xlane.xlu1 %2199 }
 0xbe7   : > { %v2226_v17 = vpop.xlane.xlu0 %2225  ;;  %3474 = vrsqrt.f32 %v2285_v21  ;;  %v4370_v39 = vmul.f32 0.03125, %v2200_v5 }
 0xbe8   : > { %v2272_v19 = vmax.f32 %v2264_v35, 0.0  ;;  %v2246_v60 = vmul.f32 0.03125, %v2226_v17  ;;  %3476 = vrsqrt.f32 %v2287_v34 }
 0xbe9   : > { %v2259_v62 = vmul.f32 %v4370_v39, %v4370_v39 }
 0xbea   : > { %v2288_v8 = vadd.f32 1e-05, %v2272_v19  ;;  %v2262_v63 = vsub.f32 %v2246_v60, %v2254_v41  ;;  %v2194_v47 = vpop.xlane.xlu1 %2193  ;;  %v2324_v60 = vrot.slane %v4282_v0, %v2323_v10 }
 0xbeb   : > { %v4368_v36 = vmul.f32 0.03125, %v2194_v47  ;;  %v2203_v61 = vpop.xlane.xlu0 %2202 }
 0xbec   : > { %3478 = vrsqrt.f32 %v2288_v8  ;;  %v2270_v42 = vmax.f32 %v2262_v63, 0.0  ;;  %v4378_v51 = vmul.f32 0.03125, %v2203_v61 }
 0xbed   : > { %v2257_v37 = vmul.f32 %v4368_v36, %v4368_v36  ;;  %v2281_v30 = vsub.f32 %v4322_v16, %v4368_v36 }
 0xbee   : > { %v2286_v40 = vadd.f32 1e-05, %v2270_v42  ;;  %v2235_v50 = vpop.xlane.xlu1 %2234  ;;  %v2260_v57 = vmul.f32 %v4378_v51, %v4378_v51 }
 0xbef   : > { %v2249_v20 = vmul.f32 0.03125, %v2235_v50  ;;  %v2197_v31 = vpop.xlane.xlu0 %2196 }
 0xbf0   : > { %3480 = vrsqrt.f32 %v2286_v40  ;;  %v4374_v22 = vmul.f32 0.03125, %v2197_v31  ;;  %v2283_v31 = vsub.f32 %v4314_v9, %v4370_v39 }
 0xbf1   : > { %v2265_v23 = vsub.f32 %v2249_v20, %v2257_v37 }
 0xbf2   : > { %v2241_v29 = vpop.xlane.xlu1 %2240  ;;  %v2258_v24 = vmul.f32 %v4374_v22, %v4374_v22 }
 0xbf3   : > { %v2273_v6 = vmax.f32 %v2265_v23, 0.0  ;;  %v2251_v43 = vmul.f32 0.03125, %v2241_v29  ;;  %v2238_v27 = vpop.xlane.xlu0 %2237  ;;  %v2282_v23 = vsub.f32 %v4335_v49, %v4374_v22 }
 0xbf4   : > { %v2250_v54 = vmul.f32 0.03125, %v2238_v27  ;;  %v3475_v11 = vpop.eup %3474 }
 0xbf5   : > { %v2289_v15 = vadd.f32 1e-05, %v2273_v6  ;;  %v2267_v44 = vsub.f32 %v2251_v43, %v2259_v62  ;;  %v3477_v58 = vpop.eup %3476  ;;  %v2301_v25 = vmul.f32 %v3475_v11, %v2277_v2  ;;  %v2284_v6 = vsub.f32 %v4327_v38, %v4378_v51  ;;  %v3343_v51 = vld [vmem:[%s3636_s11 + $0x10] sm:$0xff]   ;;  %v3345_v11 = vld [vmem:[%s3636_s11] sm:$0xff]  }
 0xbf6   : > { %v2266_v48 = vsub.f32 %v2250_v54, %v2258_v24  ;;  %v2303_v35 = vmul.f32 %v3477_v58, %v2279_v13  ;;  %3250 = vmatprep.subr.bf16.mxu0 %v3343_v51 }
 0xbf7   : > { %3482 = vrsqrt.f32 %v2289_v15  ;;  %v2275_v12 = vmax.f32 %v2267_v44, 0.0  ;;  %v2244_v1 = vpop.xlane.xlu0 %2243  ;;  %v2313_v4 = vmul.f32 %v2312_v32, %v2301_v25  ;;  %3251 = vmatpush3.bf16.msra.mxu0 %v3343_v51 }
 0xbf8   : > { %v2274_v53 = vmax.f32 %v2266_v48, 0.0  ;;  %v2252_v52 = vmul.f32 0.03125, %v2244_v1  ;;  %v2315_v19 = vmul.f32 %v2312_v32, %v2303_v35  ;;  %v3344_v48 = vld [vmem:[%s3636_s11 + $0x8] sm:$0xff]  }
 0xbf9   : > { %v3479_v56 = vpop.eup %3478  ;;  %v2291_v28 = vadd.f32 1e-05, %v2275_v12  ;;  %v4397_v47 = vadd.f32 %v2324_v60, %v2313_v4  ;;  %3252 = vmatprep.subr.bf16.mxu0 %v3344_v48  ;;  %v2340_v12 = vrot.slane %v4282_v0, %v2339_v18 }
 0xbfa   : > { %v2304_v59 = vmul.f32 %v3479_v56, %v2280_v26  ;;  %v2290_v7 = vadd.f32 1e-05, %v2274_v53  ;;  %v2268_v21 = vsub.f32 %v2252_v52, %v2260_v57  ;;  %v4401_v42 = vadd.f32 %v2324_v60, %v2315_v19 }
 0xbfb   : > { %3484 = vrsqrt.f32 %v2291_v28  ;;  %3253 = vmatpush3.bf16.msra.mxu0 %v3344_v48 }
 0xbfc   : > { %3486 = vrsqrt.f32 %v2290_v7  ;;  %v2276_v5 = vmax.f32 %v2268_v21, 0.0  ;;  %v2316_v17 = vmul.f32 %v2312_v32, %v2304_v59  ;;  %3254 = vmatprep.subr.bf16.mxu0 %v3345_v11 }
 0xbfd   : > { %v3481_v34 = vpop.eup %3480 }
 0xbfe   : > { %v2292_v41 = vadd.f32 1e-05, %v2276_v5  ;;  %v2302_v55 = vmul.f32 %v3481_v34, %v2278_v33  ;;  %v4395_v63 = vadd.f32 %v2324_v60, %v2316_v17 }
 0xbff   : > { %3255 = vmatpush3.bf16.msra.mxu0 %v3345_v11 }
 0xc00   : > { %3488 = vrsqrt.f32 %v2292_v41  ;;  %v2314_v8 = vmul.f32 %v2312_v32, %v2302_v55  ;;  %v2334_v50 = vpack.c.bf16 %v4395_v63, %v4401_v42 }
 0xc02   : > { %v4399_v61 = vadd.f32 %v2324_v60, %v2314_v8 }
 0xc04   : > { %v3483_v14 = vpop.eup %3482  ;;  %v2333_v40 = vpack.c.bf16 %v4399_v61, %v4397_v47 }
 0xc05   : > { %v2305_v37 = vmul.f32 %v3483_v14, %v2281_v30  ;;  %v2440_v30 = vsub.s32 5, %v3741_v45 }
 0xc06   : > { %3240 = vmatprep.mubr.msk.bf16.mxu1 %vm381_vm1, %v2333_v40 }
 0xc07   : > { %3241 = vmatmul.mubr.msk.bf16.vlgmr.msra.gmra.mxu1 %vm381_vm1, %v2334_v50  ;;  %v2317_v36 = vmul.f32 %v2312_v32, %v2305_v37  ;;  %v2441_v40 = vrot.slane %v4282_v0, %v2440_v30 }
 0xc08   : > { %v3485_v20 = vpop.eup %3484 }
 0xc09   : > { %v3487_v29 = vpop.eup %3486  ;;  %v2307_v62 = vmul.f32 %v3485_v20, %v2283_v31  ;;  %v4417_v24 = vadd.f32 %v2324_v60, %v2317_v36 }
 0xc0a   : > { %v2306_v16 = vmul.f32 %v3487_v29, %v2282_v23 }
 0xc0b   : > { %v2319_v39 = vmul.f32 %v2312_v32, %v2307_v62 }
 0xc0c   : > { %v2318_v43 = vmul.f32 %v2312_v32, %v2306_v16 }
 0xc0d   : > { %v3489_v27 = vpop.eup %3488  ;;  %v4424_v15 = vadd.f32 %v2324_v60, %v2319_v39 }
 0xc0e   : > { %v4419_v54 = vadd.f32 %v2324_v60, %v2318_v43  ;;  %v2308_v9 = vmul.f32 %v3489_v27, %v2284_v6 }
 0xc10   : > { %v2335_v49 = vpack.c.bf16 %v4419_v54, %v4417_v24  ;;  %v2320_v22 = vmul.f32 %v2312_v32, %v2308_v9 }
 0xc12   : > { %3244 = vmatprep.mubr.msk.bf16.mxu1 %vm381_vm1, %v2335_v49  ;;  %v4426_v44 = vadd.f32 %v2324_v60, %v2320_v22 }
 0xc14   : > { %v2336_v38 = vpack.c.bf16 %v4426_v44, %v4424_v15 }
 0xc16   : > { %3245 = vmatmul.mubr.msk.bf16.gmra.mxu1 %vm381_vm1, %v2336_v38 }
 0xcc7   : > { %v3242_v2 = vpop.f32.mrf.mxu1 }
 0xcc8   : > { %v2404_v53 = vadd.f32 %v3242_v2, %v2340_v12 }
 0xcc9   : > { %v2395_v1 = vpop.f32.mrf.mxu1 }
 0xcca   : > { %v2396_v26 = vadd.f32 %v2395_v1, %v2340_v12  ;;  %v2428_v7 = vmax.f32 %v2404_v53, 0.0 }
 0xccb   : > { %v3243_v58 = vpop.f32.mrf.mxu1 }
 0xccc   : > { %v2407_v57 = vadd.f32 %v3243_v58, %v2340_v12  ;;  %v2426_v28 = vmax.f32 %v2396_v26, 0.0 }
 0xccd   : > { %v2398_v52 = vpop.f32.mrf.mxu1 }
 0xcce   : > { %v2399_v56 = vadd.f32 %v2398_v52, %v2340_v12  ;;  %v2429_v13 = vmax.f32 %v2407_v57, 0.0 }
 0xcd0   : > { %v2427_v59 = vmax.f32 %v2399_v56, 0.0  ;;  %v2435_v25 = vpack.c.bf16 %v2429_v13, %v2428_v7 }
 0xcd2   : > { %v2434_v21 = vpack.c.bf16 %v2427_v59, %v2426_v28 }
 0xcd4   : > { %3256 = vmatprep.mubr.msk.bf16.mxu0 %vm731_vm3, %v2434_v21 }
 0xcd5   : > { %3257 = vmatmul.mubr.msk.bf16.vlgmr.msra.gmra.mxu0 %vm731_vm3, %v2435_v25 }
 0xcd6   : > { %v3246_v32 = vpop.f32.mrf.mxu1 }
 0xcd7   : > { %v2420_v34 = vadd.f32 %v3246_v32, %v2340_v12 }
 0xcd8   : > { %v2411_v35 = vpop.f32.mrf.mxu1 }
 0xcd9   : > { %v2412_v33 = vadd.f32 %v2411_v35, %v2340_v12  ;;  %v2432_v60 = vmax.f32 %v2420_v34, 0.0 }
 0xcda   : > { %v3247_v10 = vpop.f32.mrf.mxu1 }
 0xcdb   : > { %v2423_v5 = vadd.f32 %v3247_v10, %v2340_v12  ;;  %v2430_v4 = vmax.f32 %v2412_v33, 0.0 }
 0xcdc   : > { %v2414_v17 = vpop.f32.mrf.mxu1 }
 0xcdd   : > { %v2415_v41 = vadd.f32 %v2414_v17, %v2340_v12  ;;  %v2433_v55 = vmax.f32 %v2423_v5, 0.0 }
 0xcdf   : > { %v2431_v19 = vmax.f32 %v2415_v41, 0.0  ;;  %v2437_v14 = vpack.c.bf16 %v2433_v55, %v2432_v60 }
 0xce1   : > { %v2436_v8 = vpack.c.bf16 %v2431_v19, %v2430_v4 }
 0xce3   : > { %3260 = vmatprep.mubr.msk.bf16.mxu0 %vm731_vm3, %v2436_v8 }
 0xce4   : > { %3261 = vmatmul.mubr.msk.bf16.gmra.mxu0 %vm731_vm3, %v2437_v14 }
 0xd95   : > { %v3258_v50 = vpop.f32.mrf.mxu0 }
 0xd96   : > { %v2521_v37 = vadd.f32 %v3258_v50, %v2441_v40 }
 0xd97   : > { %v2512_v20 = vpop.f32.mrf.mxu0 }
 0xd98   : > { %v4443_v31 = vadd.f32 %v2521_v37, %v4401_v42  ;;  %v2513_v23 = vadd.f32 %v2512_v20, %v2441_v40 }
 0xd99   : > { %v3259_v29 = vpop.f32.mrf.mxu0 }
 0xd9a   : > { %v4446_v16 = vadd.f32 %v2513_v23, %v4397_v47  ;;  %v2524_v36 = vadd.f32 %v3259_v29, %v2441_v40  ;;  %v2557_v62 = vsel %vm381_vm1, %v4443_v31, 0.0  ;;  %v2585_v9 = vmul.f32 %v4443_v31, %v4443_v31 }
 0xd9b   : > { %2558 = vadd.xlane.f32.xlu1 %v2557_v62  ;;  %v2515_v6 = vpop.f32.mrf.mxu0 }
 0xd9c   : > { %v4451_v43 = vadd.f32 %v2524_v36, %v4395_v63  ;;  %v2516_v0 = vadd.f32 %v2515_v6, %v2441_v40  ;;  %v2551_v42 = vsel %vm381_vm1, %v4446_v16, 0.0  ;;  %v2597_v39 = vsel %vm381_vm1, %v2585_v9, 0.0 }
 0xd9e   : > { %v4454_v27 = vadd.f32 %v2516_v0, %v4399_v61  ;;  %v2560_v47 = vsel %vm381_vm1, %v4451_v43, 0.0  ;;  %v2583_v61 = vmul.f32 %v4446_v16, %v4446_v16  ;;  %v2586_v49 = vmul.f32 %v4451_v43, %v4451_v43 }
 0xd9f   : > { %2552 = vadd.xlane.f32.xlu1 %v2551_v42  ;;  %2561 = vadd.xlane.f32.xlu0 %v2560_v47 }
 0xda0   : > { %v2554_v63 = vsel %vm381_vm1, %v4454_v27, 0.0  ;;  %v2591_v48 = vsel %vm381_vm1, %v2583_v61, 0.0  ;;  %v2600_v11 = vsel %vm381_vm1, %v2586_v49, 0.0  ;;  %v2584_v18 = vmul.f32 %v4454_v27, %v4454_v27 }
 0xda2   : > { %v2594_v52 = vsel %vm381_vm1, %v2584_v18, 0.0 }
 0xda3   : > { %2598 = vadd.xlane.f32.xlu1 %v2597_v39  ;;  %2555 = vadd.xlane.f32.xlu0 %v2554_v63 }
 0xda4   : > { %v3262_v22 = vpop.f32.mrf.mxu0 }
 0xda5   : > { %v2537_v38 = vadd.f32 %v3262_v22, %v2441_v40 }
 0xda6   : > { %v2528_v51 = vpop.f32.mrf.mxu0 }
 0xda7   : > { %v4474_v2 = vadd.f32 %v2537_v38, %v4424_v15  ;;  %v2529_v12 = vadd.f32 %v2528_v51, %v2441_v40  ;;  %2592 = vadd.xlane.f32.xlu1 %v2591_v48  ;;  %2601 = vadd.xlane.f32.xlu0 %v2600_v11 }
 0xda8   : > { %v3263_v1 = vpop.f32.mrf.mxu0 }
 0xda9   : > { %v2540_v58 = vadd.f32 %v3263_v1, %v2441_v40  ;;  %v2569_v26 = vsel %vm381_vm1, %v4474_v2, 0.0  ;;  %v4479_v57 = vadd.f32 %v2529_v12, %v4417_v24 }
 0xdaa   : > { %v2531_v53 = vpop.f32.mrf.mxu0 }
 0xdab   : > { %v4483_v56 = vadd.f32 %v2540_v58, %v4426_v44  ;;  %v2532_v13 = vadd.f32 %v2531_v53, %v2441_v40  ;;  %2595 = vadd.xlane.f32.xlu0 %v2594_v52  ;;  %2570 = vadd.xlane.f32.xlu1 %v2569_v26  ;;  %v2563_v59 = vsel %vm381_vm1, %v4479_v57, 0.0  ;;  %v2587_v24 = vmul.f32 %v4479_v57, %v4479_v57  ;;  %v348_v53 = vld [vmem:[%s3646_s19 + $0x8] sm:$0x3] }
 0xdad   : > { %v2572_v15 = vsel %vm381_vm1, %v4483_v56, 0.0  ;;  %v4488_v28 = vadd.f32 %v2532_v13, %v4419_v54  ;;  %v2603_v7 = vsel %vm381_vm1, %v2587_v24, 0.0  ;;  %v2589_v54 = vmul.f32 %v4474_v2, %v4474_v2 }
 0xdae   : > { %v2590_v35 = vmul.f32 %v4483_v56, %v4483_v56  ;;  %v4529_v24 = vrot.slane %v348_v53, %v367_v46 }
 0xdaf   : > { %2573 = vadd.xlane.f32.xlu0 %v2572_v15  ;;  %2564 = vadd.xlane.f32.xlu1 %v2563_v59  ;;  %v2566_v44 = vsel %vm381_vm1, %v4488_v28, 0.0  ;;  %v2588_v21 = vmul.f32 %v4488_v28, %v4488_v28  ;;  %v2609_v32 = vsel %vm381_vm1, %v2589_v54, 0.0 }
 0xdb0   : > { %v2612_v10 = vsel %vm381_vm1, %v2590_v35, 0.0 }
 0xdb1   : > { %v2606_v25 = vsel %vm381_vm1, %v2588_v21, 0.0 }
 0xdb3   : > { %2567 = vadd.xlane.f32.xlu0 %v2566_v44  ;;  %2604 = vadd.xlane.f32.xlu1 %v2603_v7 }
 0xdb7   : > { %2607 = vadd.xlane.f32.xlu0 %v2606_v25  ;;  %2610 = vadd.xlane.f32.xlu1 %v2609_v32 }
 0xdbb   : > { %2613 = vadd.xlane.f32.xlu0 %v2612_v10 }
 0xe24   : > { %v2559_v33 = vpop.xlane.xlu1 %2558 }
 0xe25   : > { %v2577_v17 = vmul.f32 0.03125, %v2559_v33 }
 0xe27   : > { %v2625_v19 = vmul.f32 %v2577_v17, %v2577_v17  ;;  %v2649_v44 = vsub.f32 %v4443_v31, %v2577_v17 }
 0xe28   : > { %v2553_v5 = vpop.xlane.xlu1 %2552  ;;  %v2562_v34 = vpop.xlane.xlu0 %2561 }
 0xe29   : > { %v4506_v41 = vmul.f32 0.03125, %v2553_v5  ;;  %v4508_v60 = vmul.f32 0.03125, %v2562_v34  ;;  %v4538_v5 = vrot.slane %v348_v53, %v461_v3 }
 0xe2b   : > { %v2623_v30 = vmul.f32 %v4506_v41, %v4506_v41  ;;  %v2626_v37 = vmul.f32 %v4508_v60, %v4508_v60  ;;  %v2650_v45 = vsub.f32 %v4451_v43, %v4508_v60 }
 0xe2c   : > { %v2599_v55 = vpop.xlane.xlu1 %2598  ;;  %v2556_v4 = vpop.xlane.xlu0 %2555 }
 0xe2d   : > { %v2617_v8 = vmul.f32 0.03125, %v2599_v55  ;;  %v4514_v36 = vmul.f32 0.03125, %v2556_v4  ;;  %v2647_v4 = vsub.f32 %v4446_v16, %v4506_v41 }
 0xe2f   : > { %v2633_v14 = vsub.f32 %v2617_v8, %v2625_v19  ;;  %v2624_v63 = vmul.f32 %v4514_v36, %v4514_v36  ;;  %v2648_v43 = vsub.f32 %v4454_v27, %v4514_v36 }
 0xe30   : > { %v2593_v40 = vpop.xlane.xlu1 %2592  ;;  %v2602_v50 = vpop.xlane.xlu0 %2601 }
 0xe31   : > { %v2641_v20 = vmax.f32 %v2633_v14, 0.0  ;;  %v2615_v23 = vmul.f32 0.03125, %v2593_v40  ;;  %v2618_v29 = vmul.f32 0.03125, %v2602_v50 }
 0xe33   : > { %v2657_v62 = vadd.f32 1e-05, %v2641_v20  ;;  %v2631_v6 = vsub.f32 %v2615_v23, %v2623_v30  ;;  %v2634_v0 = vsub.f32 %v2618_v29, %v2626_v37 }
 0xe34   : > { %v2571_v42 = vpop.xlane.xlu1 %2570  ;;  %v2596_v47 = vpop.xlane.xlu0 %2595 }
 0xe35   : > { %3490 = vrsqrt.f32 %v2657_v62  ;;  %v2639_v9 = vmax.f32 %v2631_v6, 0.0  ;;  %v2642_v39 = vmax.f32 %v2634_v0, 0.0  ;;  %v2616_v61 = vmul.f32 0.03125, %v2596_v47 }
 0xe36   : > { %v4520_v12 = vmul.f32 0.03125, %v2571_v42 }
 0xe37   : > { %v2655_v49 = vadd.f32 1e-05, %v2639_v9  ;;  %v2658_v22 = vadd.f32 1e-05, %v2642_v39  ;;  %v2632_v38 = vsub.f32 %v2616_v61, %v2624_v63 }
 0xe38   : > { %v2565_v51 = vpop.xlane.xlu1 %2564  ;;  %v2574_v48 = vpop.xlane.xlu0 %2573  ;;  %v2629_v7 = vmul.f32 %v4520_v12, %v4520_v12 }
 0xe39   : > { %3492 = vrsqrt.f32 %v2655_v49  ;;  %v4518_v11 = vmul.f32 0.03125, %v2565_v51  ;;  %v2640_v18 = vmax.f32 %v2632_v38, 0.0  ;;  %v2582_v46 = vmul.f32 0.03125, %v2574_v48 }
 0xe3a   : > { %3494 = vrsqrt.f32 %v2658_v22  ;;  %v2653_v38 = vsub.f32 %v4474_v2, %v4520_v12 }
 0xe3b   : > { %v2656_v1 = vadd.f32 1e-05, %v2640_v18  ;;  %v2627_v52 = vmul.f32 %v4518_v11, %v4518_v11  ;;  %v2630_v3 = vmul.f32 %v2582_v46, %v2582_v46  ;;  %v2651_v36 = vsub.f32 %v4479_v57, %v4518_v11 }
 0xe3c   : > { %v2605_v58 = vpop.xlane.xlu1 %2604  ;;  %v2568_v26 = vpop.xlane.xlu0 %2567  ;;  %v2654_v2 = vsub.f32 %v4483_v56, %v2582_v46 }
 0xe3d   : > { %v2619_v13 = vmul.f32 0.03125, %v2605_v58  ;;  %v4525_v15 = vmul.f32 0.03125, %v2568_v26  ;;  %3496 = vrsqrt.f32 %v2656_v1 }
 0xe3f   : > { %v2635_v59 = vsub.f32 %v2619_v13, %v2627_v52  ;;  %v2628_v32 = vmul.f32 %v4525_v15, %v4525_v15  ;;  %v2652_v18 = vsub.f32 %v4488_v28, %v4525_v15 }
 0xe40   : > { %v2611_v21 = vpop.xlane.xlu1 %2610  ;;  %v2608_v54 = vpop.xlane.xlu0 %2607 }
 0xe41   : > { %v2643_v25 = vmax.f32 %v2635_v59, 0.0  ;;  %v2621_v35 = vmul.f32 0.03125, %v2611_v21  ;;  %v2620_v10 = vmul.f32 0.03125, %v2608_v54 }
 0xe42   : > { %v3491_v33 = vpop.eup %3490 }
 0xe43   : > { %v2673_v34 = vmul.f32 %v3491_v33, %v2649_v44  ;;  %v2659_v55 = vadd.f32 1e-05, %v2643_v25  ;;  %v2637_v31 = vsub.f32 %v2621_v35, %v2629_v7  ;;  %v2636_v17 = vsub.f32 %v2620_v10, %v2628_v32 }
 0xe44   : > { %v2614_v19 = vpop.xlane.xlu0 %2613 }
 0xe45   : > { %v2685_v8 = vmul.f32 %v4529_v24, %v2673_v34  ;;  %3498 = vrsqrt.f32 %v2659_v55  ;;  %v2645_v14 = vmax.f32 %v2637_v31, 0.0  ;;  %v2644_v30 = vmax.f32 %v2636_v17, 0.0 }
 0xe46   : > { %v3493_v40 = vpop.eup %3492  ;;  %v2622_v50 = vmul.f32 0.03125, %v2614_v19 }
 0xe47   : > { %v3495_v37 = vpop.eup %3494  ;;  %v2697_v20 = vadd.f32 %v4538_v5, %v2685_v8  ;;  %v2671_v23 = vmul.f32 %v3493_v40, %v2647_v4  ;;  %v2661_v29 = vadd.f32 1e-05, %v2645_v14  ;;  %v2660_v16 = vadd.f32 1e-05, %v2644_v30 }
 0xe48   : > { %v2674_v41 = vmul.f32 %v3495_v37, %v2650_v45  ;;  %v2638_v62 = vsub.f32 %v2622_v50, %v2630_v3 }
 0xe49   : > { %2705 = vst.msk [vmem:[%s3641_s15 + $0x10] sm:$0xff] %vm381_vm1, %v2697_v20  ;;  %v2683_v6 = vmul.f32 %v4529_v24, %v2671_v23  ;;  %3500 = vrsqrt.f32 %v2661_v29 }
 0xe4a   : > { %v2686_v60 = vmul.f32 %v4529_v24, %v2674_v41  ;;  %3502 = vrsqrt.f32 %v2660_v16  ;;  %v2646_v0 = vmax.f32 %v2638_v62, 0.0  ;;  %v3497_v42 = vpop.eup %3496 }
 0xe4b   : > { %v2695_v47 = vadd.f32 %v4538_v5, %v2683_v6  ;;  %v2672_v39 = vmul.f32 %v3497_v42, %v2648_v43 }
 0xe4c   : > { %v2698_v9 = vadd.f32 %v4538_v5, %v2686_v60  ;;  %v2662_v63 = vadd.f32 1e-05, %v2646_v0 }
 0xe4d   : > { %2703 = vst.msk [vmem:[%s3641_s15] sm:$0xff] %vm381_vm1, %v2695_v47  ;;  %v2684_v61 = vmul.f32 %v4529_v24, %v2672_v39 }
 0xe4e   : > { %2706 = vst.msk [vmem:[%s3641_s15 + $0x18] sm:$0xff] %vm381_vm1, %v2698_v9  ;;  %3504 = vrsqrt.f32 %v2662_v63 }
 0xe4f   : > { %v2696_v27 = vadd.f32 %v4538_v5, %v2684_v61 }
 0xe51   : > { %2704 = vst.msk [vmem:[%s3641_s15 + $0x8] sm:$0xff] %vm381_vm1, %v2696_v27 }
 0xe52   : > { %v3499_v49 = vpop.eup %3498 }
 0xe53   : > { %v2675_v22 = vmul.f32 %v3499_v49, %v2651_v36 }
 0xe55   : > { %v2687_v51 = vmul.f32 %v4529_v24, %v2675_v22 }
 0xe56   : > { %v3501_v48 = vpop.eup %3500 }
 0xe57   : > { %v3503_v1 = vpop.eup %3502  ;;  %v2699_v58 = vadd.f32 %v4538_v5, %v2687_v51  ;;  %v2677_v57 = vmul.f32 %v3501_v48, %v2653_v38 }
 0xe58   : > { %v2676_v11 = vmul.f32 %v3503_v1, %v2652_v18 }
 0xe59   : > { %2707 = vst.msk [vmem:[%s3641_s15 + $0x20] sm:$0xff] %vm381_vm1, %v2699_v58  ;;  %v2689_v26 = vmul.f32 %v4529_v24, %v2677_v57 }
 0xe5a   : > { %v2688_v12 = vmul.f32 %v4529_v24, %v2676_v11 }
 0xe5b   : > { %v3505_v53 = vpop.eup %3504  ;;  %v2701_v52 = vadd.f32 %v4538_v5, %v2689_v26 }
 0xe5c   : > { %v2700_v13 = vadd.f32 %v4538_v5, %v2688_v12  ;;  %v2678_v28 = vmul.f32 %v3505_v53, %v2654_v2 }
 0xe5d   : > { %2709 = vst.msk [vmem:[%s3641_s15 + $0x30] sm:$0xff] %vm381_vm1, %v2701_v52 }
 0xe5e   : > { %2708 = vst.msk [vmem:[%s3641_s15 + $0x28] sm:$0xff] %vm381_vm1, %v2700_v13  ;;  %v2690_v15 = vmul.f32 %v4529_v24, %v2678_v28 }
 0xe60   : > { %v2702_v59 = vadd.f32 %v4538_v5, %v2690_v15 }
 0xe62   : > { %2710 = vst.msk [vmem:[%s3641_s15 + $0x38] sm:$0xff] %vm381_vm1, %v2702_v59 }
 0xe63 PF: > { %s15_s22 = sadd.s32 1, %s3557_s22   ;;  %s4606_s18 = smov %s3549_s20 }
 0xe64   : > { %p12_p8 = scmp.ge.s32.totalorder %s15_s22, 6   ;;  %s4607_s19 = smov %s3553_s21 }
 0xe65   : > { %s4608_s20 = smov %s4611_s23  ;;  %s4609_s21 = smov %s4615_s24 }
 0xe66   :  { %14 = sbr.rel (!%p12_p8) target bundleno = 3 (0x3), region = 83 }

// kernel: detr_forward.7
= control target key start
LH: loop header
LB: loop body
LE: loop exit
PB: predicated region body
PF: predicated region fallthrough
CT: control target
= control target key end

     0   :  { %s4637_s13 = smov 0   ;;  %s4639_s14 = smov 0   ;;  %s5458_s0 = inlined_call_operand.vmem [shape: f32[2,64,32], index: 0, kind: input, shape index: {}]   ;;  %s5459_s1 = inlined_call_operand.vmem [shape: f32[64,32], index: 1, kind: input, shape index: {}]   ;;  %s5460_s2 = inlined_call_operand.vmem [shape: f32[20,32], index: 2, kind: input, shape index: {}]   ;;  %s5461_s3 = inlined_call_operand.vmem [shape: bf16[2,32,320], index: 3, kind: input, shape index: {}]   ;;  %s5462_s4 = inlined_call_operand.vmem [shape: bf16[2,64,32], index: 4, kind: input, shape index: {}]   ;;  %s5463_s5 = inlined_call_operand.vmem [shape: f32[2,16,64], index: 5, kind: input, shape index: {}]   ;;  %s5464_s6 = inlined_call_operand.vmem [shape: bf16[32,36], index: 6, kind: input, shape index: {}]   ;;  %s5465_s7 = inlined_call_operand.vmem [shape: bf16[32,36], index: 7, kind: input, shape index: {}]   ;;  %s5466_s8 = inlined_call_operand.vmem [shape: f32[5,36], index: 8, kind: input, shape index: {}]   ;;  %s5467_s9 = inlined_call_operand.vmem [shape: f32[2,20,4], index: 9, kind: output, shape index: {0}]   ;;  %s5468_s10 = inlined_call_operand.vmem [shape: f32[2,20,4], index: 10, kind: output, shape index: {1}]  }
   0x1   :  { %5471 = sst [smem:[#allocation7_spill]] %s5458_s0  ;;  %s4641_s15 = smov 0  }
   0x2   :  { %s4643_s16 = smov 0   ;;  %s4645_s17 = smov 0  }
   0x3 LB: > { %5472 = sst [smem:[#allocation3_spill]] %s4564_s15  ;;  %s30_s18 = sadd.s32 1, %s4564_s15  ;;  %s4572_s17 = sphi %s4645_s17, %s21_s17   ;;  %s4568_s16 = sphi %s4643_s16, %s5480_s16   ;;  %s4564_s15 = sphi %s4641_s15, %s5479_s15   ;;  %s4560_s14 = sphi %s4639_s14, %s5478_s14   ;;  %s4556_s13 = sphi %s4637_s13, %s5477_s13  }
   0x4   : > { %5473 = sst [smem:[#allocation4_spill]] %s4568_s16  ;;  %s33_s19 = sadd.s32 1, %s4568_s16 }
   0x5   : > { %p31_p0 = scmp.ge.s32.totalorder %s30_s18, 2  ;;  %p3707_p1 = scmp.ge.s32.totalorder %s4572_s17, 1 }
   0x6   : > { %p357_p2 = scmp.lt.s32.totalorder %s4572_s17, 5 }
   0x7   : > { %s5482_s18 = smov (%p31_p0, %s30_s18), 0  ;;  %s5484_s19 = smov (!%p31_p0, %s33_s19), %s4568_s16 }
   0x8   : > { %5474 = sst [smem:[#allocation5_spill]] %s5482_s18  ;;  %p358_p3 = pnand %p3707_p1, %p357_p2 }
   0x9   : > { %p35_p4 = scmp.ge.s32.totalorder %s5484_s19, 2  ;;  %p415_p5 = scmp.lt.s32.totalorder (!%p358_p3), %s4560_s14, 1 }
   0xa   : > { %361 = sbr.rel (%p358_p3) target bundleno = 7755 (0x1e4b), region = 56  ;;  %p420_p6 = scmp.lt.s32.totalorder (!%p358_p3), %s4556_s13, 1 }
   0xb   : > { %s5486_s19 = smov (%p35_p4, %s5484_s19), 0  ;;  %s5476_s0 = sld [smem:[#allocation7_spill]] (!%p358_p3) }
   0xc   : > { %5475 = sst [smem:[#allocation6_spill]] %s5486_s19  ;;  %p3717_p7 = scmp.ne.s32.totalorder (!%p358_p3), %s4556_s13, 0 }
   0xf   : > { %s5488_s14 = smov (!%p415_p5, %s4560_s14), 1 }
  0x10   : > { %s421_s20 = scalar_select %p420_p6, %s4556_s13, 1 }
  0x11   : > { %s3820_s21 = sshll.u32 %s5488_s14, 6  ;;  %s4322_s22 = smul.u32 24, %s5488_s14 }
  0x12   : > { %s4674_s25 = scalar_lea.vmem %s5476_s0, %s3820_s21  ;;  %s4321_s26 = smul.u32 48, %s421_s20 }
  0x13   : > { %s3821_s27 = sshll.u32 %s421_s20, 5  ;;  %s3822_s28 = sshll.u32 %s421_s20, 4 }
  0x14   : > { %s4679_s11 = scalar_lea.vmem %s5461_s3, %s4321_s26  ;;  %s4684_s18 = scalar_lea.vmem %s5462_s4, %s3821_s27 }
  0x15   : > { %s4689_s15 = scalar_lea.vmem %s5463_s5, %s3822_s28  ;;  %s4694_s24 = scalar_lea.vmem %s5467_s9, %s4322_s22 }
  0x16   : > { %s4699_s26 = scalar_lea.vmem %s5468_s10, %s4322_s22  ;;  %449 = sbr.rel (%p3717_p7) target bundleno = 30 (0x1e), region = 60 }
  0x1b   : > { %vm450_vm0 = vcmask 261120   ;;  %vm453_vm1 = vcmask 257024   ;;  %v4574_v0 = vmov 0.0  }
  0x1c   : > { %451 = vst.msk [vmem:[#allocation2] sm:$0xff] %vm450_vm0, %v4574_v0  ;;  %452 = vst.msk [vmem:[#allocation2 + $0x8] sm:$0xff] %vm450_vm0, %v4574_v0 }
  0x1d   : > { %454 = vst.msk [vmem:[#allocation2 + $0x10] sm:$0xf] %vm453_vm1, %v4574_v0 }
  0x1e PF: > { %v4703_v1 = vld [vmem:[%s4679_s11 + $0x18] sm:$0xff]  ;;  %v4706_v2 = vld [vmem:[%s4679_s11 + $0x24] sm:$0xff]  ;;  %v4714_v5 = vld [vmem:[%s4679_s11 + $0xc] sm:$0xff]  ;;  %s4575_s27 = smov 96   ;;  %vm518_vm2 = vcmask 261120   ;;  %v502_v20 = vlaneseq  ;;  %s4576_s30 = smov 64  }
  0x1f   : > { %v4709_v3 = vld [vmem:[%s4679_s11] sm:$0xff]  ;;  %v3719_v4 = vcombine.low %v4703_v1, %v4706_v2  ;;  %v475_v9 = vld [vmem:[%s5460_s2 + $0x8] sm:$0xff]  ;;  %v476_v14 = vld [vmem:[%s5460_s2 + $0x10] sm:$0xf]  ;;  %vm701_vm3 = vcmask 64512   ;;  %vm765_vm4 = vcmask 162816  }
  0x20   : > { %v474_v8 = vld [vmem:[%s5460_s2] sm:$0xff]  ;;  %v3718_v11 = vcombine.low %v4709_v3, %v4714_v5  ;;  %v4742_v21 = vshrl.u32 %v502_v20, 7  ;;  %vm772_vm5 = vcmask 158720   ;;  %vm808_vm6 = vcmask 1041408   ;;  %s4577_s12 = smov 120   ;;  %s4578_s14 = smov 32  }
  0x21   : > { %579 = vrot.lane.b32.xlu0 %v3719_v4, %s4575_s27  ;;  %3977 = vmatprep.subr.bf16.mxu0 %v3719_v4  ;;  %v4748_v23 = vld [vmem:[%s4689_s15] sm:$0xff]  ;;  %s4579_s21 = smov 112   ;;  %s4580_s23 = smov 104   ;;  %vm1047_vm7 = vcmask 1043456   ;;  %vm1641_vm8 = vcmask 257024   ;;  %vm2039_vm9 = vcmask 523264  }
  0x22   : > { %3978 = vmatpush3.bf16.msra.mxu0 %v3719_v4  ;;  %v4745_v22 = vsub.s32 0, %v4742_v21  ;;  %637 = vrot.lane.b32.xlu1 %v3719_v4, %s4576_s30  ;;  %v4759_v33 = vsub.s32 1, %v4742_v21  ;;  %vm2046_vm10 = vcmask 519168   ;;  %p3804_p8 = scmp.ne.s32.totalorder %s4556_s13, 1 }
  0x23   : > { %v4716_v6 = vld [vmem:[#allocation2] sm:$0xff]  ;;  %v4718_v7 = vld [vmem:[#allocation2 + $0x8] sm:$0xff]  ;;  %3979 = vmatprep.subr.bf16.mxu0 %v3718_v11 }
  0x24   : > { %v4726_v10 = vld [vmem:[#allocation2 + $0x10] sm:$0xf]  ;;  %v495_v12 = vadd.f32 %v474_v8, %v4716_v6  ;;  %v496_v13 = vadd.f32 %v475_v9, %v4718_v7  ;;  %v505_v24 = vrot.slane %v4748_v23, %v4745_v22  ;;  %v576_v34 = vrot.slane %v4748_v23, %v4759_v33 }
  0x25   : > { %v497_v16 = vadd.f32 %v476_v14, %v4726_v10  ;;  %577 = vrot.lane.b32.xlu0 %v3718_v11, %s4575_s27  ;;  %v500_v48 = vpack.c.bf16 %v4718_v7, %v4716_v6  ;;  %v501_v50 = vpack.c.bf16 %v4726_v10, %v4726_v10 }
  0x26   : > { %v498_v15 = vpack.c.bf16 %v496_v13, %v495_v12  ;;  %3980 = vmatpush3.bf16.msra.mxu0 %v3718_v11  ;;  %635 = vrot.lane.b32.xlu1 %v3718_v11, %s4576_s30 }
  0x27   : > { %v499_v17 = vpack.c.bf16 %v497_v16, %v497_v16  ;;  %v4789_v16 = vsub.s32 2, %v4742_v21 }
  0x28   : > { %3989 = vmatprep.mubr.msk.bf16.mxu1 %vm518_vm2, %v498_v15  ;;  %3981 = vmatprep.mubr.msk.bf16.mxu0 %vm518_vm2, %v498_v15 }
  0x29   : > { %3982 = vmatmul.mubr.msk.bf16.vlgmr.msra.gmra.mxu0 %vm518_vm2, %v499_v17 }
  0x2a   : > { %3997 = vmatprep.mubr.msk.bf16.mxu0 %vm518_vm2, %v500_v48 }
  0x93   : > { %v580_v18 = vpop.permute.xlu0 %579 }
  0x94   : > { %3985 = vmatprep.subr.bf16.mxu1 %v580_v18  ;;  %v638_v47 = vpop.permute.xlu1 %637 }
  0x95   : > { %3986 = vmatpush3.bf16.msra.mxu1 %v580_v18  ;;  %3993 = vmatprep.subr.bf16.mxu0 %v638_v47 }
  0x96   : > { %3994 = vmatpush3.bf16.msra.mxu0 %v638_v47 }
  0x97   : > { %v578_v19 = vpop.permute.xlu0 %577 }
  0x98   : > { %3987 = vmatprep.subr.bf16.mxu1 %v578_v19  ;;  %v636_v49 = vpop.permute.xlu1 %635 }
  0x99   : > { %3988 = vmatpush3.bf16.msra.mxu1 %v578_v19  ;;  %3995 = vmatprep.subr.bf16.mxu0 %v636_v49  ;;  %v634_v19 = vrot.slane %v4748_v23, %v4789_v16 }
  0x9a   : > { %3996 = vmatpush3.bf16.msra.mxu0 %v636_v49 }
  0x9c   : > { %3990 = vmatmul.mubr.msk.bf16.vlgmr.msra.gmra.mxu1 %vm518_vm2, %v499_v17 }
  0x9d   : > { %3998 = vmatmul.mubr.msk.bf16.vlgmr.msra.gmra.mxu0 %vm518_vm2, %v501_v50 }
  0xe9   : > { %v3983_v25 = vpop.f32.mrf.mxu0 }
  0xea   : > { %v568_v26 = vadd.f32 %v3983_v25, %v505_v24 }
  0xeb   : > { %v559_v27 = vpop.f32.mrf.mxu0 }
  0xec   : > { %v560_v29 = vadd.f32 %v559_v27, %v505_v24  ;;  %v4775_v46 = vpack.c.bf16 %v568_v26, %v568_v26 }
  0xed   : > { %v3984_v28 = vpop.f32.mrf.mxu0 }
  0xef   : > { %v562_v30 = vpop.f32.mrf.mxu0 }
  0xf0   : > { %v563_v31 = vadd.f32 %v562_v30, %v505_v24 }
  0xf2   : > { %v4752_v32 = vpack.c.bf16 %v563_v31, %v560_v29 }
  0xf4   : > { %4005 = vmatprep.mubr.msk.bf16.mxu1 %vm701_vm3, %v4752_v32 }
 0x15c   : > { %v3991_v35 = vpop.f32.mrf.mxu1 }
 0x15d   : > { %v626_v36 = vadd.f32 %v3991_v35, %v576_v34  ;;  %v3999_v61 = vpop.f32.mrf.mxu0 }
 0x15e   : > { %v617_v37 = vpop.f32.mrf.mxu1  ;;  %v690_v26 = vadd.f32 %v3999_v61, %v634_v19 }
 0x15f   : > { %v4763_v38 = vpack.c.bf16 %v626_v36, %v626_v36  ;;  %v618_v42 = vadd.f32 %v617_v37, %v576_v34  ;;  %v681_v62 = vpop.f32.mrf.mxu0 }
 0x160   : > { %v3992_v39 = vpop.f32.mrf.mxu1  ;;  %v4796_v28 = vpack.c.bf16 %v690_v26, %v690_v26  ;;  %v682_v29 = vadd.f32 %v681_v62, %v634_v19 }
 0x161   : > { %4285 = vmatprep.subr.msk.bf16.mxu1 %vm701_vm3, %v4763_v38  ;;  %v712_v40 = vsel %vm701_vm3, %v4763_v38, 0  ;;  %v4000_v63 = vpop.f32.mrf.mxu0 }
 0x162   : > { %v620_v41 = vpop.f32.mrf.mxu1  ;;  %4002 = vmatpush3.bf16.xpose.msra.mxu1 %v712_v40  ;;  %4287 = vmatprep.subr.msk.bf16.mxu0 %vm808_vm6, %v4796_v28 }
 0x163   : > { %v621_v43 = vadd.f32 %v620_v41, %v576_v34  ;;  %v684_v30 = vpop.f32.mrf.mxu0  ;;  %v810_v34 = vsel %vm808_vm6, %v4796_v28, 0 }
 0x164   : > { %v685_v31 = vadd.f32 %v684_v30, %v634_v19  ;;  %4010 = vmatpush3.bf16.msra.mxu0 %v810_v34 }
 0x165   : > { %v4769_v44 = vpack.c.bf16 %v621_v43, %v618_v42 }
 0x166   : > { %v4802_v35 = vpack.c.bf16 %v685_v31, %v682_v29 }
 0x167   : > { %4286 = vmatprep.subr.msk.bf16.mxu1 %vm701_vm3, %v4769_v44  ;;  %v709_v45 = vsel %vm701_vm3, %v4769_v44, 0 }
 0x168   : > { %4011 = vmatprep.subr.bf16.mxu0 %v4802_v35 }
 0x169   : > { %4012 = vmatpush3.bf16.msra.mxu0 %v4802_v35 }
 0x16a   : > { %4004 = vmatpush3.bf16.xpose.msra.mxu1 %v709_v45 }
 0x171   : > { %4006 = vmatmul.mubr.msk.bf16.vlgmr.msra.gmra.mxu1 %vm701_vm3, %v4775_v46 }
 0x231   : > { %v4007_v51 = vpop.f32.mrf.mxu1 }
 0x232   : > { %v764_v55 = vmul.f32 0.35355338, %v4007_v51 }
 0x233   : > { %v748_v52 = vpop.f32.mrf.mxu1 }
 0x234   : > { %v762_v53 = vmul.f32 0.35355338, %v748_v52  ;;  %v773_v59 = vsel %vm772_vm5, %v764_v55, -inf }
 0x235   : > { %v4008_v54 = vpop.f32.mrf.mxu1 }
 0x236   : > { %v766_v56 = vsel %vm765_vm4, %v762_v53, -inf }
 0x237   : > { %767 = vmax.xlane.f32.xlu0 %v766_v56  ;;  %v751_v57 = vpop.f32.mrf.mxu1 }
 0x238   : > { %v763_v58 = vmul.f32 0.35355338, %v751_v57 }
 0x23a   : > { %v769_v60 = vsel %vm765_vm4, %v763_v58, -inf }
 0x23b   : > { %774 = vmax.xlane.f32.xlu0 %v773_v59  ;;  %770 = vmax.xlane.f32.xlu1 %v769_v60 }
 0x2c0   : > { %v768_v0 = vpop.xlane.xlu0 %767 }
 0x2c1   : > { %v776_v4 = vsub.f32 %v762_v53, %v768_v0 }
 0x2c3   : > { %v779_v8 = vmul.f32 1.442695, %v776_v4 }
 0x2c4   : > { %v775_v9 = vpop.xlane.xlu0 %774  ;;  %v771_v11 = vpop.xlane.xlu1 %770 }
 0x2c5   : > { %4389 = vpow2.f32 %v779_v8  ;;  %v778_v12 = vsub.f32 %v764_v55, %v775_v9  ;;  %v777_v13 = vsub.f32 %v763_v58, %v771_v11 }
 0x2c7   : > { %v783_v14 = vmul.f32 1.442695, %v778_v12  ;;  %v781_v15 = vmul.f32 1.442695, %v777_v13 }
 0x2c9   : > { %4391 = vpow2.f32 %v783_v14 }
 0x2ca   : > { %4393 = vpow2.f32 %v781_v15 }
 0x2d2   : > { %v4390_v17 = vpop.eup %4389 }
 0x2d3   : > { %v785_v18 = vsel %vm765_vm4, %v4390_v17, 0.0 }
 0x2d4   : > { %786 = vadd.xlane.f32.xlu0 %v785_v18 }
 0x2d6   : > { %v4392_v20 = vpop.eup %4391 }
 0x2d7   : > { %v4394_v24 = vpop.eup %4393  ;;  %v791_v25 = vsel %vm772_vm5, %v4392_v20, 0.0 }
 0x2d8   : > { %792 = vadd.xlane.f32.xlu0 %v791_v25  ;;  %v788_v27 = vsel %vm765_vm4, %v4394_v24, 0.0 }
 0x2d9   : > { %789 = vadd.xlane.f32.xlu1 %v788_v27 }
 0x2ea   : > { %872 = vrot.lane.b32.xlu1 %v4763_v38, %s4577_s12 }
 0x2ee   : > { %864 = vrot.lane.b32.xlu1 %v4752_v32, %s4577_s12  ;;  %870 = vrot.lane.b32.xlu0 %v4769_v44, %s4577_s12 }
 0x2f2   : > { %866 = vrot.lane.b32.xlu1 %v4775_v46, %s4577_s12 }
 0x35d   : > { %v787_v36 = vpop.xlane.xlu0 %786 }
 0x35e   : > { %4395 = vrcp.f32 %v787_v36 }
 0x361   : > { %v793_v37 = vpop.xlane.xlu0 %792 }
 0x362   : > { %4397 = vrcp.f32 %v793_v37  ;;  %v790_v39 = vpop.xlane.xlu1 %789  ;;  %v3734_v37 = vcombine.low %v4714_v5, %v4714_v5 }
 0x363   : > { %4399 = vrcp.f32 %v790_v39 }
 0x365   : > { %v871_v53 = vpop.permute.xlu0 %870 }
 0x366   : > { %v873_v40 = vpop.permute.xlu1 %872  ;;  %v881_v54 = vsel %vm701_vm3, %v871_v53, 0 }
 0x367   : > { %4288 = vmatprep.subr.msk.bf16.mxu0 %vm701_vm3, %v873_v40  ;;  %v884_v52 = vsel %vm701_vm3, %v873_v40, 0 }
 0x36a   : > { %v865_v51 = vpop.permute.xlu1 %864 }
 0x36b   : > { %v4396_v41 = vpop.eup %4395 }
 0x36c   : > { %v797_v47 = vmul.f32 %v4396_v41, %v4390_v17 }
 0x36e   : > { %v867_v55 = vpop.permute.xlu1 %866 }
 0x36f   : > { %v4398_v42 = vpop.eup %4397 }
 0x370   : > { %v4400_v43 = vpop.eup %4399  ;;  %v799_v45 = vmul.f32 %v4398_v42, %v4392_v20 }
 0x371   : > { %v798_v48 = vmul.f32 %v4400_v43, %v4394_v24 }
 0x372   : > { %v801_v49 = vpack.c.bf16 %v799_v45, %v799_v45 }
 0x373   : > { %v800_v50 = vpack.c.bf16 %v798_v48, %v797_v47 }
 0x375   : > { %4013 = vmatprep.mubr.msk.bf16.mxu0 %vm765_vm4, %v800_v50 }
 0x376   : > { %4014 = vmatmul.mubr.msk.bf16.vlgmr.msra.gmra.mxu0 %vm765_vm4, %v801_v49 }
 0x377   : > { %4018 = vmatpush3.bf16.xpose.msra.mxu0 %v884_v52  ;;  %4021 = vmatprep.mubr.msk.bf16.mxu0 %vm701_vm3, %v865_v51 }
 0x378   : > { %4289 = vmatprep.subr.msk.bf16.mxu0 %vm701_vm3, %v871_v53 }
 0x37f   : > { %4020 = vmatpush3.bf16.xpose.msra.mxu0 %v881_v54 }
 0x386   : > { %4022 = vmatmul.mubr.msk.bf16.vlgmr.msra.gmra.mxu0 %vm701_vm3, %v867_v55 }
 0x436   : > { %v4822_v56 = vpop.f32.mrf.mxu0 }
 0x438   : > { %v846_v57 = vpop.f32.mrf.mxu0 }
 0x43a   : > { %v4016_v58 = vpop.f32.mrf.mxu0 }
 0x43c   : > { %v849_v59 = vpop.f32.mrf.mxu0 }
 0x43d   : > { %v860_v60 = vpack.c.bf16 %v849_v59, %v846_v57 }
 0x43f   : > { %4041 = vmatprep.mubr.msk.bf16.mxu0 %vm701_vm3, %v860_v60 }
 0x446   : > { %v4023_v61 = vpop.f32.mrf.mxu0 }
 0x447   : > { %v936_v4 = vmul.f32 0.35355338, %v4023_v61 }
 0x448   : > { %v920_v62 = vpop.f32.mrf.mxu0 }
 0x449   : > { %v934_v63 = vmul.f32 0.35355338, %v920_v62  ;;  %v943_v12 = vsel %vm772_vm5, %v936_v4, -inf }
 0x44a   : > { %v4024_v0 = vpop.f32.mrf.mxu0 }
 0x44b   : > { %v937_v8 = vsel %vm765_vm4, %v934_v63, -inf }
 0x44c   : > { %938 = vmax.xlane.f32.xlu0 %v937_v8  ;;  %v923_v9 = vpop.f32.mrf.mxu0 }
 0x44d   : > { %v935_v11 = vmul.f32 0.35355338, %v923_v9 }
 0x44f   : > { %v940_v13 = vsel %vm765_vm4, %v935_v11, -inf }
 0x450   : > { %944 = vmax.xlane.f32.xlu0 %v943_v12  ;;  %941 = vmax.xlane.f32.xlu1 %v940_v13 }
 0x4d5   : > { %v939_v14 = vpop.xlane.xlu0 %938 }
 0x4d6   : > { %v946_v15 = vsub.f32 %v934_v63, %v939_v14 }
 0x4d8   : > { %v949_v24 = vmul.f32 1.442695, %v946_v15 }
 0x4d9   : > { %v945_v17 = vpop.xlane.xlu0 %944  ;;  %v942_v18 = vpop.xlane.xlu1 %941 }
 0x4da   : > { %v948_v19 = vsub.f32 %v936_v4, %v945_v17  ;;  %v947_v20 = vsub.f32 %v935_v11, %v942_v18 }
 0x4dc   : > { %v953_v25 = vmul.f32 1.442695, %v948_v19  ;;  %v951_v26 = vmul.f32 1.442695, %v947_v20 }
 0x4de   : > { %4401 = vpow2.f32 %v953_v25 }
 0x4df   : > { %4403 = vpow2.f32 %v951_v26 }
 0x4e0   : > { %4405 = vpow2.f32 %v949_v24 }
 0x4eb   : > { %v4402_v27 = vpop.eup %4401 }
 0x4ec   : > { %v4404_v29 = vpop.eup %4403  ;;  %v961_v30 = vsel %vm772_vm5, %v4402_v27, 0.0 }
 0x4ed   : > { %v4406_v31 = vpop.eup %4405  ;;  %962 = vadd.xlane.f32.xlu0 %v961_v30  ;;  %v958_v34 = vsel %vm765_vm4, %v4404_v29, 0.0 }
 0x4ee   : > { %959 = vadd.xlane.f32.xlu1 %v958_v34  ;;  %v955_v36 = vsel %vm765_vm4, %v4406_v31, 0.0 }
 0x4f1   : > { %956 = vadd.xlane.f32.xlu0 %v955_v36 }
 0x4ff   : > { %976 = vrot.lane.b32.xlu1 %v4796_v28, %s4577_s12 }
 0x503   : > { %1039 = vrot.lane.b32.xlu1 %v3734_v37, %s4578_s14 }
 0x507   : > { %1165 = vrot.lane.b32.xlu1 %v4763_v38, %s4579_s21  ;;  %974 = vrot.lane.b32.xlu0 %v4802_v35, %s4577_s12 }
 0x50b   : > { %1159 = vrot.lane.b32.xlu1 %v4752_v32, %s4579_s21  ;;  %1163 = vrot.lane.b32.xlu0 %v4769_v44, %s4579_s21 }
 0x50f   : > { %1398 = vrot.lane.b32.xlu1 %v4763_v38, %s4580_s23  ;;  %1161 = vrot.lane.b32.xlu0 %v4775_v46, %s4579_s21 }
 0x513   : > { %1392 = vrot.lane.b32.xlu1 %v4752_v32, %s4580_s23  ;;  %1396 = vrot.lane.b32.xlu0 %v4769_v44, %s4580_s23 }
 0x517   : > { %1394 = vrot.lane.b32.xlu0 %v4775_v46, %s4580_s23 }
 0x576   : > { %v963_v39 = vpop.xlane.xlu0 %962 }
 0x577   : > { %v960_v40 = vpop.xlane.xlu1 %959  ;;  %4407 = vrcp.f32 %v963_v39 }
 0x578   : > { %4409 = vrcp.f32 %v960_v40 }
 0x57a   : > { %v957_v41 = vpop.xlane.xlu0 %956 }
 0x57b   : > { %4411 = vrcp.f32 %v957_v41  ;;  %v977_v42 = vpop.permute.xlu1 %976 }
 0x57c   : > { %4290 = vmatprep.subr.msk.bf16.mxu1 %vm808_vm6, %v977_v42  ;;  %v986_v38 = vsel %vm808_vm6, %v977_v42, 0 }
 0x57d   : > { %4026 = vmatpush3.bf16.msra.mxu1 %v986_v38 }
 0x57e   : > { %v975_v43 = vpop.permute.xlu0 %974 }
 0x57f   : > { %4027 = vmatprep.subr.bf16.mxu1 %v975_v43  ;;  %v1040_v32 = vpop.permute.xlu1 %1039 }
 0x580   : > { %v1049_v52 = vsel %vm1047_vm7, %v1040_v32, 0 }
 0x581   : > { %4028 = vmatpush3.bf16.msra.mxu1 %v975_v43 }
 0x582   : > { %4291 = vmatprep.subr.msk.bf16.mxu1 %vm1047_vm7, %v1040_v32  ;;  %v1164_v63 = vpop.permute.xlu0 %1163 }
 0x583   : > { %v1166_v53 = vpop.permute.xlu1 %1165  ;;  %v1174_v0 = vsel %vm701_vm3, %v1164_v63, 0 }
 0x584   : > { %v4408_v44 = vpop.eup %4407  ;;  %v1177_v62 = vsel %vm701_vm3, %v1166_v53, 0 }
 0x585   : > { %v4410_v46 = vpop.eup %4409  ;;  %v969_v47 = vmul.f32 %v4408_v44, %v4402_v27 }
 0x586   : > { %v968_v49 = vmul.f32 %v4410_v46, %v4404_v29  ;;  %v1162_v8 = vpop.permute.xlu0 %1161 }
 0x587   : > { %v971_v51 = vpack.c.bf16 %v969_v47, %v969_v47  ;;  %v1160_v61 = vpop.permute.xlu1 %1159 }
 0x588   : > { %v4412_v45 = vpop.eup %4411 }
 0x589   : > { %v967_v48 = vmul.f32 %v4412_v45, %v4406_v31 }
 0x58a   : > { %v1397_v12 = vpop.permute.xlu0 %1396 }
 0x58b   : > { %v970_v50 = vpack.c.bf16 %v968_v49, %v967_v48  ;;  %v1399_v4 = vpop.permute.xlu1 %1398  ;;  %v1407_v13 = vsel %vm701_vm3, %v1397_v12, 0 }
 0x58c   : > { %v1410_v11 = vsel %vm701_vm3, %v1399_v4, 0 }
 0x58d   : > { %4029 = vmatprep.mubr.msk.bf16.mxu1 %vm765_vm4, %v970_v50 }
 0x58e   : > { %4030 = vmatmul.mubr.msk.bf16.vlgmr.msra.gmra.mxu1 %vm765_vm4, %v971_v51  ;;  %v1395_v14 = vpop.permute.xlu0 %1394 }
 0x58f   : > { %4034 = vmatpush3.bf16.msra.mxu1 %v1049_v52  ;;  %v1393_v9 = vpop.permute.xlu1 %1392 }
 0x590   : > { %4293 = vmatprep.subr.msk.bf16.mxu1 %vm701_vm3, %v1166_v53 }
 0x64e   : > { %v4031_v54 = vpop.f32.mrf.mxu1 }
 0x64f   : > { %v1037_v60 = vpack.c.bf16 %v4031_v54, %v4031_v54  ;;  %v3737_v54 = vcombine.low %v4709_v3, %v4709_v3 }
 0x650   : > { %v1022_v55 = vpop.f32.mrf.mxu1 }
 0x652   : > { %v4032_v57 = vpop.f32.mrf.mxu1 }
 0x654   : > { %v1025_v58 = vpop.f32.mrf.mxu1 }
 0x655   : > { %v1036_v59 = vpack.c.bf16 %v1025_v58, %v1022_v55 }
 0x657   : > { %4035 = vmatprep.mubr.msk.bf16.mxu1 %vm701_vm3, %v1036_v59 }
 0x658   : > { %4036 = vmatmul.mubr.msk.bf16.vlgmr.msra.gmra.mxu1 %vm701_vm3, %v1037_v60 }
 0x659   : > { %4046 = vmatpush3.bf16.xpose.msra.mxu1 %v1177_v62  ;;  %4049 = vmatprep.mubr.msk.bf16.mxu1 %vm701_vm3, %v1160_v61 }
 0x65a   : > { %4294 = vmatprep.subr.msk.bf16.mxu1 %vm701_vm3, %v1164_v63  ;;  %v3744_v63 = vcombine.low %v4703_v1, %v4703_v1 }
 0x661   : > { %4048 = vmatpush3.bf16.xpose.msra.mxu1 %v1174_v0 }
 0x662   : > { %4297 = vmatprep.subr.msk.bf16.mxu1 %vm701_vm3, %v1399_v4 }
 0x668   : > { %4050 = vmatmul.mubr.msk.bf16.vlgmr.msra.gmra.mxu1 %vm701_vm3, %v1162_v8 }
 0x669   : > { %4068 = vmatpush3.bf16.xpose.msra.mxu1 %v1410_v11  ;;  %4071 = vmatprep.mubr.msk.bf16.mxu1 %vm701_vm3, %v1393_v9  ;;  %v861_v11 = vpack.c.bf16 %v4822_v56, %v4822_v56 }
 0x66a   : > { %4298 = vmatprep.subr.msk.bf16.mxu1 %vm701_vm3, %v1397_v12 }
 0x671   : > { %4070 = vmatpush3.bf16.xpose.msra.mxu1 %v1407_v13 }
 0x678   : > { %4072 = vmatmul.mubr.msk.bf16.vlgmr.msra.gmra.mxu1 %vm701_vm3, %v1395_v14 }
 0x718   : > { %v4874_v15 = vpop.f32.mrf.mxu1 }
 0x71a   : > { %v4876_v17 = vpop.f32.mrf.mxu1 }
 0x71c   : > { %v4038_v18 = vpop.f32.mrf.mxu1 }
 0x71e   : > { %v4878_v19 = vpop.f32.mrf.mxu1 }
 0x728   : > { %v4051_v20 = vpop.f32.mrf.mxu1 }
 0x729   : > { %v1229_v31 = vmul.f32 0.35355338, %v4051_v20 }
 0x72a   : > { %v1213_v24 = vpop.f32.mrf.mxu1 }
 0x72b   : > { %v1227_v25 = vmul.f32 0.35355338, %v1213_v24  ;;  %v1236_v36 = vsel %vm772_vm5, %v1229_v31, -inf }
 0x72c   : > { %v4052_v26 = vpop.f32.mrf.mxu1 }
 0x72d   : > { %v1230_v27 = vsel %vm765_vm4, %v1227_v25, -inf }
 0x72e   : > { %1231 = vmax.xlane.f32.xlu1 %v1230_v27  ;;  %v1216_v29 = vpop.f32.mrf.mxu1 }
 0x72f   : > { %v1228_v30 = vmul.f32 0.35355338, %v1216_v29 }
 0x731   : > { %v1233_v34 = vsel %vm765_vm4, %v1228_v30, -inf }
 0x732   : > { %1234 = vmax.xlane.f32.xlu0 %v1233_v34 }
 0x736   : > { %1237 = vmax.xlane.f32.xlu0 %v1236_v36 }
 0x738   : > { %v4073_v37 = vpop.f32.mrf.mxu1 }
 0x739   : > { %v1462_v57 = vmul.f32 0.35355338, %v4073_v37 }
 0x73a   : > { %v1446_v39 = vpop.f32.mrf.mxu1 }
 0x73b   : > { %v1460_v55 = vmul.f32 0.35355338, %v1446_v39  ;;  %v1469_v59 = vsel %vm772_vm5, %v1462_v57, -inf }
 0x73c   : > { %v4074_v40 = vpop.f32.mrf.mxu1 }
 0x73d   : > { %v1463_v58 = vsel %vm765_vm4, %v1460_v55, -inf }
 0x73e   : > { %v1449_v60 = vpop.f32.mrf.mxu1 }
 0x73f   : > { %v1461_v61 = vmul.f32 0.35355338, %v1449_v60 }
 0x741   : > { %v1466_v62 = vsel %vm765_vm4, %v1461_v61, -inf }
 0x7b7   : > { %v1232_v41 = vpop.xlane.xlu1 %1231 }
 0x7b8   : > { %v1239_v43 = vsub.f32 %v1227_v25, %v1232_v41 }
 0x7ba   : > { %v1242_v45 = vmul.f32 1.442695, %v1239_v43 }
 0x7bb   : > { %v1235_v42 = vpop.xlane.xlu0 %1234 }
 0x7bc   : > { %v1240_v38 = vsub.f32 %v1228_v30, %v1235_v42 }
 0x7be   : > { %v1244_v32 = vmul.f32 1.442695, %v1240_v38 }
 0x7bf   : > { %v1238_v44 = vpop.xlane.xlu0 %1237 }
 0x7c0   : > { %4413 = vpow2.f32 %v1244_v32  ;;  %v1241_v46 = vsub.f32 %v1229_v31, %v1238_v44 }
 0x7c2   : > { %v1246_v47 = vmul.f32 1.442695, %v1241_v46 }
 0x7c4   : > { %4415 = vpow2.f32 %v1246_v47 }
 0x7c5   : > { %4417 = vpow2.f32 %v1242_v45 }
 0x7cd   : > { %v4414_v48 = vpop.eup %4413 }
 0x7ce   : > { %v1251_v49 = vsel %vm765_vm4, %v4414_v48, 0.0 }
 0x7cf   : > { %1252 = vadd.xlane.f32.xlu0 %v1251_v49 }
 0x7d1   : > { %v4416_v50 = vpop.eup %4415 }
 0x7d2   : > { %v1254_v51 = vsel %vm772_vm5, %v4416_v50, 0.0  ;;  %v4418_v52 = vpop.eup %4417 }
 0x7d3   : > { %1255 = vadd.xlane.f32.xlu1 %v1254_v51  ;;  %v1248_v53 = vsel %vm765_vm4, %v4418_v52, 0.0 }
 0x7d7   : > { %1249 = vadd.xlane.f32.xlu1 %v1248_v53 }
 0x7e5   : > { %1100 = vrot.lane.b32.xlu0 %v3737_v54, %s4578_s14 }
 0x7e8   : > { %1267 = vrot.lane.b32.xlu1 %v4796_v28, %s4579_s21 }
 0x7ec   : > { %1265 = vrot.lane.b32.xlu1 %v4802_v35, %s4579_s21 }
 0x804   : > { %1464 = vmax.xlane.f32.xlu0 %v1463_v58 }
 0x808   : > { %1470 = vmax.xlane.f32.xlu0 %v1469_v59 }
 0x810   : > { %1467 = vmax.xlane.f32.xlu1 %v1466_v62 }
 0x821   : > { %1330 = vrot.lane.b32.xlu1 %v3744_v63, %s4578_s14 }
 0x858   : > { %v1253_v0 = vpop.xlane.xlu0 %1252 }
 0x85c   : > { %v1101_v4 = vpop.permute.xlu0 %1100  ;;  %v1256_v8 = vpop.xlane.xlu1 %1255 }
 0x85d   : > { %v1109_v9 = vsel %vm1047_vm7, %v1101_v4, 0  ;;  %4292 = vmatprep.subr.msk.bf16.mxu0 %vm1047_vm7, %v1101_v4  ;;  %4419 = vrcp.f32 %v1256_v8 }
 0x85e   : > { %4040 = vmatpush3.bf16.msra.mxu0 %v1109_v9  ;;  %4421 = vrcp.f32 %v1253_v0 }
 0x860   : > { %v1250_v12 = vpop.xlane.xlu1 %1249 }
 0x861   : > { %4423 = vrcp.f32 %v1250_v12  ;;  %4042 = vmatmul.mubr.msk.bf16.vlgmr.msra.gmra.mxu0 %vm701_vm3, %v861_v11 }
 0x864   : > { %v1268_v13 = vpop.permute.xlu1 %1267 }
 0x865   : > { %v1277_v14 = vsel %vm808_vm6, %v1268_v13, 0  ;;  %4295 = vmatprep.subr.msk.bf16.mxu0 %vm808_vm6, %v1268_v13 }
 0x866   : > { %4054 = vmatpush3.bf16.msra.mxu0 %v1277_v14 }
 0x868   : > { %v1266_v18 = vpop.permute.xlu1 %1265 }
 0x869   : > { %4055 = vmatprep.subr.bf16.mxu0 %v1266_v18 }
 0x86a   : > { %4056 = vmatpush3.bf16.msra.mxu0 %v1266_v18  ;;  %v4420_v20 = vpop.eup %4419 }
 0x86b   : > { %v4422_v24 = vpop.eup %4421  ;;  %v1262_v26 = vmul.f32 %v4420_v20, %v4416_v50  ;;  %v3751_v50 = vcombine.low %v4706_v2, %v4706_v2 }
 0x86c   : > { %v1261_v56 = vmul.f32 %v4422_v24, %v4414_v48 }
 0x86d   : > { %v1264_v30 = vpack.c.bf16 %v1262_v26, %v1262_v26 }
 0x86e   : > { %v4424_v25 = vpop.eup %4423 }
 0x86f   : > { %v1260_v27 = vmul.f32 %v4424_v25, %v4418_v52 }
 0x871   : > { %v1263_v29 = vpack.c.bf16 %v1261_v56, %v1260_v27 }
 0x873   : > { %4057 = vmatprep.mubr.msk.bf16.mxu0 %vm765_vm4, %v1263_v29 }
 0x874   : > { %4058 = vmatmul.mubr.msk.bf16.vlgmr.msra.gmra.mxu0 %vm765_vm4, %v1264_v30 }
 0x88d   : > { %v1465_v31 = vpop.xlane.xlu0 %1464 }
 0x88e   : > { %v1472_v34 = vsub.f32 %v1460_v55, %v1465_v31 }
 0x890   : > { %v1475_v39 = vmul.f32 1.442695, %v1472_v34 }
 0x891   : > { %v1471_v36 = vpop.xlane.xlu0 %1470 }
 0x892   : > { %v1474_v37 = vsub.f32 %v1462_v57, %v1471_v36 }
 0x894   : > { %v1479_v40 = vmul.f32 1.442695, %v1474_v37 }
 0x896   : > { %4425 = vpow2.f32 %v1479_v40 }
 0x897   : > { %4427 = vpow2.f32 %v1475_v39 }
 0x899   : > { %v1468_v41 = vpop.xlane.xlu1 %1467 }
 0x89a   : > { %v1473_v42 = vsub.f32 %v1461_v61, %v1468_v41 }
 0x89c   : > { %v1477_v38 = vmul.f32 1.442695, %v1473_v42 }
 0x89d   : > { %v1331_v43 = vpop.permute.xlu1 %1330 }
 0x89e   : > { %4429 = vpow2.f32 %v1477_v38  ;;  %v1339_v32 = vsel %vm1047_vm7, %v1331_v43, 0  ;;  %4296 = vmatprep.subr.msk.bf16.mxu0 %vm1047_vm7, %v1331_v43 }
 0x89f   : > { %4062 = vmatpush3.bf16.msra.mxu0 %v1339_v32 }
 0x8a3   : > { %v4426_v44 = vpop.eup %4425 }
 0x8a4   : > { %v1487_v46 = vsel %vm772_vm5, %v4426_v44, 0.0  ;;  %v4428_v45 = vpop.eup %4427 }
 0x8a5   : > { %1488 = vadd.xlane.f32.xlu0 %v1487_v46  ;;  %v1481_v47 = vsel %vm765_vm4, %v4428_v45, 0.0 }
 0x8a9   : > { %1482 = vadd.xlane.f32.xlu0 %v1481_v47 }
 0x8ab   : > { %v4430_v48 = vpop.eup %4429 }
 0x8ac   : > { %v1484_v49 = vsel %vm765_vm4, %v4430_v48, 0.0 }
 0x8ad   : > { %1485 = vadd.xlane.f32.xlu1 %v1484_v49 }
 0x8be   : > { %1498 = vrot.lane.b32.xlu1 %v4802_v35, %s4580_s23 }
 0x8bf   : > { %1500 = vrot.lane.b32.xlu0 %v4796_v28, %s4580_s23 }
 0x8c2   : > { %1563 = vrot.lane.b32.xlu1 %v3751_v50, %s4578_s14 }
 0x921   : > { %v4043_v51 = vpop.f32.mrf.mxu0 }
 0x922   : > { %v1154_v26 = vadd.f32 %v4043_v51, %v4874_v15  ;;  %v3755_v15 = vcombine.high %v4703_v1, %v4706_v2 }
 0x923   : > { %v1145_v52 = vpop.f32.mrf.mxu0 }
 0x924   : > { %v1146_v56 = vadd.f32 %v1145_v52, %v4876_v17  ;;  %4089 = vmatprep.subr.bf16.mxu1 %v3755_v15  ;;  %v3754_v17 = vcombine.high %v4709_v3, %v4714_v5 }
 0x925   : > { %v4044_v53 = vpop.f32.mrf.mxu0  ;;  %4090 = vmatpush3.bf16.msra.mxu1 %v3755_v15 }
 0x926   : > { %4091 = vmatprep.subr.bf16.mxu1 %v3754_v17 }
 0x927   : > { %v1148_v55 = vpop.f32.mrf.mxu0 }
 0x928   : > { %v1149_v36 = vadd.f32 %v1148_v55, %v4878_v19  ;;  %v4938_v19 = vsub.s32 3, %v4742_v21 }
 0x929   : > { %4092 = vmatpush3.bf16.msra.mxu1 %v3754_v17 }
 0x92e   : > { %v1489_v54 = vpop.xlane.xlu0 %1488 }
 0x92f   : > { %4431 = vrcp.f32 %v1489_v54 }
 0x932   : > { %v1483_v57 = vpop.xlane.xlu0 %1482 }
 0x933   : > { %4433 = vrcp.f32 %v1483_v57 }
 0x934   : > { %v4059_v58 = vpop.f32.mrf.mxu0 }
 0x935   : > { %v1328_v63 = vpack.c.bf16 %v4059_v58, %v4059_v58 }
 0x936   : > { %v1501_v59 = vpop.permute.xlu0 %1500  ;;  %v1313_v60 = vpop.f32.mrf.mxu0 }
 0x937   : > { %v1486_v35 = vpop.xlane.xlu1 %1485  ;;  %4299 = vmatprep.subr.msk.bf16.mxu0 %vm808_vm6, %v1501_v59  ;;  %v1510_v0 = vsel %vm808_vm6, %v1501_v59, 0 }
 0x938   : > { %4435 = vrcp.f32 %v1486_v35  ;;  %v4060_v28 = vpop.f32.mrf.mxu0  ;;  %v4970_v35 = vld [vmem:[%s4674_s25 + $0x8] sm:$0xff] }
 0x939   : > { %v466_v28 = vld [vmem:[%s5459_s1] sm:$0xff] }
 0x93a   : > { %v1316_v61 = vpop.f32.mrf.mxu0 }
 0x93b   : > { %v1327_v62 = vpack.c.bf16 %v1316_v61, %v1313_v60  ;;  %v1499_v4 = vpop.permute.xlu1 %1498  ;;  %v4967_v60 = vld [vmem:[%s4674_s25] sm:$0xff]  ;;  %v467_v61 = vld [vmem:[%s5459_s1 + $0x8] sm:$0xff] }
 0x93c   : > { %v4432_v8 = vpop.eup %4431 }
 0x93d   : > { %4063 = vmatprep.mubr.msk.bf16.mxu0 %vm701_vm3, %v1327_v62  ;;  %v1495_v12 = vmul.f32 %v4432_v8, %v4426_v44  ;;  %v1628_v44 = vrot.slane %v4748_v23, %v4938_v19  ;;  %v1704_v62 = vadd.f32 %v466_v28, %v4967_v60 }
 0x93e   : > { %4064 = vmatmul.mubr.msk.bf16.vlgmr.msra.gmra.mxu0 %vm701_vm3, %v1328_v63  ;;  %v1705_v63 = vadd.f32 %v467_v61, %v4970_v35 }
 0x93f   : > { %4076 = vmatpush3.bf16.msra.mxu0 %v1510_v0  ;;  %v1497_v20 = vpack.c.bf16 %v1495_v12, %v1495_v12  ;;  %v1564_v24 = vpop.permute.xlu1 %1563 }
 0x940   : > { %4077 = vmatprep.subr.bf16.mxu0 %v1499_v4  ;;  %v4434_v9 = vpop.eup %4433  ;;  %v1572_v25 = vsel %vm1047_vm7, %v1564_v24, 0  ;;  %v1712_v0 = vpack.c.bf16 %v1705_v63, %v1704_v62 }
 0x941   : > { %v1493_v13 = vmul.f32 %v4434_v9, %v4428_v45 }
 0x943   : > { %4078 = vmatpush3.bf16.msra.mxu0 %v1499_v4 }
 0x944   : > { %4300 = vmatprep.subr.msk.bf16.mxu0 %vm1047_vm7, %v1564_v24 }
 0x945   : > { %v4436_v11 = vpop.eup %4435 }
 0x946   : > { %v1494_v14 = vmul.f32 %v4436_v11, %v4430_v48 }
 0x948   : > { %v1496_v18 = vpack.c.bf16 %v1494_v14, %v1493_v13 }
 0x94a   : > { %4079 = vmatprep.mubr.msk.bf16.mxu0 %vm765_vm4, %v1496_v18 }
 0x94b   : > { %4080 = vmatmul.mubr.msk.bf16.vlgmr.msra.gmra.mxu0 %vm765_vm4, %v1497_v20 }
 0x94c   : > { %4084 = vmatpush3.bf16.msra.mxu0 %v1572_v25 }
 0x9fe   : > { %v4065_v27 = vpop.f32.mrf.mxu0 }
 0x9ff   : > { %v1391_v29 = vadd.f32 %v4065_v27, %v1154_v26 }
 0xa00   : > { %v1375_v30 = vpop.f32.mrf.mxu0 }
 0xa01   : > { %v1389_v31 = vadd.f32 %v1375_v30, %v1146_v56  ;;  %v4986_v30 = vld [vmem:[%s4674_s25 + $0x10] sm:$0xff] }
 0xa02   : > { %v4066_v34 = vpop.f32.mrf.mxu0 }
 0xa04   : > { %v1378_v37 = vpop.f32.mrf.mxu0 }
 0xa05   : > { %v1390_v39 = vadd.f32 %v1378_v37, %v1149_v36  ;;  %v468_v36 = vld [vmem:[%s5459_s1 + $0x10] sm:$0xff]  ;;  %v469_v37 = vld [vmem:[%s5459_s1 + $0x18] sm:$0xff] }
 0xa0b   : > { %v4081_v40 = vpop.f32.mrf.mxu0 }
 0xa0c   : > { %v1561_v32 = vpack.c.bf16 %v4081_v40, %v4081_v40 }
 0xa0d   : > { %v1546_v41 = vpop.f32.mrf.mxu0 }
 0xa0f   : > { %v4082_v42 = vpop.f32.mrf.mxu0 }
 0xa11   : > { %v1549_v38 = vpop.f32.mrf.mxu0 }
 0xa12   : > { %v1560_v43 = vpack.c.bf16 %v1549_v38, %v1546_v41  ;;  %v5001_v38 = vld [vmem:[%s4674_s25 + $0x28] sm:$0xff] }
 0xa14   : > { %4085 = vmatprep.mubr.msk.bf16.mxu0 %vm701_vm3, %v1560_v43  ;;  %v470_v43 = vld [vmem:[%s5459_s1 + $0x20] sm:$0xff] }
 0xa15   : > { %4086 = vmatmul.mubr.msk.bf16.vlgmr.msra.gmra.mxu0 %vm701_vm3, %v1561_v32  ;;  %v471_v32 = vld [vmem:[%s5459_s1 + $0x28] sm:$0xff] }
 0xa16   : > { %4101 = vmatprep.mubr.msk.bf16.mxu0 %vm518_vm2, %v1712_v0 }
 0xad5   : > { %v4087_v46 = vpop.f32.mrf.mxu0 }
 0xad6   : > { %v1624_v45 = vadd.f32 %v4087_v46, %v1391_v29  ;;  %v1706_v46 = vadd.f32 %v468_v36, %v4986_v30 }
 0xad7   : > { %v1608_v47 = vpop.f32.mrf.mxu0 }
 0xad8   : > { %v1631_v48 = vadd.f32 %v1628_v44, %v1624_v45  ;;  %v1622_v49 = vadd.f32 %v1608_v47, %v1389_v31  ;;  %v4989_v31 = vld [vmem:[%s4674_s25 + $0x18] sm:$0xff] }
 0xad9   : > { %v4088_v50 = vpop.f32.mrf.mxu0  ;;  %v1707_v45 = vadd.f32 %v469_v37, %v4989_v31 }
 0xada   : > { %v4943_v1 = vadd.f32 %v1631_v48, %v4726_v10  ;;  %v1629_v2 = vadd.f32 %v1628_v44, %v1622_v49  ;;  %v1709_v49 = vadd.f32 %v471_v32, %v5001_v38 }
 0xadb   : > { %v1611_v3 = vpop.f32.mrf.mxu0 }
 0xadc   : > { %v4946_v5 = vadd.f32 %v1629_v2, %v4716_v6  ;;  %v1623_v51 = vadd.f32 %v1611_v3, %v1390_v39  ;;  %v1642_v52 = vsel %vm1641_vm8, %v4943_v1, 0.0  ;;  %v1651_v23 = vmul.f32 %v4943_v1, %v4943_v1  ;;  %v4998_v39 = vld [vmem:[%s4674_s25 + $0x20] sm:$0xff] }
 0xadd   : > { %1643 = vadd.xlane.f32.xlu0 %v1642_v52  ;;  %v1708_v48 = vadd.f32 %v470_v43, %v4998_v39  ;;  %v5014_v52 = vld [vmem:[%s4674_s25 + $0x30] sm:$0xff] }
 0xade   : > { %v1630_v53 = vadd.f32 %v1628_v44, %v1623_v51  ;;  %v1658_v54 = vsel %vm1641_vm8, %v1651_v23, 0.0  ;;  %v1635_v6 = vsel %vm518_vm2, %v4946_v5, 0.0  ;;  %v1649_v55 = vmul.f32 %v4946_v5, %v4946_v5 }
 0xadf   : > { %1659 = vadd.xlane.f32.xlu1 %v1658_v54  ;;  %v1713_v51 = vpack.c.bf16 %v1707_v45, %v1706_v46  ;;  %v1714_v23 = vpack.c.bf16 %v1709_v49, %v1708_v48  ;;  %v472_v54 = vld [vmem:[%s5459_s1 + $0x30] sm:$0xff] }
 0xae0   : > { %v4954_v10 = vadd.f32 %v1630_v53, %v4718_v7  ;;  %v1652_v59 = vsel %vm518_vm2, %v1649_v55, 0.0  ;;  %v5017_v53 = vld [vmem:[%s4674_s25 + $0x38] sm:$0xff]  ;;  %v494_v55 = vld [vmem:[%s4689_s15 + $0x8] sm:$0xff] }
 0xae1   : > { %1636 = vadd.xlane.f32.xlu0 %v1635_v6  ;;  %v473_v6 = vld [vmem:[%s5459_s1 + $0x38] sm:$0xff]  ;;  %v1695_v61 = vrot.slane %v494_v55, %v4938_v19 }
 0xae2   : > { %v1638_v57 = vsel %vm518_vm2, %v4954_v10, 0.0  ;;  %v1650_v58 = vmul.f32 %v4954_v10, %v4954_v10 }
 0xae3   : > { %1639 = vadd.xlane.f32.xlu1 %v1638_v57  ;;  %v1710_v57 = vadd.f32 %v472_v54, %v5014_v52 }
 0xae4   : > { %v1655_v7 = vsel %vm518_vm2, %v1650_v58, 0.0  ;;  %v1711_v58 = vadd.f32 %v473_v6, %v5017_v53  ;;  %v5074_v6 = vsub.s32 4, %v4742_v21 }
 0xae5   : > { %1653 = vadd.xlane.f32.xlu0 %v1652_v59  ;;  %v1688_v59 = vrot.slane %v494_v55, %v4789_v16 }
 0xae6   : > { %v1715_v63 = vpack.c.bf16 %v1711_v58, %v1710_v57 }
 0xae7   : > { %1656 = vadd.xlane.f32.xlu1 %v1655_v7 }
 0xaf8   : > { %1790 = vrot.lane.b32.xlu1 %v3754_v17, %s4575_s27 }
 0xafb   : > { %1792 = vrot.lane.b32.xlu0 %v3755_v15, %s4575_s27 }
 0xafc   : > { %1877 = vrot.lane.b32.xlu1 %v3754_v17, %s4576_s30 }
 0xaff   : > { %1879 = vrot.lane.b32.xlu0 %v3755_v15, %s4576_s30 }
 0xb66   : > { %v1644_v4 = vpop.xlane.xlu0 %1643 }
 0xb67   : > { %v1648_v8 = vmul.f32 0.03125, %v1644_v4 }
 0xb68   : > { %v1660_v9 = vpop.xlane.xlu1 %1659 }
 0xb69   : > { %v1666_v11 = vmul.f32 %v1648_v8, %v1648_v8  ;;  %v1663_v12 = vmul.f32 0.03125, %v1660_v9  ;;  %v1675_v7 = vsub.f32 %v4943_v1, %v1648_v8 }
 0xb6a   : > { %v1637_v13 = vpop.xlane.xlu0 %1636 }
 0xb6b   : > { %v1669_v14 = vsub.f32 %v1663_v12, %v1666_v11  ;;  %v1646_v18 = vmul.f32 0.03125, %v1637_v13 }
 0xb6c   : > { %v1640_v20 = vpop.xlane.xlu1 %1639 }
 0xb6d   : > { %v1672_v24 = vmax.f32 %v1669_v14, 0.0  ;;  %v1647_v25 = vmul.f32 0.03125, %v1640_v20  ;;  %v1664_v56 = vmul.f32 %v1646_v18, %v1646_v18  ;;  %v1673_v4 = vsub.f32 %v4946_v5, %v1646_v18  ;;  %v4503_v5 = vld [vmem:[%s5460_s2 + $0x10] sm:$0xf] }
 0xb6e   : > { %v1654_v26 = vpop.xlane.xlu0 %1653 }
 0xb6f   : > { %v1678_v27 = vadd.f32 1e-05, %v1672_v24  ;;  %v1661_v29 = vmul.f32 0.03125, %v1654_v26  ;;  %v1665_v40 = vmul.f32 %v1647_v25, %v1647_v25  ;;  %v1674_v12 = vsub.f32 %v4954_v10, %v1647_v25  ;;  %v4504_v10 = vld [vmem:[%s5460_s2] sm:$0xff] }
 0xb70   : > { %v1657_v34 = vpop.xlane.xlu1 %1656 }
 0xb71   : > { %4437 = vrsqrt.f32 %v1678_v27  ;;  %v1667_v41 = vsub.f32 %v1661_v29, %v1664_v56  ;;  %v1662_v42 = vmul.f32 0.03125, %v1657_v34  ;;  %v4505_v27 = vld [vmem:[%s5460_s2 + $0x8] sm:$0xff] }
 0xb72   : > { %v1793_v15 = vpop.permute.xlu0 %1792 }
 0xb73   : > { %v1670_v17 = vmax.f32 %v1667_v41, 0.0  ;;  %v1668_v44 = vsub.f32 %v1662_v42, %v1665_v40  ;;  %4097 = vmatprep.subr.bf16.mxu0 %v1793_v15  ;;  %v1788_v42 = vsub.s32 5, %v4742_v21 }
 0xb74   : > { %4098 = vmatpush3.bf16.msra.mxu0 %v1793_v15  ;;  %v1791_v47 = vpop.permute.xlu1 %1790  ;;  %v5058_v15 = vld [vmem:[%s4689_s15] sm:$0xff] }
 0xb75   : > { %v1676_v50 = vadd.f32 1e-05, %v1670_v17  ;;  %v1671_v2 = vmax.f32 %v1668_v44, 0.0  ;;  %4099 = vmatprep.subr.bf16.mxu0 %v1791_v47  ;;  %v1789_v17 = vrot.slane %v5058_v15, %v1788_v42 }
 0xb77   : > { %4439 = vrsqrt.f32 %v1676_v50  ;;  %v1677_v3 = vadd.f32 1e-05, %v1671_v2 }
 0xb78   : > { %4100 = vmatpush3.bf16.msra.mxu0 %v1791_v47 }
 0xb79   : > { %4441 = vrsqrt.f32 %v1677_v3 }
 0xb7b   : > { %4102 = vmatmul.mubr.msk.bf16.vlgmr.msra.gmra.mxu0 %vm518_vm2, %v1713_v51 }
 0xb7c   : > { %4105 = vmatprep.mubr.msk.bf16.mxu0 %vm518_vm2, %v1714_v23 }
 0xb7e   : > { %v4438_v28 = vpop.eup %4437 }
 0xb7f   : > { %v1684_v62 = vmul.f32 %v4438_v28, %v1675_v7  ;;  %v1723_v7 = vrot.slane %v5058_v15, %v5074_v6 }
 0xb81   : > { %v1691_v0 = vmul.f32 %v1688_v59, %v1684_v62 }
 0xb83   : > { %4106 = vmatmul.mubr.msk.bf16.gmra.mxu0 %vm518_vm2, %v1715_v63  ;;  %v5035_v9 = vadd.f32 %v1695_v61, %v1691_v0 }
 0xb84   : > { %v4440_v11 = vpop.eup %4439 }
 0xb85   : > { %v1682_v13 = vmul.f32 %v4440_v11, %v1673_v4  ;;  %v1701_v18 = vadd.f32 %v4503_v5, %v5035_v9  ;;  %v1716_v5 = vpack.c.bf16 %v4970_v35, %v4967_v60 }
 0xb86   : > { %v4442_v14 = vpop.eup %4441 }
 0xb87   : > { %v1683_v20 = vmul.f32 %v4442_v14, %v1674_v12  ;;  %v1689_v24 = vmul.f32 %v1688_v59, %v1682_v13  ;;  %v1703_v34 = vpack.c.bf16 %v1701_v18, %v1701_v18  ;;  %v1717_v18 = vpack.c.bf16 %v4989_v31, %v4986_v30 }
 0xb89   : > { %v1690_v1 = vmul.f32 %v1688_v59, %v1683_v20  ;;  %v5038_v8 = vadd.f32 %v1695_v61, %v1689_v24  ;;  %v1880_v24 = vpop.permute.xlu0 %1879 }
 0xb8a   : > { %4109 = vmatprep.subr.bf16.mxu1 %v1880_v24 }
 0xb8b   : > { %v5040_v26 = vadd.f32 %v1695_v61, %v1690_v1  ;;  %v1699_v25 = vadd.f32 %v4504_v10, %v5038_v8  ;;  %v1878_v1 = vpop.permute.xlu1 %1877  ;;  %v1718_v10 = vpack.c.bf16 %v5001_v38, %v4998_v39 }
 0xb8d   : > { %v1700_v56 = vadd.f32 %v4505_v27, %v5040_v26 }
 0xb8f   : > { %v1702_v29 = vpack.c.bf16 %v1700_v56, %v1699_v25  ;;  %v1719_v25 = vpack.c.bf16 %v5017_v53, %v5014_v52 }
 0xb91   : > { %4093 = vmatprep.mubr.msk.bf16.mxu1 %vm518_vm2, %v1702_v29 }
 0xb92   : > { %4094 = vmatmul.mubr.msk.bf16.vlgmr.msra.gmra.mxu1 %vm518_vm2, %v1703_v34 }
 0xb93   : > { %4110 = vmatpush3.bf16.msra.mxu1 %v1880_v24  ;;  %4113 = vmatprep.mubr.msk.bf16.mxu1 %vm518_vm2, %v1716_v5 }
 0xb94   : > { %4111 = vmatprep.subr.bf16.mxu1 %v1878_v1 }
 0xb97   : > { %4112 = vmatpush3.bf16.msra.mxu1 %v1878_v1 }
 0xb9a   : > { %4114 = vmatmul.mubr.msk.bf16.vlgmr.msra.gmra.mxu1 %vm518_vm2, %v1717_v18 }
 0xb9b   : > { %4117 = vmatprep.mubr.msk.bf16.mxu1 %vm518_vm2, %v1718_v10 }
 0xba2   : > { %4118 = vmatmul.mubr.msk.bf16.gmra.mxu1 %vm518_vm2, %v1719_v25 }
 0xc3b   : > { %v4103_v36 = vpop.f32.mrf.mxu0 }
 0xc3c   : > { %v1851_v23 = vadd.f32 %v4103_v36, %v1789_v17  ;;  %v1875_v36 = vsub.s32 6, %v4742_v21 }
 0xc3d   : > { %v1842_v37 = vpop.f32.mrf.mxu0 }
 0xc3e   : > { %v1843_v0 = vadd.f32 %v1842_v37, %v1789_v17 }
 0xc3f   : > { %v4104_v40 = vpop.f32.mrf.mxu0 }
 0xc40   : > { %v1854_v51 = vadd.f32 %v4104_v40, %v1789_v17 }
 0xc41   : > { %v1845_v41 = vpop.f32.mrf.mxu0 }
 0xc42   : > { %v5076_v55 = vpack.c.bf16 %v1854_v51, %v1851_v23  ;;  %v1846_v28 = vadd.f32 %v1845_v41, %v1789_v17  ;;  %v1876_v41 = vrot.slane %v5058_v15, %v1875_v36 }
 0xc43   : > { %v4107_v43 = vpop.f32.mrf.mxu0 }
 0xc44   : > { %v1867_v46 = vadd.f32 %v4107_v43, %v1789_v17  ;;  %v5086_v11 = vpack.c.bf16 %v1846_v28, %v1843_v0  ;;  %v1980_v12 = vsel %vm701_vm3, %v5076_v55, 0 }
 0xc45   : > { %v1858_v32 = vpop.f32.mrf.mxu0 }
 0xc46   : > { %v1859_v48 = vadd.f32 %v1858_v32, %v1789_v17  ;;  %v1977_v13 = vsel %vm701_vm3, %v5086_v11, 0 }
 0xc47   : > { %v4108_v44 = vpop.f32.mrf.mxu0 }
 0xc48   : > { %v1870_v45 = vadd.f32 %v4108_v44, %v1789_v17 }
 0xc49   : > { %v1861_v47 = vpop.f32.mrf.mxu0 }
 0xc4a   : > { %v5063_v49 = vpack.c.bf16 %v1870_v45, %v1867_v46  ;;  %v1862_v50 = vadd.f32 %v1861_v47, %v1789_v17 }
 0xc4c   : > { %v5065_v2 = vpack.c.bf16 %v1862_v50, %v1859_v48  ;;  %4301 = vmatprep.subr.msk.bf16.mxu0 %vm701_vm3, %v5063_v49  ;;  %v1986_v3 = vsel %vm701_vm3, %v5063_v49, 0 }
 0xc4d   : > { %4122 = vmatpush3.bf16.xpose.msra.mxu0 %v1986_v3 }
 0xc4e   : > { %4302 = vmatprep.subr.msk.bf16.mxu0 %vm701_vm3, %v5065_v2  ;;  %v1983_v58 = vsel %vm701_vm3, %v5065_v2, 0 }
 0xc52   : > { %v4095_v54 = vpop.f32.mrf.mxu1 }
 0xc53   : > { %v1781_v14 = vadd.f32 %v4095_v54, %v1723_v7 }
 0xc54   : > { %v1772_v57 = vpop.f32.mrf.mxu1 }
 0xc55   : > { %4124 = vmatpush3.bf16.xpose.msra.mxu0 %v1983_v58  ;;  %v1773_v62 = vadd.f32 %v1772_v57, %v1723_v7  ;;  %v5096_v20 = vpack.c.bf16 %v1781_v14, %v1781_v14 }
 0xc56   : > { %v4096_v59 = vpop.f32.mrf.mxu1  ;;  %4303 = vmatprep.subr.msk.bf16.mxu0 %vm701_vm3, %v5076_v55 }
 0xc58   : > { %v1775_v61 = vpop.f32.mrf.mxu1 }
 0xc59   : > { %v1776_v63 = vadd.f32 %v1775_v61, %v1723_v7 }
 0xc5a   : > { %v4115_v52 = vpop.f32.mrf.mxu1 }
 0xc5b   : > { %v5084_v4 = vpack.c.bf16 %v1776_v63, %v1773_v62  ;;  %v1938_v48 = vadd.f32 %v4115_v52, %v1876_v41 }
 0xc5c   : > { %v1929_v53 = vpop.f32.mrf.mxu1 }
 0xc5d   : > { %4126 = vmatpush3.bf16.xpose.msra.mxu0 %v1980_v12  ;;  %4129 = vmatprep.mubr.msk.bf16.mxu0 %vm701_vm3, %v5084_v4  ;;  %v1930_v54 = vadd.f32 %v1929_v53, %v1876_v41 }
 0xc5e   : > { %4304 = vmatprep.subr.msk.bf16.mxu0 %vm701_vm3, %v5086_v11  ;;  %v4116_v37 = vpop.f32.mrf.mxu1 }
 0xc5f   : > { %v1941_v50 = vadd.f32 %v4116_v37, %v1876_v41 }
 0xc60   : > { %v1932_v40 = vpop.f32.mrf.mxu1 }
 0xc61   : > { %v5125_v57 = vpack.c.bf16 %v1941_v50, %v1938_v48  ;;  %v1933_v58 = vadd.f32 %v1932_v40, %v1876_v41 }
 0xc62   : > { %v4119_v43 = vpop.f32.mrf.mxu1 }
 0xc63   : > { %v1954_v17 = vadd.f32 %v4119_v43, %v1876_v41  ;;  %v5129_v59 = vpack.c.bf16 %v1933_v58, %v1930_v54 }
 0xc64   : > { %v1945_v32 = vpop.f32.mrf.mxu1 }
 0xc65   : > { %4128 = vmatpush3.bf16.xpose.msra.mxu0 %v1977_v13  ;;  %v1946_v46 = vadd.f32 %v1945_v32, %v1876_v41 }
 0xc66   : > { %v4120_v44 = vpop.f32.mrf.mxu1 }
 0xc67   : > { %v1957_v45 = vadd.f32 %v4120_v44, %v1876_v41 }
 0xc68   : > { %v1948_v47 = vpop.f32.mrf.mxu1 }
 0xc69   : > { %v5119_v3 = vpack.c.bf16 %v1957_v45, %v1954_v17  ;;  %v1949_v51 = vadd.f32 %v1948_v47, %v1876_v41 }
 0xc6b   : > { %v5121_v23 = vpack.c.bf16 %v1949_v51, %v1946_v46  ;;  %4133 = vmatprep.subr.bf16.mxu1 %v5119_v3 }
 0xc6c   : > { %4130 = vmatmul.mubr.msk.bf16.vlgmr.msra.gmra.mxu0 %vm701_vm3, %v5096_v20  ;;  %4134 = vmatpush3.bf16.msra.mxu1 %v5119_v3 }
 0xc6d   : > { %4135 = vmatprep.subr.bf16.mxu1 %v5121_v23 }
 0xc70   : > { %4136 = vmatpush3.bf16.msra.mxu1 %v5121_v23 }
 0xc71   : > { %4137 = vmatprep.subr.bf16.mxu1 %v5125_v57 }
 0xc74   : > { %4138 = vmatpush3.bf16.msra.mxu1 %v5125_v57 }
 0xc75   : > { %4139 = vmatprep.subr.bf16.mxu1 %v5129_v59 }
 0xc78   : > { %4140 = vmatpush3.bf16.msra.mxu1 %v5129_v59 }
 0xd2c   : > { %v4131_v60 = vpop.f32.mrf.mxu0 }
 0xd2d   : > { %v2038_v29 = vmul.f32 0.35355338, %v4131_v60 }
 0xd2e   : > { %v2022_v35 = vpop.f32.mrf.mxu0 }
 0xd2f   : > { %v2036_v27 = vmul.f32 0.35355338, %v2022_v35  ;;  %v2047_v38 = vsel %vm2046_vm10, %v2038_v29, -inf }
 0xd30   : > { %v4132_v56 = vpop.f32.mrf.mxu0 }
 0xd31   : > { %v2040_v30 = vsel %vm2039_vm9, %v2036_v27, -inf }
 0xd32   : > { %2041 = vmax.xlane.f32.xlu0 %v2040_v30  ;;  %v2025_v31 = vpop.f32.mrf.mxu0 }
 0xd33   : > { %v2037_v39 = vmul.f32 0.35355338, %v2025_v31 }
 0xd35   : > { %v2043_v34 = vsel %vm2039_vm9, %v2037_v39, -inf }
 0xd36   : > { %2048 = vmax.xlane.f32.xlu0 %v2047_v38  ;;  %2044 = vmax.xlane.f32.xlu1 %v2043_v34 }
 0xdbb   : > { %v2042_v7 = vpop.xlane.xlu0 %2041 }
 0xdbc   : > { %v2050_v28 = vsub.f32 %v2036_v27, %v2042_v7 }
 0xdbe   : > { %v2053_v61 = vmul.f32 1.442695, %v2050_v28 }
 0xdbf   : > { %v2049_v62 = vpop.xlane.xlu0 %2048  ;;  %v2045_v63 = vpop.xlane.xlu1 %2044 }
 0xdc0   : > { %4443 = vpow2.f32 %v2053_v61  ;;  %v2052_v0 = vsub.f32 %v2038_v29, %v2049_v62  ;;  %v2051_v12 = vsub.f32 %v2037_v39, %v2045_v63 }
 0xdc2   : > { %v2057_v13 = vmul.f32 1.442695, %v2052_v0  ;;  %v2055_v14 = vmul.f32 1.442695, %v2051_v12 }
 0xdc4   : > { %4445 = vpow2.f32 %v2057_v13 }
 0xdc5   : > { %4447 = vpow2.f32 %v2055_v14 }
 0xdcd   : > { %v4444_v24 = vpop.eup %4443 }
 0xdce   : > { %v2059_v1 = vsel %vm2039_vm9, %v4444_v24, 0.0 }
 0xdcf   : > { %2060 = vadd.xlane.f32.xlu0 %v2059_v1 }
 0xdd1   : > { %v4446_v5 = vpop.eup %4445 }
 0xdd2   : > { %v4448_v18 = vpop.eup %4447  ;;  %v2065_v10 = vsel %vm2046_vm10, %v4446_v5, 0.0 }
 0xdd3   : > { %2066 = vadd.xlane.f32.xlu0 %v2065_v10  ;;  %v2062_v25 = vsel %vm2039_vm9, %v4448_v18, 0.0 }
 0xdd4   : > { %2063 = vadd.xlane.f32.xlu1 %v2062_v25 }
 0xde5   : > { %2148 = vrot.lane.b32.xlu1 %v5063_v49, %s4577_s12 }
 0xde9   : > { %2144 = vrot.lane.b32.xlu1 %v5076_v55, %s4577_s12  ;;  %2146 = vrot.lane.b32.xlu0 %v5065_v2, %s4577_s12 }
 0xded   : > { %2142 = vrot.lane.b32.xlu1 %v5086_v11, %s4577_s12  ;;  %2134 = vrot.lane.b32.xlu0 %v5084_v4, %s4577_s12 }
 0xdf1   : > { %2136 = vrot.lane.b32.xlu1 %v5096_v20, %s4577_s12 }
 0xe58   : > { %v2061_v60 = vpop.xlane.xlu0 %2060 }
 0xe59   : > { %4449 = vrcp.f32 %v2061_v60 }
 0xe5c   : > { %v2067_v35 = vpop.xlane.xlu0 %2066 }
 0xe5d   : > { %4451 = vrcp.f32 %v2067_v35  ;;  %v2064_v27 = vpop.xlane.xlu1 %2063 }
 0xe5e   : > { %4453 = vrcp.f32 %v2064_v27 }
 0xe60   : > { %v2147_v38 = vpop.permute.xlu0 %2146 }
 0xe61   : > { %v2149_v56 = vpop.permute.xlu1 %2148  ;;  %v2163_v43 = vsel %vm701_vm3, %v2147_v38, 0 }
 0xe62   : > { %4305 = vmatprep.subr.msk.bf16.mxu1 %vm701_vm3, %v2149_v56  ;;  %v2166_v40 = vsel %vm701_vm3, %v2149_v56, 0 }
 0xe64   : > { %v2135_v41 = vpop.permute.xlu0 %2134 }
 0xe65   : > { %v2145_v32 = vpop.permute.xlu1 %2144 }
 0xe66   : > { %v4450_v29 = vpop.eup %4449  ;;  %v2160_v17 = vsel %vm701_vm3, %v2145_v32, 0 }
 0xe67   : > { %v2071_v34 = vmul.f32 %v4450_v29, %v4444_v24 }
 0xe69   : > { %v2143_v44 = vpop.permute.xlu1 %2142 }
 0xe6a   : > { %v4452_v30 = vpop.eup %4451  ;;  %v2157_v46 = vsel %vm701_vm3, %v2143_v44, 0 }
 0xe6b   : > { %v4454_v31 = vpop.eup %4453  ;;  %v2073_v39 = vmul.f32 %v4452_v30, %v4446_v5 }
 0xe6c   : > { %v2072_v52 = vmul.f32 %v4454_v31, %v4448_v18 }
 0xe6d   : > { %v2075_v53 = vpack.c.bf16 %v2073_v39, %v2073_v39  ;;  %v2137_v45 = vpop.permute.xlu1 %2136 }
 0xe6e   : > { %v2074_v37 = vpack.c.bf16 %v2072_v52, %v2071_v34  ;;  %v4507_v52 = vld [vmem:[%s4679_s11 + $0xc] sm:$0xff] }
 0xe70   : > { %4141 = vmatprep.mubr.msk.bf16.mxu1 %vm2039_vm9, %v2074_v37 }
 0xe71   : > { %4142 = vmatmul.mubr.msk.bf16.vlgmr.msra.gmra.mxu1 %vm2039_vm9, %v2075_v53  ;;  %v3774_v53 = vcombine.high %v4507_v52, %v4507_v52 }
 0xe72   : > { %4146 = vmatpush3.bf16.xpose.msra.mxu1 %v2166_v40  ;;  %4153 = vmatprep.mubr.msk.bf16.mxu1 %vm701_vm3, %v2135_v41 }
 0xe73   : > { %4306 = vmatprep.subr.msk.bf16.mxu1 %vm701_vm3, %v2147_v38 }
 0xe7a   : > { %4148 = vmatpush3.bf16.xpose.msra.mxu1 %v2163_v43 }
 0xe7b   : > { %4307 = vmatprep.subr.msk.bf16.mxu1 %vm701_vm3, %v2145_v32 }
 0xe82   : > { %4150 = vmatpush3.bf16.xpose.msra.mxu1 %v2160_v17 }
 0xe83   : > { %4308 = vmatprep.subr.msk.bf16.mxu1 %vm701_vm3, %v2143_v44 }
 0xe8a   : > { %4152 = vmatpush3.bf16.xpose.msra.mxu1 %v2157_v46 }
 0xe91   : > { %4154 = vmatmul.mubr.msk.bf16.vlgmr.msra.gmra.mxu1 %vm701_vm3, %v2137_v45 }
 0xf31   : > { %v5162_v47 = vpop.f32.mrf.mxu1 }
 0xf33   : > { %v2116_v48 = vpop.f32.mrf.mxu1 }
 0xf35   : > { %v4144_v50 = vpop.f32.mrf.mxu1 }
 0xf37   : > { %v2119_v51 = vpop.f32.mrf.mxu1 }
 0xf38   : > { %v2130_v54 = vpack.c.bf16 %v2119_v51, %v2116_v48 }
 0xf3a   : > { %4177 = vmatprep.mubr.msk.bf16.mxu1 %vm701_vm3, %v2130_v54 }
 0xf51   : > { %v4155_v58 = vpop.f32.mrf.mxu1 }
 0xf52   : > { %v2218_v62 = vmul.f32 0.35355338, %v4155_v58 }
 0xf53   : > { %v2202_v7 = vpop.f32.mrf.mxu1 }
 0xf54   : > { %v2216_v28 = vmul.f32 0.35355338, %v2202_v7  ;;  %v2225_v13 = vsel %vm2046_vm10, %v2218_v62, -inf }
 0xf55   : > { %v4156_v61 = vpop.f32.mrf.mxu1 }
 0xf56   : > { %v2219_v63 = vsel %vm2039_vm9, %v2216_v28, -inf }
 0xf57   : > { %2220 = vmax.xlane.f32.xlu0 %v2219_v63  ;;  %v2205_v0 = vpop.f32.mrf.mxu1 }
 0xf58   : > { %v2217_v12 = vmul.f32 0.35355338, %v2205_v0 }
 0xf5a   : > { %v2222_v14 = vsel %vm2039_vm9, %v2217_v12, -inf }
 0xf5b   : > { %2226 = vmax.xlane.f32.xlu0 %v2225_v13  ;;  %2223 = vmax.xlane.f32.xlu1 %v2222_v14 }
 0xf6c   : > { %2264 = vrot.lane.b32.xlu1 %v5119_v3, %s4577_s12 }
 0xf70   : > { %2260 = vrot.lane.b32.xlu1 %v5125_v57, %s4577_s12 }
 0xfe0   : > { %v2221_v24 = vpop.xlane.xlu0 %2220 }
 0xfe1   : > { %v2228_v1 = vsub.f32 %v2216_v28, %v2221_v24 }
 0xfe3   : > { %v2231_v60 = vmul.f32 1.442695, %v2228_v1 }
 0xfe4   : > { %v2227_v5 = vpop.xlane.xlu0 %2226  ;;  %v2224_v18 = vpop.xlane.xlu1 %2223 }
 0xfe5   : > { %v2230_v10 = vsub.f32 %v2218_v62, %v2227_v5  ;;  %v2229_v25 = vsub.f32 %v2217_v12, %v2224_v18 }
 0xfe7   : > { %v2235_v35 = vmul.f32 1.442695, %v2230_v10  ;;  %v2233_v27 = vmul.f32 1.442695, %v2229_v25 }
 0xfe8   : > { %v2265_v56 = vpop.permute.xlu1 %2264 }
 0xfe9   : > { %4455 = vpow2.f32 %v2235_v35  ;;  %4157 = vmatprep.subr.bf16.mxu0 %v2265_v56 }
 0xfea   : > { %4457 = vpow2.f32 %v2233_v27  ;;  %4158 = vmatpush3.bf16.msra.mxu0 %v2265_v56 }
 0xfeb   : > { %4459 = vpow2.f32 %v2231_v60 }
 0xfec   : > { %v2261_v37 = vpop.permute.xlu1 %2260 }
 0xff6   : > { %v4456_v29 = vpop.eup %4455 }
 0xff7   : > { %v4458_v30 = vpop.eup %4457  ;;  %v2243_v31 = vsel %vm2046_vm10, %v4456_v29, 0.0 }
 0xff8   : > { %v4460_v39 = vpop.eup %4459  ;;  %2244 = vadd.xlane.f32.xlu0 %v2243_v31  ;;  %v2240_v38 = vsel %vm2039_vm9, %v4458_v30, 0.0 }
 0xff9   : > { %2241 = vadd.xlane.f32.xlu1 %v2240_v38  ;;  %v2237_v34 = vsel %vm2039_vm9, %v4460_v39, 0.0 }
 0xffc   : > { %2238 = vadd.xlane.f32.xlu0 %v2237_v34 }
0x100a   : > { %2258 = vrot.lane.b32.xlu1 %v5129_v59, %s4577_s12 }
0x100e   : > { %2456 = vrot.lane.b32.xlu1 %v5063_v49, %s4579_s21 }
0x1012   : > { %2452 = vrot.lane.b32.xlu1 %v5076_v55, %s4579_s21  ;;  %2262 = vrot.lane.b32.xlu0 %v5121_v23, %s4577_s12 }
0x1016   : > { %2446 = vrot.lane.b32.xlu1 %v5084_v4, %s4579_s21  ;;  %2327 = vrot.lane.b32.xlu0 %v3774_v53, %s4578_s14 }
0x101a   : > { %2454 = vrot.lane.b32.xlu0 %v5065_v2, %s4579_s21 }
0x101e   : > { %2450 = vrot.lane.b32.xlu0 %v5086_v11, %s4579_s21 }
0x1022   : > { %2448 = vrot.lane.b32.xlu0 %v5096_v20, %s4579_s21 }
0x1081   : > { %v2245_v40 = vpop.xlane.xlu0 %2244 }
0x1082   : > { %v2242_v41 = vpop.xlane.xlu1 %2241  ;;  %4461 = vrcp.f32 %v2245_v40 }
0x1083   : > { %4463 = vrcp.f32 %v2242_v41 }
0x1085   : > { %v2239_v43 = vpop.xlane.xlu0 %2238 }
0x1086   : > { %4465 = vrcp.f32 %v2239_v43  ;;  %v2259_v17 = vpop.permute.xlu1 %2258 }
0x1089   : > { %v2263_v32 = vpop.permute.xlu0 %2262 }
0x108a   : > { %4159 = vmatprep.subr.bf16.mxu0 %v2263_v32  ;;  %v2457_v61 = vpop.permute.xlu1 %2456 }
0x108b   : > { %4160 = vmatpush3.bf16.msra.mxu0 %v2263_v32  ;;  %v2474_v1 = vsel %vm701_vm3, %v2457_v61, 0 }
0x108c   : > { %4161 = vmatprep.subr.bf16.mxu0 %v2261_v37 }
0x108d   : > { %v2328_v48 = vpop.permute.xlu0 %2327 }
0x108e   : > { %v2336_v7 = vsel %vm1047_vm7, %v2328_v48, 0  ;;  %v2453_v0 = vpop.permute.xlu1 %2452 }
0x108f   : > { %4162 = vmatpush3.bf16.msra.mxu0 %v2261_v37  ;;  %v4462_v44 = vpop.eup %4461  ;;  %v2468_v25 = vsel %vm701_vm3, %v2453_v0, 0 }
0x1090   : > { %4163 = vmatprep.subr.bf16.mxu0 %v2259_v17  ;;  %v4464_v46 = vpop.eup %4463  ;;  %v2251_v50 = vmul.f32 %v4462_v44, %v4456_v29 }
0x1091   : > { %v2250_v54 = vmul.f32 %v4464_v46, %v4458_v30  ;;  %v2455_v18 = vpop.permute.xlu0 %2454 }
0x1092   : > { %v2253_v28 = vpack.c.bf16 %v2251_v50, %v2251_v50  ;;  %v2447_v5 = vpop.permute.xlu1 %2446  ;;  %v2471_v10 = vsel %vm701_vm3, %v2455_v18, 0 }
0x1093   : > { %v4466_v45 = vpop.eup %4465  ;;  %4164 = vmatpush3.bf16.msra.mxu0 %v2259_v17  ;;  %v4508_v17 = vld [vmem:[%s4679_s11] sm:$0xff] }
0x1094   : > { %v2249_v51 = vmul.f32 %v4466_v45, %v4460_v39  ;;  %4309 = vmatprep.subr.msk.bf16.mxu0 %vm1047_vm7, %v2328_v48  ;;  %v3777_v44 = vcombine.high %v4508_v17, %v4508_v17 }
0x1095   : > { %v2451_v60 = vpop.permute.xlu0 %2450 }
0x1096   : > { %v2252_v58 = vpack.c.bf16 %v2250_v54, %v2249_v51  ;;  %v2465_v35 = vsel %vm701_vm3, %v2451_v60, 0 }
0x1098   : > { %4165 = vmatprep.mubr.msk.bf16.mxu0 %vm2039_vm9, %v2252_v58 }
0x1099   : > { %4166 = vmatmul.mubr.msk.bf16.vlgmr.msra.gmra.mxu0 %vm2039_vm9, %v2253_v28  ;;  %v2449_v27 = vpop.permute.xlu0 %2448 }
0x109a   : > { %4170 = vmatpush3.bf16.msra.mxu0 %v2336_v7 }
0x109b   : > { %4311 = vmatprep.subr.msk.bf16.mxu0 %vm701_vm3, %v2457_v61 }
0x1159   : > { %v4167_v62 = vpop.f32.mrf.mxu0 }
0x115a   : > { %v2325_v24 = vpack.c.bf16 %v4167_v62, %v4167_v62 }
0x115b   : > { %v2310_v63 = vpop.f32.mrf.mxu0 }
0x115d   : > { %v4168_v12 = vpop.f32.mrf.mxu0 }
0x115f   : > { %v2313_v13 = vpop.f32.mrf.mxu0 }
0x1160   : > { %v2324_v14 = vpack.c.bf16 %v2313_v13, %v2310_v63 }
0x1162   : > { %4171 = vmatprep.mubr.msk.bf16.mxu0 %vm701_vm3, %v2324_v14 }
0x1163   : > { %4172 = vmatmul.mubr.msk.bf16.vlgmr.msra.gmra.mxu0 %vm701_vm3, %v2325_v24 }
0x1164   : > { %4182 = vmatpush3.bf16.xpose.msra.mxu0 %v2474_v1  ;;  %4189 = vmatprep.mubr.msk.bf16.mxu0 %vm701_vm3, %v2447_v5 }
0x1165   : > { %4312 = vmatprep.subr.msk.bf16.mxu0 %vm701_vm3, %v2455_v18  ;;  %v4509_v18 = vld [vmem:[%s4679_s11 + $0x18] sm:$0xff] }
0x116c   : > { %4184 = vmatpush3.bf16.xpose.msra.mxu0 %v2471_v10  ;;  %v3784_v10 = vcombine.high %v4509_v18, %v4509_v18 }
0x116d   : > { %4313 = vmatprep.subr.msk.bf16.mxu0 %vm701_vm3, %v2453_v0  ;;  %v2131_v0 = vpack.c.bf16 %v5162_v47, %v5162_v47 }
0x1174   : > { %4186 = vmatpush3.bf16.xpose.msra.mxu0 %v2468_v25 }
0x1175   : > { %4314 = vmatprep.subr.msk.bf16.mxu0 %vm701_vm3, %v2451_v60 }
0x117c   : > { %4188 = vmatpush3.bf16.xpose.msra.mxu0 %v2465_v35 }
0x1183   : > { %4190 = vmatmul.mubr.msk.bf16.vlgmr.msra.gmra.mxu0 %vm701_vm3, %v2449_v27 }
0x1223   : > { %v5209_v56 = vpop.f32.mrf.mxu0 }
0x1225   : > { %v5211_v29 = vpop.f32.mrf.mxu0 }
0x1227   : > { %v4174_v30 = vpop.f32.mrf.mxu0 }
0x1229   : > { %v5213_v31 = vpop.f32.mrf.mxu0 }
0x1243   : > { %v4191_v39 = vpop.f32.mrf.mxu0 }
0x1244   : > { %v2526_v41 = vmul.f32 0.35355338, %v4191_v39 }
0x1245   : > { %v2510_v38 = vpop.f32.mrf.mxu0 }
0x1246   : > { %v2524_v34 = vmul.f32 0.35355338, %v2510_v38  ;;  %v2533_v32 = vsel %vm2046_vm10, %v2526_v41, -inf }
0x1247   : > { %v4192_v52 = vpop.f32.mrf.mxu0 }
0x1248   : > { %v2527_v53 = vsel %vm2039_vm9, %v2524_v34, -inf }
0x1249   : > { %2528 = vmax.xlane.f32.xlu1 %v2527_v53  ;;  %v2513_v37 = vpop.f32.mrf.mxu0 }
0x124a   : > { %v2525_v40 = vmul.f32 0.35355338, %v2513_v37 }
0x124c   : > { %v2530_v43 = vsel %vm2039_vm9, %v2525_v40, -inf }
0x124d   : > { %2531 = vmax.xlane.f32.xlu0 %v2530_v43 }
0x1251   : > { %2534 = vmax.xlane.f32.xlu0 %v2533_v32 }
0x125a   : > { %2568 = vrot.lane.b32.xlu1 %v5119_v3, %s4579_s21 }
0x125e   : > { %2566 = vrot.lane.b32.xlu1 %v5121_v23, %s4579_s21 }
0x1267   : > { %2387 = vrot.lane.b32.xlu0 %v3777_v44, %s4578_s14 }
0x12d2   : > { %v2529_v46 = vpop.xlane.xlu1 %2528 }
0x12d3   : > { %v2536_v50 = vsub.f32 %v2524_v34, %v2529_v46 }
0x12d5   : > { %v2539_v7 = vmul.f32 1.442695, %v2536_v50 }
0x12d6   : > { %v2532_v45 = vpop.xlane.xlu0 %2531  ;;  %v2569_v61 = vpop.permute.xlu1 %2568 }
0x12d7   : > { %v2537_v48 = vsub.f32 %v2525_v40, %v2532_v45 }
0x12d9   : > { %v2541_v51 = vmul.f32 1.442695, %v2537_v48 }
0x12da   : > { %v2535_v54 = vpop.xlane.xlu0 %2534  ;;  %v2567_v12 = vpop.permute.xlu1 %2566 }
0x12db   : > { %4467 = vpow2.f32 %v2541_v51  ;;  %v2538_v58 = vsub.f32 %v2526_v41, %v2535_v54 }
0x12dd   : > { %v2543_v28 = vmul.f32 1.442695, %v2538_v58 }
0x12de   : > { %v2388_v62 = vpop.permute.xlu0 %2387 }
0x12df   : > { %4469 = vpow2.f32 %v2543_v28  ;;  %v2396_v63 = vsel %vm1047_vm7, %v2388_v62, 0  ;;  %4310 = vmatprep.subr.msk.bf16.mxu1 %vm1047_vm7, %v2388_v62 }
0x12e0   : > { %4176 = vmatpush3.bf16.msra.mxu1 %v2396_v63  ;;  %4471 = vpow2.f32 %v2539_v7 }
0x12e1   : > { %4193 = vmatprep.subr.bf16.mxu1 %v2569_v61 }
0x12e3   : > { %4178 = vmatmul.mubr.msk.bf16.vlgmr.msra.gmra.mxu1 %vm701_vm3, %v2131_v0 }
0x12e4   : > { %4194 = vmatpush3.bf16.msra.mxu1 %v2569_v61 }
0x12e5   : > { %4195 = vmatprep.subr.bf16.mxu1 %v2567_v12 }
0x12e8   : > { %v4468_v13 = vpop.eup %4467  ;;  %4196 = vmatpush3.bf16.msra.mxu1 %v2567_v12 }
0x12e9   : > { %v2548_v14 = vsel %vm2039_vm9, %v4468_v13, 0.0 }
0x12ea   : > { %2549 = vadd.xlane.f32.xlu0 %v2548_v14 }
0x12ec   : > { %v4470_v24 = vpop.eup %4469 }
0x12ed   : > { %v2551_v1 = vsel %vm2046_vm10, %v4470_v24, 0.0  ;;  %v4472_v5 = vpop.eup %4471 }
0x12ee   : > { %2552 = vadd.xlane.f32.xlu1 %v2551_v1  ;;  %v2545_v47 = vsel %vm2039_vm9, %v4472_v5, 0.0 }
0x12f2   : > { %2546 = vadd.xlane.f32.xlu1 %v2545_v47 }
0x1300   : > { %2564 = vrot.lane.b32.xlu0 %v5125_v57, %s4579_s21 }
0x1303   : > { %2562 = vrot.lane.b32.xlu1 %v5129_v59, %s4579_s21  ;;  %s4581_s21 = smov (!%p3804_p8), 96  }
0x1304   : > { %2631 = vrot.lane.b32.xlu0 %v3784_v10, %s4578_s14 }
0x1307   : > { %2703 = vrot.lane.b32.xlu1 %v5063_v49, %s4580_s23 }
0x1308   : > { %2701 = vrot.lane.b32.xlu0 %v5065_v2, %s4580_s23 }
0x130b   : > { %2699 = vrot.lane.b32.xlu1 %v5076_v55, %s4580_s23 }
0x130c   : > { %2697 = vrot.lane.b32.xlu0 %v5086_v11, %s4580_s23 }
0x130f   : > { %2693 = vrot.lane.b32.xlu1 %v5084_v4, %s4580_s23 }
0x1310   : > { %2695 = vrot.lane.b32.xlu0 %v5096_v20, %s4580_s23 }
0x1373   : > { %v2550_v25 = vpop.xlane.xlu0 %2549 }
0x1377   : > { %v2553_v60 = vpop.xlane.xlu1 %2552  ;;  %v2565_v35 = vpop.permute.xlu0 %2564 }
0x1378   : > { %4197 = vmatprep.subr.bf16.mxu1 %v2565_v35  ;;  %4473 = vrcp.f32 %v2553_v60 }
0x1379   : > { %4198 = vmatpush3.bf16.msra.mxu1 %v2565_v35  ;;  %4475 = vrcp.f32 %v2550_v25 }
0x137b   : > { %v2547_v49 = vpop.xlane.xlu1 %2546  ;;  %v2632_v55 = vpop.permute.xlu0 %2631 }
0x137c   : > { %4477 = vrcp.f32 %v2547_v49  ;;  %v2640_v34 = vsel %vm1047_vm7, %v2632_v55, 0 }
0x137f   : > { %v2563_v2 = vpop.permute.xlu1 %2562  ;;  %v2702_v58 = vpop.permute.xlu0 %2701 }
0x1380   : > { %4199 = vmatprep.subr.bf16.mxu1 %v2563_v2  ;;  %v2718_v7 = vsel %vm701_vm3, %v2702_v58, 0 }
0x1381   : > { %4200 = vmatpush3.bf16.msra.mxu1 %v2563_v2 }
0x1382   : > { %4315 = vmatprep.subr.msk.bf16.mxu1 %vm1047_vm7, %v2632_v55 }
0x1383   : > { %v2704_v53 = vpop.permute.xlu1 %2703  ;;  %v2698_v61 = vpop.permute.xlu0 %2697 }
0x1384   : > { %v2721_v51 = vsel %vm701_vm3, %v2704_v53, 0  ;;  %v2712_v62 = vsel %vm701_vm3, %v2698_v61, 0 }
0x1385   : > { %v4474_v11 = vpop.eup %4473 }
0x1386   : > { %v4476_v4 = vpop.eup %4475  ;;  %v2559_v30 = vmul.f32 %v4474_v11, %v4470_v24 }
0x1387   : > { %v2558_v39 = vmul.f32 %v4476_v4, %v4468_v13  ;;  %v2700_v44 = vpop.permute.xlu1 %2699  ;;  %v2696_v63 = vpop.permute.xlu0 %2695 }
0x1388   : > { %v2561_v52 = vpack.c.bf16 %v2559_v30, %v2559_v30  ;;  %v2715_v28 = vsel %vm701_vm3, %v2700_v44, 0 }
0x1389   : > { %v4478_v27 = vpop.eup %4477 }
0x138a   : > { %v2557_v20 = vmul.f32 %v4478_v27, %v4472_v5 }
0x138b   : > { %v2694_v54 = vpop.permute.xlu1 %2693 }
0x138c   : > { %v2560_v38 = vpack.c.bf16 %v2558_v39, %v2557_v20 }
0x138e   : > { %4201 = vmatprep.mubr.msk.bf16.mxu1 %vm2039_vm9, %v2560_v38 }
0x138f   : > { %4202 = vmatmul.mubr.msk.bf16.vlgmr.msra.gmra.mxu1 %vm2039_vm9, %v2561_v52 }
0x1390   : > { %4206 = vmatpush3.bf16.msra.mxu1 %v2640_v34 }
0x1391   : > { %4316 = vmatprep.subr.msk.bf16.mxu1 %vm701_vm3, %v2704_v53 }
0x13a3   : > { %v4179_v37 = vpop.f32.mrf.mxu1 }
0x13a4   : > { %v2441_v0 = vadd.f32 %v4179_v37, %v5209_v56 }
0x13a5   : > { %v2432_v40 = vpop.f32.mrf.mxu1 }
0x13a6   : > { %v2433_v13 = vadd.f32 %v2432_v40, %v5211_v29 }
0x13a7   : > { %v4180_v41 = vpop.f32.mrf.mxu1 }
0x13a9   : > { %v5255_v43 = vpop.f32.mrf.mxu1 }
0x144f   : > { %v4203_v32 = vpop.f32.mrf.mxu1 }
0x1450   : > { %v2629_v50 = vpack.c.bf16 %v4203_v32, %v4203_v32 }
0x1451   : > { %v2614_v17 = vpop.f32.mrf.mxu1 }
0x1453   : > { %v4204_v46 = vpop.f32.mrf.mxu1 }
0x1455   : > { %v2617_v45 = vpop.f32.mrf.mxu1 }
0x1456   : > { %v2628_v48 = vpack.c.bf16 %v2617_v45, %v2614_v17 }
0x1458   : > { %4207 = vmatprep.mubr.msk.bf16.mxu1 %vm701_vm3, %v2628_v48 }
0x1459   : > { %4208 = vmatmul.mubr.msk.bf16.vlgmr.msra.gmra.mxu1 %vm701_vm3, %v2629_v50 }
0x145a   : > { %4212 = vmatpush3.bf16.xpose.msra.mxu1 %v2721_v51  ;;  %4219 = vmatprep.mubr.msk.bf16.mxu1 %vm701_vm3, %v2694_v54 }
0x145b   : > { %4317 = vmatprep.subr.msk.bf16.mxu1 %vm701_vm3, %v2702_v58 }
0x1462   : > { %4214 = vmatpush3.bf16.xpose.msra.mxu1 %v2718_v7 }
0x1463   : > { %4318 = vmatprep.subr.msk.bf16.mxu1 %vm701_vm3, %v2700_v44  ;;  %v4510_v44 = vld [vmem:[%s4679_s11 + $0x24] sm:$0xff] }
0x1464   : > { %v3791_v46 = vcombine.high %v4510_v44, %v4510_v44 }
0x146a   : > { %4216 = vmatpush3.bf16.xpose.msra.mxu1 %v2715_v28 }
0x146b   : > { %4319 = vmatprep.subr.msk.bf16.mxu1 %vm701_vm3, %v2698_v61 }
0x1472   : > { %4218 = vmatpush3.bf16.xpose.msra.mxu1 %v2712_v62 }
0x1479   : > { %4220 = vmatmul.mubr.msk.bf16.vlgmr.msra.gmra.mxu1 %vm701_vm3, %v2696_v63 }
0x1519   : > { %v4209_v12 = vpop.f32.mrf.mxu1 }
0x151a   : > { %v5270_v14 = vadd.f32 %v4209_v12, %v2441_v0 }
0x151b   : > { %v2676_v24 = vpop.f32.mrf.mxu1 }
0x151c   : > { %v5272_v1 = vadd.f32 %v2676_v24, %v2433_v13 }
0x151d   : > { %v4210_v5 = vpop.f32.mrf.mxu1 }
0x151f   : > { %v5274_v47 = vpop.f32.mrf.mxu1 }
0x1539   : > { %v4221_v18 = vpop.f32.mrf.mxu1 }
0x153a   : > { %v2773_v2 = vmul.f32 0.35355338, %v4221_v18 }
0x153b   : > { %v2757_v10 = vpop.f32.mrf.mxu1 }
0x153c   : > { %v2771_v25 = vmul.f32 0.35355338, %v2757_v10  ;;  %v2780_v55 = vsel %vm2046_vm10, %v2773_v2, -inf }
0x153d   : > { %v4222_v60 = vpop.f32.mrf.mxu1 }
0x153e   : > { %v2774_v35 = vsel %vm2039_vm9, %v2771_v25, -inf  ;;  %v2942_v60 = vsub.s32 7, %v4742_v21 }
0x153f   : > { %2775 = vmax.xlane.f32.xlu1 %v2774_v35  ;;  %v2760_v49 = vpop.f32.mrf.mxu1 }
0x1540   : > { %v2772_v56 = vmul.f32 0.35355338, %v2760_v49  ;;  %v2943_v35 = vrot.slane %v5058_v15, %v2942_v60 }
0x1542   : > { %v2777_v29 = vsel %vm2039_vm9, %v2772_v56, -inf }
0x1543   : > { %2778 = vmax.xlane.f32.xlu0 %v2777_v29  ;;  %v2436_v29 = vadd.f32 %v5255_v43, %v5213_v31 }
0x1547   : > { %2781 = vmax.xlane.f32.xlu0 %v2780_v55 }
0x1550   : > { %2813 = vrot.lane.b32.xlu1 %v5121_v23, %s4580_s23 }
0x155d   : > { %2815 = vrot.lane.b32.xlu0 %v5119_v3, %s4580_s23 }
0x15c8   : > { %v2776_v11 = vpop.xlane.xlu1 %2775 }
0x15c9   : > { %v2783_v30 = vsub.f32 %v2771_v25, %v2776_v11 }
0x15cb   : > { %v2786_v34 = vmul.f32 1.442695, %v2783_v30 }
0x15cc   : > { %v2779_v4 = vpop.xlane.xlu0 %2778  ;;  %v2814_v37 = vpop.permute.xlu1 %2813 }
0x15cd   : > { %v2784_v27 = vsub.f32 %v2772_v56, %v2779_v4 }
0x15cf   : > { %v2788_v20 = vmul.f32 1.442695, %v2784_v27  ;;  %v2691_v27 = vadd.f32 %v5274_v47, %v2436_v29 }
0x15d0   : > { %v2782_v39 = vpop.xlane.xlu0 %2781 }
0x15d1   : > { %4479 = vpow2.f32 %v2788_v20  ;;  %v2785_v38 = vsub.f32 %v2773_v2, %v2782_v39 }
0x15d3   : > { %v2790_v52 = vmul.f32 1.442695, %v2785_v38 }
0x15d4   : > { %v2816_v53 = vpop.permute.xlu0 %2815 }
0x15d5   : > { %4481 = vpow2.f32 %v2790_v52  ;;  %4223 = vmatprep.subr.bf16.mxu0 %v2816_v53 }
0x15d6   : > { %4224 = vmatpush3.bf16.msra.mxu0 %v2816_v53  ;;  %4483 = vpow2.f32 %v2786_v34 }
0x15d7   : > { %4225 = vmatprep.subr.bf16.mxu0 %v2814_v37 }
0x15da   : > { %4226 = vmatpush3.bf16.msra.mxu0 %v2814_v37  ;;  %v4383_v37 = vld [vmem:[%s4679_s11 + $0x20] ss:$12 sps:$4 sm:$0xff]  }
0x15de   : > { %v4480_v3 = vpop.eup %4479 }
0x15df   : > { %v2795_v23 = vsel %vm2039_vm9, %v4480_v3, 0.0 }
0x15e0   : > { %2796 = vadd.xlane.f32.xlu0 %v2795_v23  ;;  %v4385_v23 = vld [vmem:[%s4684_s18 + $0x18] sm:$0xff]  }
0x15e1   : > { %4249 = vmatprep.subr.bf16.mxu1 %v4385_v23 }
0x15e2   : > { %v4482_v40 = vpop.eup %4481  ;;  %4250 = vmatpush3.bf16.msra.mxu1 %v4385_v23 }
0x15e3   : > { %v2798_v41 = vsel %vm2046_vm10, %v4482_v40, 0.0  ;;  %v4484_v32 = vpop.eup %4483 }
0x15e4   : > { %2799 = vadd.xlane.f32.xlu1 %v2798_v41  ;;  %v2792_v17 = vsel %vm2039_vm9, %v4484_v32, 0.0 }
0x15e8   : > { %2793 = vadd.xlane.f32.xlu1 %v2792_v17 }
0x15f6   : > { %2809 = vrot.lane.b32.xlu0 %v5129_v59, %s4580_s23 }
0x15f9   : > { %2811 = vrot.lane.b32.xlu1 %v5125_v57, %s4580_s23 }
0x15fd   : > { %2878 = vrot.lane.b32.xlu1 %v3791_v46, %s4578_s14 }
0x1669   : > { %v2797_v45 = vpop.xlane.xlu0 %2796 }
0x166d   : > { %v2800_v48 = vpop.xlane.xlu1 %2799  ;;  %v2810_v54 = vpop.permute.xlu0 %2809 }
0x166e   : > { %4485 = vrcp.f32 %v2800_v48 }
0x166f   : > { %4487 = vrcp.f32 %v2797_v45 }
0x1671   : > { %v2794_v50 = vpop.xlane.xlu1 %2793 }
0x1672   : > { %4489 = vrcp.f32 %v2794_v50 }
0x1675   : > { %v2812_v51 = vpop.permute.xlu1 %2811 }
0x1676   : > { %4227 = vmatprep.subr.bf16.mxu0 %v2812_v51 }
0x1677   : > { %4228 = vmatpush3.bf16.msra.mxu0 %v2812_v51 }
0x1678   : > { %4229 = vmatprep.subr.bf16.mxu0 %v2810_v54 }
0x1679   : > { %v2879_v0 = vpop.permute.xlu1 %2878 }
0x167a   : > { %v2887_v12 = vsel %vm1047_vm7, %v2879_v0, 0 }
0x167b   : > { %4230 = vmatpush3.bf16.msra.mxu0 %v2810_v54  ;;  %v4486_v59 = vpop.eup %4485 }
0x167c   : > { %v4488_v58 = vpop.eup %4487  ;;  %v2806_v57 = vmul.f32 %v4486_v59, %v4482_v40  ;;  %4320 = vmatprep.subr.msk.bf16.mxu0 %vm1047_vm7, %v2879_v0 }
0x167d   : > { %v2805_v61 = vmul.f32 %v4488_v58, %v4480_v3  ;;  %v4384_v3 = vld [vmem:[%s4679_s11 + $0x8] ss:$12 sps:$4 sm:$0xff]  }
0x167e   : > { %v2808_v63 = vpack.c.bf16 %v2806_v57, %v2806_v57 }
0x167f   : > { %v4490_v7 = vpop.eup %4489 }
0x1680   : > { %v2804_v28 = vmul.f32 %v4490_v7, %v4484_v32 }
0x1682   : > { %v2807_v62 = vpack.c.bf16 %v2805_v61, %v2804_v28 }
0x1684   : > { %4231 = vmatprep.mubr.msk.bf16.mxu0 %vm2039_vm9, %v2807_v62 }
0x1685   : > { %4232 = vmatmul.mubr.msk.bf16.vlgmr.msra.gmra.mxu0 %vm2039_vm9, %v2808_v63 }
0x1686   : > { %4236 = vmatpush3.bf16.msra.mxu0 %v2887_v12 }
0x1687   : > { %4241 = vmatprep.subr.bf16.mxu0 %v4383_v37 }
0x1745   : > { %v4233_v13 = vpop.f32.mrf.mxu0 }
0x1746   : > { %v2876_v25 = vpack.c.bf16 %v4233_v13, %v4233_v13 }
0x1747   : > { %v2861_v24 = vpop.f32.mrf.mxu0 }
0x1749   : > { %v4234_v5 = vpop.f32.mrf.mxu0 }
0x174b   : > { %v2864_v18 = vpop.f32.mrf.mxu0 }
0x174c   : > { %v2875_v10 = vpack.c.bf16 %v2864_v18, %v2861_v24  ;;  %v5325_v18 = vld [vmem:[%s4689_s15 + $0x8] sm:$0xff] }
0x174e   : > { %4237 = vmatprep.mubr.msk.bf16.mxu0 %vm701_vm3, %v2875_v10  ;;  %v3001_v10 = vrot.slane %v5325_v18, %v5074_v6 }
0x174f   : > { %4238 = vmatmul.mubr.msk.bf16.vlgmr.msra.gmra.mxu0 %vm701_vm3, %v2876_v25 }
0x1750   : > { %4242 = vmatpush3.bf16.msra.mxu0 %v4383_v37 }
0x1751   : > { %4243 = vmatprep.subr.bf16.mxu0 %v4384_v3 }
0x1754   : > { %4244 = vmatpush3.bf16.msra.mxu0 %v4384_v3 }
0x180f   : > { %v4239_v49 = vpop.f32.mrf.mxu0 }
0x1810   : > { %v2939_v56 = vadd.f32 %v4239_v49, %v5270_v14 }
0x1811   : > { %v2923_v2 = vpop.f32.mrf.mxu0 }
0x1812   : > { %v2946_v55 = vadd.f32 %v2943_v35, %v2939_v56  ;;  %v2937_v11 = vadd.f32 %v2923_v2, %v5272_v1 }
0x1813   : > { %v4240_v4 = vpop.f32.mrf.mxu0 }
0x1814   : > { %v5308_v30 = vadd.f32 %v2946_v55, %v5035_v9  ;;  %v2944_v20 = vadd.f32 %v2943_v35, %v2937_v11  ;;  %v3008_v4 = vrot.slane %v5325_v18, %v1788_v42  ;;  %v4388_v42 = vld [vmem:[%s4684_s18] sm:$0xff]  }
0x1815   : > { %v2926_v39 = vpop.f32.mrf.mxu0 }
0x1816   : > { %v2947_v15 = vadd.f32 %v2944_v20, %v5038_v8  ;;  %v2938_v38 = vadd.f32 %v2926_v39, %v2691_v27  ;;  %v2956_v14 = vsel %vm1641_vm8, %v5308_v30, 0.0  ;;  %v2964_v52 = vmul.f32 %v5308_v30, %v5308_v30 }
0x1817   : > { %2957 = vadd.xlane.f32.xlu0 %v2956_v14 }
0x1818   : > { %v2945_v31 = vadd.f32 %v2943_v35, %v2938_v38  ;;  %v2950_v1 = vsel %vm518_vm2, %v2947_v15, 0.0  ;;  %v2962_v47 = vmul.f32 %v2947_v15, %v2947_v15 }
0x181a   : > { %v2948_v43 = vadd.f32 %v2945_v31, %v5040_v26  ;;  %v2965_v8 = vsel %vm518_vm2, %v2962_v47, 0.0  ;;  %v2971_v26 = vsel %vm1641_vm8, %v2964_v52, 0.0  ;;  %v4387_v47 = vld [vmem:[%s4684_s18 + $0x8] sm:$0xff]  }
0x181b   : > { %2951 = vadd.xlane.f32.xlu0 %v2950_v1 }
0x181c   : > { %v2953_v9 = vsel %vm518_vm2, %v2948_v43, 0.0  ;;  %v2963_v34 = vmul.f32 %v2948_v43, %v2948_v43 }
0x181d   : > { %2954 = vadd.xlane.f32.xlu1 %v2953_v9  ;;  %v3017_v9 = vrot.slane %v5325_v18, %v4745_v22 }
0x181e   : > { %v2968_v53 = vsel %vm518_vm2, %v2963_v34, 0.0 }
0x181f   : > { %2966 = vadd.xlane.f32.xlu0 %v2965_v8 }
0x1821   : > { %2969 = vadd.xlane.f32.xlu1 %v2968_v53 }
0x1823   : > { %2972 = vadd.xlane.f32.xlu0 %v2971_v26 }
0x18a0   : > { %v2958_v40 = vpop.xlane.xlu0 %2957 }
0x18a1   : > { %v2961_v45 = vmul.f32 0.03125, %v2958_v40 }
0x18a3   : > { %v2979_v57 = vmul.f32 %v2961_v45, %v2961_v45  ;;  %v2988_v29 = vsub.f32 %v5308_v30, %v2961_v45  ;;  %v4386_v30 = vld [vmem:[%s4684_s18 + $0x10] sm:$0xff]  }
0x18a4   : > { %v2952_v41 = vpop.xlane.xlu0 %2951  ;;  %4251 = vmatprep.subr.bf16.mxu1 %v4386_v30 }
0x18a5   : > { %v2959_v32 = vmul.f32 0.03125, %v2952_v41  ;;  %4252 = vmatpush3.bf16.msra.mxu1 %v4386_v30 }
0x18a6   : > { %v2955_v17 = vpop.xlane.xlu1 %2954  ;;  %4253 = vmatprep.subr.bf16.mxu1 %v4387_v47 }
0x18a7   : > { %v2960_v44 = vmul.f32 0.03125, %v2955_v17  ;;  %v2977_v48 = vmul.f32 %v2959_v32, %v2959_v32  ;;  %v2986_v25 = vsub.f32 %v2947_v15, %v2959_v32 }
0x18a8   : > { %v2967_v46 = vpop.xlane.xlu0 %2966 }
0x18a9   : > { %v2974_v50 = vmul.f32 0.03125, %v2967_v46  ;;  %v2978_v54 = vmul.f32 %v2960_v44, %v2960_v44  ;;  %v2987_v49 = vsub.f32 %v2948_v43, %v2960_v44  ;;  %4254 = vmatpush3.bf16.msra.mxu1 %v4387_v47  ;;  %v3092_v44 = vrot.slane %v5325_v18, %v4759_v33 }
0x18aa   : > { %v2970_v51 = vpop.xlane.xlu1 %2969  ;;  %4255 = vmatprep.subr.bf16.mxu1 %v4388_v42 }
0x18ab   : > { %v2980_v59 = vsub.f32 %v2974_v50, %v2977_v48  ;;  %v2975_v58 = vmul.f32 0.03125, %v2970_v51 }
0x18ac   : > { %v2973_v7 = vpop.xlane.xlu0 %2972 }
0x18ad   : > { %v2983_v28 = vmax.f32 %v2980_v59, 0.0  ;;  %v2981_v61 = vsub.f32 %v2975_v58, %v2978_v54  ;;  %v2976_v62 = vmul.f32 0.03125, %v2973_v7  ;;  %4256 = vmatpush3.bf16.msra.mxu1 %v4388_v42 }
0x18af   : > { %v2989_v63 = vadd.f32 1e-05, %v2983_v28  ;;  %v2984_v0 = vmax.f32 %v2981_v61, 0.0  ;;  %v2982_v12 = vsub.f32 %v2976_v62, %v2979_v57 }
0x18b1   : > { %4491 = vrsqrt.f32 %v2989_v63  ;;  %v2990_v13 = vadd.f32 1e-05, %v2984_v0  ;;  %v2985_v24 = vmax.f32 %v2982_v12, 0.0 }
0x18b3   : > { %4493 = vrsqrt.f32 %v2990_v13  ;;  %v2991_v5 = vadd.f32 1e-05, %v2985_v24 }
0x18b5   : > { %4495 = vrsqrt.f32 %v2991_v5 }
0x18be   : > { %v4492_v35 = vpop.eup %4491 }
0x18bf   : > { %v2995_v56 = vmul.f32 %v4492_v35, %v2986_v25 }
0x18c0   : > { %v4494_v2 = vpop.eup %4493 }
0x18c1   : > { %v2996_v55 = vmul.f32 %v4494_v2, %v2987_v49  ;;  %v3002_v11 = vmul.f32 %v3001_v10, %v2995_v56 }
0x18c2   : > { %v4496_v27 = vpop.eup %4495 }
0x18c3   : > { %v3003_v20 = vmul.f32 %v3001_v10, %v2996_v55  ;;  %v2997_v39 = vmul.f32 %v4496_v27, %v2988_v29  ;;  %v3009_v38 = vadd.f32 %v3008_v4, %v3002_v11 }
0x18c5   : > { %v3010_v15 = vadd.f32 %v3008_v4, %v3003_v20  ;;  %v3004_v14 = vmul.f32 %v3001_v10, %v2997_v39 }
0x18c7   : > { %v3012_v31 = vpack.c.bf16 %v3010_v15, %v3009_v38  ;;  %v3011_v43 = vadd.f32 %v3008_v4, %v3004_v14 }
0x18c9   : > { %4245 = vmatprep.mubr.msk.bf16.mxu0 %vm518_vm2, %v3012_v31  ;;  %v3013_v1 = vpack.c.bf16 %v3011_v43, %v3011_v43 }
0x18cb   : > { %4246 = vmatmul.mubr.msk.bf16.vlgmr.msra.gmra.mxu0 %vm518_vm2, %v3013_v1 }
0x198b   : > { %v4247_v34 = vpop.f32.mrf.mxu0 }
0x198c   : > { %v3079_v52 = vadd.f32 %v4247_v34, %v3017_v9 }
0x198d   : > { %v3070_v8 = vpop.f32.mrf.mxu0 }
0x198e   : > { %v3071_v26 = vadd.f32 %v3070_v8, %v3017_v9  ;;  %v3086_v23 = vmax.f32 %v3079_v52, 0.0  ;;  %v3225_v8 = vrot.slane %v5325_v18, %v1875_v36 }
0x198f   : > { %v4248_v53 = vpop.f32.mrf.mxu0 }
0x1990   : > { %v3084_v40 = vmax.f32 %v3071_v26, 0.0  ;;  %v3088_v17 = vpack.c.bf16 %v3086_v23, %v3086_v23  ;;  %v3232_v26 = vrot.slane %v5325_v18, %v2942_v60 }
0x1991   : > { %v3073_v37 = vpop.f32.mrf.mxu0 }
0x1992   : > { %v3074_v3 = vadd.f32 %v3073_v37, %v3017_v9 }
0x1994   : > { %v3085_v41 = vmax.f32 %v3074_v3, 0.0 }
0x1996   : > { %v3087_v32 = vpack.c.bf16 %v3085_v41, %v3084_v40 }
0x1998   : > { %4257 = vmatprep.mubr.msk.bf16.mxu1 %vm2039_vm9, %v3087_v32 }
0x1999   : > { %4258 = vmatmul.mubr.msk.bf16.vlgmr.msra.gmra.mxu1 %vm2039_vm9, %v3088_v17 }
0x1a59   : > { %v4259_v46 = vpop.f32.mrf.mxu1 }
0x1a5a   : > { %v3166_v45 = vadd.f32 %v4259_v46, %v3092_v44 }
0x1a5b   : > { %v3157_v48 = vpop.f32.mrf.mxu1 }
0x1a5c   : > { %v5344_v50 = vadd.f32 %v3166_v45, %v3011_v43  ;;  %v3158_v51 = vadd.f32 %v3157_v48, %v3092_v44 }
0x1a5d   : > { %v4260_v54 = vpop.f32.mrf.mxu1 }
0x1a5e   : > { %v3171_v59 = vadd.f32 %v3158_v51, %v3009_v38  ;;  %v3180_v58 = vsel %vm1641_vm8, %v5344_v50, 0.0  ;;  %v3188_v24 = vmul.f32 %v5344_v50, %v5344_v50 }
0x1a5f   : > { %3181 = vadd.xlane.f32.xlu1 %v3180_v58  ;;  %v3160_v7 = vpop.f32.mrf.mxu1 }
0x1a60   : > { %v3161_v57 = vadd.f32 %v3160_v7, %v3092_v44  ;;  %v3186_v28 = vmul.f32 %v3171_v59, %v3171_v59  ;;  %v3174_v63 = vsel %vm518_vm2, %v3171_v59, 0.0  ;;  %v3195_v5 = vsel %vm1641_vm8, %v3188_v24, 0.0 }
0x1a62   : > { %v3172_v61 = vadd.f32 %v3161_v57, %v3010_v15  ;;  %v3189_v62 = vsel %vm518_vm2, %v3186_v28, 0.0 }
0x1a63   : > { %3190 = vadd.xlane.f32.xlu0 %v3189_v62  ;;  %3175 = vadd.xlane.f32.xlu1 %v3174_v63 }
0x1a64   : > { %v3187_v0 = vmul.f32 %v3172_v61, %v3172_v61  ;;  %v3177_v12 = vsel %vm518_vm2, %v3172_v61, 0.0 }
0x1a66   : > { %v3192_v13 = vsel %vm518_vm2, %v3187_v0, 0.0 }
0x1a67   : > { %3178 = vadd.xlane.f32.xlu0 %v3177_v12  ;;  %3193 = vadd.xlane.f32.xlu1 %v3192_v13 }
0x1a6b   : > { %3196 = vadd.xlane.f32.xlu0 %v3195_v5 }
0x1ae8   : > { %v3182_v10 = vpop.xlane.xlu1 %3181 }
0x1ae9   : > { %v3185_v11 = vmul.f32 0.03125, %v3182_v10 }
0x1aeb   : > { %v3203_v14 = vmul.f32 %v3185_v11, %v3185_v11  ;;  %v3212_v41 = vsub.f32 %v5344_v50, %v3185_v11 }
0x1aec   : > { %v3191_v25 = vpop.xlane.xlu0 %3190  ;;  %v3176_v35 = vpop.xlane.xlu1 %3175 }
0x1aed   : > { %v3183_v49 = vmul.f32 0.03125, %v3176_v35  ;;  %v3198_v56 = vmul.f32 0.03125, %v3191_v25 }
0x1aef   : > { %v3201_v2 = vmul.f32 %v3183_v49, %v3183_v49  ;;  %v3210_v52 = vsub.f32 %v3171_v59, %v3183_v49 }
0x1af0   : > { %v3179_v29 = vpop.xlane.xlu0 %3178  ;;  %v3194_v55 = vpop.xlane.xlu1 %3193 }
0x1af1   : > { %v3204_v4 = vsub.f32 %v3198_v56, %v3201_v2  ;;  %v3184_v27 = vmul.f32 0.03125, %v3179_v29  ;;  %v3199_v38 = vmul.f32 0.03125, %v3194_v55 }
0x1af3   : > { %v3207_v20 = vmax.f32 %v3204_v4, 0.0  ;;  %v3202_v39 = vmul.f32 %v3184_v27, %v3184_v27  ;;  %v3211_v23 = vsub.f32 %v3172_v61, %v3184_v27 }
0x1af4   : > { %v3197_v15 = vpop.xlane.xlu0 %3196 }
0x1af5   : > { %v3213_v31 = vadd.f32 1e-05, %v3207_v20  ;;  %v3205_v43 = vsub.f32 %v3199_v38, %v3202_v39  ;;  %v3200_v1 = vmul.f32 0.03125, %v3197_v15 }
0x1af7   : > { %4497 = vrsqrt.f32 %v3213_v31  ;;  %v3208_v30 = vmax.f32 %v3205_v43, 0.0  ;;  %v3206_v47 = vsub.f32 %v3200_v1, %v3203_v14 }
0x1af9   : > { %v3214_v42 = vadd.f32 1e-05, %v3208_v30  ;;  %v3209_v9 = vmax.f32 %v3206_v47, 0.0 }
0x1afb   : > { %4499 = vrsqrt.f32 %v3214_v42  ;;  %v3215_v34 = vadd.f32 1e-05, %v3209_v9 }
0x1afd   : > { %4501 = vrsqrt.f32 %v3215_v34 }
0x1b04   : > { %v4498_v53 = vpop.eup %4497 }
0x1b05   : > { %v3219_v37 = vmul.f32 %v4498_v53, %v3210_v52 }
0x1b07   : > { %v3226_v3 = vmul.f32 %v3225_v8, %v3219_v37 }
0x1b08   : > { %v4500_v40 = vpop.eup %4499 }
0x1b09   : > { %v5362_v32 = vadd.f32 %v3232_v26, %v3226_v3  ;;  %v3220_v17 = vmul.f32 %v4500_v40, %v3211_v23 }
0x1b0a   : > { %v4502_v44 = vpop.eup %4501 }
0x1b0b   : > { %3236 = vst.msk [vmem:[#allocation2] sm:$0xff] %vm518_vm2, %v5362_v32  ;;  %v3227_v36 = vmul.f32 %v3225_v8, %v3220_v17  ;;  %v3221_v46 = vmul.f32 %v4502_v44, %v3212_v41 }
0x1b0d   : > { %v5366_v45 = vadd.f32 %v3232_v26, %v3227_v36  ;;  %v3228_v21 = vmul.f32 %v3225_v8, %v3221_v46  ;;  %3242 = sbr.rel (%p3804_p8) target bundleno = 7755 (0x1e4b), region = 64 }
0x1b0f   : > { %3237 = vst.msk [vmem:[#allocation2 + $0x8] sm:$0xff] %vm518_vm2, %v5366_v45  ;;  %v5370_v60 = vadd.f32 %v3232_v26, %v3228_v21 }
0x1b11   : > { %3238 = vst.msk [vmem:[#allocation2 + $0x10] sm:$0xf] %vm1641_vm8, %v5370_v60 }
0x1b12   : > { %v3258_v18 = vsel %vm1641_vm8, %v5370_v60, 0.0  ;;  %v3252_v48 = vsel %vm518_vm2, %v5362_v32, 0.0  ;;  %v3264_v50 = vmul.f32 %v5362_v32, %v5362_v32  ;;  %v3255_v54 = vsel %vm518_vm2, %v5366_v45, 0.0  ;;  %v4512_v28 = vld [vmem:[%s5464_s6 + $0x8] sm:$0xff]   ;;  %v4513_v61 = vld [vmem:[%s5464_s6] sm:$0xff]  }
0x1b13   : > { %3259 = vadd.xlane.f32.xlu1 %v3258_v18  ;;  %3253 = vadd.xlane.f32.xlu0 %v3252_v48  ;;  %v3266_v59 = vmul.f32 %v5370_v60, %v5370_v60  ;;  %v3265_v58 = vmul.f32 %v5366_v45, %v5366_v45  ;;  %v4514_v62 = vld [vmem:[%s5465_s7 + $0x8] sm:$0xff]   ;;  %v5403_v1 = vld [vmem:[%s5466_s8] sm:$0x1f]  ;;  %vm3401_vm11 = vcmask 27648   ;;  %vm3398_vm12 = vcmask 31744  }
0x1b14   : > { %v3267_v51 = vsel %vm518_vm2, %v3264_v50, 0.0  ;;  %4261 = vmatprep.subr.bf16.mxu0 %v4512_v28  ;;  %4269 = vmatprep.subr.bf16.mxu1 %v4514_v62  ;;  %v3303_v9 = vrot.slane %v5403_v1, %v4938_v19  ;;  %v3310_v23 = vrot.slane %v5403_v1, %v5074_v6  ;;  %v4515_v19 = vld [vmem:[%s5465_s7] sm:$0xff]   ;;  %v3319_v21 = vrot.slane %v5403_v1, %v4745_v22 }
0x1b15   : > { %v3273_v7 = vsel %vm1641_vm8, %v3266_v59, 0.0  ;;  %v3270_v57 = vsel %vm518_vm2, %v3265_v58, 0.0  ;;  %4262 = vmatpush3.bf16.msra.mxu0 %v4512_v28  ;;  %4270 = vmatpush3.bf16.msra.mxu1 %v4514_v62 }
0x1b16   : > { %4263 = vmatprep.subr.bf16.mxu0 %v4513_v61  ;;  %4271 = vmatprep.subr.bf16.mxu1 %v4515_v19 }
0x1b17   : > { %3268 = vadd.xlane.f32.xlu1 %v3267_v51  ;;  %3256 = vadd.xlane.f32.xlu0 %v3255_v54 }
0x1b19   : > { %4264 = vmatpush3.bf16.msra.mxu0 %v4513_v61  ;;  %4272 = vmatpush3.bf16.msra.mxu1 %v4515_v19 }
0x1b1b   : > { %3274 = vadd.xlane.f32.xlu1 %v3273_v7  ;;  %3271 = vadd.xlane.f32.xlu0 %v3270_v57 }
0x1b2c   : > { %3487 = vrot.lane.b32.xlu1 %v4515_v19, %s4581_s21 }
0x1b31   : > { %3489 = vrot.lane.b32.xlu0 %v4514_v62, %s4581_s21 }
0x1b9c   : > { %v3260_v63 = vpop.xlane.xlu1 %3259  ;;  %v3254_v0 = vpop.xlane.xlu0 %3253 }
0x1b9d   : > { %v3261_v12 = vmul.f32 0.03125, %v3254_v0  ;;  %v3263_v13 = vmul.f32 0.03125, %v3260_v63  ;;  %v3411_v0 = vrot.slane %v5403_v1, %v4759_v33 }
0x1b9f   : > { %v3279_v10 = vmul.f32 %v3261_v12, %v3261_v12  ;;  %v3281_v56 = vmul.f32 %v3263_v13, %v3263_v13  ;;  %v3288_v47 = vsub.f32 %v5362_v32, %v3261_v12  ;;  %v3290_v34 = vsub.f32 %v5370_v60, %v3263_v13 }
0x1ba0   : > { %v3269_v24 = vpop.xlane.xlu1 %3268  ;;  %v3257_v5 = vpop.xlane.xlu0 %3256 }
0x1ba1   : > { %v3276_v25 = vmul.f32 0.03125, %v3269_v24  ;;  %v3262_v35 = vmul.f32 0.03125, %v3257_v5 }
0x1ba3   : > { %v3282_v49 = vsub.f32 %v3276_v25, %v3279_v10  ;;  %v3280_v11 = vmul.f32 %v3262_v35, %v3262_v35  ;;  %v3289_v52 = vsub.f32 %v5366_v45, %v3262_v35 }
0x1ba4   : > { %v3275_v2 = vpop.xlane.xlu1 %3274  ;;  %v3272_v29 = vpop.xlane.xlu0 %3271 }
0x1ba5   : > { %v3285_v55 = vmax.f32 %v3282_v49, 0.0  ;;  %v3278_v4 = vmul.f32 0.03125, %v3275_v2  ;;  %v3277_v27 = vmul.f32 0.03125, %v3272_v29 }
0x1ba7   : > { %v3291_v20 = vadd.f32 1e-05, %v3285_v55  ;;  %v3284_v39 = vsub.f32 %v3278_v4, %v3281_v56  ;;  %v3283_v38 = vsub.f32 %v3277_v27, %v3280_v11  ;;  %v3486_v11 = vrot.slane %v5403_v1, %v4789_v16 }
0x1ba8   : > { %v3490_v6 = vpop.permute.xlu0 %3489  ;;  %v3488_v45 = vpop.permute.xlu1 %3487 }
0x1ba9   : > { %4516 = vrsqrt.f32 %v3291_v20  ;;  %v3287_v15 = vmax.f32 %v3284_v39, 0.0  ;;  %v3286_v14 = vmax.f32 %v3283_v38, 0.0  ;;  %4277 = vmatprep.subr.bf16.mxu0 %v3490_v6 }
0x1bab   : > { %v3293_v31 = vadd.f32 1e-05, %v3287_v15  ;;  %v3292_v43 = vadd.f32 1e-05, %v3286_v14 }
0x1bad   : > { %4518 = vrsqrt.f32 %v3293_v31 }
0x1bae   : > { %4520 = vrsqrt.f32 %v3292_v43 }
0x1bb6   : > { %v4517_v30 = vpop.eup %4516 }
0x1bb7   : > { %v3297_v42 = vmul.f32 %v4517_v30, %v3288_v47 }
0x1bb9   : > { %v3304_v3 = vmul.f32 %v3303_v9, %v3297_v42 }
0x1bba   : > { %v4519_v8 = vpop.eup %4518 }
0x1bbb   : > { %v4521_v53 = vpop.eup %4520  ;;  %v3299_v26 = vmul.f32 %v4519_v8, %v3290_v34  ;;  %v3311_v32 = vadd.f32 %v3310_v23, %v3304_v3 }
0x1bbc   : > { %v3298_v37 = vmul.f32 %v4521_v53, %v3289_v52 }
0x1bbd   : > { %v3306_v40 = vmul.f32 %v3303_v9, %v3299_v26 }
0x1bbe   : > { %v3305_v41 = vmul.f32 %v3303_v9, %v3298_v37 }
0x1bbf   : > { %v3313_v17 = vadd.f32 %v3310_v23, %v3306_v40 }
0x1bc0   : > { %v3312_v44 = vadd.f32 %v3310_v23, %v3305_v41 }
0x1bc1   : > { %v3315_v36 = vpack.c.bf16 %v3313_v17, %v3313_v17 }
0x1bc2   : > { %v3314_v46 = vpack.c.bf16 %v3312_v44, %v3311_v32 }
0x1bc4   : > { %4265 = vmatprep.mubr.msk.bf16.mxu0 %vm518_vm2, %v3314_v46 }
0x1bc5   : > { %4266 = vmatmul.mubr.msk.bf16.vlgmr.msra.gmra.mxu0 %vm518_vm2, %v3315_v36 }
0x1bc6   : > { %4278 = vmatpush3.bf16.msra.mxu0 %v3490_v6 }
0x1bc7   : > { %4279 = vmatprep.subr.bf16.mxu0 %v3488_v45 }
0x1bca   : > { %4280 = vmatpush3.bf16.msra.mxu0 %v3488_v45 }
0x1c85   : > { %v4267_v60 = vpop.f32.mrf.mxu0 }
0x1c86   : > { %v3381_v18 = vadd.f32 %v4267_v60, %v3319_v21 }
0x1c87   : > { %v3372_v48 = vpop.f32.mrf.mxu0 }
0x1c88   : > { %v3373_v50 = vadd.f32 %v3372_v48, %v3319_v21  ;;  %3393 = vrot.lane.b32.xlu0 %v3381_v18, %s4581_s21  ;;  %v3405_v58 = vmax.f32 %v3381_v18, 0.0 }
0x1c89   : > { %v4268_v51 = vpop.f32.mrf.mxu0 }
0x1c8a   : > { %3389 = vrot.lane.b32.xlu1 %v3373_v50, %s4581_s21  ;;  %v3403_v7 = vmax.f32 %v3373_v50, 0.0  ;;  %v3407_v28 = vpack.c.bf16 %v3405_v58, %v3405_v58 }
0x1c8b   : > { %v3375_v54 = vpop.f32.mrf.mxu0 }
0x1c8c   : > { %v3376_v59 = vadd.f32 %v3375_v54, %v3319_v21 }
0x1c8e   : > { %3391 = vrot.lane.b32.xlu1 %v3376_v59, %s4581_s21  ;;  %v3404_v57 = vmax.f32 %v3376_v59, 0.0 }
0x1c90   : > { %v3406_v22 = vpack.c.bf16 %v3404_v57, %v3403_v7 }
0x1c92   : > { %4273 = vmatprep.mubr.msk.bf16.mxu1 %vm518_vm2, %v3406_v22 }
0x1c93   : > { %4274 = vmatmul.mubr.msk.bf16.vlgmr.msra.gmra.mxu1 %vm518_vm2, %v3407_v28 }
0x1cfa   : > { %v3394_v61 = vpop.permute.xlu0 %3393 }
0x1cfb   : > { %3402 = vst.msk [vmem:[%s4694_s24 + $0x10] sm:$0xf] %vm3401_vm11, %v3394_v61 }
0x1cfc   : > { %v3390_v62 = vpop.permute.xlu1 %3389 }
0x1cfd   : > { %3399 = vst.msk [vmem:[%s4694_s24] sm:$0xff] %vm3398_vm12, %v3390_v62 }
0x1d00   : > { %v3392_v63 = vpop.permute.xlu1 %3391 }
0x1d01   : > { %3400 = vst.msk [vmem:[%s4694_s24 + $0x8] sm:$0xff] %vm3398_vm12, %v3392_v63 }
0x1d53   : > { %v4275_v12 = vpop.f32.mrf.mxu1 }
0x1d54   : > { %v3473_v24 = vadd.f32 %v4275_v12, %v3411_v0 }
0x1d55   : > { %v3464_v13 = vpop.f32.mrf.mxu1 }
0x1d56   : > { %v3465_v10 = vadd.f32 %v3464_v13, %v3411_v0  ;;  %v3480_v49 = vmax.f32 %v3473_v24, 0.0 }
0x1d57   : > { %v4276_v5 = vpop.f32.mrf.mxu1 }
0x1d58   : > { %v3478_v56 = vmax.f32 %v3465_v10, 0.0  ;;  %v3482_v55 = vpack.c.bf16 %v3480_v49, %v3480_v49 }
0x1d59   : > { %v3467_v25 = vpop.f32.mrf.mxu1 }
0x1d5a   : > { %v3468_v35 = vadd.f32 %v3467_v25, %v3411_v0 }
0x1d5c   : > { %v3479_v2 = vmax.f32 %v3468_v35, 0.0 }
0x1d5e   : > { %v3481_v29 = vpack.c.bf16 %v3479_v2, %v3478_v56 }
0x1d60   : > { %4281 = vmatprep.mubr.msk.bf16.mxu0 %vm518_vm2, %v3481_v29 }
0x1d61   : > { %4282 = vmatmul.mubr.msk.bf16.vlgmr.msra.gmra.mxu0 %vm518_vm2, %v3482_v55 }
0x1e21   : > { %v4283_v33 = vpop.f32.mrf.mxu0 }
0x1e22   : > { %v3542_v4 = vadd.f32 %v4283_v33, %v3486_v11 }
0x1e23   : > { %v3533_v27 = vpop.f32.mrf.mxu0 }
0x1e24   : > { %v3817_v20 = vmul.f32 -1.442695, %v3542_v4  ;;  %v3534_v39 = vadd.f32 %v3533_v27, %v3486_v11 }
0x1e25   : > { %v4284_v38 = vpop.f32.mrf.mxu0 }
0x1e26   : > { %4522 = vpow2.f32 %v3817_v20  ;;  %v3815_v15 = vmul.f32 -1.442695, %v3534_v39 }
0x1e27   : > { %v3536_v14 = vpop.f32.mrf.mxu0 }
0x1e28   : > { %4524 = vpow2.f32 %v3815_v15  ;;  %v3537_v31 = vadd.f32 %v3536_v14, %v3486_v11 }
0x1e2a   : > { %v3816_v43 = vmul.f32 -1.442695, %v3537_v31 }
0x1e2c   : > { %4526 = vpow2.f32 %v3816_v43 }
0x1e33   : > { %v4523_v30 = vpop.eup %4522 }
0x1e34   : > { %v3558_v47 = vadd.f32 1.0, %v4523_v30 }
0x1e35   : > { %v4525_v42 = vpop.eup %4524 }
0x1e36   : > { %4528 = vrcp.f32 %v3558_v47  ;;  %v3556_v16 = vadd.f32 1.0, %v4525_v42 }
0x1e38   : > { %4530 = vrcp.f32 %v3556_v16 }
0x1e39   : > { %v4527_v1 = vpop.eup %4526 }
0x1e3a   : > { %v3557_v9 = vadd.f32 1.0, %v4527_v1 }
0x1e3c   : > { %4532 = vrcp.f32 %v3557_v9 }
0x1e43   : > { %v4529_v34 = vpop.eup %4528 }
0x1e44   : > { %3567 = vst.msk [vmem:[%s4699_s26 + $0x10] sm:$0xf] %vm3401_vm11, %v4529_v34 }
0x1e45   : > { %v4531_v8 = vpop.eup %4530 }
0x1e46   : > { %3565 = vst.msk [vmem:[%s4699_s26] sm:$0xff] %vm3398_vm12, %v4531_v8 }
0x1e49   : > { %v4533_v52 = vpop.eup %4532 }
0x1e4a   : > { %3566 = vst.msk [vmem:[%s4699_s26 + $0x8] sm:$0xff] %vm3398_vm12, %v4533_v52 }
0x1e4b PF: > { %s21_s17 = sadd.s32 1, %s4572_s17   ;;  %s5477_s13 = sld [smem:[#allocation3_spill]] }
0x1e4c   : > { %p18_p9 = scmp.ge.s32.totalorder %s21_s17, 6   ;;  %s5478_s14 = sld [smem:[#allocation4_spill]] }
0x1e4d   : > { %s5479_s15 = sld [smem:[#allocation5_spill]] }
0x1e4e   : > { %s5480_s16 = sld [smem:[#allocation6_spill]]  ;;  %20 = sbr.rel (!%p18_p9) target bundleno = 3 (0x3), region = 115 }

</bundles_post_ra>
